<compile_context>
chip_gen: v7x
topology: tpu7x:2x2x1
jax: 0.10.0
libtpu: 0.0.40
codegen_flags: <defaults>
</compile_context>

<pallas_src>
import math
from functools import lru_cache

import numpy as np
import jax
import jax.numpy as jnp
from jax.experimental import pallas as pl
from jax.experimental.pallas import tpu as pltpu

# ----------------------------------------------------------------------------
# Configuration
# ----------------------------------------------------------------------------
H = 8                        # multiplicity of every hidden irrep slot
HIDDEN_LS = (0, 1, 2, 0)     # l of each hidden irrep slot
OUT_LS = (0, 2)              # output irreps: 1x0e + 1x2e
D_IN = H * sum(2 * l + 1 for l in HIDDEN_LS)        # 80
D_OUT = sum(2 * l + 1 for l in OUT_LS)              # 6
D_OUT_PAD = 8

# The 'uvu' instruction list from the PyTorch module (tp1 == tp2 == tp3).
TP_INSTRUCTIONS = [(0, 0, 0), (0, 1, 1), (0, 2, 2), (0, 3, 3),
                   (1, 0, 1), (1, 1, 0), (1, 1, 1), (1, 1, 3),
                   (2, 0, 2), (2, 1, 2), (2, 2, 0), (2, 2, 1),
                   (2, 2, 3), (2, 3, 2)]

# ----------------------------------------------------------------------------
# Clebsch-Gordan tensors (Cartesian construction, Frobenius-normalized)
# ----------------------------------------------------------------------------
def _sym_traceless_basis():
    ex, ey, ez = np.eye(3)

    def sym(a, b):
        return 0.5 * (np.outer(a, b) + np.outer(b, a))

    return np.stack([
        math.sqrt(2.0) * sym(ex, ey),
        math.sqrt(2.0) * sym(ey, ez),
        math.sqrt(2.0) * sym(ex, ez),
        (np.outer(ex, ex) - np.outer(ey, ey)) / math.sqrt(2.0),
        (2 * np.outer(ez, ez) - np.outer(ex, ex) - np.outer(ey, ey)) / math.sqrt(6.0),
    ])


_S2 = _sym_traceless_basis()
_EPS = np.zeros((3, 3, 3))
for _a, _b, _c, _s in [(0, 1, 2, 1), (1, 2, 0, 1), (2, 0, 1, 1),
                       (0, 2, 1, -1), (2, 1, 0, -1), (1, 0, 2, -1)]:
    _EPS[_a, _b, _c] = _s


def _canonical_invariant(ls_sorted):
    if ls_sorted == (0, 0, 0):
        return np.ones((1, 1, 1))
    if ls_sorted[0] == 0:                      # (0, l, l)
        d = 2 * ls_sorted[1] + 1
        return np.eye(d).reshape(1, d, d)
    if ls_sorted == (1, 1, 1):
        return _EPS.copy()
    if ls_sorted == (1, 1, 2):                 # K[i,j,a] = (S_a)_{ij}
        return np.transpose(_S2, (1, 2, 0))
    if ls_sorted == (1, 2, 2):                 # K[i,a,b] = eps_ipq (S_a)_pr (S_b)_rq
        return np.einsum('ipq,apr,brq->iab', _EPS, _S2, _S2)
    if ls_sorted == (2, 2, 2):                 # K[a,b,c] = tr(S_a S_b S_c)
        return np.einsum('aij,bjk,cki->abc', _S2, _S2, _S2)
    raise ValueError(f"unsupported irrep triple {ls_sorted}")


@lru_cache(maxsize=None)
def clebsch_gordan(l1, l2, l3):
    ls = (l1, l2, l3)
    order = tuple(sorted(ls))
    K = _canonical_invariant(order)
    used = [False] * 3
    perm = []
    for l in ls:
        for q in range(3):
            if not used[q] and order[q] == l:
                used[q] = True
                perm.append(q)
                break
    C = np.transpose(K, axes=perm)
    n = np.linalg.norm(C)
    assert n > 1e-8, ls
    return C / n


@lru_cache(maxsize=None)
def cg_terms(l1, l2, l3):
    """Returns (scale, terms) where terms = (((i,j,k), c), ...) and the full
    CG value is scale * c.  When all nonzeros share a magnitude, that magnitude
    is factored into `scale` so most in-kernel multipliers become +/-1 (the
    scale itself is folded into the packed weights)."""
    C = clebsch_gordan(l1, l2, l3)
    nz = [(idx, float(v)) for idx, v in np.ndenumerate(C) if abs(v) > 1e-10]
    mags = np.array([abs(v) for _, v in nz])
    scale = float(mags[0]) if np.allclose(mags, mags[0], rtol=1e-6) else 1.0
    terms = []
    for idx, v in nz:
        c = v / scale
        if abs(c - 1.0) < 1e-9:
            c = 1.0
        elif abs(c + 1.0) < 1e-9:
            c = -1.0
        terms.append((idx, c))
    return scale, tuple(terms)


# ----------------------------------------------------------------------------
# Irrep bookkeeping
# ----------------------------------------------------------------------------
def _block_offsets(ls, mult):
    offs, o = [], 0
    for l in ls:
        offs.append(o)
        o += mult * (2 * l + 1)
    return offs, o


_H_OFFS, _ = _block_offsets(HIDDEN_LS, H)
SCALAR_SLOTS = [i for i, l in enumerate(HIDDEN_LS) if l == 0]     # [0, 3]
VEC_SLOT = HIDDEN_LS.index(1)
TEN_SLOT = HIDDEN_LS.index(2)


def _fc_paths():
    paths = []
    for io, lo in enumerate(OUT_LS):
        for i1, l1 in enumerate(HIDDEN_LS):
            for i2, l2 in enumerate(HIDDEN_LS):
                if abs(l1 - l2) <= lo <= l1 + l2:
                    paths.append((i1, i2, io))
    return paths


FC_PATHS = _fc_paths()                       # 14 paths (hidden x hidden -> 0e+2e)


def _fan(instrs, per_path):
    fan = {}
    for (_, _, io) in instrs:
        fan[io] = fan.get(io, 0) + per_path
    return fan


_UVU_FAN = _fan(TP_INSTRUCTIONS, H)
_FC_FAN = _fan(FC_PATHS, H * H)


def _rhs_row_offsets(instrs):
    """Row layout of the fused weighted-right-operand matmul result: for each
    path p, a block of (2*l2+1)*H rows (one [H, N] slab per m-component)."""
    offs, o = [], 0
    for (_, i2, _) in instrs:
        offs.append(o)
        o += (2 * HIDDEN_LS[i2] + 1) * H
    return offs, o


UVU_ROW_OFF, UVU_ROWS = _rhs_row_offsets(TP_INSTRUCTIONS)   # 320 rows
FC_ROW_OFF, FC_ROWS = _rhs_row_offsets(FC_PATHS)            # 320 rows


# ----------------------------------------------------------------------------
# Parameters (logical, as in the previous version) and wrapper-side packing
# ----------------------------------------------------------------------------
def init_params(key):
    ks = jax.random.split(key, 6)
    return dict(
        lw_s=jax.random.normal(ks[0], (13, 2 * H, 2 * H), jnp.float32),
        lw_v=jax.random.normal(ks[1], (13, H, H), jnp.float32),
        lw_t=jax.random.normal(ks[2], (13, H, H), jnp.float32),
        lb=0.1 * jax.random.normal(ks[3], (13, 2 * H, 1), jnp.float32),
        tpw=jax.random.normal(ks[4], (3, len(TP_INSTRUCTIONS), H, H), jnp.float32),
        fcw=jax.random.normal(ks[5], (len(FC_PATHS), H, H), jnp.float32),
    )


def pack_params(params):
    """Fold normalization constants into the weights and pack every layer into
    a single (bf16) matrix so the kernel issues one MXU matmul per layer."""
    lw_s, lw_v, lw_t, lb = params['lw_s'], params['lw_v'], params['lw_t'], params['lb']
    tpw, fcw = params['tpw'], params['fcw']

    s_scale = 1.0 / math.sqrt(2 * H)
    vt_scale = 1.0 / math.sqrt(H)
    o0 = _H_OFFS[SCALAR_SLOTS[0]]
    o3 = _H_OFFS[SCALAR_SLOTS[1]]
    ov = _H_OFFS[VEC_SLOT]
    ot = _H_OFFS[TEN_SLOT]

    def lin_matrix(idx):
        W = jnp.zeros((D_IN, D_IN), jnp.float32)
        ss = lw_s[idx] * s_scale                                   # [2H, 2H]
        W = W.at[o0:o0 + H, o0:o0 + H].set(ss[:H, :H])
        W = W.at[o0:o0 + H, o3:o3 + H].set(ss[:H, H:])
        W = W.at[o3:o3 + H, o0:o0 + H].set(ss[H:, :H])
        W = W.at[o3:o3 + H, o3:o3 + H].set(ss[H:, H:])
        wv = lw_v[idx] * vt_scale
        for m in range(3):
            W = W.at[ov + m * H:ov + (m + 1) * H, ov + m * H:ov + (m + 1) * H].set(wv)
        wt = lw_t[idx] * vt_scale
        for m in range(5):
            W = W.at[ot + m * H:ot + (m + 1) * H, ot + m * H:ot + (m + 1) * H].set(wt)
        return W

    def lin_bias(idx):
        b = jnp.zeros((D_IN, 1), jnp.float32)
        b = b.at[o0:o0 + H].set(lb[idx, :H])
        b = b.at[o3:o3 + H].set(lb[idx, H:])
        return b

    # lin1..lin5 as single [80,80] matmuls; split heads stacked into [160,80].
    w_lin = jnp.stack([lin_matrix(i) for i in range(5)]).astype(jnp.bfloat16)
    b_lin = jnp.stack([lin_bias(i) for i in range(5)])
    w_pair = jnp.stack([jnp.concatenate([lin_matrix(5 + 2 * j), lin_matrix(6 + 2 * j)],
                                        axis=0) for j in range(4)]).astype(jnp.bfloat16)
    b_pair = jnp.stack([jnp.concatenate([lin_bias(5 + 2 * j), lin_bias(6 + 2 * j)],
                                        axis=0) for j in range(4)])

    def rhs_matrix(w_paths, instrs, row_offs, total_rows, out_ls, fan):
        W = jnp.zeros((total_rows, D_IN), jnp.float32)
        for p, (i1, i2, io) in enumerate(instrs):
            l1, l2, lo = HIDDEN_LS[i1], HIDDEN_LS[i2], out_ls[io]
            scale, _ = cg_terms(l1, l2, lo)
            wp = w_paths[p] * (scale / math.sqrt(fan[io]))         # fold alpha + CG scale
            d2 = 2 * l2 + 1
            coff, roff = _H_OFFS[i2], row_offs[p]
            for m in range(d2):
                W = W.at[roff + m * H:roff + (m + 1) * H,
                         coff + m * H:coff + (m + 1) * H].set(wp)
        return W

    w_tp = jnp.stack([rhs_matrix(tpw[t], TP_INSTRUCTIONS, UVU_ROW_OFF, UVU_ROWS,
                                 HIDDEN_LS, _UVU_FAN)
                      for t in range(3)]).astype(jnp.bfloat16)
    w_fc = rhs_matrix(fcw, FC_PATHS, FC_ROW_OFF, FC_ROWS,
                      OUT_LS, _FC_FAN).astype(jnp.bfloat16)

    return dict(w_lin=w_lin, b_lin=b_lin, w_pair=w_pair, b_pair=b_pair,
                w_tp=w_tp, w_fc=w_fc)


# ----------------------------------------------------------------------------
# In-kernel building blocks (feature = one [80, TN] f32 array)
# ----------------------------------------------------------------------------
def _accum(cur, a, b, c):
    if c == 1.0:
        t = a * b
        return t if cur is None else cur + t
    if c == -1.0:
        t = a * b
        return -t if cur is None else cur - t
    t = c * (a * b)
    return t if cur is None else cur + t


def _norm_act(h):
    """e3nn NormActivation(silu): out = silu(||x_u||)/||x_u|| * x_u = sigmoid(||x_u||)*x_u."""
    parts = []
    for slot, l in enumerate(HIDDEN_LS):
        off = _H_OFFS[slot]
        d = 2 * l + 1
        comps = [h[off + m * H: off + (m + 1) * H, :] for m in range(d)]
        if d == 1:
            norm = jnp.abs(comps[0])
        else:
            sq = comps[0] * comps[0]
            for c in comps[1:]:
                sq = sq + c * c
            norm = jnp.sqrt(sq)
        f = jax.nn.sigmoid(norm)          # silu(n)/n == sigmoid(n); safe at n == 0
        parts.extend([c * f for c in comps])
    return jnp.concatenate(parts, axis=0)


def _tp_uvu(ha, hb, w_rhs, layer):
    """o3.TensorProduct ('uvu'); the per-path weights, fan and uniform-CG factors
    are pre-folded into w_rhs, so only one matmul + CG accumulation remain."""
    x2 = jnp.dot(w_rhs, hb.astype(jnp.bfloat16),
                 preferred_element_type=jnp.float32)               # [320, TN]
    out = [[None] * (2 * l + 1) for l in HIDDEN_LS]
    for p, (i1, i2, io) in enumerate(TP_INSTRUCTIONS):
        roff, aoff = UVU_ROW_OFF[p], _H_OFFS[i1]
        _, terms = cg_terms(HIDDEN_LS[i1], HIDDEN_LS[i2], HIDDEN_LS[io])
        for (i, j, k), c in terms:
            a = ha[aoff + i * H: aoff + (i + 1) * H, :]
            b = x2[roff + j * H: roff + (j + 1) * H, :]
            out[io][k] = _accum(out[io][k], a, b, c)
    rows = []
    for slot, l in enumerate(HIDDEN_LS):
        rows.extend(out[slot])
    return jnp.concatenate(rows, axis=0)                           # [80, TN]


def _tp_fc(ha, hb, w_rhs):
    """o3.FullyConnectedTensorProduct(hidden, hidden, 1x0e+1x2e): accumulate
    [H,TN] per output component, reduce over the mult axis once at the end."""
    x2 = jnp.dot(w_rhs, hb.astype(jnp.bfloat16),
                 preferred_element_type=jnp.float32)               # [320, TN]
    acc = [[None] * (2 * l + 1) for l in OUT_LS]
    for p, (i1, i2, io) in enumerate(FC_PATHS):
        roff, aoff = FC_ROW_OFF[p], _H_OFFS[i1]
        _, terms = cg_terms(HIDDEN_LS[i1], HIDDEN_LS[i2], OUT_LS[io])
        for (i, j, k), c in terms:
            a = ha[aoff + i * H: aoff + (i + 1) * H, :]
            b = x2[roff + j * H: roff + (j + 1) * H, :]
            acc[io][k] = _accum(acc[io][k], a, b, c)
    return [jnp.sum(acc[io][k], axis=0, keepdims=True)             # 6 x [1, TN]
            for io, l in enumerate(OUT_LS) for k in range(2 * l + 1)]


# ----------------------------------------------------------------------------
# The fused Pallas kernel: whole forward pass for a tile of TN nodes.
# ----------------------------------------------------------------------------
def _predictor_kernel(x_ref, wlin_ref, blin_ref, wpair_ref, bpair_ref,
                      wtp_ref, wfc_ref, out_ref):
    tn = x_ref.shape[1]
    h = x_ref[...]                                                 # [80, TN] f32

    def lin(i, v):                                                 # one [80,80] matmul
        return jnp.dot(wlin_ref[i], v.astype(jnp.bfloat16),
                       preferred_element_type=jnp.float32) + blin_ref[i]

    def split(j, v):                                               # stacked [160,80] matmul
        y = jnp.dot(wpair_ref[j], v.astype(jnp.bfloat16),
                    preferred_element_type=jnp.float32) + bpair_ref[j]
        return y[:D_IN, :], y[D_IN:, :]

    # TODO(synk): SplitModule is not defined in the provided source; modeled as
    # two parallel o3.Linear(hidden, hidden, biases=True) heads producing (ha, hb).
    h = lin(0, h)                                 # lin1
    h = _norm_act(lin(1, h))                      # act(lin2)
    ha, hb = split(0, h)                          # split1
    ht = _tp_uvu(ha, hb, wtp_ref[0], 0)           # tp1
    h = _norm_act(lin(2, ht))                     # act(lin3)
    ha, hb = split(1, h)                          # split2
    ht = _tp_uvu(ha, hb, wtp_ref[1], 1)           # tp2
    h = _norm_act(lin(3, ht))                     # act(lin4)
    ha, hb = split(2, h)                          # split3
    ht = _tp_uvu(ha, hb, wtp_ref[2], 2)           # tp3
    h = lin(4, ht)                                # lin5
    ha, hb = split(3, h)                          # split4
    rows = _tp_fc(ha, hb, wfc_ref[...])           # tp4 -> 6 x [1, TN]

    rows.append(jnp.zeros((D_OUT_PAD - D_OUT, tn), jnp.float32))
    out_ref[...] = jnp.concatenate(rows, axis=0)


# ----------------------------------------------------------------------------
# Wrapper
# ----------------------------------------------------------------------------
def _full_spec(shape):
    rank = len(shape)
    return pl.BlockSpec(shape, lambda i, _r=rank: (0,) * _r)


def deep_rst_predictor_act(x, params, *, tile_n=256):
    D, N = x.shape
    assert D == D_IN and N % tile_n == 0
    packed = pack_params(params)      # tiny; in production pack once and reuse
    grid = (N // tile_n,)

    out = pl.pallas_call(
        _predictor_kernel,
        out_shape=jax.ShapeDtypeStruct((D_OUT_PAD, N), jnp.float32),
        grid_spec=pltpu.PrefetchScalarGridSpec(
            num_scalar_prefetch=0,
            grid=grid,
            in_specs=[
                pl.BlockSpec((D_IN, tile_n), lambda i: (0, i)),
                _full_spec(packed['w_lin'].shape),
                _full_spec(packed['b_lin'].shape),
                _full_spec(packed['w_pair'].shape),
                _full_spec(packed['b_pair'].shape),
                _full_spec(packed['w_tp'].shape),
                _full_spec(packed['w_fc'].shape),
            ],
            out_specs=pl.BlockSpec((D_OUT_PAD, tile_n), lambda i: (0, i)),
        ),
        compiler_params=pltpu.CompilerParams(dimension_semantics=("parallel",)),
    )(x, packed['w_lin'], packed['b_lin'], packed['w_pair'], packed['b_pair'],
      packed['w_tp'], packed['w_fc'])

    return out[:D_OUT]            # [6, N]: row 0 = 0e, rows 1..5 = 2e components


# ----------------------------------------------------------------------------
if __name__ == "__main__":
    key = jax.random.PRNGKey(0)
    kx, kp = jax.random.split(key)
    N = 512                                               # 2 grid steps at tile_n=256
    x = jax.random.normal(kx, (D_IN, N), jnp.float32)     # layout: [D_IN=80, N]
    params = init_params(kp)

    y = deep_rst_predictor_act(x, params, tile_n=256)
    y = jax.block_until_ready(y)

    assert y.shape == (D_OUT, N)
    assert bool(jnp.all(jnp.isfinite(y)))
    print("KERNEL_OK")
</pallas_src>

<mosaic_0001>
module attributes {stable_mosaic.version = 11 : i64} {
  func.func @_predictor_kernel(%arg0: i32, %arg1: memref<80x256xf32, #tpu.memory_space<vmem>>, %arg2: memref<5x80x80xbf16, #tpu.memory_space<vmem>>, %arg3: memref<5x80x1xf32, #tpu.memory_space<vmem>>, %arg4: memref<4x160x80xbf16, #tpu.memory_space<vmem>>, %arg5: memref<4x160x1xf32, #tpu.memory_space<vmem>>, %arg6: memref<3x320x80xbf16, #tpu.memory_space<vmem>>, %arg7: memref<320x80xbf16, #tpu.memory_space<vmem>>, %arg8: memref<8x256xf32, #tpu.memory_space<vmem>>) attributes {dimension_semantics = [#tpu.dimension_semantics<parallel>], iteration_bounds = array<i64: 2>, scalar_prefetch = 0 : i64, scratch_operands = 0 : i64, tpu.core_type = #tpu.core_type<tc>, window_params = [{transform_indices = @transform_0, window_bounds = array<i64: 80, 256>}, {pipeline_mode = #tpu.pipeline_mode<synchronous>, transform_indices = @transform_1, window_bounds = array<i64: 5, 80, 80>}, {pipeline_mode = #tpu.pipeline_mode<synchronous>, transform_indices = @transform_2, window_bounds = array<i64: 5, 80, 1>}, {pipeline_mode = #tpu.pipeline_mode<synchronous>, transform_indices = @transform_3, window_bounds = array<i64: 4, 160, 80>}, {pipeline_mode = #tpu.pipeline_mode<synchronous>, transform_indices = @transform_4, window_bounds = array<i64: 4, 160, 1>}, {pipeline_mode = #tpu.pipeline_mode<synchronous>, transform_indices = @transform_5, window_bounds = array<i64: 3, 320, 80>}, {pipeline_mode = #tpu.pipeline_mode<synchronous>, transform_indices = @transform_6, window_bounds = array<i64: 320, 80>}, {transform_indices = @transform_7, window_bounds = array<i64: 8, 256>}]} {
    %c0 = arith.constant 0 : index
    %c0_0 = arith.constant 0 : index
    %0 = vector.load %arg1[%c0, %c0_0] : memref<80x256xf32, #tpu.memory_space<vmem>>, vector<80x256xf32>
    %c0_1 = arith.constant 0 : index
    %c0_2 = arith.constant 0 : index
    %c0_3 = arith.constant 0 : index
    %1 = vector.load %arg2[%c0_1, %c0_2, %c0_3] : memref<5x80x80xbf16, #tpu.memory_space<vmem>>, vector<1x80x80xbf16>
    %2 = vector.shape_cast %1 : vector<1x80x80xbf16> to vector<80x80xbf16>
    %3 = arith.truncf %0 : vector<80x256xf32> to vector<80x256xbf16>
    %cst = arith.constant dense<0.000000e+00> : vector<80x256xf32>
    %4 = tpu.matmul %2, %3, %cst {dimension_numbers = #tpu.dot_dimension_numbers<[1], [0], [0], [1], [0, 0, 1, 1], [], []>} : vector<80x80xbf16>, vector<80x256xbf16>, vector<80x256xf32> -> vector<80x256xf32>
    %c0_4 = arith.constant 0 : index
    %c0_5 = arith.constant 0 : index
    %c0_6 = arith.constant 0 : index
    %5 = vector.load %arg3[%c0_4, %c0_5, %c0_6] : memref<5x80x1xf32, #tpu.memory_space<vmem>>, vector<1x80x1xf32>
    %6 = vector.shape_cast %5 : vector<1x80x1xf32> to vector<80x1xf32>
    %7 = vector.broadcast %6 : vector<80x1xf32> to vector<80x256xf32>
    %8 = arith.addf %4, %7 : vector<80x256xf32>
    %c1 = arith.constant 1 : index
    %c0_7 = arith.constant 0 : index
    %c0_8 = arith.constant 0 : index
    %9 = vector.load %arg2[%c1, %c0_7, %c0_8] : memref<5x80x80xbf16, #tpu.memory_space<vmem>>, vector<1x80x80xbf16>
    %10 = vector.shape_cast %9 : vector<1x80x80xbf16> to vector<80x80xbf16>
    %11 = arith.truncf %8 : vector<80x256xf32> to vector<80x256xbf16>
    %cst_9 = arith.constant dense<0.000000e+00> : vector<80x256xf32>
    %12 = tpu.matmul %10, %11, %cst_9 {dimension_numbers = #tpu.dot_dimension_numbers<[1], [0], [0], [1], [0, 0, 1, 1], [], []>} : vector<80x80xbf16>, vector<80x256xbf16>, vector<80x256xf32> -> vector<80x256xf32>
    %c1_10 = arith.constant 1 : index
    %c0_11 = arith.constant 0 : index
    %c0_12 = arith.constant 0 : index
    %13 = vector.load %arg3[%c1_10, %c0_11, %c0_12] : memref<5x80x1xf32, #tpu.memory_space<vmem>>, vector<1x80x1xf32>
    %14 = vector.shape_cast %13 : vector<1x80x1xf32> to vector<80x1xf32>
    %15 = vector.broadcast %14 : vector<80x1xf32> to vector<80x256xf32>
    %16 = arith.addf %12, %15 : vector<80x256xf32>
    %17 = vector.extract_strided_slice %16 {offsets = [0, 0], sizes = [8, 256], strides = [1, 1]} : vector<80x256xf32> to vector<8x256xf32>
    %18 = math.absf %17 : vector<8x256xf32>
    %19 = arith.negf %18 : vector<8x256xf32>
    %20 = math.exp %19 : vector<8x256xf32>
    %cst_13 = arith.constant 1.000000e+00 : f32
    %21 = vector.broadcast %cst_13 : f32 to vector<8x256xf32>
    %22 = arith.addf %21, %20 : vector<8x256xf32>
    %23 = arith.divf %21, %22 : vector<8x256xf32>
    %24 = arith.mulf %17, %23 : vector<8x256xf32>
    %25 = vector.extract_strided_slice %16 {offsets = [8, 0], sizes = [8, 256], strides = [1, 1]} : vector<80x256xf32> to vector<8x256xf32>
    %26 = vector.extract_strided_slice %16 {offsets = [16, 0], sizes = [8, 256], strides = [1, 1]} : vector<80x256xf32> to vector<8x256xf32>
    %27 = vector.extract_strided_slice %16 {offsets = [24, 0], sizes = [8, 256], strides = [1, 1]} : vector<80x256xf32> to vector<8x256xf32>
    %28 = arith.mulf %25, %25 : vector<8x256xf32>
    %29 = arith.mulf %26, %26 : vector<8x256xf32>
    %30 = arith.addf %28, %29 : vector<8x256xf32>
    %31 = arith.mulf %27, %27 : vector<8x256xf32>
    %32 = arith.addf %30, %31 : vector<8x256xf32>
    %33 = math.sqrt %32 : vector<8x256xf32>
    %34 = arith.negf %33 : vector<8x256xf32>
    %35 = math.exp %34 : vector<8x256xf32>
    %cst_14 = arith.constant 1.000000e+00 : f32
    %36 = vector.broadcast %cst_14 : f32 to vector<8x256xf32>
    %37 = arith.addf %36, %35 : vector<8x256xf32>
    %38 = arith.divf %36, %37 : vector<8x256xf32>
    %39 = arith.mulf %25, %38 : vector<8x256xf32>
    %40 = arith.mulf %26, %38 : vector<8x256xf32>
    %41 = arith.mulf %27, %38 : vector<8x256xf32>
    %42 = vector.extract_strided_slice %16 {offsets = [32, 0], sizes = [8, 256], strides = [1, 1]} : vector<80x256xf32> to vector<8x256xf32>
    %43 = vector.extract_strided_slice %16 {offsets = [40, 0], sizes = [8, 256], strides = [1, 1]} : vector<80x256xf32> to vector<8x256xf32>
    %44 = vector.extract_strided_slice %16 {offsets = [48, 0], sizes = [8, 256], strides = [1, 1]} : vector<80x256xf32> to vector<8x256xf32>
    %45 = vector.extract_strided_slice %16 {offsets = [56, 0], sizes = [8, 256], strides = [1, 1]} : vector<80x256xf32> to vector<8x256xf32>
    %46 = vector.extract_strided_slice %16 {offsets = [64, 0], sizes = [8, 256], strides = [1, 1]} : vector<80x256xf32> to vector<8x256xf32>
    %47 = arith.mulf %42, %42 : vector<8x256xf32>
    %48 = arith.mulf %43, %43 : vector<8x256xf32>
    %49 = arith.addf %47, %48 : vector<8x256xf32>
    %50 = arith.mulf %44, %44 : vector<8x256xf32>
    %51 = arith.addf %49, %50 : vector<8x256xf32>
    %52 = arith.mulf %45, %45 : vector<8x256xf32>
    %53 = arith.addf %51, %52 : vector<8x256xf32>
    %54 = arith.mulf %46, %46 : vector<8x256xf32>
    %55 = arith.addf %53, %54 : vector<8x256xf32>
    %56 = math.sqrt %55 : vector<8x256xf32>
    %57 = arith.negf %56 : vector<8x256xf32>
    %58 = math.exp %57 : vector<8x256xf32>
    %cst_15 = arith.constant 1.000000e+00 : f32
    %59 = vector.broadcast %cst_15 : f32 to vector<8x256xf32>
    %60 = arith.addf %59, %58 : vector<8x256xf32>
    %61 = arith.divf %59, %60 : vector<8x256xf32>
    %62 = arith.mulf %42, %61 : vector<8x256xf32>
    %63 = arith.mulf %43, %61 : vector<8x256xf32>
    %64 = arith.mulf %44, %61 : vector<8x256xf32>
    %65 = arith.mulf %45, %61 : vector<8x256xf32>
    %66 = arith.mulf %46, %61 : vector<8x256xf32>
    %67 = vector.extract_strided_slice %16 {offsets = [72, 0], sizes = [8, 256], strides = [1, 1]} : vector<80x256xf32> to vector<8x256xf32>
    %68 = math.absf %67 : vector<8x256xf32>
    %69 = arith.negf %68 : vector<8x256xf32>
    %70 = math.exp %69 : vector<8x256xf32>
    %cst_16 = arith.constant 1.000000e+00 : f32
    %71 = vector.broadcast %cst_16 : f32 to vector<8x256xf32>
    %72 = arith.addf %71, %70 : vector<8x256xf32>
    %73 = arith.divf %71, %72 : vector<8x256xf32>
    %74 = arith.mulf %67, %73 : vector<8x256xf32>
    %75 = tpu.concatenate %24, %39, %40, %41, %62, %63, %64, %65, %66, %74 in 0 : vector<8x256xf32>, vector<8x256xf32>, vector<8x256xf32>, vector<8x256xf32>, vector<8x256xf32>, vector<8x256xf32>, vector<8x256xf32>, vector<8x256xf32>, vector<8x256xf32>, vector<8x256xf32> -> vector<80x256xf32>
    %c0_17 = arith.constant 0 : index
    %c0_18 = arith.constant 0 : index
    %c0_19 = arith.constant 0 : index
    %76 = vector.load %arg4[%c0_17, %c0_18, %c0_19] : memref<4x160x80xbf16, #tpu.memory_space<vmem>>, vector<1x160x80xbf16>
    %77 = vector.shape_cast %76 : vector<1x160x80xbf16> to vector<160x80xbf16>
    %78 = arith.truncf %75 : vector<80x256xf32> to vector<80x256xbf16>
    %cst_20 = arith.constant dense<0.000000e+00> : vector<160x256xf32>
    %79 = tpu.matmul %77, %78, %cst_20 {dimension_numbers = #tpu.dot_dimension_numbers<[1], [0], [0], [1], [0, 0, 1, 1], [], []>} : vector<160x80xbf16>, vector<80x256xbf16>, vector<160x256xf32> -> vector<160x256xf32>
    %c0_21 = arith.constant 0 : index
    %c0_22 = arith.constant 0 : index
    %c0_23 = arith.constant 0 : index
    %80 = vector.load %arg5[%c0_21, %c0_22, %c0_23] : memref<4x160x1xf32, #tpu.memory_space<vmem>>, vector<1x160x1xf32>
    %81 = vector.shape_cast %80 : vector<1x160x1xf32> to vector<160x1xf32>
    %82 = vector.broadcast %81 : vector<160x1xf32> to vector<160x256xf32>
    %83 = arith.addf %79, %82 : vector<160x256xf32>
    %84 = vector.extract_strided_slice %83 {offsets = [0, 0], sizes = [80, 256], strides = [1, 1]} : vector<160x256xf32> to vector<80x256xf32>
    %85 = vector.extract_strided_slice %83 {offsets = [80, 0], sizes = [80, 256], strides = [1, 1]} : vector<160x256xf32> to vector<80x256xf32>
    %c0_24 = arith.constant 0 : index
    %c0_25 = arith.constant 0 : index
    %c0_26 = arith.constant 0 : index
    %86 = vector.load %arg6[%c0_24, %c0_25, %c0_26] : memref<3x320x80xbf16, #tpu.memory_space<vmem>>, vector<1x320x80xbf16>
    %87 = vector.shape_cast %86 : vector<1x320x80xbf16> to vector<320x80xbf16>
    %88 = arith.truncf %85 : vector<80x256xf32> to vector<80x256xbf16>
    %cst_27 = arith.constant dense<0.000000e+00> : vector<320x256xf32>
    %89 = tpu.matmul %87, %88, %cst_27 {dimension_numbers = #tpu.dot_dimension_numbers<[1], [0], [0], [1], [0, 0, 1, 1], [], []>} : vector<320x80xbf16>, vector<80x256xbf16>, vector<320x256xf32> -> vector<320x256xf32>
    %90 = vector.extract_strided_slice %84 {offsets = [0, 0], sizes = [8, 256], strides = [1, 1]} : vector<80x256xf32> to vector<8x256xf32>
    %91 = vector.extract_strided_slice %89 {offsets = [0, 0], sizes = [8, 256], strides = [1, 1]} : vector<320x256xf32> to vector<8x256xf32>
    %92 = arith.mulf %90, %91 : vector<8x256xf32>
    %93 = vector.extract_strided_slice %84 {offsets = [0, 0], sizes = [8, 256], strides = [1, 1]} : vector<80x256xf32> to vector<8x256xf32>
    %94 = vector.extract_strided_slice %89 {offsets = [8, 0], sizes = [8, 256], strides = [1, 1]} : vector<320x256xf32> to vector<8x256xf32>
    %95 = arith.mulf %93, %94 : vector<8x256xf32>
    %96 = vector.extract_strided_slice %84 {offsets = [0, 0], sizes = [8, 256], strides = [1, 1]} : vector<80x256xf32> to vector<8x256xf32>
    %97 = vector.extract_strided_slice %89 {offsets = [16, 0], sizes = [8, 256], strides = [1, 1]} : vector<320x256xf32> to vector<8x256xf32>
    %98 = arith.mulf %96, %97 : vector<8x256xf32>
    %99 = vector.extract_strided_slice %84 {offsets = [0, 0], sizes = [8, 256], strides = [1, 1]} : vector<80x256xf32> to vector<8x256xf32>
    %100 = vector.extract_strided_slice %89 {offsets = [24, 0], sizes = [8, 256], strides = [1, 1]} : vector<320x256xf32> to vector<8x256xf32>
    %101 = arith.mulf %99, %100 : vector<8x256xf32>
    %102 = vector.extract_strided_slice %84 {offsets = [0, 0], sizes = [8, 256], strides = [1, 1]} : vector<80x256xf32> to vector<8x256xf32>
    %103 = vector.extract_strided_slice %89 {offsets = [32, 0], sizes = [8, 256], strides = [1, 1]} : vector<320x256xf32> to vector<8x256xf32>
    %104 = arith.mulf %102, %103 : vector<8x256xf32>
    %105 = vector.extract_strided_slice %84 {offsets = [0, 0], sizes = [8, 256], strides = [1, 1]} : vector<80x256xf32> to vector<8x256xf32>
    %106 = vector.extract_strided_slice %89 {offsets = [40, 0], sizes = [8, 256], strides = [1, 1]} : vector<320x256xf32> to vector<8x256xf32>
    %107 = arith.mulf %105, %106 : vector<8x256xf32>
    %108 = vector.extract_strided_slice %84 {offsets = [0, 0], sizes = [8, 256], strides = [1, 1]} : vector<80x256xf32> to vector<8x256xf32>
    %109 = vector.extract_strided_slice %89 {offsets = [48, 0], sizes = [8, 256], strides = [1, 1]} : vector<320x256xf32> to vector<8x256xf32>
    %110 = arith.mulf %108, %109 : vector<8x256xf32>
    %111 = vector.extract_strided_slice %84 {offsets = [0, 0], sizes = [8, 256], strides = [1, 1]} : vector<80x256xf32> to vector<8x256xf32>
    %112 = vector.extract_strided_slice %89 {offsets = [56, 0], sizes = [8, 256], strides = [1, 1]} : vector<320x256xf32> to vector<8x256xf32>
    %113 = arith.mulf %111, %112 : vector<8x256xf32>
    %114 = vector.extract_strided_slice %84 {offsets = [0, 0], sizes = [8, 256], strides = [1, 1]} : vector<80x256xf32> to vector<8x256xf32>
    %115 = vector.extract_strided_slice %89 {offsets = [64, 0], sizes = [8, 256], strides = [1, 1]} : vector<320x256xf32> to vector<8x256xf32>
    %116 = arith.mulf %114, %115 : vector<8x256xf32>
    %117 = vector.extract_strided_slice %84 {offsets = [0, 0], sizes = [8, 256], strides = [1, 1]} : vector<80x256xf32> to vector<8x256xf32>
    %118 = vector.extract_strided_slice %89 {offsets = [72, 0], sizes = [8, 256], strides = [1, 1]} : vector<320x256xf32> to vector<8x256xf32>
    %119 = arith.mulf %117, %118 : vector<8x256xf32>
    %120 = vector.extract_strided_slice %84 {offsets = [8, 0], sizes = [8, 256], strides = [1, 1]} : vector<80x256xf32> to vector<8x256xf32>
    %121 = vector.extract_strided_slice %89 {offsets = [80, 0], sizes = [8, 256], strides = [1, 1]} : vector<320x256xf32> to vector<8x256xf32>
    %122 = arith.mulf %120, %121 : vector<8x256xf32>
    %123 = arith.addf %95, %122 : vector<8x256xf32>
    %124 = vector.extract_strided_slice %84 {offsets = [16, 0], sizes = [8, 256], strides = [1, 1]} : vector<80x256xf32> to vector<8x256xf32>
    %125 = vector.extract_strided_slice %89 {offsets = [80, 0], sizes = [8, 256], strides = [1, 1]} : vector<320x256xf32> to vector<8x256xf32>
    %126 = arith.mulf %124, %125 : vector<8x256xf32>
    %127 = arith.addf %98, %126 : vector<8x256xf32>
    %128 = vector.extract_strided_slice %84 {offsets = [24, 0], sizes = [8, 256], strides = [1, 1]} : vector<80x256xf32> to vector<8x256xf32>
    %129 = vector.extract_strided_slice %89 {offsets = [80, 0], sizes = [8, 256], strides = [1, 1]} : vector<320x256xf32> to vector<8x256xf32>
    %130 = arith.mulf %128, %129 : vector<8x256xf32>
    %131 = arith.addf %101, %130 : vector<8x256xf32>
    %132 = vector.extract_strided_slice %84 {offsets = [8, 0], sizes = [8, 256], strides = [1, 1]} : vector<80x256xf32> to vector<8x256xf32>
    %133 = vector.extract_strided_slice %89 {offsets = [88, 0], sizes = [8, 256], strides = [1, 1]} : vector<320x256xf32> to vector<8x256xf32>
    %134 = arith.mulf %132, %133 : vector<8x256xf32>
    %135 = arith.addf %92, %134 : vector<8x256xf32>
    %136 = vector.extract_strided_slice %84 {offsets = [16, 0], sizes = [8, 256], strides = [1, 1]} : vector<80x256xf32> to vector<8x256xf32>
    %137 = vector.extract_strided_slice %89 {offsets = [96, 0], sizes = [8, 256], strides = [1, 1]} : vector<320x256xf32> to vector<8x256xf32>
    %138 = arith.mulf %136, %137 : vector<8x256xf32>
    %139 = arith.addf %135, %138 : vector<8x256xf32>
    %140 = vector.extract_strided_slice %84 {offsets = [24, 0], sizes = [8, 256], strides = [1, 1]} : vector<80x256xf32> to vector<8x256xf32>
    %141 = vector.extract_strided_slice %89 {offsets = [104, 0], sizes = [8, 256], strides = [1, 1]} : vector<320x256xf32> to vector<8x256xf32>
    %142 = arith.mulf %140, %141 : vector<8x256xf32>
    %143 = arith.addf %139, %142 : vector<8x256xf32>
    %144 = vector.extract_strided_slice %84 {offsets = [8, 0], sizes = [8, 256], strides = [1, 1]} : vector<80x256xf32> to vector<8x256xf32>
    %145 = vector.extract_strided_slice %89 {offsets = [120, 0], sizes = [8, 256], strides = [1, 1]} : vector<320x256xf32> to vector<8x256xf32>
    %146 = arith.mulf %144, %145 : vector<8x256xf32>
    %147 = arith.addf %131, %146 : vector<8x256xf32>
    %148 = vector.extract_strided_slice %84 {offsets = [8, 0], sizes = [8, 256], strides = [1, 1]} : vector<80x256xf32> to vector<8x256xf32>
    %149 = vector.extract_strided_slice %89 {offsets = [128, 0], sizes = [8, 256], strides = [1, 1]} : vector<320x256xf32> to vector<8x256xf32>
    %150 = arith.mulf %148, %149 : vector<8x256xf32>
    %151 = arith.subf %127, %150 : vector<8x256xf32>
    %152 = vector.extract_strided_slice %84 {offsets = [16, 0], sizes = [8, 256], strides = [1, 1]} : vector<80x256xf32> to vector<8x256xf32>
    %153 = vector.extract_strided_slice %89 {offsets = [112, 0], sizes = [8, 256], strides = [1, 1]} : vector<320x256xf32> to vector<8x256xf32>
    %154 = arith.mulf %152, %153 : vector<8x256xf32>
    %155 = arith.subf %147, %154 : vector<8x256xf32>
    %156 = vector.extract_strided_slice %84 {offsets = [16, 0], sizes = [8, 256], strides = [1, 1]} : vector<80x256xf32> to vector<8x256xf32>
    %157 = vector.extract_strided_slice %89 {offsets = [128, 0], sizes = [8, 256], strides = [1, 1]} : vector<320x256xf32> to vector<8x256xf32>
    %158 = arith.mulf %156, %157 : vector<8x256xf32>
    %159 = arith.addf %123, %158 : vector<8x256xf32>
    %160 = vector.extract_strided_slice %84 {offsets = [24, 0], sizes = [8, 256], strides = [1, 1]} : vector<80x256xf32> to vector<8x256xf32>
    %161 = vector.extract_strided_slice %89 {offsets = [112, 0], sizes = [8, 256], strides = [1, 1]} : vector<320x256xf32> to vector<8x256xf32>
    %162 = arith.mulf %160, %161 : vector<8x256xf32>
    %163 = arith.addf %151, %162 : vector<8x256xf32>
    %164 = vector.extract_strided_slice %84 {offsets = [24, 0], sizes = [8, 256], strides = [1, 1]} : vector<80x256xf32> to vector<8x256xf32>
    %165 = vector.extract_strided_slice %89 {offsets = [120, 0], sizes = [8, 256], strides = [1, 1]} : vector<320x256xf32> to vector<8x256xf32>
    %166 = arith.mulf %164, %165 : vector<8x256xf32>
    %167 = arith.subf %159, %166 : vector<8x256xf32>
    %168 = vector.extract_strided_slice %84 {offsets = [8, 0], sizes = [8, 256], strides = [1, 1]} : vector<80x256xf32> to vector<8x256xf32>
    %169 = vector.extract_strided_slice %89 {offsets = [136, 0], sizes = [8, 256], strides = [1, 1]} : vector<320x256xf32> to vector<8x256xf32>
    %170 = arith.mulf %168, %169 : vector<8x256xf32>
    %171 = arith.addf %119, %170 : vector<8x256xf32>
    %172 = vector.extract_strided_slice %84 {offsets = [16, 0], sizes = [8, 256], strides = [1, 1]} : vector<80x256xf32> to vector<8x256xf32>
    %173 = vector.extract_strided_slice %89 {offsets = [144, 0], sizes = [8, 256], strides = [1, 1]} : vector<320x256xf32> to vector<8x256xf32>
    %174 = arith.mulf %172, %173 : vector<8x256xf32>
    %175 = arith.addf %171, %174 : vector<8x256xf32>
    %176 = vector.extract_strided_slice %84 {offsets = [24, 0], sizes = [8, 256], strides = [1, 1]} : vector<80x256xf32> to vector<8x256xf32>
    %177 = vector.extract_strided_slice %89 {offsets = [152, 0], sizes = [8, 256], strides = [1, 1]} : vector<320x256xf32> to vector<8x256xf32>
    %178 = arith.mulf %176, %177 : vector<8x256xf32>
    %179 = arith.addf %175, %178 : vector<8x256xf32>
    %180 = vector.extract_strided_slice %84 {offsets = [32, 0], sizes = [8, 256], strides = [1, 1]} : vector<80x256xf32> to vector<8x256xf32>
    %181 = vector.extract_strided_slice %89 {offsets = [160, 0], sizes = [8, 256], strides = [1, 1]} : vector<320x256xf32> to vector<8x256xf32>
    %182 = arith.mulf %180, %181 : vector<8x256xf32>
    %183 = arith.addf %104, %182 : vector<8x256xf32>
    %184 = vector.extract_strided_slice %84 {offsets = [40, 0], sizes = [8, 256], strides = [1, 1]} : vector<80x256xf32> to vector<8x256xf32>
    %185 = vector.extract_strided_slice %89 {offsets = [160, 0], sizes = [8, 256], strides = [1, 1]} : vector<320x256xf32> to vector<8x256xf32>
    %186 = arith.mulf %184, %185 : vector<8x256xf32>
    %187 = arith.addf %107, %186 : vector<8x256xf32>
    %188 = vector.extract_strided_slice %84 {offsets = [48, 0], sizes = [8, 256], strides = [1, 1]} : vector<80x256xf32> to vector<8x256xf32>
    %189 = vector.extract_strided_slice %89 {offsets = [160, 0], sizes = [8, 256], strides = [1, 1]} : vector<320x256xf32> to vector<8x256xf32>
    %190 = arith.mulf %188, %189 : vector<8x256xf32>
    %191 = arith.addf %110, %190 : vector<8x256xf32>
    %192 = vector.extract_strided_slice %84 {offsets = [56, 0], sizes = [8, 256], strides = [1, 1]} : vector<80x256xf32> to vector<8x256xf32>
    %193 = vector.extract_strided_slice %89 {offsets = [160, 0], sizes = [8, 256], strides = [1, 1]} : vector<320x256xf32> to vector<8x256xf32>
    %194 = arith.mulf %192, %193 : vector<8x256xf32>
    %195 = arith.addf %113, %194 : vector<8x256xf32>
    %196 = vector.extract_strided_slice %84 {offsets = [64, 0], sizes = [8, 256], strides = [1, 1]} : vector<80x256xf32> to vector<8x256xf32>
    %197 = vector.extract_strided_slice %89 {offsets = [160, 0], sizes = [8, 256], strides = [1, 1]} : vector<320x256xf32> to vector<8x256xf32>
    %198 = arith.mulf %196, %197 : vector<8x256xf32>
    %199 = arith.addf %116, %198 : vector<8x256xf32>
    %200 = vector.extract_strided_slice %84 {offsets = [32, 0], sizes = [8, 256], strides = [1, 1]} : vector<80x256xf32> to vector<8x256xf32>
    %201 = vector.extract_strided_slice %89 {offsets = [168, 0], sizes = [8, 256], strides = [1, 1]} : vector<320x256xf32> to vector<8x256xf32>
    %202 = arith.mulf %200, %201 : vector<8x256xf32>
    %cst_28 = arith.constant 0.182574183 : f32
    %203 = vector.broadcast %cst_28 : f32 to vector<8x256xf32>
    %204 = arith.mulf %203, %202 : vector<8x256xf32>
    %205 = arith.addf %191, %204 : vector<8x256xf32>
    %206 = vector.extract_strided_slice %84 {offsets = [32, 0], sizes = [8, 256], strides = [1, 1]} : vector<80x256xf32> to vector<8x256xf32>
    %207 = vector.extract_strided_slice %89 {offsets = [176, 0], sizes = [8, 256], strides = [1, 1]} : vector<320x256xf32> to vector<8x256xf32>
    %208 = arith.mulf %206, %207 : vector<8x256xf32>
    %cst_29 = arith.constant -0.182574183 : f32
    %209 = vector.broadcast %cst_29 : f32 to vector<8x256xf32>
    %210 = arith.mulf %209, %208 : vector<8x256xf32>
    %211 = arith.addf %187, %210 : vector<8x256xf32>
    %212 = vector.extract_strided_slice %84 {offsets = [32, 0], sizes = [8, 256], strides = [1, 1]} : vector<80x256xf32> to vector<8x256xf32>
    %213 = vector.extract_strided_slice %89 {offsets = [184, 0], sizes = [8, 256], strides = [1, 1]} : vector<320x256xf32> to vector<8x256xf32>
    %214 = arith.mulf %212, %213 : vector<8x256xf32>
    %cst_30 = arith.constant -0.365148365 : f32
    %215 = vector.broadcast %cst_30 : f32 to vector<8x256xf32>
    %216 = arith.mulf %215, %214 : vector<8x256xf32>
    %217 = arith.addf %195, %216 : vector<8x256xf32>
    %218 = vector.extract_strided_slice %84 {offsets = [40, 0], sizes = [8, 256], strides = [1, 1]} : vector<80x256xf32> to vector<8x256xf32>
    %219 = vector.extract_strided_slice %89 {offsets = [168, 0], sizes = [8, 256], strides = [1, 1]} : vector<320x256xf32> to vector<8x256xf32>
    %220 = arith.mulf %218, %219 : vector<8x256xf32>
    %cst_31 = arith.constant 0.182574183 : f32
    %221 = vector.broadcast %cst_31 : f32 to vector<8x256xf32>
    %222 = arith.mulf %221, %220 : vector<8x256xf32>
    %223 = arith.addf %217, %222 : vector<8x256xf32>
    %224 = vector.extract_strided_slice %84 {offsets = [40, 0], sizes = [8, 256], strides = [1, 1]} : vector<80x256xf32> to vector<8x256xf32>
    %225 = vector.extract_strided_slice %89 {offsets = [168, 0], sizes = [8, 256], strides = [1, 1]} : vector<320x256xf32> to vector<8x256xf32>
    %226 = arith.mulf %224, %225 : vector<8x256xf32>
    %cst_32 = arith.constant 0.316227764 : f32
    %227 = vector.broadcast %cst_32 : f32 to vector<8x256xf32>
    %228 = arith.mulf %227, %226 : vector<8x256xf32>
    %229 = arith.addf %199, %228 : vector<8x256xf32>
    %230 = vector.extract_strided_slice %84 {offsets = [40, 0], sizes = [8, 256], strides = [1, 1]} : vector<80x256xf32> to vector<8x256xf32>
    %231 = vector.extract_strided_slice %89 {offsets = [176, 0], sizes = [8, 256], strides = [1, 1]} : vector<320x256xf32> to vector<8x256xf32>
    %232 = arith.mulf %230, %231 : vector<8x256xf32>
    %cst_33 = arith.constant 0.182574183 : f32
    %233 = vector.broadcast %cst_33 : f32 to vector<8x256xf32>
    %234 = arith.mulf %233, %232 : vector<8x256xf32>
    %235 = arith.addf %183, %234 : vector<8x256xf32>
    %236 = vector.extract_strided_slice %84 {offsets = [40, 0], sizes = [8, 256], strides = [1, 1]} : vector<80x256xf32> to vector<8x256xf32>
    %237 = vector.extract_strided_slice %89 {offsets = [184, 0], sizes = [8, 256], strides = [1, 1]} : vector<320x256xf32> to vector<8x256xf32>
    %238 = arith.mulf %236, %237 : vector<8x256xf32>
    %cst_34 = arith.constant -0.182574183 : f32
    %239 = vector.broadcast %cst_34 : f32 to vector<8x256xf32>
    %240 = arith.mulf %239, %238 : vector<8x256xf32>
    %241 = arith.addf %205, %240 : vector<8x256xf32>
    %242 = vector.extract_strided_slice %84 {offsets = [48, 0], sizes = [8, 256], strides = [1, 1]} : vector<80x256xf32> to vector<8x256xf32>
    %243 = vector.extract_strided_slice %89 {offsets = [168, 0], sizes = [8, 256], strides = [1, 1]} : vector<320x256xf32> to vector<8x256xf32>
    %244 = arith.mulf %242, %243 : vector<8x256xf32>
    %cst_35 = arith.constant -0.182574183 : f32
    %245 = vector.broadcast %cst_35 : f32 to vector<8x256xf32>
    %246 = arith.mulf %245, %244 : vector<8x256xf32>
    %247 = arith.addf %235, %246 : vector<8x256xf32>
    %248 = vector.extract_strided_slice %84 {offsets = [48, 0], sizes = [8, 256], strides = [1, 1]} : vector<80x256xf32> to vector<8x256xf32>
    %249 = vector.extract_strided_slice %89 {offsets = [176, 0], sizes = [8, 256], strides = [1, 1]} : vector<320x256xf32> to vector<8x256xf32>
    %250 = arith.mulf %248, %249 : vector<8x256xf32>
    %cst_36 = arith.constant 0.182574183 : f32
    %251 = vector.broadcast %cst_36 : f32 to vector<8x256xf32>
    %252 = arith.mulf %251, %250 : vector<8x256xf32>
    %253 = arith.addf %223, %252 : vector<8x256xf32>
    %254 = vector.extract_strided_slice %84 {offsets = [48, 0], sizes = [8, 256], strides = [1, 1]} : vector<80x256xf32> to vector<8x256xf32>
    %255 = vector.extract_strided_slice %89 {offsets = [176, 0], sizes = [8, 256], strides = [1, 1]} : vector<320x256xf32> to vector<8x256xf32>
    %256 = arith.mulf %254, %255 : vector<8x256xf32>
    %cst_37 = arith.constant -0.316227764 : f32
    %257 = vector.broadcast %cst_37 : f32 to vector<8x256xf32>
    %258 = arith.mulf %257, %256 : vector<8x256xf32>
    %259 = arith.addf %229, %258 : vector<8x256xf32>
    %260 = vector.extract_strided_slice %84 {offsets = [48, 0], sizes = [8, 256], strides = [1, 1]} : vector<80x256xf32> to vector<8x256xf32>
    %261 = vector.extract_strided_slice %89 {offsets = [184, 0], sizes = [8, 256], strides = [1, 1]} : vector<320x256xf32> to vector<8x256xf32>
    %262 = arith.mulf %260, %261 : vector<8x256xf32>
    %cst_38 = arith.constant 0.182574183 : f32
    %263 = vector.broadcast %cst_38 : f32 to vector<8x256xf32>
    %264 = arith.mulf %263, %262 : vector<8x256xf32>
    %265 = arith.addf %211, %264 : vector<8x256xf32>
    %266 = vector.extract_strided_slice %84 {offsets = [56, 0], sizes = [8, 256], strides = [1, 1]} : vector<80x256xf32> to vector<8x256xf32>
    %267 = vector.extract_strided_slice %89 {offsets = [168, 0], sizes = [8, 256], strides = [1, 1]} : vector<320x256xf32> to vector<8x256xf32>
    %268 = arith.mulf %266, %267 : vector<8x256xf32>
    %cst_39 = arith.constant -0.182574183 : f32
    %269 = vector.broadcast %cst_39 : f32 to vector<8x256xf32>
    %270 = arith.mulf %269, %268 : vector<8x256xf32>
    %271 = arith.addf %265, %270 : vector<8x256xf32>
    %272 = vector.extract_strided_slice %84 {offsets = [56, 0], sizes = [8, 256], strides = [1, 1]} : vector<80x256xf32> to vector<8x256xf32>
    %273 = vector.extract_strided_slice %89 {offsets = [176, 0], sizes = [8, 256], strides = [1, 1]} : vector<320x256xf32> to vector<8x256xf32>
    %274 = arith.mulf %272, %273 : vector<8x256xf32>
    %cst_40 = arith.constant -0.182574183 : f32
    %275 = vector.broadcast %cst_40 : f32 to vector<8x256xf32>
    %276 = arith.mulf %275, %274 : vector<8x256xf32>
    %277 = arith.addf %241, %276 : vector<8x256xf32>
    %278 = vector.extract_strided_slice %84 {offsets = [56, 0], sizes = [8, 256], strides = [1, 1]} : vector<80x256xf32> to vector<8x256xf32>
    %279 = vector.extract_strided_slice %89 {offsets = [184, 0], sizes = [8, 256], strides = [1, 1]} : vector<320x256xf32> to vector<8x256xf32>
    %280 = arith.mulf %278, %279 : vector<8x256xf32>
    %cst_41 = arith.constant 0.365148365 : f32
    %281 = vector.broadcast %cst_41 : f32 to vector<8x256xf32>
    %282 = arith.mulf %281, %280 : vector<8x256xf32>
    %283 = arith.addf %247, %282 : vector<8x256xf32>
    %284 = vector.extract_strided_slice %84 {offsets = [64, 0], sizes = [8, 256], strides = [1, 1]} : vector<80x256xf32> to vector<8x256xf32>
    %285 = vector.extract_strided_slice %89 {offsets = [168, 0], sizes = [8, 256], strides = [1, 1]} : vector<320x256xf32> to vector<8x256xf32>
    %286 = arith.mulf %284, %285 : vector<8x256xf32>
    %cst_42 = arith.constant -0.316227764 : f32
    %287 = vector.broadcast %cst_42 : f32 to vector<8x256xf32>
    %288 = arith.mulf %287, %286 : vector<8x256xf32>
    %289 = arith.addf %271, %288 : vector<8x256xf32>
    %290 = vector.extract_strided_slice %84 {offsets = [64, 0], sizes = [8, 256], strides = [1, 1]} : vector<80x256xf32> to vector<8x256xf32>
    %291 = vector.extract_strided_slice %89 {offsets = [176, 0], sizes = [8, 256], strides = [1, 1]} : vector<320x256xf32> to vector<8x256xf32>
    %292 = arith.mulf %290, %291 : vector<8x256xf32>
    %cst_43 = arith.constant 0.316227764 : f32
    %293 = vector.broadcast %cst_43 : f32 to vector<8x256xf32>
    %294 = arith.mulf %293, %292 : vector<8x256xf32>
    %295 = arith.addf %277, %294 : vector<8x256xf32>
    %296 = vector.extract_strided_slice %84 {offsets = [32, 0], sizes = [8, 256], strides = [1, 1]} : vector<80x256xf32> to vector<8x256xf32>
    %297 = vector.extract_strided_slice %89 {offsets = [192, 0], sizes = [8, 256], strides = [1, 1]} : vector<320x256xf32> to vector<8x256xf32>
    %298 = arith.mulf %296, %297 : vector<8x256xf32>
    %299 = arith.addf %143, %298 : vector<8x256xf32>
    %300 = vector.extract_strided_slice %84 {offsets = [40, 0], sizes = [8, 256], strides = [1, 1]} : vector<80x256xf32> to vector<8x256xf32>
    %301 = vector.extract_strided_slice %89 {offsets = [200, 0], sizes = [8, 256], strides = [1, 1]} : vector<320x256xf32> to vector<8x256xf32>
    %302 = arith.mulf %300, %301 : vector<8x256xf32>
    %303 = arith.addf %299, %302 : vector<8x256xf32>
    %304 = vector.extract_strided_slice %84 {offsets = [48, 0], sizes = [8, 256], strides = [1, 1]} : vector<80x256xf32> to vector<8x256xf32>
    %305 = vector.extract_strided_slice %89 {offsets = [208, 0], sizes = [8, 256], strides = [1, 1]} : vector<320x256xf32> to vector<8x256xf32>
    %306 = arith.mulf %304, %305 : vector<8x256xf32>
    %307 = arith.addf %303, %306 : vector<8x256xf32>
    %308 = vector.extract_strided_slice %84 {offsets = [56, 0], sizes = [8, 256], strides = [1, 1]} : vector<80x256xf32> to vector<8x256xf32>
    %309 = vector.extract_strided_slice %89 {offsets = [216, 0], sizes = [8, 256], strides = [1, 1]} : vector<320x256xf32> to vector<8x256xf32>
    %310 = arith.mulf %308, %309 : vector<8x256xf32>
    %311 = arith.addf %307, %310 : vector<8x256xf32>
    %312 = vector.extract_strided_slice %84 {offsets = [64, 0], sizes = [8, 256], strides = [1, 1]} : vector<80x256xf32> to vector<8x256xf32>
    %313 = vector.extract_strided_slice %89 {offsets = [224, 0], sizes = [8, 256], strides = [1, 1]} : vector<320x256xf32> to vector<8x256xf32>
    %314 = arith.mulf %312, %313 : vector<8x256xf32>
    %315 = arith.addf %311, %314 : vector<8x256xf32>
    %316 = vector.extract_strided_slice %84 {offsets = [32, 0], sizes = [8, 256], strides = [1, 1]} : vector<80x256xf32> to vector<8x256xf32>
    %317 = vector.extract_strided_slice %89 {offsets = [240, 0], sizes = [8, 256], strides = [1, 1]} : vector<320x256xf32> to vector<8x256xf32>
    %318 = arith.mulf %316, %317 : vector<8x256xf32>
    %cst_44 = arith.constant -0.182574183 : f32
    %319 = vector.broadcast %cst_44 : f32 to vector<8x256xf32>
    %320 = arith.mulf %319, %318 : vector<8x256xf32>
    %321 = arith.addf %163, %320 : vector<8x256xf32>
    %322 = vector.extract_strided_slice %84 {offsets = [32, 0], sizes = [8, 256], strides = [1, 1]} : vector<80x256xf32> to vector<8x256xf32>
    %323 = vector.extract_strided_slice %89 {offsets = [248, 0], sizes = [8, 256], strides = [1, 1]} : vector<320x256xf32> to vector<8x256xf32>
    %324 = arith.mulf %322, %323 : vector<8x256xf32>
    %cst_45 = arith.constant 0.182574183 : f32
    %325 = vector.broadcast %cst_45 : f32 to vector<8x256xf32>
    %326 = arith.mulf %325, %324 : vector<8x256xf32>
    %327 = arith.addf %167, %326 : vector<8x256xf32>
    %328 = vector.extract_strided_slice %84 {offsets = [32, 0], sizes = [8, 256], strides = [1, 1]} : vector<80x256xf32> to vector<8x256xf32>
    %329 = vector.extract_strided_slice %89 {offsets = [256, 0], sizes = [8, 256], strides = [1, 1]} : vector<320x256xf32> to vector<8x256xf32>
    %330 = arith.mulf %328, %329 : vector<8x256xf32>
    %cst_46 = arith.constant -0.365148365 : f32
    %331 = vector.broadcast %cst_46 : f32 to vector<8x256xf32>
    %332 = arith.mulf %331, %330 : vector<8x256xf32>
    %333 = arith.addf %155, %332 : vector<8x256xf32>
    %334 = vector.extract_strided_slice %84 {offsets = [40, 0], sizes = [8, 256], strides = [1, 1]} : vector<80x256xf32> to vector<8x256xf32>
    %335 = vector.extract_strided_slice %89 {offsets = [232, 0], sizes = [8, 256], strides = [1, 1]} : vector<320x256xf32> to vector<8x256xf32>
    %336 = arith.mulf %334, %335 : vector<8x256xf32>
    %cst_47 = arith.constant 0.182574183 : f32
    %337 = vector.broadcast %cst_47 : f32 to vector<8x256xf32>
    %338 = arith.mulf %337, %336 : vector<8x256xf32>
    %339 = arith.addf %321, %338 : vector<8x256xf32>
    %340 = vector.extract_strided_slice %84 {offsets = [40, 0], sizes = [8, 256], strides = [1, 1]} : vector<80x256xf32> to vector<8x256xf32>
    %341 = vector.extract_strided_slice %89 {offsets = [248, 0], sizes = [8, 256], strides = [1, 1]} : vector<320x256xf32> to vector<8x256xf32>
    %342 = arith.mulf %340, %341 : vector<8x256xf32>
    %cst_48 = arith.constant -0.182574183 : f32
    %343 = vector.broadcast %cst_48 : f32 to vector<8x256xf32>
    %344 = arith.mulf %343, %342 : vector<8x256xf32>
    %345 = arith.addf %333, %344 : vector<8x256xf32>
    %346 = vector.extract_strided_slice %84 {offsets = [40, 0], sizes = [8, 256], strides = [1, 1]} : vector<80x256xf32> to vector<8x256xf32>
    %347 = vector.extract_strided_slice %89 {offsets = [256, 0], sizes = [8, 256], strides = [1, 1]} : vector<320x256xf32> to vector<8x256xf32>
    %348 = arith.mulf %346, %347 : vector<8x256xf32>
    %cst_49 = arith.constant 0.182574183 : f32
    %349 = vector.broadcast %cst_49 : f32 to vector<8x256xf32>
    %350 = arith.mulf %349, %348 : vector<8x256xf32>
    %351 = arith.addf %327, %350 : vector<8x256xf32>
    %352 = vector.extract_strided_slice %84 {offsets = [40, 0], sizes = [8, 256], strides = [1, 1]} : vector<80x256xf32> to vector<8x256xf32>
    %353 = vector.extract_strided_slice %89 {offsets = [264, 0], sizes = [8, 256], strides = [1, 1]} : vector<320x256xf32> to vector<8x256xf32>
    %354 = arith.mulf %352, %353 : vector<8x256xf32>
    %cst_50 = arith.constant 0.316227764 : f32
    %355 = vector.broadcast %cst_50 : f32 to vector<8x256xf32>
    %356 = arith.mulf %355, %354 : vector<8x256xf32>
    %357 = arith.addf %351, %356 : vector<8x256xf32>
    %358 = vector.extract_strided_slice %84 {offsets = [48, 0], sizes = [8, 256], strides = [1, 1]} : vector<80x256xf32> to vector<8x256xf32>
    %359 = vector.extract_strided_slice %89 {offsets = [232, 0], sizes = [8, 256], strides = [1, 1]} : vector<320x256xf32> to vector<8x256xf32>
    %360 = arith.mulf %358, %359 : vector<8x256xf32>
    %cst_51 = arith.constant -0.182574183 : f32
    %361 = vector.broadcast %cst_51 : f32 to vector<8x256xf32>
    %362 = arith.mulf %361, %360 : vector<8x256xf32>
    %363 = arith.addf %357, %362 : vector<8x256xf32>
    %364 = vector.extract_strided_slice %84 {offsets = [48, 0], sizes = [8, 256], strides = [1, 1]} : vector<80x256xf32> to vector<8x256xf32>
    %365 = vector.extract_strided_slice %89 {offsets = [240, 0], sizes = [8, 256], strides = [1, 1]} : vector<320x256xf32> to vector<8x256xf32>
    %366 = arith.mulf %364, %365 : vector<8x256xf32>
    %cst_52 = arith.constant 0.182574183 : f32
    %367 = vector.broadcast %cst_52 : f32 to vector<8x256xf32>
    %368 = arith.mulf %367, %366 : vector<8x256xf32>
    %369 = arith.addf %345, %368 : vector<8x256xf32>
    %370 = vector.extract_strided_slice %84 {offsets = [48, 0], sizes = [8, 256], strides = [1, 1]} : vector<80x256xf32> to vector<8x256xf32>
    %371 = vector.extract_strided_slice %89 {offsets = [256, 0], sizes = [8, 256], strides = [1, 1]} : vector<320x256xf32> to vector<8x256xf32>
    %372 = arith.mulf %370, %371 : vector<8x256xf32>
    %cst_53 = arith.constant 0.182574183 : f32
    %373 = vector.broadcast %cst_53 : f32 to vector<8x256xf32>
    %374 = arith.mulf %373, %372 : vector<8x256xf32>
    %375 = arith.addf %339, %374 : vector<8x256xf32>
    %376 = vector.extract_strided_slice %84 {offsets = [48, 0], sizes = [8, 256], strides = [1, 1]} : vector<80x256xf32> to vector<8x256xf32>
    %377 = vector.extract_strided_slice %89 {offsets = [264, 0], sizes = [8, 256], strides = [1, 1]} : vector<320x256xf32> to vector<8x256xf32>
    %378 = arith.mulf %376, %377 : vector<8x256xf32>
    %cst_54 = arith.constant -0.316227764 : f32
    %379 = vector.broadcast %cst_54 : f32 to vector<8x256xf32>
    %380 = arith.mulf %379, %378 : vector<8x256xf32>
    %381 = arith.addf %375, %380 : vector<8x256xf32>
    %382 = vector.extract_strided_slice %84 {offsets = [56, 0], sizes = [8, 256], strides = [1, 1]} : vector<80x256xf32> to vector<8x256xf32>
    %383 = vector.extract_strided_slice %89 {offsets = [232, 0], sizes = [8, 256], strides = [1, 1]} : vector<320x256xf32> to vector<8x256xf32>
    %384 = arith.mulf %382, %383 : vector<8x256xf32>
    %cst_55 = arith.constant 0.365148365 : f32
    %385 = vector.broadcast %cst_55 : f32 to vector<8x256xf32>
    %386 = arith.mulf %385, %384 : vector<8x256xf32>
    %387 = arith.addf %369, %386 : vector<8x256xf32>
    %388 = vector.extract_strided_slice %84 {offsets = [56, 0], sizes = [8, 256], strides = [1, 1]} : vector<80x256xf32> to vector<8x256xf32>
    %389 = vector.extract_strided_slice %89 {offsets = [240, 0], sizes = [8, 256], strides = [1, 1]} : vector<320x256xf32> to vector<8x256xf32>
    %390 = arith.mulf %388, %389 : vector<8x256xf32>
    %cst_56 = arith.constant -0.182574183 : f32
    %391 = vector.broadcast %cst_56 : f32 to vector<8x256xf32>
    %392 = arith.mulf %391, %390 : vector<8x256xf32>
    %393 = arith.addf %363, %392 : vector<8x256xf32>
    %394 = vector.extract_strided_slice %84 {offsets = [56, 0], sizes = [8, 256], strides = [1, 1]} : vector<80x256xf32> to vector<8x256xf32>
    %395 = vector.extract_strided_slice %89 {offsets = [248, 0], sizes = [8, 256], strides = [1, 1]} : vector<320x256xf32> to vector<8x256xf32>
    %396 = arith.mulf %394, %395 : vector<8x256xf32>
    %cst_57 = arith.constant -0.182574183 : f32
    %397 = vector.broadcast %cst_57 : f32 to vector<8x256xf32>
    %398 = arith.mulf %397, %396 : vector<8x256xf32>
    %399 = arith.addf %381, %398 : vector<8x256xf32>
    %400 = vector.extract_strided_slice %84 {offsets = [64, 0], sizes = [8, 256], strides = [1, 1]} : vector<80x256xf32> to vector<8x256xf32>
    %401 = vector.extract_strided_slice %89 {offsets = [240, 0], sizes = [8, 256], strides = [1, 1]} : vector<320x256xf32> to vector<8x256xf32>
    %402 = arith.mulf %400, %401 : vector<8x256xf32>
    %cst_58 = arith.constant -0.316227764 : f32
    %403 = vector.broadcast %cst_58 : f32 to vector<8x256xf32>
    %404 = arith.mulf %403, %402 : vector<8x256xf32>
    %405 = arith.addf %393, %404 : vector<8x256xf32>
    %406 = vector.extract_strided_slice %84 {offsets = [64, 0], sizes = [8, 256], strides = [1, 1]} : vector<80x256xf32> to vector<8x256xf32>
    %407 = vector.extract_strided_slice %89 {offsets = [248, 0], sizes = [8, 256], strides = [1, 1]} : vector<320x256xf32> to vector<8x256xf32>
    %408 = arith.mulf %406, %407 : vector<8x256xf32>
    %cst_59 = arith.constant 0.316227764 : f32
    %409 = vector.broadcast %cst_59 : f32 to vector<8x256xf32>
    %410 = arith.mulf %409, %408 : vector<8x256xf32>
    %411 = arith.addf %399, %410 : vector<8x256xf32>
    %412 = vector.extract_strided_slice %84 {offsets = [32, 0], sizes = [8, 256], strides = [1, 1]} : vector<80x256xf32> to vector<8x256xf32>
    %413 = vector.extract_strided_slice %89 {offsets = [272, 0], sizes = [8, 256], strides = [1, 1]} : vector<320x256xf32> to vector<8x256xf32>
    %414 = arith.mulf %412, %413 : vector<8x256xf32>
    %415 = arith.addf %179, %414 : vector<8x256xf32>
    %416 = vector.extract_strided_slice %84 {offsets = [40, 0], sizes = [8, 256], strides = [1, 1]} : vector<80x256xf32> to vector<8x256xf32>
    %417 = vector.extract_strided_slice %89 {offsets = [280, 0], sizes = [8, 256], strides = [1, 1]} : vector<320x256xf32> to vector<8x256xf32>
    %418 = arith.mulf %416, %417 : vector<8x256xf32>
    %419 = arith.addf %415, %418 : vector<8x256xf32>
    %420 = vector.extract_strided_slice %84 {offsets = [48, 0], sizes = [8, 256], strides = [1, 1]} : vector<80x256xf32> to vector<8x256xf32>
    %421 = vector.extract_strided_slice %89 {offsets = [288, 0], sizes = [8, 256], strides = [1, 1]} : vector<320x256xf32> to vector<8x256xf32>
    %422 = arith.mulf %420, %421 : vector<8x256xf32>
    %423 = arith.addf %419, %422 : vector<8x256xf32>
    %424 = vector.extract_strided_slice %84 {offsets = [56, 0], sizes = [8, 256], strides = [1, 1]} : vector<80x256xf32> to vector<8x256xf32>
    %425 = vector.extract_strided_slice %89 {offsets = [296, 0], sizes = [8, 256], strides = [1, 1]} : vector<320x256xf32> to vector<8x256xf32>
    %426 = arith.mulf %424, %425 : vector<8x256xf32>
    %427 = arith.addf %423, %426 : vector<8x256xf32>
    %428 = vector.extract_strided_slice %84 {offsets = [64, 0], sizes = [8, 256], strides = [1, 1]} : vector<80x256xf32> to vector<8x256xf32>
    %429 = vector.extract_strided_slice %89 {offsets = [304, 0], sizes = [8, 256], strides = [1, 1]} : vector<320x256xf32> to vector<8x256xf32>
    %430 = arith.mulf %428, %429 : vector<8x256xf32>
    %431 = arith.addf %427, %430 : vector<8x256xf32>
    %432 = vector.extract_strided_slice %84 {offsets = [32, 0], sizes = [8, 256], strides = [1, 1]} : vector<80x256xf32> to vector<8x256xf32>
    %433 = vector.extract_strided_slice %89 {offsets = [312, 0], sizes = [8, 256], strides = [1, 1]} : vector<320x256xf32> to vector<8x256xf32>
    %434 = arith.mulf %432, %433 : vector<8x256xf32>
    %435 = arith.addf %283, %434 : vector<8x256xf32>
    %436 = vector.extract_strided_slice %84 {offsets = [40, 0], sizes = [8, 256], strides = [1, 1]} : vector<80x256xf32> to vector<8x256xf32>
    %437 = vector.extract_strided_slice %89 {offsets = [312, 0], sizes = [8, 256], strides = [1, 1]} : vector<320x256xf32> to vector<8x256xf32>
    %438 = arith.mulf %436, %437 : vector<8x256xf32>
    %439 = arith.addf %289, %438 : vector<8x256xf32>
    %440 = vector.extract_strided_slice %84 {offsets = [48, 0], sizes = [8, 256], strides = [1, 1]} : vector<80x256xf32> to vector<8x256xf32>
    %441 = vector.extract_strided_slice %89 {offsets = [312, 0], sizes = [8, 256], strides = [1, 1]} : vector<320x256xf32> to vector<8x256xf32>
    %442 = arith.mulf %440, %441 : vector<8x256xf32>
    %443 = arith.addf %295, %442 : vector<8x256xf32>
    %444 = vector.extract_strided_slice %84 {offsets = [56, 0], sizes = [8, 256], strides = [1, 1]} : vector<80x256xf32> to vector<8x256xf32>
    %445 = vector.extract_strided_slice %89 {offsets = [312, 0], sizes = [8, 256], strides = [1, 1]} : vector<320x256xf32> to vector<8x256xf32>
    %446 = arith.mulf %444, %445 : vector<8x256xf32>
    %447 = arith.addf %253, %446 : vector<8x256xf32>
    %448 = vector.extract_strided_slice %84 {offsets = [64, 0], sizes = [8, 256], strides = [1, 1]} : vector<80x256xf32> to vector<8x256xf32>
    %449 = vector.extract_strided_slice %89 {offsets = [312, 0], sizes = [8, 256], strides = [1, 1]} : vector<320x256xf32> to vector<8x256xf32>
    %450 = arith.mulf %448, %449 : vector<8x256xf32>
    %451 = arith.addf %259, %450 : vector<8x256xf32>
    %452 = tpu.concatenate %315, %405, %411, %387, %435, %439, %443, %447, %451, %431 in 0 : vector<8x256xf32>, vector<8x256xf32>, vector<8x256xf32>, vector<8x256xf32>, vector<8x256xf32>, vector<8x256xf32>, vector<8x256xf32>, vector<8x256xf32>, vector<8x256xf32>, vector<8x256xf32> -> vector<80x256xf32>
    %c2 = arith.constant 2 : index
    %c0_60 = arith.constant 0 : index
    %c0_61 = arith.constant 0 : index
    %453 = vector.load %arg2[%c2, %c0_60, %c0_61] : memref<5x80x80xbf16, #tpu.memory_space<vmem>>, vector<1x80x80xbf16>
    %454 = vector.shape_cast %453 : vector<1x80x80xbf16> to vector<80x80xbf16>
    %455 = arith.truncf %452 : vector<80x256xf32> to vector<80x256xbf16>
    %cst_62 = arith.constant dense<0.000000e+00> : vector<80x256xf32>
    %456 = tpu.matmul %454, %455, %cst_62 {dimension_numbers = #tpu.dot_dimension_numbers<[1], [0], [0], [1], [0, 0, 1, 1], [], []>} : vector<80x80xbf16>, vector<80x256xbf16>, vector<80x256xf32> -> vector<80x256xf32>
    %c2_63 = arith.constant 2 : index
    %c0_64 = arith.constant 0 : index
    %c0_65 = arith.constant 0 : index
    %457 = vector.load %arg3[%c2_63, %c0_64, %c0_65] : memref<5x80x1xf32, #tpu.memory_space<vmem>>, vector<1x80x1xf32>
    %458 = vector.shape_cast %457 : vector<1x80x1xf32> to vector<80x1xf32>
    %459 = vector.broadcast %458 : vector<80x1xf32> to vector<80x256xf32>
    %460 = arith.addf %456, %459 : vector<80x256xf32>
    %461 = vector.extract_strided_slice %460 {offsets = [0, 0], sizes = [8, 256], strides = [1, 1]} : vector<80x256xf32> to vector<8x256xf32>
    %462 = math.absf %461 : vector<8x256xf32>
    %463 = arith.negf %462 : vector<8x256xf32>
    %464 = math.exp %463 : vector<8x256xf32>
    %cst_66 = arith.constant 1.000000e+00 : f32
    %465 = vector.broadcast %cst_66 : f32 to vector<8x256xf32>
    %466 = arith.addf %465, %464 : vector<8x256xf32>
    %467 = arith.divf %465, %466 : vector<8x256xf32>
    %468 = arith.mulf %461, %467 : vector<8x256xf32>
    %469 = vector.extract_strided_slice %460 {offsets = [8, 0], sizes = [8, 256], strides = [1, 1]} : vector<80x256xf32> to vector<8x256xf32>
    %470 = vector.extract_strided_slice %460 {offsets = [16, 0], sizes = [8, 256], strides = [1, 1]} : vector<80x256xf32> to vector<8x256xf32>
    %471 = vector.extract_strided_slice %460 {offsets = [24, 0], sizes = [8, 256], strides = [1, 1]} : vector<80x256xf32> to vector<8x256xf32>
    %472 = arith.mulf %469, %469 : vector<8x256xf32>
    %473 = arith.mulf %470, %470 : vector<8x256xf32>
    %474 = arith.addf %472, %473 : vector<8x256xf32>
    %475 = arith.mulf %471, %471 : vector<8x256xf32>
    %476 = arith.addf %474, %475 : vector<8x256xf32>
    %477 = math.sqrt %476 : vector<8x256xf32>
    %478 = arith.negf %477 : vector<8x256xf32>
    %479 = math.exp %478 : vector<8x256xf32>
    %cst_67 = arith.constant 1.000000e+00 : f32
    %480 = vector.broadcast %cst_67 : f32 to vector<8x256xf32>
    %481 = arith.addf %480, %479 : vector<8x256xf32>
    %482 = arith.divf %480, %481 : vector<8x256xf32>
    %483 = arith.mulf %469, %482 : vector<8x256xf32>
    %484 = arith.mulf %470, %482 : vector<8x256xf32>
    %485 = arith.mulf %471, %482 : vector<8x256xf32>
    %486 = vector.extract_strided_slice %460 {offsets = [32, 0], sizes = [8, 256], strides = [1, 1]} : vector<80x256xf32> to vector<8x256xf32>
    %487 = vector.extract_strided_slice %460 {offsets = [40, 0], sizes = [8, 256], strides = [1, 1]} : vector<80x256xf32> to vector<8x256xf32>
    %488 = vector.extract_strided_slice %460 {offsets = [48, 0], sizes = [8, 256], strides = [1, 1]} : vector<80x256xf32> to vector<8x256xf32>
    %489 = vector.extract_strided_slice %460 {offsets = [56, 0], sizes = [8, 256], strides = [1, 1]} : vector<80x256xf32> to vector<8x256xf32>
    %490 = vector.extract_strided_slice %460 {offsets = [64, 0], sizes = [8, 256], strides = [1, 1]} : vector<80x256xf32> to vector<8x256xf32>
    %491 = arith.mulf %486, %486 : vector<8x256xf32>
    %492 = arith.mulf %487, %487 : vector<8x256xf32>
    %493 = arith.addf %491, %492 : vector<8x256xf32>
    %494 = arith.mulf %488, %488 : vector<8x256xf32>
    %495 = arith.addf %493, %494 : vector<8x256xf32>
    %496 = arith.mulf %489, %489 : vector<8x256xf32>
    %497 = arith.addf %495, %496 : vector<8x256xf32>
    %498 = arith.mulf %490, %490 : vector<8x256xf32>
    %499 = arith.addf %497, %498 : vector<8x256xf32>
    %500 = math.sqrt %499 : vector<8x256xf32>
    %501 = arith.negf %500 : vector<8x256xf32>
    %502 = math.exp %501 : vector<8x256xf32>
    %cst_68 = arith.constant 1.000000e+00 : f32
    %503 = vector.broadcast %cst_68 : f32 to vector<8x256xf32>
    %504 = arith.addf %503, %502 : vector<8x256xf32>
    %505 = arith.divf %503, %504 : vector<8x256xf32>
    %506 = arith.mulf %486, %505 : vector<8x256xf32>
    %507 = arith.mulf %487, %505 : vector<8x256xf32>
    %508 = arith.mulf %488, %505 : vector<8x256xf32>
    %509 = arith.mulf %489, %505 : vector<8x256xf32>
    %510 = arith.mulf %490, %505 : vector<8x256xf32>
    %511 = vector.extract_strided_slice %460 {offsets = [72, 0], sizes = [8, 256], strides = [1, 1]} : vector<80x256xf32> to vector<8x256xf32>
    %512 = math.absf %511 : vector<8x256xf32>
    %513 = arith.negf %512 : vector<8x256xf32>
    %514 = math.exp %513 : vector<8x256xf32>
    %cst_69 = arith.constant 1.000000e+00 : f32
    %515 = vector.broadcast %cst_69 : f32 to vector<8x256xf32>
    %516 = arith.addf %515, %514 : vector<8x256xf32>
    %517 = arith.divf %515, %516 : vector<8x256xf32>
    %518 = arith.mulf %511, %517 : vector<8x256xf32>
    %519 = tpu.concatenate %468, %483, %484, %485, %506, %507, %508, %509, %510, %518 in 0 : vector<8x256xf32>, vector<8x256xf32>, vector<8x256xf32>, vector<8x256xf32>, vector<8x256xf32>, vector<8x256xf32>, vector<8x256xf32>, vector<8x256xf32>, vector<8x256xf32>, vector<8x256xf32> -> vector<80x256xf32>
    %c1_70 = arith.constant 1 : index
    %c0_71 = arith.constant 0 : index
    %c0_72 = arith.constant 0 : index
    %520 = vector.load %arg4[%c1_70, %c0_71, %c0_72] : memref<4x160x80xbf16, #tpu.memory_space<vmem>>, vector<1x160x80xbf16>
    %521 = vector.shape_cast %520 : vector<1x160x80xbf16> to vector<160x80xbf16>
    %522 = arith.truncf %519 : vector<80x256xf32> to vector<80x256xbf16>
    %cst_73 = arith.constant dense<0.000000e+00> : vector<160x256xf32>
    %523 = tpu.matmul %521, %522, %cst_73 {dimension_numbers = #tpu.dot_dimension_numbers<[1], [0], [0], [1], [0, 0, 1, 1], [], []>} : vector<160x80xbf16>, vector<80x256xbf16>, vector<160x256xf32> -> vector<160x256xf32>
    %c1_74 = arith.constant 1 : index
    %c0_75 = arith.constant 0 : index
    %c0_76 = arith.constant 0 : index
    %524 = vector.load %arg5[%c1_74, %c0_75, %c0_76] : memref<4x160x1xf32, #tpu.memory_space<vmem>>, vector<1x160x1xf32>
    %525 = vector.shape_cast %524 : vector<1x160x1xf32> to vector<160x1xf32>
    %526 = vector.broadcast %525 : vector<160x1xf32> to vector<160x256xf32>
    %527 = arith.addf %523, %526 : vector<160x256xf32>
    %528 = vector.extract_strided_slice %527 {offsets = [0, 0], sizes = [80, 256], strides = [1, 1]} : vector<160x256xf32> to vector<80x256xf32>
    %529 = vector.extract_strided_slice %527 {offsets = [80, 0], sizes = [80, 256], strides = [1, 1]} : vector<160x256xf32> to vector<80x256xf32>
    %c1_77 = arith.constant 1 : index
    %c0_78 = arith.constant 0 : index
    %c0_79 = arith.constant 0 : index
    %530 = vector.load %arg6[%c1_77, %c0_78, %c0_79] : memref<3x320x80xbf16, #tpu.memory_space<vmem>>, vector<1x320x80xbf16>
    %531 = vector.shape_cast %530 : vector<1x320x80xbf16> to vector<320x80xbf16>
    %532 = arith.truncf %529 : vector<80x256xf32> to vector<80x256xbf16>
    %cst_80 = arith.constant dense<0.000000e+00> : vector<320x256xf32>
    %533 = tpu.matmul %531, %532, %cst_80 {dimension_numbers = #tpu.dot_dimension_numbers<[1], [0], [0], [1], [0, 0, 1, 1], [], []>} : vector<320x80xbf16>, vector<80x256xbf16>, vector<320x256xf32> -> vector<320x256xf32>
    %534 = vector.extract_strided_slice %528 {offsets = [0, 0], sizes = [8, 256], strides = [1, 1]} : vector<80x256xf32> to vector<8x256xf32>
    %535 = vector.extract_strided_slice %533 {offsets = [0, 0], sizes = [8, 256], strides = [1, 1]} : vector<320x256xf32> to vector<8x256xf32>
    %536 = arith.mulf %534, %535 : vector<8x256xf32>
    %537 = vector.extract_strided_slice %528 {offsets = [0, 0], sizes = [8, 256], strides = [1, 1]} : vector<80x256xf32> to vector<8x256xf32>
    %538 = vector.extract_strided_slice %533 {offsets = [8, 0], sizes = [8, 256], strides = [1, 1]} : vector<320x256xf32> to vector<8x256xf32>
    %539 = arith.mulf %537, %538 : vector<8x256xf32>
    %540 = vector.extract_strided_slice %528 {offsets = [0, 0], sizes = [8, 256], strides = [1, 1]} : vector<80x256xf32> to vector<8x256xf32>
    %541 = vector.extract_strided_slice %533 {offsets = [16, 0], sizes = [8, 256], strides = [1, 1]} : vector<320x256xf32> to vector<8x256xf32>
    %542 = arith.mulf %540, %541 : vector<8x256xf32>
    %543 = vector.extract_strided_slice %528 {offsets = [0, 0], sizes = [8, 256], strides = [1, 1]} : vector<80x256xf32> to vector<8x256xf32>
    %544 = vector.extract_strided_slice %533 {offsets = [24, 0], sizes = [8, 256], strides = [1, 1]} : vector<320x256xf32> to vector<8x256xf32>
    %545 = arith.mulf %543, %544 : vector<8x256xf32>
    %546 = vector.extract_strided_slice %528 {offsets = [0, 0], sizes = [8, 256], strides = [1, 1]} : vector<80x256xf32> to vector<8x256xf32>
    %547 = vector.extract_strided_slice %533 {offsets = [32, 0], sizes = [8, 256], strides = [1, 1]} : vector<320x256xf32> to vector<8x256xf32>
    %548 = arith.mulf %546, %547 : vector<8x256xf32>
    %549 = vector.extract_strided_slice %528 {offsets = [0, 0], sizes = [8, 256], strides = [1, 1]} : vector<80x256xf32> to vector<8x256xf32>
    %550 = vector.extract_strided_slice %533 {offsets = [40, 0], sizes = [8, 256], strides = [1, 1]} : vector<320x256xf32> to vector<8x256xf32>
    %551 = arith.mulf %549, %550 : vector<8x256xf32>
    %552 = vector.extract_strided_slice %528 {offsets = [0, 0], sizes = [8, 256], strides = [1, 1]} : vector<80x256xf32> to vector<8x256xf32>
    %553 = vector.extract_strided_slice %533 {offsets = [48, 0], sizes = [8, 256], strides = [1, 1]} : vector<320x256xf32> to vector<8x256xf32>
    %554 = arith.mulf %552, %553 : vector<8x256xf32>
    %555 = vector.extract_strided_slice %528 {offsets = [0, 0], sizes = [8, 256], strides = [1, 1]} : vector<80x256xf32> to vector<8x256xf32>
    %556 = vector.extract_strided_slice %533 {offsets = [56, 0], sizes = [8, 256], strides = [1, 1]} : vector<320x256xf32> to vector<8x256xf32>
    %557 = arith.mulf %555, %556 : vector<8x256xf32>
    %558 = vector.extract_strided_slice %528 {offsets = [0, 0], sizes = [8, 256], strides = [1, 1]} : vector<80x256xf32> to vector<8x256xf32>
    %559 = vector.extract_strided_slice %533 {offsets = [64, 0], sizes = [8, 256], strides = [1, 1]} : vector<320x256xf32> to vector<8x256xf32>
    %560 = arith.mulf %558, %559 : vector<8x256xf32>
    %561 = vector.extract_strided_slice %528 {offsets = [0, 0], sizes = [8, 256], strides = [1, 1]} : vector<80x256xf32> to vector<8x256xf32>
    %562 = vector.extract_strided_slice %533 {offsets = [72, 0], sizes = [8, 256], strides = [1, 1]} : vector<320x256xf32> to vector<8x256xf32>
    %563 = arith.mulf %561, %562 : vector<8x256xf32>
    %564 = vector.extract_strided_slice %528 {offsets = [8, 0], sizes = [8, 256], strides = [1, 1]} : vector<80x256xf32> to vector<8x256xf32>
    %565 = vector.extract_strided_slice %533 {offsets = [80, 0], sizes = [8, 256], strides = [1, 1]} : vector<320x256xf32> to vector<8x256xf32>
    %566 = arith.mulf %564, %565 : vector<8x256xf32>
    %567 = arith.addf %539, %566 : vector<8x256xf32>
    %568 = vector.extract_strided_slice %528 {offsets = [16, 0], sizes = [8, 256], strides = [1, 1]} : vector<80x256xf32> to vector<8x256xf32>
    %569 = vector.extract_strided_slice %533 {offsets = [80, 0], sizes = [8, 256], strides = [1, 1]} : vector<320x256xf32> to vector<8x256xf32>
    %570 = arith.mulf %568, %569 : vector<8x256xf32>
    %571 = arith.addf %542, %570 : vector<8x256xf32>
    %572 = vector.extract_strided_slice %528 {offsets = [24, 0], sizes = [8, 256], strides = [1, 1]} : vector<80x256xf32> to vector<8x256xf32>
    %573 = vector.extract_strided_slice %533 {offsets = [80, 0], sizes = [8, 256], strides = [1, 1]} : vector<320x256xf32> to vector<8x256xf32>
    %574 = arith.mulf %572, %573 : vector<8x256xf32>
    %575 = arith.addf %545, %574 : vector<8x256xf32>
    %576 = vector.extract_strided_slice %528 {offsets = [8, 0], sizes = [8, 256], strides = [1, 1]} : vector<80x256xf32> to vector<8x256xf32>
    %577 = vector.extract_strided_slice %533 {offsets = [88, 0], sizes = [8, 256], strides = [1, 1]} : vector<320x256xf32> to vector<8x256xf32>
    %578 = arith.mulf %576, %577 : vector<8x256xf32>
    %579 = arith.addf %536, %578 : vector<8x256xf32>
    %580 = vector.extract_strided_slice %528 {offsets = [16, 0], sizes = [8, 256], strides = [1, 1]} : vector<80x256xf32> to vector<8x256xf32>
    %581 = vector.extract_strided_slice %533 {offsets = [96, 0], sizes = [8, 256], strides = [1, 1]} : vector<320x256xf32> to vector<8x256xf32>
    %582 = arith.mulf %580, %581 : vector<8x256xf32>
    %583 = arith.addf %579, %582 : vector<8x256xf32>
    %584 = vector.extract_strided_slice %528 {offsets = [24, 0], sizes = [8, 256], strides = [1, 1]} : vector<80x256xf32> to vector<8x256xf32>
    %585 = vector.extract_strided_slice %533 {offsets = [104, 0], sizes = [8, 256], strides = [1, 1]} : vector<320x256xf32> to vector<8x256xf32>
    %586 = arith.mulf %584, %585 : vector<8x256xf32>
    %587 = arith.addf %583, %586 : vector<8x256xf32>
    %588 = vector.extract_strided_slice %528 {offsets = [8, 0], sizes = [8, 256], strides = [1, 1]} : vector<80x256xf32> to vector<8x256xf32>
    %589 = vector.extract_strided_slice %533 {offsets = [120, 0], sizes = [8, 256], strides = [1, 1]} : vector<320x256xf32> to vector<8x256xf32>
    %590 = arith.mulf %588, %589 : vector<8x256xf32>
    %591 = arith.addf %575, %590 : vector<8x256xf32>
    %592 = vector.extract_strided_slice %528 {offsets = [8, 0], sizes = [8, 256], strides = [1, 1]} : vector<80x256xf32> to vector<8x256xf32>
    %593 = vector.extract_strided_slice %533 {offsets = [128, 0], sizes = [8, 256], strides = [1, 1]} : vector<320x256xf32> to vector<8x256xf32>
    %594 = arith.mulf %592, %593 : vector<8x256xf32>
    %595 = arith.subf %571, %594 : vector<8x256xf32>
    %596 = vector.extract_strided_slice %528 {offsets = [16, 0], sizes = [8, 256], strides = [1, 1]} : vector<80x256xf32> to vector<8x256xf32>
    %597 = vector.extract_strided_slice %533 {offsets = [112, 0], sizes = [8, 256], strides = [1, 1]} : vector<320x256xf32> to vector<8x256xf32>
    %598 = arith.mulf %596, %597 : vector<8x256xf32>
    %599 = arith.subf %591, %598 : vector<8x256xf32>
    %600 = vector.extract_strided_slice %528 {offsets = [16, 0], sizes = [8, 256], strides = [1, 1]} : vector<80x256xf32> to vector<8x256xf32>
    %601 = vector.extract_strided_slice %533 {offsets = [128, 0], sizes = [8, 256], strides = [1, 1]} : vector<320x256xf32> to vector<8x256xf32>
    %602 = arith.mulf %600, %601 : vector<8x256xf32>
    %603 = arith.addf %567, %602 : vector<8x256xf32>
    %604 = vector.extract_strided_slice %528 {offsets = [24, 0], sizes = [8, 256], strides = [1, 1]} : vector<80x256xf32> to vector<8x256xf32>
    %605 = vector.extract_strided_slice %533 {offsets = [112, 0], sizes = [8, 256], strides = [1, 1]} : vector<320x256xf32> to vector<8x256xf32>
    %606 = arith.mulf %604, %605 : vector<8x256xf32>
    %607 = arith.addf %595, %606 : vector<8x256xf32>
    %608 = vector.extract_strided_slice %528 {offsets = [24, 0], sizes = [8, 256], strides = [1, 1]} : vector<80x256xf32> to vector<8x256xf32>
    %609 = vector.extract_strided_slice %533 {offsets = [120, 0], sizes = [8, 256], strides = [1, 1]} : vector<320x256xf32> to vector<8x256xf32>
    %610 = arith.mulf %608, %609 : vector<8x256xf32>
    %611 = arith.subf %603, %610 : vector<8x256xf32>
    %612 = vector.extract_strided_slice %528 {offsets = [8, 0], sizes = [8, 256], strides = [1, 1]} : vector<80x256xf32> to vector<8x256xf32>
    %613 = vector.extract_strided_slice %533 {offsets = [136, 0], sizes = [8, 256], strides = [1, 1]} : vector<320x256xf32> to vector<8x256xf32>
    %614 = arith.mulf %612, %613 : vector<8x256xf32>
    %615 = arith.addf %563, %614 : vector<8x256xf32>
    %616 = vector.extract_strided_slice %528 {offsets = [16, 0], sizes = [8, 256], strides = [1, 1]} : vector<80x256xf32> to vector<8x256xf32>
    %617 = vector.extract_strided_slice %533 {offsets = [144, 0], sizes = [8, 256], strides = [1, 1]} : vector<320x256xf32> to vector<8x256xf32>
    %618 = arith.mulf %616, %617 : vector<8x256xf32>
    %619 = arith.addf %615, %618 : vector<8x256xf32>
    %620 = vector.extract_strided_slice %528 {offsets = [24, 0], sizes = [8, 256], strides = [1, 1]} : vector<80x256xf32> to vector<8x256xf32>
    %621 = vector.extract_strided_slice %533 {offsets = [152, 0], sizes = [8, 256], strides = [1, 1]} : vector<320x256xf32> to vector<8x256xf32>
    %622 = arith.mulf %620, %621 : vector<8x256xf32>
    %623 = arith.addf %619, %622 : vector<8x256xf32>
    %624 = vector.extract_strided_slice %528 {offsets = [32, 0], sizes = [8, 256], strides = [1, 1]} : vector<80x256xf32> to vector<8x256xf32>
    %625 = vector.extract_strided_slice %533 {offsets = [160, 0], sizes = [8, 256], strides = [1, 1]} : vector<320x256xf32> to vector<8x256xf32>
    %626 = arith.mulf %624, %625 : vector<8x256xf32>
    %627 = arith.addf %548, %626 : vector<8x256xf32>
    %628 = vector.extract_strided_slice %528 {offsets = [40, 0], sizes = [8, 256], strides = [1, 1]} : vector<80x256xf32> to vector<8x256xf32>
    %629 = vector.extract_strided_slice %533 {offsets = [160, 0], sizes = [8, 256], strides = [1, 1]} : vector<320x256xf32> to vector<8x256xf32>
    %630 = arith.mulf %628, %629 : vector<8x256xf32>
    %631 = arith.addf %551, %630 : vector<8x256xf32>
    %632 = vector.extract_strided_slice %528 {offsets = [48, 0], sizes = [8, 256], strides = [1, 1]} : vector<80x256xf32> to vector<8x256xf32>
    %633 = vector.extract_strided_slice %533 {offsets = [160, 0], sizes = [8, 256], strides = [1, 1]} : vector<320x256xf32> to vector<8x256xf32>
    %634 = arith.mulf %632, %633 : vector<8x256xf32>
    %635 = arith.addf %554, %634 : vector<8x256xf32>
    %636 = vector.extract_strided_slice %528 {offsets = [56, 0], sizes = [8, 256], strides = [1, 1]} : vector<80x256xf32> to vector<8x256xf32>
    %637 = vector.extract_strided_slice %533 {offsets = [160, 0], sizes = [8, 256], strides = [1, 1]} : vector<320x256xf32> to vector<8x256xf32>
    %638 = arith.mulf %636, %637 : vector<8x256xf32>
    %639 = arith.addf %557, %638 : vector<8x256xf32>
    %640 = vector.extract_strided_slice %528 {offsets = [64, 0], sizes = [8, 256], strides = [1, 1]} : vector<80x256xf32> to vector<8x256xf32>
    %641 = vector.extract_strided_slice %533 {offsets = [160, 0], sizes = [8, 256], strides = [1, 1]} : vector<320x256xf32> to vector<8x256xf32>
    %642 = arith.mulf %640, %641 : vector<8x256xf32>
    %643 = arith.addf %560, %642 : vector<8x256xf32>
    %644 = vector.extract_strided_slice %528 {offsets = [32, 0], sizes = [8, 256], strides = [1, 1]} : vector<80x256xf32> to vector<8x256xf32>
    %645 = vector.extract_strided_slice %533 {offsets = [168, 0], sizes = [8, 256], strides = [1, 1]} : vector<320x256xf32> to vector<8x256xf32>
    %646 = arith.mulf %644, %645 : vector<8x256xf32>
    %cst_81 = arith.constant 0.182574183 : f32
    %647 = vector.broadcast %cst_81 : f32 to vector<8x256xf32>
    %648 = arith.mulf %647, %646 : vector<8x256xf32>
    %649 = arith.addf %635, %648 : vector<8x256xf32>
    %650 = vector.extract_strided_slice %528 {offsets = [32, 0], sizes = [8, 256], strides = [1, 1]} : vector<80x256xf32> to vector<8x256xf32>
    %651 = vector.extract_strided_slice %533 {offsets = [176, 0], sizes = [8, 256], strides = [1, 1]} : vector<320x256xf32> to vector<8x256xf32>
    %652 = arith.mulf %650, %651 : vector<8x256xf32>
    %cst_82 = arith.constant -0.182574183 : f32
    %653 = vector.broadcast %cst_82 : f32 to vector<8x256xf32>
    %654 = arith.mulf %653, %652 : vector<8x256xf32>
    %655 = arith.addf %631, %654 : vector<8x256xf32>
    %656 = vector.extract_strided_slice %528 {offsets = [32, 0], sizes = [8, 256], strides = [1, 1]} : vector<80x256xf32> to vector<8x256xf32>
    %657 = vector.extract_strided_slice %533 {offsets = [184, 0], sizes = [8, 256], strides = [1, 1]} : vector<320x256xf32> to vector<8x256xf32>
    %658 = arith.mulf %656, %657 : vector<8x256xf32>
    %cst_83 = arith.constant -0.365148365 : f32
    %659 = vector.broadcast %cst_83 : f32 to vector<8x256xf32>
    %660 = arith.mulf %659, %658 : vector<8x256xf32>
    %661 = arith.addf %639, %660 : vector<8x256xf32>
    %662 = vector.extract_strided_slice %528 {offsets = [40, 0], sizes = [8, 256], strides = [1, 1]} : vector<80x256xf32> to vector<8x256xf32>
    %663 = vector.extract_strided_slice %533 {offsets = [168, 0], sizes = [8, 256], strides = [1, 1]} : vector<320x256xf32> to vector<8x256xf32>
    %664 = arith.mulf %662, %663 : vector<8x256xf32>
    %cst_84 = arith.constant 0.182574183 : f32
    %665 = vector.broadcast %cst_84 : f32 to vector<8x256xf32>
    %666 = arith.mulf %665, %664 : vector<8x256xf32>
    %667 = arith.addf %661, %666 : vector<8x256xf32>
    %668 = vector.extract_strided_slice %528 {offsets = [40, 0], sizes = [8, 256], strides = [1, 1]} : vector<80x256xf32> to vector<8x256xf32>
    %669 = vector.extract_strided_slice %533 {offsets = [168, 0], sizes = [8, 256], strides = [1, 1]} : vector<320x256xf32> to vector<8x256xf32>
    %670 = arith.mulf %668, %669 : vector<8x256xf32>
    %cst_85 = arith.constant 0.316227764 : f32
    %671 = vector.broadcast %cst_85 : f32 to vector<8x256xf32>
    %672 = arith.mulf %671, %670 : vector<8x256xf32>
    %673 = arith.addf %643, %672 : vector<8x256xf32>
    %674 = vector.extract_strided_slice %528 {offsets = [40, 0], sizes = [8, 256], strides = [1, 1]} : vector<80x256xf32> to vector<8x256xf32>
    %675 = vector.extract_strided_slice %533 {offsets = [176, 0], sizes = [8, 256], strides = [1, 1]} : vector<320x256xf32> to vector<8x256xf32>
    %676 = arith.mulf %674, %675 : vector<8x256xf32>
    %cst_86 = arith.constant 0.182574183 : f32
    %677 = vector.broadcast %cst_86 : f32 to vector<8x256xf32>
    %678 = arith.mulf %677, %676 : vector<8x256xf32>
    %679 = arith.addf %627, %678 : vector<8x256xf32>
    %680 = vector.extract_strided_slice %528 {offsets = [40, 0], sizes = [8, 256], strides = [1, 1]} : vector<80x256xf32> to vector<8x256xf32>
    %681 = vector.extract_strided_slice %533 {offsets = [184, 0], sizes = [8, 256], strides = [1, 1]} : vector<320x256xf32> to vector<8x256xf32>
    %682 = arith.mulf %680, %681 : vector<8x256xf32>
    %cst_87 = arith.constant -0.182574183 : f32
    %683 = vector.broadcast %cst_87 : f32 to vector<8x256xf32>
    %684 = arith.mulf %683, %682 : vector<8x256xf32>
    %685 = arith.addf %649, %684 : vector<8x256xf32>
    %686 = vector.extract_strided_slice %528 {offsets = [48, 0], sizes = [8, 256], strides = [1, 1]} : vector<80x256xf32> to vector<8x256xf32>
    %687 = vector.extract_strided_slice %533 {offsets = [168, 0], sizes = [8, 256], strides = [1, 1]} : vector<320x256xf32> to vector<8x256xf32>
    %688 = arith.mulf %686, %687 : vector<8x256xf32>
    %cst_88 = arith.constant -0.182574183 : f32
    %689 = vector.broadcast %cst_88 : f32 to vector<8x256xf32>
    %690 = arith.mulf %689, %688 : vector<8x256xf32>
    %691 = arith.addf %679, %690 : vector<8x256xf32>
    %692 = vector.extract_strided_slice %528 {offsets = [48, 0], sizes = [8, 256], strides = [1, 1]} : vector<80x256xf32> to vector<8x256xf32>
    %693 = vector.extract_strided_slice %533 {offsets = [176, 0], sizes = [8, 256], strides = [1, 1]} : vector<320x256xf32> to vector<8x256xf32>
    %694 = arith.mulf %692, %693 : vector<8x256xf32>
    %cst_89 = arith.constant 0.182574183 : f32
    %695 = vector.broadcast %cst_89 : f32 to vector<8x256xf32>
    %696 = arith.mulf %695, %694 : vector<8x256xf32>
    %697 = arith.addf %667, %696 : vector<8x256xf32>
    %698 = vector.extract_strided_slice %528 {offsets = [48, 0], sizes = [8, 256], strides = [1, 1]} : vector<80x256xf32> to vector<8x256xf32>
    %699 = vector.extract_strided_slice %533 {offsets = [176, 0], sizes = [8, 256], strides = [1, 1]} : vector<320x256xf32> to vector<8x256xf32>
    %700 = arith.mulf %698, %699 : vector<8x256xf32>
    %cst_90 = arith.constant -0.316227764 : f32
    %701 = vector.broadcast %cst_90 : f32 to vector<8x256xf32>
    %702 = arith.mulf %701, %700 : vector<8x256xf32>
    %703 = arith.addf %673, %702 : vector<8x256xf32>
    %704 = vector.extract_strided_slice %528 {offsets = [48, 0], sizes = [8, 256], strides = [1, 1]} : vector<80x256xf32> to vector<8x256xf32>
    %705 = vector.extract_strided_slice %533 {offsets = [184, 0], sizes = [8, 256], strides = [1, 1]} : vector<320x256xf32> to vector<8x256xf32>
    %706 = arith.mulf %704, %705 : vector<8x256xf32>
    %cst_91 = arith.constant 0.182574183 : f32
    %707 = vector.broadcast %cst_91 : f32 to vector<8x256xf32>
    %708 = arith.mulf %707, %706 : vector<8x256xf32>
    %709 = arith.addf %655, %708 : vector<8x256xf32>
    %710 = vector.extract_strided_slice %528 {offsets = [56, 0], sizes = [8, 256], strides = [1, 1]} : vector<80x256xf32> to vector<8x256xf32>
    %711 = vector.extract_strided_slice %533 {offsets = [168, 0], sizes = [8, 256], strides = [1, 1]} : vector<320x256xf32> to vector<8x256xf32>
    %712 = arith.mulf %710, %711 : vector<8x256xf32>
    %cst_92 = arith.constant -0.182574183 : f32
    %713 = vector.broadcast %cst_92 : f32 to vector<8x256xf32>
    %714 = arith.mulf %713, %712 : vector<8x256xf32>
    %715 = arith.addf %709, %714 : vector<8x256xf32>
    %716 = vector.extract_strided_slice %528 {offsets = [56, 0], sizes = [8, 256], strides = [1, 1]} : vector<80x256xf32> to vector<8x256xf32>
    %717 = vector.extract_strided_slice %533 {offsets = [176, 0], sizes = [8, 256], strides = [1, 1]} : vector<320x256xf32> to vector<8x256xf32>
    %718 = arith.mulf %716, %717 : vector<8x256xf32>
    %cst_93 = arith.constant -0.182574183 : f32
    %719 = vector.broadcast %cst_93 : f32 to vector<8x256xf32>
    %720 = arith.mulf %719, %718 : vector<8x256xf32>
    %721 = arith.addf %685, %720 : vector<8x256xf32>
    %722 = vector.extract_strided_slice %528 {offsets = [56, 0], sizes = [8, 256], strides = [1, 1]} : vector<80x256xf32> to vector<8x256xf32>
    %723 = vector.extract_strided_slice %533 {offsets = [184, 0], sizes = [8, 256], strides = [1, 1]} : vector<320x256xf32> to vector<8x256xf32>
    %724 = arith.mulf %722, %723 : vector<8x256xf32>
    %cst_94 = arith.constant 0.365148365 : f32
    %725 = vector.broadcast %cst_94 : f32 to vector<8x256xf32>
    %726 = arith.mulf %725, %724 : vector<8x256xf32>
    %727 = arith.addf %691, %726 : vector<8x256xf32>
    %728 = vector.extract_strided_slice %528 {offsets = [64, 0], sizes = [8, 256], strides = [1, 1]} : vector<80x256xf32> to vector<8x256xf32>
    %729 = vector.extract_strided_slice %533 {offsets = [168, 0], sizes = [8, 256], strides = [1, 1]} : vector<320x256xf32> to vector<8x256xf32>
    %730 = arith.mulf %728, %729 : vector<8x256xf32>
    %cst_95 = arith.constant -0.316227764 : f32
    %731 = vector.broadcast %cst_95 : f32 to vector<8x256xf32>
    %732 = arith.mulf %731, %730 : vector<8x256xf32>
    %733 = arith.addf %715, %732 : vector<8x256xf32>
    %734 = vector.extract_strided_slice %528 {offsets = [64, 0], sizes = [8, 256], strides = [1, 1]} : vector<80x256xf32> to vector<8x256xf32>
    %735 = vector.extract_strided_slice %533 {offsets = [176, 0], sizes = [8, 256], strides = [1, 1]} : vector<320x256xf32> to vector<8x256xf32>
    %736 = arith.mulf %734, %735 : vector<8x256xf32>
    %cst_96 = arith.constant 0.316227764 : f32
    %737 = vector.broadcast %cst_96 : f32 to vector<8x256xf32>
    %738 = arith.mulf %737, %736 : vector<8x256xf32>
    %739 = arith.addf %721, %738 : vector<8x256xf32>
    %740 = vector.extract_strided_slice %528 {offsets = [32, 0], sizes = [8, 256], strides = [1, 1]} : vector<80x256xf32> to vector<8x256xf32>
    %741 = vector.extract_strided_slice %533 {offsets = [192, 0], sizes = [8, 256], strides = [1, 1]} : vector<320x256xf32> to vector<8x256xf32>
    %742 = arith.mulf %740, %741 : vector<8x256xf32>
    %743 = arith.addf %587, %742 : vector<8x256xf32>
    %744 = vector.extract_strided_slice %528 {offsets = [40, 0], sizes = [8, 256], strides = [1, 1]} : vector<80x256xf32> to vector<8x256xf32>
    %745 = vector.extract_strided_slice %533 {offsets = [200, 0], sizes = [8, 256], strides = [1, 1]} : vector<320x256xf32> to vector<8x256xf32>
    %746 = arith.mulf %744, %745 : vector<8x256xf32>
    %747 = arith.addf %743, %746 : vector<8x256xf32>
    %748 = vector.extract_strided_slice %528 {offsets = [48, 0], sizes = [8, 256], strides = [1, 1]} : vector<80x256xf32> to vector<8x256xf32>
    %749 = vector.extract_strided_slice %533 {offsets = [208, 0], sizes = [8, 256], strides = [1, 1]} : vector<320x256xf32> to vector<8x256xf32>
    %750 = arith.mulf %748, %749 : vector<8x256xf32>
    %751 = arith.addf %747, %750 : vector<8x256xf32>
    %752 = vector.extract_strided_slice %528 {offsets = [56, 0], sizes = [8, 256], strides = [1, 1]} : vector<80x256xf32> to vector<8x256xf32>
    %753 = vector.extract_strided_slice %533 {offsets = [216, 0], sizes = [8, 256], strides = [1, 1]} : vector<320x256xf32> to vector<8x256xf32>
    %754 = arith.mulf %752, %753 : vector<8x256xf32>
    %755 = arith.addf %751, %754 : vector<8x256xf32>
    %756 = vector.extract_strided_slice %528 {offsets = [64, 0], sizes = [8, 256], strides = [1, 1]} : vector<80x256xf32> to vector<8x256xf32>
    %757 = vector.extract_strided_slice %533 {offsets = [224, 0], sizes = [8, 256], strides = [1, 1]} : vector<320x256xf32> to vector<8x256xf32>
    %758 = arith.mulf %756, %757 : vector<8x256xf32>
    %759 = arith.addf %755, %758 : vector<8x256xf32>
    %760 = vector.extract_strided_slice %528 {offsets = [32, 0], sizes = [8, 256], strides = [1, 1]} : vector<80x256xf32> to vector<8x256xf32>
    %761 = vector.extract_strided_slice %533 {offsets = [240, 0], sizes = [8, 256], strides = [1, 1]} : vector<320x256xf32> to vector<8x256xf32>
    %762 = arith.mulf %760, %761 : vector<8x256xf32>
    %cst_97 = arith.constant -0.182574183 : f32
    %763 = vector.broadcast %cst_97 : f32 to vector<8x256xf32>
    %764 = arith.mulf %763, %762 : vector<8x256xf32>
    %765 = arith.addf %607, %764 : vector<8x256xf32>
    %766 = vector.extract_strided_slice %528 {offsets = [32, 0], sizes = [8, 256], strides = [1, 1]} : vector<80x256xf32> to vector<8x256xf32>
    %767 = vector.extract_strided_slice %533 {offsets = [248, 0], sizes = [8, 256], strides = [1, 1]} : vector<320x256xf32> to vector<8x256xf32>
    %768 = arith.mulf %766, %767 : vector<8x256xf32>
    %cst_98 = arith.constant 0.182574183 : f32
    %769 = vector.broadcast %cst_98 : f32 to vector<8x256xf32>
    %770 = arith.mulf %769, %768 : vector<8x256xf32>
    %771 = arith.addf %611, %770 : vector<8x256xf32>
    %772 = vector.extract_strided_slice %528 {offsets = [32, 0], sizes = [8, 256], strides = [1, 1]} : vector<80x256xf32> to vector<8x256xf32>
    %773 = vector.extract_strided_slice %533 {offsets = [256, 0], sizes = [8, 256], strides = [1, 1]} : vector<320x256xf32> to vector<8x256xf32>
    %774 = arith.mulf %772, %773 : vector<8x256xf32>
    %cst_99 = arith.constant -0.365148365 : f32
    %775 = vector.broadcast %cst_99 : f32 to vector<8x256xf32>
    %776 = arith.mulf %775, %774 : vector<8x256xf32>
    %777 = arith.addf %599, %776 : vector<8x256xf32>
    %778 = vector.extract_strided_slice %528 {offsets = [40, 0], sizes = [8, 256], strides = [1, 1]} : vector<80x256xf32> to vector<8x256xf32>
    %779 = vector.extract_strided_slice %533 {offsets = [232, 0], sizes = [8, 256], strides = [1, 1]} : vector<320x256xf32> to vector<8x256xf32>
    %780 = arith.mulf %778, %779 : vector<8x256xf32>
    %cst_100 = arith.constant 0.182574183 : f32
    %781 = vector.broadcast %cst_100 : f32 to vector<8x256xf32>
    %782 = arith.mulf %781, %780 : vector<8x256xf32>
    %783 = arith.addf %765, %782 : vector<8x256xf32>
    %784 = vector.extract_strided_slice %528 {offsets = [40, 0], sizes = [8, 256], strides = [1, 1]} : vector<80x256xf32> to vector<8x256xf32>
    %785 = vector.extract_strided_slice %533 {offsets = [248, 0], sizes = [8, 256], strides = [1, 1]} : vector<320x256xf32> to vector<8x256xf32>
    %786 = arith.mulf %784, %785 : vector<8x256xf32>
    %cst_101 = arith.constant -0.182574183 : f32
    %787 = vector.broadcast %cst_101 : f32 to vector<8x256xf32>
    %788 = arith.mulf %787, %786 : vector<8x256xf32>
    %789 = arith.addf %777, %788 : vector<8x256xf32>
    %790 = vector.extract_strided_slice %528 {offsets = [40, 0], sizes = [8, 256], strides = [1, 1]} : vector<80x256xf32> to vector<8x256xf32>
    %791 = vector.extract_strided_slice %533 {offsets = [256, 0], sizes = [8, 256], strides = [1, 1]} : vector<320x256xf32> to vector<8x256xf32>
    %792 = arith.mulf %790, %791 : vector<8x256xf32>
    %cst_102 = arith.constant 0.182574183 : f32
    %793 = vector.broadcast %cst_102 : f32 to vector<8x256xf32>
    %794 = arith.mulf %793, %792 : vector<8x256xf32>
    %795 = arith.addf %771, %794 : vector<8x256xf32>
    %796 = vector.extract_strided_slice %528 {offsets = [40, 0], sizes = [8, 256], strides = [1, 1]} : vector<80x256xf32> to vector<8x256xf32>
    %797 = vector.extract_strided_slice %533 {offsets = [264, 0], sizes = [8, 256], strides = [1, 1]} : vector<320x256xf32> to vector<8x256xf32>
    %798 = arith.mulf %796, %797 : vector<8x256xf32>
    %cst_103 = arith.constant 0.316227764 : f32
    %799 = vector.broadcast %cst_103 : f32 to vector<8x256xf32>
    %800 = arith.mulf %799, %798 : vector<8x256xf32>
    %801 = arith.addf %795, %800 : vector<8x256xf32>
    %802 = vector.extract_strided_slice %528 {offsets = [48, 0], sizes = [8, 256], strides = [1, 1]} : vector<80x256xf32> to vector<8x256xf32>
    %803 = vector.extract_strided_slice %533 {offsets = [232, 0], sizes = [8, 256], strides = [1, 1]} : vector<320x256xf32> to vector<8x256xf32>
    %804 = arith.mulf %802, %803 : vector<8x256xf32>
    %cst_104 = arith.constant -0.182574183 : f32
    %805 = vector.broadcast %cst_104 : f32 to vector<8x256xf32>
    %806 = arith.mulf %805, %804 : vector<8x256xf32>
    %807 = arith.addf %801, %806 : vector<8x256xf32>
    %808 = vector.extract_strided_slice %528 {offsets = [48, 0], sizes = [8, 256], strides = [1, 1]} : vector<80x256xf32> to vector<8x256xf32>
    %809 = vector.extract_strided_slice %533 {offsets = [240, 0], sizes = [8, 256], strides = [1, 1]} : vector<320x256xf32> to vector<8x256xf32>
    %810 = arith.mulf %808, %809 : vector<8x256xf32>
    %cst_105 = arith.constant 0.182574183 : f32
    %811 = vector.broadcast %cst_105 : f32 to vector<8x256xf32>
    %812 = arith.mulf %811, %810 : vector<8x256xf32>
    %813 = arith.addf %789, %812 : vector<8x256xf32>
    %814 = vector.extract_strided_slice %528 {offsets = [48, 0], sizes = [8, 256], strides = [1, 1]} : vector<80x256xf32> to vector<8x256xf32>
    %815 = vector.extract_strided_slice %533 {offsets = [256, 0], sizes = [8, 256], strides = [1, 1]} : vector<320x256xf32> to vector<8x256xf32>
    %816 = arith.mulf %814, %815 : vector<8x256xf32>
    %cst_106 = arith.constant 0.182574183 : f32
    %817 = vector.broadcast %cst_106 : f32 to vector<8x256xf32>
    %818 = arith.mulf %817, %816 : vector<8x256xf32>
    %819 = arith.addf %783, %818 : vector<8x256xf32>
    %820 = vector.extract_strided_slice %528 {offsets = [48, 0], sizes = [8, 256], strides = [1, 1]} : vector<80x256xf32> to vector<8x256xf32>
    %821 = vector.extract_strided_slice %533 {offsets = [264, 0], sizes = [8, 256], strides = [1, 1]} : vector<320x256xf32> to vector<8x256xf32>
    %822 = arith.mulf %820, %821 : vector<8x256xf32>
    %cst_107 = arith.constant -0.316227764 : f32
    %823 = vector.broadcast %cst_107 : f32 to vector<8x256xf32>
    %824 = arith.mulf %823, %822 : vector<8x256xf32>
    %825 = arith.addf %819, %824 : vector<8x256xf32>
    %826 = vector.extract_strided_slice %528 {offsets = [56, 0], sizes = [8, 256], strides = [1, 1]} : vector<80x256xf32> to vector<8x256xf32>
    %827 = vector.extract_strided_slice %533 {offsets = [232, 0], sizes = [8, 256], strides = [1, 1]} : vector<320x256xf32> to vector<8x256xf32>
    %828 = arith.mulf %826, %827 : vector<8x256xf32>
    %cst_108 = arith.constant 0.365148365 : f32
    %829 = vector.broadcast %cst_108 : f32 to vector<8x256xf32>
    %830 = arith.mulf %829, %828 : vector<8x256xf32>
    %831 = arith.addf %813, %830 : vector<8x256xf32>
    %832 = vector.extract_strided_slice %528 {offsets = [56, 0], sizes = [8, 256], strides = [1, 1]} : vector<80x256xf32> to vector<8x256xf32>
    %833 = vector.extract_strided_slice %533 {offsets = [240, 0], sizes = [8, 256], strides = [1, 1]} : vector<320x256xf32> to vector<8x256xf32>
    %834 = arith.mulf %832, %833 : vector<8x256xf32>
    %cst_109 = arith.constant -0.182574183 : f32
    %835 = vector.broadcast %cst_109 : f32 to vector<8x256xf32>
    %836 = arith.mulf %835, %834 : vector<8x256xf32>
    %837 = arith.addf %807, %836 : vector<8x256xf32>
    %838 = vector.extract_strided_slice %528 {offsets = [56, 0], sizes = [8, 256], strides = [1, 1]} : vector<80x256xf32> to vector<8x256xf32>
    %839 = vector.extract_strided_slice %533 {offsets = [248, 0], sizes = [8, 256], strides = [1, 1]} : vector<320x256xf32> to vector<8x256xf32>
    %840 = arith.mulf %838, %839 : vector<8x256xf32>
    %cst_110 = arith.constant -0.182574183 : f32
    %841 = vector.broadcast %cst_110 : f32 to vector<8x256xf32>
    %842 = arith.mulf %841, %840 : vector<8x256xf32>
    %843 = arith.addf %825, %842 : vector<8x256xf32>
    %844 = vector.extract_strided_slice %528 {offsets = [64, 0], sizes = [8, 256], strides = [1, 1]} : vector<80x256xf32> to vector<8x256xf32>
    %845 = vector.extract_strided_slice %533 {offsets = [240, 0], sizes = [8, 256], strides = [1, 1]} : vector<320x256xf32> to vector<8x256xf32>
    %846 = arith.mulf %844, %845 : vector<8x256xf32>
    %cst_111 = arith.constant -0.316227764 : f32
    %847 = vector.broadcast %cst_111 : f32 to vector<8x256xf32>
    %848 = arith.mulf %847, %846 : vector<8x256xf32>
    %849 = arith.addf %837, %848 : vector<8x256xf32>
    %850 = vector.extract_strided_slice %528 {offsets = [64, 0], sizes = [8, 256], strides = [1, 1]} : vector<80x256xf32> to vector<8x256xf32>
    %851 = vector.extract_strided_slice %533 {offsets = [248, 0], sizes = [8, 256], strides = [1, 1]} : vector<320x256xf32> to vector<8x256xf32>
    %852 = arith.mulf %850, %851 : vector<8x256xf32>
    %cst_112 = arith.constant 0.316227764 : f32
    %853 = vector.broadcast %cst_112 : f32 to vector<8x256xf32>
    %854 = arith.mulf %853, %852 : vector<8x256xf32>
    %855 = arith.addf %843, %854 : vector<8x256xf32>
    %856 = vector.extract_strided_slice %528 {offsets = [32, 0], sizes = [8, 256], strides = [1, 1]} : vector<80x256xf32> to vector<8x256xf32>
    %857 = vector.extract_strided_slice %533 {offsets = [272, 0], sizes = [8, 256], strides = [1, 1]} : vector<320x256xf32> to vector<8x256xf32>
    %858 = arith.mulf %856, %857 : vector<8x256xf32>
    %859 = arith.addf %623, %858 : vector<8x256xf32>
    %860 = vector.extract_strided_slice %528 {offsets = [40, 0], sizes = [8, 256], strides = [1, 1]} : vector<80x256xf32> to vector<8x256xf32>
    %861 = vector.extract_strided_slice %533 {offsets = [280, 0], sizes = [8, 256], strides = [1, 1]} : vector<320x256xf32> to vector<8x256xf32>
    %862 = arith.mulf %860, %861 : vector<8x256xf32>
    %863 = arith.addf %859, %862 : vector<8x256xf32>
    %864 = vector.extract_strided_slice %528 {offsets = [48, 0], sizes = [8, 256], strides = [1, 1]} : vector<80x256xf32> to vector<8x256xf32>
    %865 = vector.extract_strided_slice %533 {offsets = [288, 0], sizes = [8, 256], strides = [1, 1]} : vector<320x256xf32> to vector<8x256xf32>
    %866 = arith.mulf %864, %865 : vector<8x256xf32>
    %867 = arith.addf %863, %866 : vector<8x256xf32>
    %868 = vector.extract_strided_slice %528 {offsets = [56, 0], sizes = [8, 256], strides = [1, 1]} : vector<80x256xf32> to vector<8x256xf32>
    %869 = vector.extract_strided_slice %533 {offsets = [296, 0], sizes = [8, 256], strides = [1, 1]} : vector<320x256xf32> to vector<8x256xf32>
    %870 = arith.mulf %868, %869 : vector<8x256xf32>
    %871 = arith.addf %867, %870 : vector<8x256xf32>
    %872 = vector.extract_strided_slice %528 {offsets = [64, 0], sizes = [8, 256], strides = [1, 1]} : vector<80x256xf32> to vector<8x256xf32>
    %873 = vector.extract_strided_slice %533 {offsets = [304, 0], sizes = [8, 256], strides = [1, 1]} : vector<320x256xf32> to vector<8x256xf32>
    %874 = arith.mulf %872, %873 : vector<8x256xf32>
    %875 = arith.addf %871, %874 : vector<8x256xf32>
    %876 = vector.extract_strided_slice %528 {offsets = [32, 0], sizes = [8, 256], strides = [1, 1]} : vector<80x256xf32> to vector<8x256xf32>
    %877 = vector.extract_strided_slice %533 {offsets = [312, 0], sizes = [8, 256], strides = [1, 1]} : vector<320x256xf32> to vector<8x256xf32>
    %878 = arith.mulf %876, %877 : vector<8x256xf32>
    %879 = arith.addf %727, %878 : vector<8x256xf32>
    %880 = vector.extract_strided_slice %528 {offsets = [40, 0], sizes = [8, 256], strides = [1, 1]} : vector<80x256xf32> to vector<8x256xf32>
    %881 = vector.extract_strided_slice %533 {offsets = [312, 0], sizes = [8, 256], strides = [1, 1]} : vector<320x256xf32> to vector<8x256xf32>
    %882 = arith.mulf %880, %881 : vector<8x256xf32>
    %883 = arith.addf %733, %882 : vector<8x256xf32>
    %884 = vector.extract_strided_slice %528 {offsets = [48, 0], sizes = [8, 256], strides = [1, 1]} : vector<80x256xf32> to vector<8x256xf32>
    %885 = vector.extract_strided_slice %533 {offsets = [312, 0], sizes = [8, 256], strides = [1, 1]} : vector<320x256xf32> to vector<8x256xf32>
    %886 = arith.mulf %884, %885 : vector<8x256xf32>
    %887 = arith.addf %739, %886 : vector<8x256xf32>
    %888 = vector.extract_strided_slice %528 {offsets = [56, 0], sizes = [8, 256], strides = [1, 1]} : vector<80x256xf32> to vector<8x256xf32>
    %889 = vector.extract_strided_slice %533 {offsets = [312, 0], sizes = [8, 256], strides = [1, 1]} : vector<320x256xf32> to vector<8x256xf32>
    %890 = arith.mulf %888, %889 : vector<8x256xf32>
    %891 = arith.addf %697, %890 : vector<8x256xf32>
    %892 = vector.extract_strided_slice %528 {offsets = [64, 0], sizes = [8, 256], strides = [1, 1]} : vector<80x256xf32> to vector<8x256xf32>
    %893 = vector.extract_strided_slice %533 {offsets = [312, 0], sizes = [8, 256], strides = [1, 1]} : vector<320x256xf32> to vector<8x256xf32>
    %894 = arith.mulf %892, %893 : vector<8x256xf32>
    %895 = arith.addf %703, %894 : vector<8x256xf32>
    %896 = tpu.concatenate %759, %849, %855, %831, %879, %883, %887, %891, %895, %875 in 0 : vector<8x256xf32>, vector<8x256xf32>, vector<8x256xf32>, vector<8x256xf32>, vector<8x256xf32>, vector<8x256xf32>, vector<8x256xf32>, vector<8x256xf32>, vector<8x256xf32>, vector<8x256xf32> -> vector<80x256xf32>
    %c3 = arith.constant 3 : index
    %c0_113 = arith.constant 0 : index
    %c0_114 = arith.constant 0 : index
    %897 = vector.load %arg2[%c3, %c0_113, %c0_114] : memref<5x80x80xbf16, #tpu.memory_space<vmem>>, vector<1x80x80xbf16>
    %898 = vector.shape_cast %897 : vector<1x80x80xbf16> to vector<80x80xbf16>
    %899 = arith.truncf %896 : vector<80x256xf32> to vector<80x256xbf16>
    %cst_115 = arith.constant dense<0.000000e+00> : vector<80x256xf32>
    %900 = tpu.matmul %898, %899, %cst_115 {dimension_numbers = #tpu.dot_dimension_numbers<[1], [0], [0], [1], [0, 0, 1, 1], [], []>} : vector<80x80xbf16>, vector<80x256xbf16>, vector<80x256xf32> -> vector<80x256xf32>
    %c3_116 = arith.constant 3 : index
    %c0_117 = arith.constant 0 : index
    %c0_118 = arith.constant 0 : index
    %901 = vector.load %arg3[%c3_116, %c0_117, %c0_118] : memref<5x80x1xf32, #tpu.memory_space<vmem>>, vector<1x80x1xf32>
    %902 = vector.shape_cast %901 : vector<1x80x1xf32> to vector<80x1xf32>
    %903 = vector.broadcast %902 : vector<80x1xf32> to vector<80x256xf32>
    %904 = arith.addf %900, %903 : vector<80x256xf32>
    %905 = vector.extract_strided_slice %904 {offsets = [0, 0], sizes = [8, 256], strides = [1, 1]} : vector<80x256xf32> to vector<8x256xf32>
    %906 = math.absf %905 : vector<8x256xf32>
    %907 = arith.negf %906 : vector<8x256xf32>
    %908 = math.exp %907 : vector<8x256xf32>
    %cst_119 = arith.constant 1.000000e+00 : f32
    %909 = vector.broadcast %cst_119 : f32 to vector<8x256xf32>
    %910 = arith.addf %909, %908 : vector<8x256xf32>
    %911 = arith.divf %909, %910 : vector<8x256xf32>
    %912 = arith.mulf %905, %911 : vector<8x256xf32>
    %913 = vector.extract_strided_slice %904 {offsets = [8, 0], sizes = [8, 256], strides = [1, 1]} : vector<80x256xf32> to vector<8x256xf32>
    %914 = vector.extract_strided_slice %904 {offsets = [16, 0], sizes = [8, 256], strides = [1, 1]} : vector<80x256xf32> to vector<8x256xf32>
    %915 = vector.extract_strided_slice %904 {offsets = [24, 0], sizes = [8, 256], strides = [1, 1]} : vector<80x256xf32> to vector<8x256xf32>
    %916 = arith.mulf %913, %913 : vector<8x256xf32>
    %917 = arith.mulf %914, %914 : vector<8x256xf32>
    %918 = arith.addf %916, %917 : vector<8x256xf32>
    %919 = arith.mulf %915, %915 : vector<8x256xf32>
    %920 = arith.addf %918, %919 : vector<8x256xf32>
    %921 = math.sqrt %920 : vector<8x256xf32>
    %922 = arith.negf %921 : vector<8x256xf32>
    %923 = math.exp %922 : vector<8x256xf32>
    %cst_120 = arith.constant 1.000000e+00 : f32
    %924 = vector.broadcast %cst_120 : f32 to vector<8x256xf32>
    %925 = arith.addf %924, %923 : vector<8x256xf32>
    %926 = arith.divf %924, %925 : vector<8x256xf32>
    %927 = arith.mulf %913, %926 : vector<8x256xf32>
    %928 = arith.mulf %914, %926 : vector<8x256xf32>
    %929 = arith.mulf %915, %926 : vector<8x256xf32>
    %930 = vector.extract_strided_slice %904 {offsets = [32, 0], sizes = [8, 256], strides = [1, 1]} : vector<80x256xf32> to vector<8x256xf32>
    %931 = vector.extract_strided_slice %904 {offsets = [40, 0], sizes = [8, 256], strides = [1, 1]} : vector<80x256xf32> to vector<8x256xf32>
    %932 = vector.extract_strided_slice %904 {offsets = [48, 0], sizes = [8, 256], strides = [1, 1]} : vector<80x256xf32> to vector<8x256xf32>
    %933 = vector.extract_strided_slice %904 {offsets = [56, 0], sizes = [8, 256], strides = [1, 1]} : vector<80x256xf32> to vector<8x256xf32>
    %934 = vector.extract_strided_slice %904 {offsets = [64, 0], sizes = [8, 256], strides = [1, 1]} : vector<80x256xf32> to vector<8x256xf32>
    %935 = arith.mulf %930, %930 : vector<8x256xf32>
    %936 = arith.mulf %931, %931 : vector<8x256xf32>
    %937 = arith.addf %935, %936 : vector<8x256xf32>
    %938 = arith.mulf %932, %932 : vector<8x256xf32>
    %939 = arith.addf %937, %938 : vector<8x256xf32>
    %940 = arith.mulf %933, %933 : vector<8x256xf32>
    %941 = arith.addf %939, %940 : vector<8x256xf32>
    %942 = arith.mulf %934, %934 : vector<8x256xf32>
    %943 = arith.addf %941, %942 : vector<8x256xf32>
    %944 = math.sqrt %943 : vector<8x256xf32>
    %945 = arith.negf %944 : vector<8x256xf32>
    %946 = math.exp %945 : vector<8x256xf32>
    %cst_121 = arith.constant 1.000000e+00 : f32
    %947 = vector.broadcast %cst_121 : f32 to vector<8x256xf32>
    %948 = arith.addf %947, %946 : vector<8x256xf32>
    %949 = arith.divf %947, %948 : vector<8x256xf32>
    %950 = arith.mulf %930, %949 : vector<8x256xf32>
    %951 = arith.mulf %931, %949 : vector<8x256xf32>
    %952 = arith.mulf %932, %949 : vector<8x256xf32>
    %953 = arith.mulf %933, %949 : vector<8x256xf32>
    %954 = arith.mulf %934, %949 : vector<8x256xf32>
    %955 = vector.extract_strided_slice %904 {offsets = [72, 0], sizes = [8, 256], strides = [1, 1]} : vector<80x256xf32> to vector<8x256xf32>
    %956 = math.absf %955 : vector<8x256xf32>
    %957 = arith.negf %956 : vector<8x256xf32>
    %958 = math.exp %957 : vector<8x256xf32>
    %cst_122 = arith.constant 1.000000e+00 : f32
    %959 = vector.broadcast %cst_122 : f32 to vector<8x256xf32>
    %960 = arith.addf %959, %958 : vector<8x256xf32>
    %961 = arith.divf %959, %960 : vector<8x256xf32>
    %962 = arith.mulf %955, %961 : vector<8x256xf32>
    %963 = tpu.concatenate %912, %927, %928, %929, %950, %951, %952, %953, %954, %962 in 0 : vector<8x256xf32>, vector<8x256xf32>, vector<8x256xf32>, vector<8x256xf32>, vector<8x256xf32>, vector<8x256xf32>, vector<8x256xf32>, vector<8x256xf32>, vector<8x256xf32>, vector<8x256xf32> -> vector<80x256xf32>
    %c2_123 = arith.constant 2 : index
    %c0_124 = arith.constant 0 : index
    %c0_125 = arith.constant 0 : index
    %964 = vector.load %arg4[%c2_123, %c0_124, %c0_125] : memref<4x160x80xbf16, #tpu.memory_space<vmem>>, vector<1x160x80xbf16>
    %965 = vector.shape_cast %964 : vector<1x160x80xbf16> to vector<160x80xbf16>
    %966 = arith.truncf %963 : vector<80x256xf32> to vector<80x256xbf16>
    %cst_126 = arith.constant dense<0.000000e+00> : vector<160x256xf32>
    %967 = tpu.matmul %965, %966, %cst_126 {dimension_numbers = #tpu.dot_dimension_numbers<[1], [0], [0], [1], [0, 0, 1, 1], [], []>} : vector<160x80xbf16>, vector<80x256xbf16>, vector<160x256xf32> -> vector<160x256xf32>
    %c2_127 = arith.constant 2 : index
    %c0_128 = arith.constant 0 : index
    %c0_129 = arith.constant 0 : index
    %968 = vector.load %arg5[%c2_127, %c0_128, %c0_129] : memref<4x160x1xf32, #tpu.memory_space<vmem>>, vector<1x160x1xf32>
    %969 = vector.shape_cast %968 : vector<1x160x1xf32> to vector<160x1xf32>
    %970 = vector.broadcast %969 : vector<160x1xf32> to vector<160x256xf32>
    %971 = arith.addf %967, %970 : vector<160x256xf32>
    %972 = vector.extract_strided_slice %971 {offsets = [0, 0], sizes = [80, 256], strides = [1, 1]} : vector<160x256xf32> to vector<80x256xf32>
    %973 = vector.extract_strided_slice %971 {offsets = [80, 0], sizes = [80, 256], strides = [1, 1]} : vector<160x256xf32> to vector<80x256xf32>
    %c2_130 = arith.constant 2 : index
    %c0_131 = arith.constant 0 : index
    %c0_132 = arith.constant 0 : index
    %974 = vector.load %arg6[%c2_130, %c0_131, %c0_132] : memref<3x320x80xbf16, #tpu.memory_space<vmem>>, vector<1x320x80xbf16>
    %975 = vector.shape_cast %974 : vector<1x320x80xbf16> to vector<320x80xbf16>
    %976 = arith.truncf %973 : vector<80x256xf32> to vector<80x256xbf16>
    %cst_133 = arith.constant dense<0.000000e+00> : vector<320x256xf32>
    %977 = tpu.matmul %975, %976, %cst_133 {dimension_numbers = #tpu.dot_dimension_numbers<[1], [0], [0], [1], [0, 0, 1, 1], [], []>} : vector<320x80xbf16>, vector<80x256xbf16>, vector<320x256xf32> -> vector<320x256xf32>
    %978 = vector.extract_strided_slice %972 {offsets = [0, 0], sizes = [8, 256], strides = [1, 1]} : vector<80x256xf32> to vector<8x256xf32>
    %979 = vector.extract_strided_slice %977 {offsets = [0, 0], sizes = [8, 256], strides = [1, 1]} : vector<320x256xf32> to vector<8x256xf32>
    %980 = arith.mulf %978, %979 : vector<8x256xf32>
    %981 = vector.extract_strided_slice %972 {offsets = [0, 0], sizes = [8, 256], strides = [1, 1]} : vector<80x256xf32> to vector<8x256xf32>
    %982 = vector.extract_strided_slice %977 {offsets = [8, 0], sizes = [8, 256], strides = [1, 1]} : vector<320x256xf32> to vector<8x256xf32>
    %983 = arith.mulf %981, %982 : vector<8x256xf32>
    %984 = vector.extract_strided_slice %972 {offsets = [0, 0], sizes = [8, 256], strides = [1, 1]} : vector<80x256xf32> to vector<8x256xf32>
    %985 = vector.extract_strided_slice %977 {offsets = [16, 0], sizes = [8, 256], strides = [1, 1]} : vector<320x256xf32> to vector<8x256xf32>
    %986 = arith.mulf %984, %985 : vector<8x256xf32>
    %987 = vector.extract_strided_slice %972 {offsets = [0, 0], sizes = [8, 256], strides = [1, 1]} : vector<80x256xf32> to vector<8x256xf32>
    %988 = vector.extract_strided_slice %977 {offsets = [24, 0], sizes = [8, 256], strides = [1, 1]} : vector<320x256xf32> to vector<8x256xf32>
    %989 = arith.mulf %987, %988 : vector<8x256xf32>
    %990 = vector.extract_strided_slice %972 {offsets = [0, 0], sizes = [8, 256], strides = [1, 1]} : vector<80x256xf32> to vector<8x256xf32>
    %991 = vector.extract_strided_slice %977 {offsets = [32, 0], sizes = [8, 256], strides = [1, 1]} : vector<320x256xf32> to vector<8x256xf32>
    %992 = arith.mulf %990, %991 : vector<8x256xf32>
    %993 = vector.extract_strided_slice %972 {offsets = [0, 0], sizes = [8, 256], strides = [1, 1]} : vector<80x256xf32> to vector<8x256xf32>
    %994 = vector.extract_strided_slice %977 {offsets = [40, 0], sizes = [8, 256], strides = [1, 1]} : vector<320x256xf32> to vector<8x256xf32>
    %995 = arith.mulf %993, %994 : vector<8x256xf32>
    %996 = vector.extract_strided_slice %972 {offsets = [0, 0], sizes = [8, 256], strides = [1, 1]} : vector<80x256xf32> to vector<8x256xf32>
    %997 = vector.extract_strided_slice %977 {offsets = [48, 0], sizes = [8, 256], strides = [1, 1]} : vector<320x256xf32> to vector<8x256xf32>
    %998 = arith.mulf %996, %997 : vector<8x256xf32>
    %999 = vector.extract_strided_slice %972 {offsets = [0, 0], sizes = [8, 256], strides = [1, 1]} : vector<80x256xf32> to vector<8x256xf32>
    %1000 = vector.extract_strided_slice %977 {offsets = [56, 0], sizes = [8, 256], strides = [1, 1]} : vector<320x256xf32> to vector<8x256xf32>
    %1001 = arith.mulf %999, %1000 : vector<8x256xf32>
    %1002 = vector.extract_strided_slice %972 {offsets = [0, 0], sizes = [8, 256], strides = [1, 1]} : vector<80x256xf32> to vector<8x256xf32>
    %1003 = vector.extract_strided_slice %977 {offsets = [64, 0], sizes = [8, 256], strides = [1, 1]} : vector<320x256xf32> to vector<8x256xf32>
    %1004 = arith.mulf %1002, %1003 : vector<8x256xf32>
    %1005 = vector.extract_strided_slice %972 {offsets = [0, 0], sizes = [8, 256], strides = [1, 1]} : vector<80x256xf32> to vector<8x256xf32>
    %1006 = vector.extract_strided_slice %977 {offsets = [72, 0], sizes = [8, 256], strides = [1, 1]} : vector<320x256xf32> to vector<8x256xf32>
    %1007 = arith.mulf %1005, %1006 : vector<8x256xf32>
    %1008 = vector.extract_strided_slice %972 {offsets = [8, 0], sizes = [8, 256], strides = [1, 1]} : vector<80x256xf32> to vector<8x256xf32>
    %1009 = vector.extract_strided_slice %977 {offsets = [80, 0], sizes = [8, 256], strides = [1, 1]} : vector<320x256xf32> to vector<8x256xf32>
    %1010 = arith.mulf %1008, %1009 : vector<8x256xf32>
    %1011 = arith.addf %983, %1010 : vector<8x256xf32>
    %1012 = vector.extract_strided_slice %972 {offsets = [16, 0], sizes = [8, 256], strides = [1, 1]} : vector<80x256xf32> to vector<8x256xf32>
    %1013 = vector.extract_strided_slice %977 {offsets = [80, 0], sizes = [8, 256], strides = [1, 1]} : vector<320x256xf32> to vector<8x256xf32>
    %1014 = arith.mulf %1012, %1013 : vector<8x256xf32>
    %1015 = arith.addf %986, %1014 : vector<8x256xf32>
    %1016 = vector.extract_strided_slice %972 {offsets = [24, 0], sizes = [8, 256], strides = [1, 1]} : vector<80x256xf32> to vector<8x256xf32>
    %1017 = vector.extract_strided_slice %977 {offsets = [80, 0], sizes = [8, 256], strides = [1, 1]} : vector<320x256xf32> to vector<8x256xf32>
    %1018 = arith.mulf %1016, %1017 : vector<8x256xf32>
    %1019 = arith.addf %989, %1018 : vector<8x256xf32>
    %1020 = vector.extract_strided_slice %972 {offsets = [8, 0], sizes = [8, 256], strides = [1, 1]} : vector<80x256xf32> to vector<8x256xf32>
    %1021 = vector.extract_strided_slice %977 {offsets = [88, 0], sizes = [8, 256], strides = [1, 1]} : vector<320x256xf32> to vector<8x256xf32>
    %1022 = arith.mulf %1020, %1021 : vector<8x256xf32>
    %1023 = arith.addf %980, %1022 : vector<8x256xf32>
    %1024 = vector.extract_strided_slice %972 {offsets = [16, 0], sizes = [8, 256], strides = [1, 1]} : vector<80x256xf32> to vector<8x256xf32>
    %1025 = vector.extract_strided_slice %977 {offsets = [96, 0], sizes = [8, 256], strides = [1, 1]} : vector<320x256xf32> to vector<8x256xf32>
    %1026 = arith.mulf %1024, %1025 : vector<8x256xf32>
    %1027 = arith.addf %1023, %1026 : vector<8x256xf32>
    %1028 = vector.extract_strided_slice %972 {offsets = [24, 0], sizes = [8, 256], strides = [1, 1]} : vector<80x256xf32> to vector<8x256xf32>
    %1029 = vector.extract_strided_slice %977 {offsets = [104, 0], sizes = [8, 256], strides = [1, 1]} : vector<320x256xf32> to vector<8x256xf32>
    %1030 = arith.mulf %1028, %1029 : vector<8x256xf32>
    %1031 = arith.addf %1027, %1030 : vector<8x256xf32>
    %1032 = vector.extract_strided_slice %972 {offsets = [8, 0], sizes = [8, 256], strides = [1, 1]} : vector<80x256xf32> to vector<8x256xf32>
    %1033 = vector.extract_strided_slice %977 {offsets = [120, 0], sizes = [8, 256], strides = [1, 1]} : vector<320x256xf32> to vector<8x256xf32>
    %1034 = arith.mulf %1032, %1033 : vector<8x256xf32>
    %1035 = arith.addf %1019, %1034 : vector<8x256xf32>
    %1036 = vector.extract_strided_slice %972 {offsets = [8, 0], sizes = [8, 256], strides = [1, 1]} : vector<80x256xf32> to vector<8x256xf32>
    %1037 = vector.extract_strided_slice %977 {offsets = [128, 0], sizes = [8, 256], strides = [1, 1]} : vector<320x256xf32> to vector<8x256xf32>
    %1038 = arith.mulf %1036, %1037 : vector<8x256xf32>
    %1039 = arith.subf %1015, %1038 : vector<8x256xf32>
    %1040 = vector.extract_strided_slice %972 {offsets = [16, 0], sizes = [8, 256], strides = [1, 1]} : vector<80x256xf32> to vector<8x256xf32>
    %1041 = vector.extract_strided_slice %977 {offsets = [112, 0], sizes = [8, 256], strides = [1, 1]} : vector<320x256xf32> to vector<8x256xf32>
    %1042 = arith.mulf %1040, %1041 : vector<8x256xf32>
    %1043 = arith.subf %1035, %1042 : vector<8x256xf32>
    %1044 = vector.extract_strided_slice %972 {offsets = [16, 0], sizes = [8, 256], strides = [1, 1]} : vector<80x256xf32> to vector<8x256xf32>
    %1045 = vector.extract_strided_slice %977 {offsets = [128, 0], sizes = [8, 256], strides = [1, 1]} : vector<320x256xf32> to vector<8x256xf32>
    %1046 = arith.mulf %1044, %1045 : vector<8x256xf32>
    %1047 = arith.addf %1011, %1046 : vector<8x256xf32>
    %1048 = vector.extract_strided_slice %972 {offsets = [24, 0], sizes = [8, 256], strides = [1, 1]} : vector<80x256xf32> to vector<8x256xf32>
    %1049 = vector.extract_strided_slice %977 {offsets = [112, 0], sizes = [8, 256], strides = [1, 1]} : vector<320x256xf32> to vector<8x256xf32>
    %1050 = arith.mulf %1048, %1049 : vector<8x256xf32>
    %1051 = arith.addf %1039, %1050 : vector<8x256xf32>
    %1052 = vector.extract_strided_slice %972 {offsets = [24, 0], sizes = [8, 256], strides = [1, 1]} : vector<80x256xf32> to vector<8x256xf32>
    %1053 = vector.extract_strided_slice %977 {offsets = [120, 0], sizes = [8, 256], strides = [1, 1]} : vector<320x256xf32> to vector<8x256xf32>
    %1054 = arith.mulf %1052, %1053 : vector<8x256xf32>
    %1055 = arith.subf %1047, %1054 : vector<8x256xf32>
    %1056 = vector.extract_strided_slice %972 {offsets = [8, 0], sizes = [8, 256], strides = [1, 1]} : vector<80x256xf32> to vector<8x256xf32>
    %1057 = vector.extract_strided_slice %977 {offsets = [136, 0], sizes = [8, 256], strides = [1, 1]} : vector<320x256xf32> to vector<8x256xf32>
    %1058 = arith.mulf %1056, %1057 : vector<8x256xf32>
    %1059 = arith.addf %1007, %1058 : vector<8x256xf32>
    %1060 = vector.extract_strided_slice %972 {offsets = [16, 0], sizes = [8, 256], strides = [1, 1]} : vector<80x256xf32> to vector<8x256xf32>
    %1061 = vector.extract_strided_slice %977 {offsets = [144, 0], sizes = [8, 256], strides = [1, 1]} : vector<320x256xf32> to vector<8x256xf32>
    %1062 = arith.mulf %1060, %1061 : vector<8x256xf32>
    %1063 = arith.addf %1059, %1062 : vector<8x256xf32>
    %1064 = vector.extract_strided_slice %972 {offsets = [24, 0], sizes = [8, 256], strides = [1, 1]} : vector<80x256xf32> to vector<8x256xf32>
    %1065 = vector.extract_strided_slice %977 {offsets = [152, 0], sizes = [8, 256], strides = [1, 1]} : vector<320x256xf32> to vector<8x256xf32>
    %1066 = arith.mulf %1064, %1065 : vector<8x256xf32>
    %1067 = arith.addf %1063, %1066 : vector<8x256xf32>
    %1068 = vector.extract_strided_slice %972 {offsets = [32, 0], sizes = [8, 256], strides = [1, 1]} : vector<80x256xf32> to vector<8x256xf32>
    %1069 = vector.extract_strided_slice %977 {offsets = [160, 0], sizes = [8, 256], strides = [1, 1]} : vector<320x256xf32> to vector<8x256xf32>
    %1070 = arith.mulf %1068, %1069 : vector<8x256xf32>
    %1071 = arith.addf %992, %1070 : vector<8x256xf32>
    %1072 = vector.extract_strided_slice %972 {offsets = [40, 0], sizes = [8, 256], strides = [1, 1]} : vector<80x256xf32> to vector<8x256xf32>
    %1073 = vector.extract_strided_slice %977 {offsets = [160, 0], sizes = [8, 256], strides = [1, 1]} : vector<320x256xf32> to vector<8x256xf32>
    %1074 = arith.mulf %1072, %1073 : vector<8x256xf32>
    %1075 = arith.addf %995, %1074 : vector<8x256xf32>
    %1076 = vector.extract_strided_slice %972 {offsets = [48, 0], sizes = [8, 256], strides = [1, 1]} : vector<80x256xf32> to vector<8x256xf32>
    %1077 = vector.extract_strided_slice %977 {offsets = [160, 0], sizes = [8, 256], strides = [1, 1]} : vector<320x256xf32> to vector<8x256xf32>
    %1078 = arith.mulf %1076, %1077 : vector<8x256xf32>
    %1079 = arith.addf %998, %1078 : vector<8x256xf32>
    %1080 = vector.extract_strided_slice %972 {offsets = [56, 0], sizes = [8, 256], strides = [1, 1]} : vector<80x256xf32> to vector<8x256xf32>
    %1081 = vector.extract_strided_slice %977 {offsets = [160, 0], sizes = [8, 256], strides = [1, 1]} : vector<320x256xf32> to vector<8x256xf32>
    %1082 = arith.mulf %1080, %1081 : vector<8x256xf32>
    %1083 = arith.addf %1001, %1082 : vector<8x256xf32>
    %1084 = vector.extract_strided_slice %972 {offsets = [64, 0], sizes = [8, 256], strides = [1, 1]} : vector<80x256xf32> to vector<8x256xf32>
    %1085 = vector.extract_strided_slice %977 {offsets = [160, 0], sizes = [8, 256], strides = [1, 1]} : vector<320x256xf32> to vector<8x256xf32>
    %1086 = arith.mulf %1084, %1085 : vector<8x256xf32>
    %1087 = arith.addf %1004, %1086 : vector<8x256xf32>
    %1088 = vector.extract_strided_slice %972 {offsets = [32, 0], sizes = [8, 256], strides = [1, 1]} : vector<80x256xf32> to vector<8x256xf32>
    %1089 = vector.extract_strided_slice %977 {offsets = [168, 0], sizes = [8, 256], strides = [1, 1]} : vector<320x256xf32> to vector<8x256xf32>
    %1090 = arith.mulf %1088, %1089 : vector<8x256xf32>
    %cst_134 = arith.constant 0.182574183 : f32
    %1091 = vector.broadcast %cst_134 : f32 to vector<8x256xf32>
    %1092 = arith.mulf %1091, %1090 : vector<8x256xf32>
    %1093 = arith.addf %1079, %1092 : vector<8x256xf32>
    %1094 = vector.extract_strided_slice %972 {offsets = [32, 0], sizes = [8, 256], strides = [1, 1]} : vector<80x256xf32> to vector<8x256xf32>
    %1095 = vector.extract_strided_slice %977 {offsets = [176, 0], sizes = [8, 256], strides = [1, 1]} : vector<320x256xf32> to vector<8x256xf32>
    %1096 = arith.mulf %1094, %1095 : vector<8x256xf32>
    %cst_135 = arith.constant -0.182574183 : f32
    %1097 = vector.broadcast %cst_135 : f32 to vector<8x256xf32>
    %1098 = arith.mulf %1097, %1096 : vector<8x256xf32>
    %1099 = arith.addf %1075, %1098 : vector<8x256xf32>
    %1100 = vector.extract_strided_slice %972 {offsets = [32, 0], sizes = [8, 256], strides = [1, 1]} : vector<80x256xf32> to vector<8x256xf32>
    %1101 = vector.extract_strided_slice %977 {offsets = [184, 0], sizes = [8, 256], strides = [1, 1]} : vector<320x256xf32> to vector<8x256xf32>
    %1102 = arith.mulf %1100, %1101 : vector<8x256xf32>
    %cst_136 = arith.constant -0.365148365 : f32
    %1103 = vector.broadcast %cst_136 : f32 to vector<8x256xf32>
    %1104 = arith.mulf %1103, %1102 : vector<8x256xf32>
    %1105 = arith.addf %1083, %1104 : vector<8x256xf32>
    %1106 = vector.extract_strided_slice %972 {offsets = [40, 0], sizes = [8, 256], strides = [1, 1]} : vector<80x256xf32> to vector<8x256xf32>
    %1107 = vector.extract_strided_slice %977 {offsets = [168, 0], sizes = [8, 256], strides = [1, 1]} : vector<320x256xf32> to vector<8x256xf32>
    %1108 = arith.mulf %1106, %1107 : vector<8x256xf32>
    %cst_137 = arith.constant 0.182574183 : f32
    %1109 = vector.broadcast %cst_137 : f32 to vector<8x256xf32>
    %1110 = arith.mulf %1109, %1108 : vector<8x256xf32>
    %1111 = arith.addf %1105, %1110 : vector<8x256xf32>
    %1112 = vector.extract_strided_slice %972 {offsets = [40, 0], sizes = [8, 256], strides = [1, 1]} : vector<80x256xf32> to vector<8x256xf32>
    %1113 = vector.extract_strided_slice %977 {offsets = [168, 0], sizes = [8, 256], strides = [1, 1]} : vector<320x256xf32> to vector<8x256xf32>
    %1114 = arith.mulf %1112, %1113 : vector<8x256xf32>
    %cst_138 = arith.constant 0.316227764 : f32
    %1115 = vector.broadcast %cst_138 : f32 to vector<8x256xf32>
    %1116 = arith.mulf %1115, %1114 : vector<8x256xf32>
    %1117 = arith.addf %1087, %1116 : vector<8x256xf32>
    %1118 = vector.extract_strided_slice %972 {offsets = [40, 0], sizes = [8, 256], strides = [1, 1]} : vector<80x256xf32> to vector<8x256xf32>
    %1119 = vector.extract_strided_slice %977 {offsets = [176, 0], sizes = [8, 256], strides = [1, 1]} : vector<320x256xf32> to vector<8x256xf32>
    %1120 = arith.mulf %1118, %1119 : vector<8x256xf32>
    %cst_139 = arith.constant 0.182574183 : f32
    %1121 = vector.broadcast %cst_139 : f32 to vector<8x256xf32>
    %1122 = arith.mulf %1121, %1120 : vector<8x256xf32>
    %1123 = arith.addf %1071, %1122 : vector<8x256xf32>
    %1124 = vector.extract_strided_slice %972 {offsets = [40, 0], sizes = [8, 256], strides = [1, 1]} : vector<80x256xf32> to vector<8x256xf32>
    %1125 = vector.extract_strided_slice %977 {offsets = [184, 0], sizes = [8, 256], strides = [1, 1]} : vector<320x256xf32> to vector<8x256xf32>
    %1126 = arith.mulf %1124, %1125 : vector<8x256xf32>
    %cst_140 = arith.constant -0.182574183 : f32
    %1127 = vector.broadcast %cst_140 : f32 to vector<8x256xf32>
    %1128 = arith.mulf %1127, %1126 : vector<8x256xf32>
    %1129 = arith.addf %1093, %1128 : vector<8x256xf32>
    %1130 = vector.extract_strided_slice %972 {offsets = [48, 0], sizes = [8, 256], strides = [1, 1]} : vector<80x256xf32> to vector<8x256xf32>
    %1131 = vector.extract_strided_slice %977 {offsets = [168, 0], sizes = [8, 256], strides = [1, 1]} : vector<320x256xf32> to vector<8x256xf32>
    %1132 = arith.mulf %1130, %1131 : vector<8x256xf32>
    %cst_141 = arith.constant -0.182574183 : f32
    %1133 = vector.broadcast %cst_141 : f32 to vector<8x256xf32>
    %1134 = arith.mulf %1133, %1132 : vector<8x256xf32>
    %1135 = arith.addf %1123, %1134 : vector<8x256xf32>
    %1136 = vector.extract_strided_slice %972 {offsets = [48, 0], sizes = [8, 256], strides = [1, 1]} : vector<80x256xf32> to vector<8x256xf32>
    %1137 = vector.extract_strided_slice %977 {offsets = [176, 0], sizes = [8, 256], strides = [1, 1]} : vector<320x256xf32> to vector<8x256xf32>
    %1138 = arith.mulf %1136, %1137 : vector<8x256xf32>
    %cst_142 = arith.constant 0.182574183 : f32
    %1139 = vector.broadcast %cst_142 : f32 to vector<8x256xf32>
    %1140 = arith.mulf %1139, %1138 : vector<8x256xf32>
    %1141 = arith.addf %1111, %1140 : vector<8x256xf32>
    %1142 = vector.extract_strided_slice %972 {offsets = [48, 0], sizes = [8, 256], strides = [1, 1]} : vector<80x256xf32> to vector<8x256xf32>
    %1143 = vector.extract_strided_slice %977 {offsets = [176, 0], sizes = [8, 256], strides = [1, 1]} : vector<320x256xf32> to vector<8x256xf32>
    %1144 = arith.mulf %1142, %1143 : vector<8x256xf32>
    %cst_143 = arith.constant -0.316227764 : f32
    %1145 = vector.broadcast %cst_143 : f32 to vector<8x256xf32>
    %1146 = arith.mulf %1145, %1144 : vector<8x256xf32>
    %1147 = arith.addf %1117, %1146 : vector<8x256xf32>
    %1148 = vector.extract_strided_slice %972 {offsets = [48, 0], sizes = [8, 256], strides = [1, 1]} : vector<80x256xf32> to vector<8x256xf32>
    %1149 = vector.extract_strided_slice %977 {offsets = [184, 0], sizes = [8, 256], strides = [1, 1]} : vector<320x256xf32> to vector<8x256xf32>
    %1150 = arith.mulf %1148, %1149 : vector<8x256xf32>
    %cst_144 = arith.constant 0.182574183 : f32
    %1151 = vector.broadcast %cst_144 : f32 to vector<8x256xf32>
    %1152 = arith.mulf %1151, %1150 : vector<8x256xf32>
    %1153 = arith.addf %1099, %1152 : vector<8x256xf32>
    %1154 = vector.extract_strided_slice %972 {offsets = [56, 0], sizes = [8, 256], strides = [1, 1]} : vector<80x256xf32> to vector<8x256xf32>
    %1155 = vector.extract_strided_slice %977 {offsets = [168, 0], sizes = [8, 256], strides = [1, 1]} : vector<320x256xf32> to vector<8x256xf32>
    %1156 = arith.mulf %1154, %1155 : vector<8x256xf32>
    %cst_145 = arith.constant -0.182574183 : f32
    %1157 = vector.broadcast %cst_145 : f32 to vector<8x256xf32>
    %1158 = arith.mulf %1157, %1156 : vector<8x256xf32>
    %1159 = arith.addf %1153, %1158 : vector<8x256xf32>
    %1160 = vector.extract_strided_slice %972 {offsets = [56, 0], sizes = [8, 256], strides = [1, 1]} : vector<80x256xf32> to vector<8x256xf32>
    %1161 = vector.extract_strided_slice %977 {offsets = [176, 0], sizes = [8, 256], strides = [1, 1]} : vector<320x256xf32> to vector<8x256xf32>
    %1162 = arith.mulf %1160, %1161 : vector<8x256xf32>
    %cst_146 = arith.constant -0.182574183 : f32
    %1163 = vector.broadcast %cst_146 : f32 to vector<8x256xf32>
    %1164 = arith.mulf %1163, %1162 : vector<8x256xf32>
    %1165 = arith.addf %1129, %1164 : vector<8x256xf32>
    %1166 = vector.extract_strided_slice %972 {offsets = [56, 0], sizes = [8, 256], strides = [1, 1]} : vector<80x256xf32> to vector<8x256xf32>
    %1167 = vector.extract_strided_slice %977 {offsets = [184, 0], sizes = [8, 256], strides = [1, 1]} : vector<320x256xf32> to vector<8x256xf32>
    %1168 = arith.mulf %1166, %1167 : vector<8x256xf32>
    %cst_147 = arith.constant 0.365148365 : f32
    %1169 = vector.broadcast %cst_147 : f32 to vector<8x256xf32>
    %1170 = arith.mulf %1169, %1168 : vector<8x256xf32>
    %1171 = arith.addf %1135, %1170 : vector<8x256xf32>
    %1172 = vector.extract_strided_slice %972 {offsets = [64, 0], sizes = [8, 256], strides = [1, 1]} : vector<80x256xf32> to vector<8x256xf32>
    %1173 = vector.extract_strided_slice %977 {offsets = [168, 0], sizes = [8, 256], strides = [1, 1]} : vector<320x256xf32> to vector<8x256xf32>
    %1174 = arith.mulf %1172, %1173 : vector<8x256xf32>
    %cst_148 = arith.constant -0.316227764 : f32
    %1175 = vector.broadcast %cst_148 : f32 to vector<8x256xf32>
    %1176 = arith.mulf %1175, %1174 : vector<8x256xf32>
    %1177 = arith.addf %1159, %1176 : vector<8x256xf32>
    %1178 = vector.extract_strided_slice %972 {offsets = [64, 0], sizes = [8, 256], strides = [1, 1]} : vector<80x256xf32> to vector<8x256xf32>
    %1179 = vector.extract_strided_slice %977 {offsets = [176, 0], sizes = [8, 256], strides = [1, 1]} : vector<320x256xf32> to vector<8x256xf32>
    %1180 = arith.mulf %1178, %1179 : vector<8x256xf32>
    %cst_149 = arith.constant 0.316227764 : f32
    %1181 = vector.broadcast %cst_149 : f32 to vector<8x256xf32>
    %1182 = arith.mulf %1181, %1180 : vector<8x256xf32>
    %1183 = arith.addf %1165, %1182 : vector<8x256xf32>
    %1184 = vector.extract_strided_slice %972 {offsets = [32, 0], sizes = [8, 256], strides = [1, 1]} : vector<80x256xf32> to vector<8x256xf32>
    %1185 = vector.extract_strided_slice %977 {offsets = [192, 0], sizes = [8, 256], strides = [1, 1]} : vector<320x256xf32> to vector<8x256xf32>
    %1186 = arith.mulf %1184, %1185 : vector<8x256xf32>
    %1187 = arith.addf %1031, %1186 : vector<8x256xf32>
    %1188 = vector.extract_strided_slice %972 {offsets = [40, 0], sizes = [8, 256], strides = [1, 1]} : vector<80x256xf32> to vector<8x256xf32>
    %1189 = vector.extract_strided_slice %977 {offsets = [200, 0], sizes = [8, 256], strides = [1, 1]} : vector<320x256xf32> to vector<8x256xf32>
    %1190 = arith.mulf %1188, %1189 : vector<8x256xf32>
    %1191 = arith.addf %1187, %1190 : vector<8x256xf32>
    %1192 = vector.extract_strided_slice %972 {offsets = [48, 0], sizes = [8, 256], strides = [1, 1]} : vector<80x256xf32> to vector<8x256xf32>
    %1193 = vector.extract_strided_slice %977 {offsets = [208, 0], sizes = [8, 256], strides = [1, 1]} : vector<320x256xf32> to vector<8x256xf32>
    %1194 = arith.mulf %1192, %1193 : vector<8x256xf32>
    %1195 = arith.addf %1191, %1194 : vector<8x256xf32>
    %1196 = vector.extract_strided_slice %972 {offsets = [56, 0], sizes = [8, 256], strides = [1, 1]} : vector<80x256xf32> to vector<8x256xf32>
    %1197 = vector.extract_strided_slice %977 {offsets = [216, 0], sizes = [8, 256], strides = [1, 1]} : vector<320x256xf32> to vector<8x256xf32>
    %1198 = arith.mulf %1196, %1197 : vector<8x256xf32>
    %1199 = arith.addf %1195, %1198 : vector<8x256xf32>
    %1200 = vector.extract_strided_slice %972 {offsets = [64, 0], sizes = [8, 256], strides = [1, 1]} : vector<80x256xf32> to vector<8x256xf32>
    %1201 = vector.extract_strided_slice %977 {offsets = [224, 0], sizes = [8, 256], strides = [1, 1]} : vector<320x256xf32> to vector<8x256xf32>
    %1202 = arith.mulf %1200, %1201 : vector<8x256xf32>
    %1203 = arith.addf %1199, %1202 : vector<8x256xf32>
    %1204 = vector.extract_strided_slice %972 {offsets = [32, 0], sizes = [8, 256], strides = [1, 1]} : vector<80x256xf32> to vector<8x256xf32>
    %1205 = vector.extract_strided_slice %977 {offsets = [240, 0], sizes = [8, 256], strides = [1, 1]} : vector<320x256xf32> to vector<8x256xf32>
    %1206 = arith.mulf %1204, %1205 : vector<8x256xf32>
    %cst_150 = arith.constant -0.182574183 : f32
    %1207 = vector.broadcast %cst_150 : f32 to vector<8x256xf32>
    %1208 = arith.mulf %1207, %1206 : vector<8x256xf32>
    %1209 = arith.addf %1051, %1208 : vector<8x256xf32>
    %1210 = vector.extract_strided_slice %972 {offsets = [32, 0], sizes = [8, 256], strides = [1, 1]} : vector<80x256xf32> to vector<8x256xf32>
    %1211 = vector.extract_strided_slice %977 {offsets = [248, 0], sizes = [8, 256], strides = [1, 1]} : vector<320x256xf32> to vector<8x256xf32>
    %1212 = arith.mulf %1210, %1211 : vector<8x256xf32>
    %cst_151 = arith.constant 0.182574183 : f32
    %1213 = vector.broadcast %cst_151 : f32 to vector<8x256xf32>
    %1214 = arith.mulf %1213, %1212 : vector<8x256xf32>
    %1215 = arith.addf %1055, %1214 : vector<8x256xf32>
    %1216 = vector.extract_strided_slice %972 {offsets = [32, 0], sizes = [8, 256], strides = [1, 1]} : vector<80x256xf32> to vector<8x256xf32>
    %1217 = vector.extract_strided_slice %977 {offsets = [256, 0], sizes = [8, 256], strides = [1, 1]} : vector<320x256xf32> to vector<8x256xf32>
    %1218 = arith.mulf %1216, %1217 : vector<8x256xf32>
    %cst_152 = arith.constant -0.365148365 : f32
    %1219 = vector.broadcast %cst_152 : f32 to vector<8x256xf32>
    %1220 = arith.mulf %1219, %1218 : vector<8x256xf32>
    %1221 = arith.addf %1043, %1220 : vector<8x256xf32>
    %1222 = vector.extract_strided_slice %972 {offsets = [40, 0], sizes = [8, 256], strides = [1, 1]} : vector<80x256xf32> to vector<8x256xf32>
    %1223 = vector.extract_strided_slice %977 {offsets = [232, 0], sizes = [8, 256], strides = [1, 1]} : vector<320x256xf32> to vector<8x256xf32>
    %1224 = arith.mulf %1222, %1223 : vector<8x256xf32>
    %cst_153 = arith.constant 0.182574183 : f32
    %1225 = vector.broadcast %cst_153 : f32 to vector<8x256xf32>
    %1226 = arith.mulf %1225, %1224 : vector<8x256xf32>
    %1227 = arith.addf %1209, %1226 : vector<8x256xf32>
    %1228 = vector.extract_strided_slice %972 {offsets = [40, 0], sizes = [8, 256], strides = [1, 1]} : vector<80x256xf32> to vector<8x256xf32>
    %1229 = vector.extract_strided_slice %977 {offsets = [248, 0], sizes = [8, 256], strides = [1, 1]} : vector<320x256xf32> to vector<8x256xf32>
    %1230 = arith.mulf %1228, %1229 : vector<8x256xf32>
    %cst_154 = arith.constant -0.182574183 : f32
    %1231 = vector.broadcast %cst_154 : f32 to vector<8x256xf32>
    %1232 = arith.mulf %1231, %1230 : vector<8x256xf32>
    %1233 = arith.addf %1221, %1232 : vector<8x256xf32>
    %1234 = vector.extract_strided_slice %972 {offsets = [40, 0], sizes = [8, 256], strides = [1, 1]} : vector<80x256xf32> to vector<8x256xf32>
    %1235 = vector.extract_strided_slice %977 {offsets = [256, 0], sizes = [8, 256], strides = [1, 1]} : vector<320x256xf32> to vector<8x256xf32>
    %1236 = arith.mulf %1234, %1235 : vector<8x256xf32>
    %cst_155 = arith.constant 0.182574183 : f32
    %1237 = vector.broadcast %cst_155 : f32 to vector<8x256xf32>
    %1238 = arith.mulf %1237, %1236 : vector<8x256xf32>
    %1239 = arith.addf %1215, %1238 : vector<8x256xf32>
    %1240 = vector.extract_strided_slice %972 {offsets = [40, 0], sizes = [8, 256], strides = [1, 1]} : vector<80x256xf32> to vector<8x256xf32>
    %1241 = vector.extract_strided_slice %977 {offsets = [264, 0], sizes = [8, 256], strides = [1, 1]} : vector<320x256xf32> to vector<8x256xf32>
    %1242 = arith.mulf %1240, %1241 : vector<8x256xf32>
    %cst_156 = arith.constant 0.316227764 : f32
    %1243 = vector.broadcast %cst_156 : f32 to vector<8x256xf32>
    %1244 = arith.mulf %1243, %1242 : vector<8x256xf32>
    %1245 = arith.addf %1239, %1244 : vector<8x256xf32>
    %1246 = vector.extract_strided_slice %972 {offsets = [48, 0], sizes = [8, 256], strides = [1, 1]} : vector<80x256xf32> to vector<8x256xf32>
    %1247 = vector.extract_strided_slice %977 {offsets = [232, 0], sizes = [8, 256], strides = [1, 1]} : vector<320x256xf32> to vector<8x256xf32>
    %1248 = arith.mulf %1246, %1247 : vector<8x256xf32>
    %cst_157 = arith.constant -0.182574183 : f32
    %1249 = vector.broadcast %cst_157 : f32 to vector<8x256xf32>
    %1250 = arith.mulf %1249, %1248 : vector<8x256xf32>
    %1251 = arith.addf %1245, %1250 : vector<8x256xf32>
    %1252 = vector.extract_strided_slice %972 {offsets = [48, 0], sizes = [8, 256], strides = [1, 1]} : vector<80x256xf32> to vector<8x256xf32>
    %1253 = vector.extract_strided_slice %977 {offsets = [240, 0], sizes = [8, 256], strides = [1, 1]} : vector<320x256xf32> to vector<8x256xf32>
    %1254 = arith.mulf %1252, %1253 : vector<8x256xf32>
    %cst_158 = arith.constant 0.182574183 : f32
    %1255 = vector.broadcast %cst_158 : f32 to vector<8x256xf32>
    %1256 = arith.mulf %1255, %1254 : vector<8x256xf32>
    %1257 = arith.addf %1233, %1256 : vector<8x256xf32>
    %1258 = vector.extract_strided_slice %972 {offsets = [48, 0], sizes = [8, 256], strides = [1, 1]} : vector<80x256xf32> to vector<8x256xf32>
    %1259 = vector.extract_strided_slice %977 {offsets = [256, 0], sizes = [8, 256], strides = [1, 1]} : vector<320x256xf32> to vector<8x256xf32>
    %1260 = arith.mulf %1258, %1259 : vector<8x256xf32>
    %cst_159 = arith.constant 0.182574183 : f32
    %1261 = vector.broadcast %cst_159 : f32 to vector<8x256xf32>
    %1262 = arith.mulf %1261, %1260 : vector<8x256xf32>
    %1263 = arith.addf %1227, %1262 : vector<8x256xf32>
    %1264 = vector.extract_strided_slice %972 {offsets = [48, 0], sizes = [8, 256], strides = [1, 1]} : vector<80x256xf32> to vector<8x256xf32>
    %1265 = vector.extract_strided_slice %977 {offsets = [264, 0], sizes = [8, 256], strides = [1, 1]} : vector<320x256xf32> to vector<8x256xf32>
    %1266 = arith.mulf %1264, %1265 : vector<8x256xf32>
    %cst_160 = arith.constant -0.316227764 : f32
    %1267 = vector.broadcast %cst_160 : f32 to vector<8x256xf32>
    %1268 = arith.mulf %1267, %1266 : vector<8x256xf32>
    %1269 = arith.addf %1263, %1268 : vector<8x256xf32>
    %1270 = vector.extract_strided_slice %972 {offsets = [56, 0], sizes = [8, 256], strides = [1, 1]} : vector<80x256xf32> to vector<8x256xf32>
    %1271 = vector.extract_strided_slice %977 {offsets = [232, 0], sizes = [8, 256], strides = [1, 1]} : vector<320x256xf32> to vector<8x256xf32>
    %1272 = arith.mulf %1270, %1271 : vector<8x256xf32>
    %cst_161 = arith.constant 0.365148365 : f32
    %1273 = vector.broadcast %cst_161 : f32 to vector<8x256xf32>
    %1274 = arith.mulf %1273, %1272 : vector<8x256xf32>
    %1275 = arith.addf %1257, %1274 : vector<8x256xf32>
    %1276 = vector.extract_strided_slice %972 {offsets = [56, 0], sizes = [8, 256], strides = [1, 1]} : vector<80x256xf32> to vector<8x256xf32>
    %1277 = vector.extract_strided_slice %977 {offsets = [240, 0], sizes = [8, 256], strides = [1, 1]} : vector<320x256xf32> to vector<8x256xf32>
    %1278 = arith.mulf %1276, %1277 : vector<8x256xf32>
    %cst_162 = arith.constant -0.182574183 : f32
    %1279 = vector.broadcast %cst_162 : f32 to vector<8x256xf32>
    %1280 = arith.mulf %1279, %1278 : vector<8x256xf32>
    %1281 = arith.addf %1251, %1280 : vector<8x256xf32>
    %1282 = vector.extract_strided_slice %972 {offsets = [56, 0], sizes = [8, 256], strides = [1, 1]} : vector<80x256xf32> to vector<8x256xf32>
    %1283 = vector.extract_strided_slice %977 {offsets = [248, 0], sizes = [8, 256], strides = [1, 1]} : vector<320x256xf32> to vector<8x256xf32>
    %1284 = arith.mulf %1282, %1283 : vector<8x256xf32>
    %cst_163 = arith.constant -0.182574183 : f32
    %1285 = vector.broadcast %cst_163 : f32 to vector<8x256xf32>
    %1286 = arith.mulf %1285, %1284 : vector<8x256xf32>
    %1287 = arith.addf %1269, %1286 : vector<8x256xf32>
    %1288 = vector.extract_strided_slice %972 {offsets = [64, 0], sizes = [8, 256], strides = [1, 1]} : vector<80x256xf32> to vector<8x256xf32>
    %1289 = vector.extract_strided_slice %977 {offsets = [240, 0], sizes = [8, 256], strides = [1, 1]} : vector<320x256xf32> to vector<8x256xf32>
    %1290 = arith.mulf %1288, %1289 : vector<8x256xf32>
    %cst_164 = arith.constant -0.316227764 : f32
    %1291 = vector.broadcast %cst_164 : f32 to vector<8x256xf32>
    %1292 = arith.mulf %1291, %1290 : vector<8x256xf32>
    %1293 = arith.addf %1281, %1292 : vector<8x256xf32>
    %1294 = vector.extract_strided_slice %972 {offsets = [64, 0], sizes = [8, 256], strides = [1, 1]} : vector<80x256xf32> to vector<8x256xf32>
    %1295 = vector.extract_strided_slice %977 {offsets = [248, 0], sizes = [8, 256], strides = [1, 1]} : vector<320x256xf32> to vector<8x256xf32>
    %1296 = arith.mulf %1294, %1295 : vector<8x256xf32>
    %cst_165 = arith.constant 0.316227764 : f32
    %1297 = vector.broadcast %cst_165 : f32 to vector<8x256xf32>
    %1298 = arith.mulf %1297, %1296 : vector<8x256xf32>
    %1299 = arith.addf %1287, %1298 : vector<8x256xf32>
    %1300 = vector.extract_strided_slice %972 {offsets = [32, 0], sizes = [8, 256], strides = [1, 1]} : vector<80x256xf32> to vector<8x256xf32>
    %1301 = vector.extract_strided_slice %977 {offsets = [272, 0], sizes = [8, 256], strides = [1, 1]} : vector<320x256xf32> to vector<8x256xf32>
    %1302 = arith.mulf %1300, %1301 : vector<8x256xf32>
    %1303 = arith.addf %1067, %1302 : vector<8x256xf32>
    %1304 = vector.extract_strided_slice %972 {offsets = [40, 0], sizes = [8, 256], strides = [1, 1]} : vector<80x256xf32> to vector<8x256xf32>
    %1305 = vector.extract_strided_slice %977 {offsets = [280, 0], sizes = [8, 256], strides = [1, 1]} : vector<320x256xf32> to vector<8x256xf32>
    %1306 = arith.mulf %1304, %1305 : vector<8x256xf32>
    %1307 = arith.addf %1303, %1306 : vector<8x256xf32>
    %1308 = vector.extract_strided_slice %972 {offsets = [48, 0], sizes = [8, 256], strides = [1, 1]} : vector<80x256xf32> to vector<8x256xf32>
    %1309 = vector.extract_strided_slice %977 {offsets = [288, 0], sizes = [8, 256], strides = [1, 1]} : vector<320x256xf32> to vector<8x256xf32>
    %1310 = arith.mulf %1308, %1309 : vector<8x256xf32>
    %1311 = arith.addf %1307, %1310 : vector<8x256xf32>
    %1312 = vector.extract_strided_slice %972 {offsets = [56, 0], sizes = [8, 256], strides = [1, 1]} : vector<80x256xf32> to vector<8x256xf32>
    %1313 = vector.extract_strided_slice %977 {offsets = [296, 0], sizes = [8, 256], strides = [1, 1]} : vector<320x256xf32> to vector<8x256xf32>
    %1314 = arith.mulf %1312, %1313 : vector<8x256xf32>
    %1315 = arith.addf %1311, %1314 : vector<8x256xf32>
    %1316 = vector.extract_strided_slice %972 {offsets = [64, 0], sizes = [8, 256], strides = [1, 1]} : vector<80x256xf32> to vector<8x256xf32>
    %1317 = vector.extract_strided_slice %977 {offsets = [304, 0], sizes = [8, 256], strides = [1, 1]} : vector<320x256xf32> to vector<8x256xf32>
    %1318 = arith.mulf %1316, %1317 : vector<8x256xf32>
    %1319 = arith.addf %1315, %1318 : vector<8x256xf32>
    %1320 = vector.extract_strided_slice %972 {offsets = [32, 0], sizes = [8, 256], strides = [1, 1]} : vector<80x256xf32> to vector<8x256xf32>
    %1321 = vector.extract_strided_slice %977 {offsets = [312, 0], sizes = [8, 256], strides = [1, 1]} : vector<320x256xf32> to vector<8x256xf32>
    %1322 = arith.mulf %1320, %1321 : vector<8x256xf32>
    %1323 = arith.addf %1171, %1322 : vector<8x256xf32>
    %1324 = vector.extract_strided_slice %972 {offsets = [40, 0], sizes = [8, 256], strides = [1, 1]} : vector<80x256xf32> to vector<8x256xf32>
    %1325 = vector.extract_strided_slice %977 {offsets = [312, 0], sizes = [8, 256], strides = [1, 1]} : vector<320x256xf32> to vector<8x256xf32>
    %1326 = arith.mulf %1324, %1325 : vector<8x256xf32>
    %1327 = arith.addf %1177, %1326 : vector<8x256xf32>
    %1328 = vector.extract_strided_slice %972 {offsets = [48, 0], sizes = [8, 256], strides = [1, 1]} : vector<80x256xf32> to vector<8x256xf32>
    %1329 = vector.extract_strided_slice %977 {offsets = [312, 0], sizes = [8, 256], strides = [1, 1]} : vector<320x256xf32> to vector<8x256xf32>
    %1330 = arith.mulf %1328, %1329 : vector<8x256xf32>
    %1331 = arith.addf %1183, %1330 : vector<8x256xf32>
    %1332 = vector.extract_strided_slice %972 {offsets = [56, 0], sizes = [8, 256], strides = [1, 1]} : vector<80x256xf32> to vector<8x256xf32>
    %1333 = vector.extract_strided_slice %977 {offsets = [312, 0], sizes = [8, 256], strides = [1, 1]} : vector<320x256xf32> to vector<8x256xf32>
    %1334 = arith.mulf %1332, %1333 : vector<8x256xf32>
    %1335 = arith.addf %1141, %1334 : vector<8x256xf32>
    %1336 = vector.extract_strided_slice %972 {offsets = [64, 0], sizes = [8, 256], strides = [1, 1]} : vector<80x256xf32> to vector<8x256xf32>
    %1337 = vector.extract_strided_slice %977 {offsets = [312, 0], sizes = [8, 256], strides = [1, 1]} : vector<320x256xf32> to vector<8x256xf32>
    %1338 = arith.mulf %1336, %1337 : vector<8x256xf32>
    %1339 = arith.addf %1147, %1338 : vector<8x256xf32>
    %1340 = tpu.concatenate %1203, %1293, %1299, %1275, %1323, %1327, %1331, %1335, %1339, %1319 in 0 : vector<8x256xf32>, vector<8x256xf32>, vector<8x256xf32>, vector<8x256xf32>, vector<8x256xf32>, vector<8x256xf32>, vector<8x256xf32>, vector<8x256xf32>, vector<8x256xf32>, vector<8x256xf32> -> vector<80x256xf32>
    %c4 = arith.constant 4 : index
    %c0_166 = arith.constant 0 : index
    %c0_167 = arith.constant 0 : index
    %1341 = vector.load %arg2[%c4, %c0_166, %c0_167] : memref<5x80x80xbf16, #tpu.memory_space<vmem>>, vector<1x80x80xbf16>
    %1342 = vector.shape_cast %1341 : vector<1x80x80xbf16> to vector<80x80xbf16>
    %1343 = arith.truncf %1340 : vector<80x256xf32> to vector<80x256xbf16>
    %cst_168 = arith.constant dense<0.000000e+00> : vector<80x256xf32>
    %1344 = tpu.matmul %1342, %1343, %cst_168 {dimension_numbers = #tpu.dot_dimension_numbers<[1], [0], [0], [1], [0, 0, 1, 1], [], []>} : vector<80x80xbf16>, vector<80x256xbf16>, vector<80x256xf32> -> vector<80x256xf32>
    %c4_169 = arith.constant 4 : index
    %c0_170 = arith.constant 0 : index
    %c0_171 = arith.constant 0 : index
    %1345 = vector.load %arg3[%c4_169, %c0_170, %c0_171] : memref<5x80x1xf32, #tpu.memory_space<vmem>>, vector<1x80x1xf32>
    %1346 = vector.shape_cast %1345 : vector<1x80x1xf32> to vector<80x1xf32>
    %1347 = vector.broadcast %1346 : vector<80x1xf32> to vector<80x256xf32>
    %1348 = arith.addf %1344, %1347 : vector<80x256xf32>
    %c3_172 = arith.constant 3 : index
    %c0_173 = arith.constant 0 : index
    %c0_174 = arith.constant 0 : index
    %1349 = vector.load %arg4[%c3_172, %c0_173, %c0_174] : memref<4x160x80xbf16, #tpu.memory_space<vmem>>, vector<1x160x80xbf16>
    %1350 = vector.shape_cast %1349 : vector<1x160x80xbf16> to vector<160x80xbf16>
    %1351 = arith.truncf %1348 : vector<80x256xf32> to vector<80x256xbf16>
    %cst_175 = arith.constant dense<0.000000e+00> : vector<160x256xf32>
    %1352 = tpu.matmul %1350, %1351, %cst_175 {dimension_numbers = #tpu.dot_dimension_numbers<[1], [0], [0], [1], [0, 0, 1, 1], [], []>} : vector<160x80xbf16>, vector<80x256xbf16>, vector<160x256xf32> -> vector<160x256xf32>
    %c3_176 = arith.constant 3 : index
    %c0_177 = arith.constant 0 : index
    %c0_178 = arith.constant 0 : index
    %1353 = vector.load %arg5[%c3_176, %c0_177, %c0_178] : memref<4x160x1xf32, #tpu.memory_space<vmem>>, vector<1x160x1xf32>
    %1354 = vector.shape_cast %1353 : vector<1x160x1xf32> to vector<160x1xf32>
    %1355 = vector.broadcast %1354 : vector<160x1xf32> to vector<160x256xf32>
    %1356 = arith.addf %1352, %1355 : vector<160x256xf32>
    %1357 = vector.extract_strided_slice %1356 {offsets = [0, 0], sizes = [80, 256], strides = [1, 1]} : vector<160x256xf32> to vector<80x256xf32>
    %1358 = vector.extract_strided_slice %1356 {offsets = [80, 0], sizes = [80, 256], strides = [1, 1]} : vector<160x256xf32> to vector<80x256xf32>
    %c0_179 = arith.constant 0 : index
    %c0_180 = arith.constant 0 : index
    %1359 = vector.load %arg7[%c0_179, %c0_180] : memref<320x80xbf16, #tpu.memory_space<vmem>>, vector<320x80xbf16>
    %1360 = arith.truncf %1358 : vector<80x256xf32> to vector<80x256xbf16>
    %cst_181 = arith.constant dense<0.000000e+00> : vector<320x256xf32>
    %1361 = tpu.matmul %1359, %1360, %cst_181 {dimension_numbers = #tpu.dot_dimension_numbers<[1], [0], [0], [1], [0, 0, 1, 1], [], []>} : vector<320x80xbf16>, vector<80x256xbf16>, vector<320x256xf32> -> vector<320x256xf32>
    %1362 = vector.extract_strided_slice %1357 {offsets = [0, 0], sizes = [8, 256], strides = [1, 1]} : vector<80x256xf32> to vector<8x256xf32>
    %1363 = vector.extract_strided_slice %1361 {offsets = [0, 0], sizes = [8, 256], strides = [1, 1]} : vector<320x256xf32> to vector<8x256xf32>
    %1364 = arith.mulf %1362, %1363 : vector<8x256xf32>
    %1365 = vector.extract_strided_slice %1357 {offsets = [0, 0], sizes = [8, 256], strides = [1, 1]} : vector<80x256xf32> to vector<8x256xf32>
    %1366 = vector.extract_strided_slice %1361 {offsets = [8, 0], sizes = [8, 256], strides = [1, 1]} : vector<320x256xf32> to vector<8x256xf32>
    %1367 = arith.mulf %1365, %1366 : vector<8x256xf32>
    %1368 = arith.addf %1364, %1367 : vector<8x256xf32>
    %1369 = vector.extract_strided_slice %1357 {offsets = [8, 0], sizes = [8, 256], strides = [1, 1]} : vector<80x256xf32> to vector<8x256xf32>
    %1370 = vector.extract_strided_slice %1361 {offsets = [16, 0], sizes = [8, 256], strides = [1, 1]} : vector<320x256xf32> to vector<8x256xf32>
    %1371 = arith.mulf %1369, %1370 : vector<8x256xf32>
    %1372 = arith.addf %1368, %1371 : vector<8x256xf32>
    %1373 = vector.extract_strided_slice %1357 {offsets = [16, 0], sizes = [8, 256], strides = [1, 1]} : vector<80x256xf32> to vector<8x256xf32>
    %1374 = vector.extract_strided_slice %1361 {offsets = [24, 0], sizes = [8, 256], strides = [1, 1]} : vector<320x256xf32> to vector<8x256xf32>
    %1375 = arith.mulf %1373, %1374 : vector<8x256xf32>
    %1376 = arith.addf %1372, %1375 : vector<8x256xf32>
    %1377 = vector.extract_strided_slice %1357 {offsets = [24, 0], sizes = [8, 256], strides = [1, 1]} : vector<80x256xf32> to vector<8x256xf32>
    %1378 = vector.extract_strided_slice %1361 {offsets = [32, 0], sizes = [8, 256], strides = [1, 1]} : vector<320x256xf32> to vector<8x256xf32>
    %1379 = arith.mulf %1377, %1378 : vector<8x256xf32>
    %1380 = arith.addf %1376, %1379 : vector<8x256xf32>
    %1381 = vector.extract_strided_slice %1357 {offsets = [32, 0], sizes = [8, 256], strides = [1, 1]} : vector<80x256xf32> to vector<8x256xf32>
    %1382 = vector.extract_strided_slice %1361 {offsets = [40, 0], sizes = [8, 256], strides = [1, 1]} : vector<320x256xf32> to vector<8x256xf32>
    %1383 = arith.mulf %1381, %1382 : vector<8x256xf32>
    %1384 = arith.addf %1380, %1383 : vector<8x256xf32>
    %1385 = vector.extract_strided_slice %1357 {offsets = [40, 0], sizes = [8, 256], strides = [1, 1]} : vector<80x256xf32> to vector<8x256xf32>
    %1386 = vector.extract_strided_slice %1361 {offsets = [48, 0], sizes = [8, 256], strides = [1, 1]} : vector<320x256xf32> to vector<8x256xf32>
    %1387 = arith.mulf %1385, %1386 : vector<8x256xf32>
    %1388 = arith.addf %1384, %1387 : vector<8x256xf32>
    %1389 = vector.extract_strided_slice %1357 {offsets = [48, 0], sizes = [8, 256], strides = [1, 1]} : vector<80x256xf32> to vector<8x256xf32>
    %1390 = vector.extract_strided_slice %1361 {offsets = [56, 0], sizes = [8, 256], strides = [1, 1]} : vector<320x256xf32> to vector<8x256xf32>
    %1391 = arith.mulf %1389, %1390 : vector<8x256xf32>
    %1392 = arith.addf %1388, %1391 : vector<8x256xf32>
    %1393 = vector.extract_strided_slice %1357 {offsets = [56, 0], sizes = [8, 256], strides = [1, 1]} : vector<80x256xf32> to vector<8x256xf32>
    %1394 = vector.extract_strided_slice %1361 {offsets = [64, 0], sizes = [8, 256], strides = [1, 1]} : vector<320x256xf32> to vector<8x256xf32>
    %1395 = arith.mulf %1393, %1394 : vector<8x256xf32>
    %1396 = arith.addf %1392, %1395 : vector<8x256xf32>
    %1397 = vector.extract_strided_slice %1357 {offsets = [64, 0], sizes = [8, 256], strides = [1, 1]} : vector<80x256xf32> to vector<8x256xf32>
    %1398 = vector.extract_strided_slice %1361 {offsets = [72, 0], sizes = [8, 256], strides = [1, 1]} : vector<320x256xf32> to vector<8x256xf32>
    %1399 = arith.mulf %1397, %1398 : vector<8x256xf32>
    %1400 = arith.addf %1396, %1399 : vector<8x256xf32>
    %1401 = vector.extract_strided_slice %1357 {offsets = [72, 0], sizes = [8, 256], strides = [1, 1]} : vector<80x256xf32> to vector<8x256xf32>
    %1402 = vector.extract_strided_slice %1361 {offsets = [80, 0], sizes = [8, 256], strides = [1, 1]} : vector<320x256xf32> to vector<8x256xf32>
    %1403 = arith.mulf %1401, %1402 : vector<8x256xf32>
    %1404 = arith.addf %1400, %1403 : vector<8x256xf32>
    %1405 = vector.extract_strided_slice %1357 {offsets = [72, 0], sizes = [8, 256], strides = [1, 1]} : vector<80x256xf32> to vector<8x256xf32>
    %1406 = vector.extract_strided_slice %1361 {offsets = [88, 0], sizes = [8, 256], strides = [1, 1]} : vector<320x256xf32> to vector<8x256xf32>
    %1407 = arith.mulf %1405, %1406 : vector<8x256xf32>
    %1408 = arith.addf %1404, %1407 : vector<8x256xf32>
    %1409 = vector.extract_strided_slice %1357 {offsets = [0, 0], sizes = [8, 256], strides = [1, 1]} : vector<80x256xf32> to vector<8x256xf32>
    %1410 = vector.extract_strided_slice %1361 {offsets = [96, 0], sizes = [8, 256], strides = [1, 1]} : vector<320x256xf32> to vector<8x256xf32>
    %1411 = arith.mulf %1409, %1410 : vector<8x256xf32>
    %1412 = vector.extract_strided_slice %1357 {offsets = [0, 0], sizes = [8, 256], strides = [1, 1]} : vector<80x256xf32> to vector<8x256xf32>
    %1413 = vector.extract_strided_slice %1361 {offsets = [104, 0], sizes = [8, 256], strides = [1, 1]} : vector<320x256xf32> to vector<8x256xf32>
    %1414 = arith.mulf %1412, %1413 : vector<8x256xf32>
    %1415 = vector.extract_strided_slice %1357 {offsets = [0, 0], sizes = [8, 256], strides = [1, 1]} : vector<80x256xf32> to vector<8x256xf32>
    %1416 = vector.extract_strided_slice %1361 {offsets = [112, 0], sizes = [8, 256], strides = [1, 1]} : vector<320x256xf32> to vector<8x256xf32>
    %1417 = arith.mulf %1415, %1416 : vector<8x256xf32>
    %1418 = vector.extract_strided_slice %1357 {offsets = [0, 0], sizes = [8, 256], strides = [1, 1]} : vector<80x256xf32> to vector<8x256xf32>
    %1419 = vector.extract_strided_slice %1361 {offsets = [120, 0], sizes = [8, 256], strides = [1, 1]} : vector<320x256xf32> to vector<8x256xf32>
    %1420 = arith.mulf %1418, %1419 : vector<8x256xf32>
    %1421 = vector.extract_strided_slice %1357 {offsets = [0, 0], sizes = [8, 256], strides = [1, 1]} : vector<80x256xf32> to vector<8x256xf32>
    %1422 = vector.extract_strided_slice %1361 {offsets = [128, 0], sizes = [8, 256], strides = [1, 1]} : vector<320x256xf32> to vector<8x256xf32>
    %1423 = arith.mulf %1421, %1422 : vector<8x256xf32>
    %1424 = vector.extract_strided_slice %1357 {offsets = [8, 0], sizes = [8, 256], strides = [1, 1]} : vector<80x256xf32> to vector<8x256xf32>
    %1425 = vector.extract_strided_slice %1361 {offsets = [136, 0], sizes = [8, 256], strides = [1, 1]} : vector<320x256xf32> to vector<8x256xf32>
    %1426 = arith.mulf %1424, %1425 : vector<8x256xf32>
    %cst_182 = arith.constant 0.316227764 : f32
    %1427 = vector.broadcast %cst_182 : f32 to vector<8x256xf32>
    %1428 = arith.mulf %1427, %1426 : vector<8x256xf32>
    %1429 = arith.addf %1420, %1428 : vector<8x256xf32>
    %1430 = vector.extract_strided_slice %1357 {offsets = [8, 0], sizes = [8, 256], strides = [1, 1]} : vector<80x256xf32> to vector<8x256xf32>
    %1431 = vector.extract_strided_slice %1361 {offsets = [136, 0], sizes = [8, 256], strides = [1, 1]} : vector<320x256xf32> to vector<8x256xf32>
    %1432 = arith.mulf %1430, %1431 : vector<8x256xf32>
    %cst_183 = arith.constant -0.182574183 : f32
    %1433 = vector.broadcast %cst_183 : f32 to vector<8x256xf32>
    %1434 = arith.mulf %1433, %1432 : vector<8x256xf32>
    %1435 = arith.addf %1423, %1434 : vector<8x256xf32>
    %1436 = vector.extract_strided_slice %1357 {offsets = [8, 0], sizes = [8, 256], strides = [1, 1]} : vector<80x256xf32> to vector<8x256xf32>
    %1437 = vector.extract_strided_slice %1361 {offsets = [144, 0], sizes = [8, 256], strides = [1, 1]} : vector<320x256xf32> to vector<8x256xf32>
    %1438 = arith.mulf %1436, %1437 : vector<8x256xf32>
    %cst_184 = arith.constant 0.316227764 : f32
    %1439 = vector.broadcast %cst_184 : f32 to vector<8x256xf32>
    %1440 = arith.mulf %1439, %1438 : vector<8x256xf32>
    %1441 = arith.addf %1411, %1440 : vector<8x256xf32>
    %1442 = vector.extract_strided_slice %1357 {offsets = [8, 0], sizes = [8, 256], strides = [1, 1]} : vector<80x256xf32> to vector<8x256xf32>
    %1443 = vector.extract_strided_slice %1361 {offsets = [152, 0], sizes = [8, 256], strides = [1, 1]} : vector<320x256xf32> to vector<8x256xf32>
    %1444 = arith.mulf %1442, %1443 : vector<8x256xf32>
    %cst_185 = arith.constant 0.316227764 : f32
    %1445 = vector.broadcast %cst_185 : f32 to vector<8x256xf32>
    %1446 = arith.mulf %1445, %1444 : vector<8x256xf32>
    %1447 = arith.addf %1417, %1446 : vector<8x256xf32>
    %1448 = vector.extract_strided_slice %1357 {offsets = [16, 0], sizes = [8, 256], strides = [1, 1]} : vector<80x256xf32> to vector<8x256xf32>
    %1449 = vector.extract_strided_slice %1361 {offsets = [136, 0], sizes = [8, 256], strides = [1, 1]} : vector<320x256xf32> to vector<8x256xf32>
    %1450 = arith.mulf %1448, %1449 : vector<8x256xf32>
    %cst_186 = arith.constant 0.316227764 : f32
    %1451 = vector.broadcast %cst_186 : f32 to vector<8x256xf32>
    %1452 = arith.mulf %1451, %1450 : vector<8x256xf32>
    %1453 = arith.addf %1441, %1452 : vector<8x256xf32>
    %1454 = vector.extract_strided_slice %1357 {offsets = [16, 0], sizes = [8, 256], strides = [1, 1]} : vector<80x256xf32> to vector<8x256xf32>
    %1455 = vector.extract_strided_slice %1361 {offsets = [144, 0], sizes = [8, 256], strides = [1, 1]} : vector<320x256xf32> to vector<8x256xf32>
    %1456 = arith.mulf %1454, %1455 : vector<8x256xf32>
    %cst_187 = arith.constant -0.316227764 : f32
    %1457 = vector.broadcast %cst_187 : f32 to vector<8x256xf32>
    %1458 = arith.mulf %1457, %1456 : vector<8x256xf32>
    %1459 = arith.addf %1429, %1458 : vector<8x256xf32>
    %1460 = vector.extract_strided_slice %1357 {offsets = [16, 0], sizes = [8, 256], strides = [1, 1]} : vector<80x256xf32> to vector<8x256xf32>
    %1461 = vector.extract_strided_slice %1361 {offsets = [144, 0], sizes = [8, 256], strides = [1, 1]} : vector<320x256xf32> to vector<8x256xf32>
    %1462 = arith.mulf %1460, %1461 : vector<8x256xf32>
    %cst_188 = arith.constant -0.182574183 : f32
    %1463 = vector.broadcast %cst_188 : f32 to vector<8x256xf32>
    %1464 = arith.mulf %1463, %1462 : vector<8x256xf32>
    %1465 = arith.addf %1435, %1464 : vector<8x256xf32>
    %1466 = vector.extract_strided_slice %1357 {offsets = [16, 0], sizes = [8, 256], strides = [1, 1]} : vector<80x256xf32> to vector<8x256xf32>
    %1467 = vector.extract_strided_slice %1361 {offsets = [152, 0], sizes = [8, 256], strides = [1, 1]} : vector<320x256xf32> to vector<8x256xf32>
    %1468 = arith.mulf %1466, %1467 : vector<8x256xf32>
    %cst_189 = arith.constant 0.316227764 : f32
    %1469 = vector.broadcast %cst_189 : f32 to vector<8x256xf32>
    %1470 = arith.mulf %1469, %1468 : vector<8x256xf32>
    %1471 = arith.addf %1414, %1470 : vector<8x256xf32>
    %1472 = vector.extract_strided_slice %1357 {offsets = [24, 0], sizes = [8, 256], strides = [1, 1]} : vector<80x256xf32> to vector<8x256xf32>
    %1473 = vector.extract_strided_slice %1361 {offsets = [136, 0], sizes = [8, 256], strides = [1, 1]} : vector<320x256xf32> to vector<8x256xf32>
    %1474 = arith.mulf %1472, %1473 : vector<8x256xf32>
    %cst_190 = arith.constant 0.316227764 : f32
    %1475 = vector.broadcast %cst_190 : f32 to vector<8x256xf32>
    %1476 = arith.mulf %1475, %1474 : vector<8x256xf32>
    %1477 = arith.addf %1447, %1476 : vector<8x256xf32>
    %1478 = vector.extract_strided_slice %1357 {offsets = [24, 0], sizes = [8, 256], strides = [1, 1]} : vector<80x256xf32> to vector<8x256xf32>
    %1479 = vector.extract_strided_slice %1361 {offsets = [144, 0], sizes = [8, 256], strides = [1, 1]} : vector<320x256xf32> to vector<8x256xf32>
    %1480 = arith.mulf %1478, %1479 : vector<8x256xf32>
    %cst_191 = arith.constant 0.316227764 : f32
    %1481 = vector.broadcast %cst_191 : f32 to vector<8x256xf32>
    %1482 = arith.mulf %1481, %1480 : vector<8x256xf32>
    %1483 = arith.addf %1471, %1482 : vector<8x256xf32>
    %1484 = vector.extract_strided_slice %1357 {offsets = [24, 0], sizes = [8, 256], strides = [1, 1]} : vector<80x256xf32> to vector<8x256xf32>
    %1485 = vector.extract_strided_slice %1361 {offsets = [152, 0], sizes = [8, 256], strides = [1, 1]} : vector<320x256xf32> to vector<8x256xf32>
    %1486 = arith.mulf %1484, %1485 : vector<8x256xf32>
    %cst_192 = arith.constant 0.365148365 : f32
    %1487 = vector.broadcast %cst_192 : f32 to vector<8x256xf32>
    %1488 = arith.mulf %1487, %1486 : vector<8x256xf32>
    %1489 = arith.addf %1465, %1488 : vector<8x256xf32>
    %1490 = vector.extract_strided_slice %1357 {offsets = [8, 0], sizes = [8, 256], strides = [1, 1]} : vector<80x256xf32> to vector<8x256xf32>
    %1491 = vector.extract_strided_slice %1361 {offsets = [160, 0], sizes = [8, 256], strides = [1, 1]} : vector<320x256xf32> to vector<8x256xf32>
    %1492 = arith.mulf %1490, %1491 : vector<8x256xf32>
    %cst_193 = arith.constant 0.182574183 : f32
    %1493 = vector.broadcast %cst_193 : f32 to vector<8x256xf32>
    %1494 = arith.mulf %1493, %1492 : vector<8x256xf32>
    %1495 = arith.addf %1477, %1494 : vector<8x256xf32>
    %1496 = vector.extract_strided_slice %1357 {offsets = [8, 0], sizes = [8, 256], strides = [1, 1]} : vector<80x256xf32> to vector<8x256xf32>
    %1497 = vector.extract_strided_slice %1361 {offsets = [168, 0], sizes = [8, 256], strides = [1, 1]} : vector<320x256xf32> to vector<8x256xf32>
    %1498 = arith.mulf %1496, %1497 : vector<8x256xf32>
    %cst_194 = arith.constant 0.182574183 : f32
    %1499 = vector.broadcast %cst_194 : f32 to vector<8x256xf32>
    %1500 = arith.mulf %1499, %1498 : vector<8x256xf32>
    %1501 = arith.addf %1459, %1500 : vector<8x256xf32>
    %1502 = vector.extract_strided_slice %1357 {offsets = [8, 0], sizes = [8, 256], strides = [1, 1]} : vector<80x256xf32> to vector<8x256xf32>
    %1503 = vector.extract_strided_slice %1361 {offsets = [168, 0], sizes = [8, 256], strides = [1, 1]} : vector<320x256xf32> to vector<8x256xf32>
    %1504 = arith.mulf %1502, %1503 : vector<8x256xf32>
    %cst_195 = arith.constant 0.316227764 : f32
    %1505 = vector.broadcast %cst_195 : f32 to vector<8x256xf32>
    %1506 = arith.mulf %1505, %1504 : vector<8x256xf32>
    %1507 = arith.addf %1489, %1506 : vector<8x256xf32>
    %1508 = vector.extract_strided_slice %1357 {offsets = [8, 0], sizes = [8, 256], strides = [1, 1]} : vector<80x256xf32> to vector<8x256xf32>
    %1509 = vector.extract_strided_slice %1361 {offsets = [176, 0], sizes = [8, 256], strides = [1, 1]} : vector<320x256xf32> to vector<8x256xf32>
    %1510 = arith.mulf %1508, %1509 : vector<8x256xf32>
    %cst_196 = arith.constant -0.182574183 : f32
    %1511 = vector.broadcast %cst_196 : f32 to vector<8x256xf32>
    %1512 = arith.mulf %1511, %1510 : vector<8x256xf32>
    %1513 = arith.addf %1453, %1512 : vector<8x256xf32>
    %1514 = vector.extract_strided_slice %1357 {offsets = [8, 0], sizes = [8, 256], strides = [1, 1]} : vector<80x256xf32> to vector<8x256xf32>
    %1515 = vector.extract_strided_slice %1361 {offsets = [184, 0], sizes = [8, 256], strides = [1, 1]} : vector<320x256xf32> to vector<8x256xf32>
    %1516 = arith.mulf %1514, %1515 : vector<8x256xf32>
    %cst_197 = arith.constant -0.182574183 : f32
    %1517 = vector.broadcast %cst_197 : f32 to vector<8x256xf32>
    %1518 = arith.mulf %1517, %1516 : vector<8x256xf32>
    %1519 = arith.addf %1483, %1518 : vector<8x256xf32>
    %1520 = vector.extract_strided_slice %1357 {offsets = [8, 0], sizes = [8, 256], strides = [1, 1]} : vector<80x256xf32> to vector<8x256xf32>
    %1521 = vector.extract_strided_slice %1361 {offsets = [192, 0], sizes = [8, 256], strides = [1, 1]} : vector<320x256xf32> to vector<8x256xf32>
    %1522 = arith.mulf %1520, %1521 : vector<8x256xf32>
    %cst_198 = arith.constant -0.316227764 : f32
    %1523 = vector.broadcast %cst_198 : f32 to vector<8x256xf32>
    %1524 = arith.mulf %1523, %1522 : vector<8x256xf32>
    %1525 = arith.addf %1519, %1524 : vector<8x256xf32>
    %1526 = vector.extract_strided_slice %1357 {offsets = [16, 0], sizes = [8, 256], strides = [1, 1]} : vector<80x256xf32> to vector<8x256xf32>
    %1527 = vector.extract_strided_slice %1361 {offsets = [160, 0], sizes = [8, 256], strides = [1, 1]} : vector<320x256xf32> to vector<8x256xf32>
    %1528 = arith.mulf %1526, %1527 : vector<8x256xf32>
    %cst_199 = arith.constant -0.182574183 : f32
    %1529 = vector.broadcast %cst_199 : f32 to vector<8x256xf32>
    %1530 = arith.mulf %1529, %1528 : vector<8x256xf32>
    %1531 = arith.addf %1525, %1530 : vector<8x256xf32>
    %1532 = vector.extract_strided_slice %1357 {offsets = [16, 0], sizes = [8, 256], strides = [1, 1]} : vector<80x256xf32> to vector<8x256xf32>
    %1533 = vector.extract_strided_slice %1361 {offsets = [168, 0], sizes = [8, 256], strides = [1, 1]} : vector<320x256xf32> to vector<8x256xf32>
    %1534 = arith.mulf %1532, %1533 : vector<8x256xf32>
    %cst_200 = arith.constant 0.182574183 : f32
    %1535 = vector.broadcast %cst_200 : f32 to vector<8x256xf32>
    %1536 = arith.mulf %1535, %1534 : vector<8x256xf32>
    %1537 = arith.addf %1513, %1536 : vector<8x256xf32>
    %1538 = vector.extract_strided_slice %1357 {offsets = [16, 0], sizes = [8, 256], strides = [1, 1]} : vector<80x256xf32> to vector<8x256xf32>
    %1539 = vector.extract_strided_slice %1361 {offsets = [176, 0], sizes = [8, 256], strides = [1, 1]} : vector<320x256xf32> to vector<8x256xf32>
    %1540 = arith.mulf %1538, %1539 : vector<8x256xf32>
    %cst_201 = arith.constant 0.182574183 : f32
    %1541 = vector.broadcast %cst_201 : f32 to vector<8x256xf32>
    %1542 = arith.mulf %1541, %1540 : vector<8x256xf32>
    %1543 = arith.addf %1501, %1542 : vector<8x256xf32>
    %1544 = vector.extract_strided_slice %1357 {offsets = [16, 0], sizes = [8, 256], strides = [1, 1]} : vector<80x256xf32> to vector<8x256xf32>
    %1545 = vector.extract_strided_slice %1361 {offsets = [176, 0], sizes = [8, 256], strides = [1, 1]} : vector<320x256xf32> to vector<8x256xf32>
    %1546 = arith.mulf %1544, %1545 : vector<8x256xf32>
    %cst_202 = arith.constant -0.316227764 : f32
    %1547 = vector.broadcast %cst_202 : f32 to vector<8x256xf32>
    %1548 = arith.mulf %1547, %1546 : vector<8x256xf32>
    %1549 = arith.addf %1507, %1548 : vector<8x256xf32>
    %1550 = vector.extract_strided_slice %1357 {offsets = [16, 0], sizes = [8, 256], strides = [1, 1]} : vector<80x256xf32> to vector<8x256xf32>
    %1551 = vector.extract_strided_slice %1361 {offsets = [184, 0], sizes = [8, 256], strides = [1, 1]} : vector<320x256xf32> to vector<8x256xf32>
    %1552 = arith.mulf %1550, %1551 : vector<8x256xf32>
    %cst_203 = arith.constant -0.182574183 : f32
    %1553 = vector.broadcast %cst_203 : f32 to vector<8x256xf32>
    %1554 = arith.mulf %1553, %1552 : vector<8x256xf32>
    %1555 = arith.addf %1495, %1554 : vector<8x256xf32>
    %1556 = vector.extract_strided_slice %1357 {offsets = [16, 0], sizes = [8, 256], strides = [1, 1]} : vector<80x256xf32> to vector<8x256xf32>
    %1557 = vector.extract_strided_slice %1361 {offsets = [192, 0], sizes = [8, 256], strides = [1, 1]} : vector<320x256xf32> to vector<8x256xf32>
    %1558 = arith.mulf %1556, %1557 : vector<8x256xf32>
    %cst_204 = arith.constant 0.316227764 : f32
    %1559 = vector.broadcast %cst_204 : f32 to vector<8x256xf32>
    %1560 = arith.mulf %1559, %1558 : vector<8x256xf32>
    %1561 = arith.addf %1555, %1560 : vector<8x256xf32>
    %1562 = vector.extract_strided_slice %1357 {offsets = [24, 0], sizes = [8, 256], strides = [1, 1]} : vector<80x256xf32> to vector<8x256xf32>
    %1563 = vector.extract_strided_slice %1361 {offsets = [160, 0], sizes = [8, 256], strides = [1, 1]} : vector<320x256xf32> to vector<8x256xf32>
    %1564 = arith.mulf %1562, %1563 : vector<8x256xf32>
    %cst_205 = arith.constant -0.365148365 : f32
    %1565 = vector.broadcast %cst_205 : f32 to vector<8x256xf32>
    %1566 = arith.mulf %1565, %1564 : vector<8x256xf32>
    %1567 = arith.addf %1543, %1566 : vector<8x256xf32>
    %1568 = vector.extract_strided_slice %1357 {offsets = [24, 0], sizes = [8, 256], strides = [1, 1]} : vector<80x256xf32> to vector<8x256xf32>
    %1569 = vector.extract_strided_slice %1361 {offsets = [168, 0], sizes = [8, 256], strides = [1, 1]} : vector<320x256xf32> to vector<8x256xf32>
    %1570 = arith.mulf %1568, %1569 : vector<8x256xf32>
    %cst_206 = arith.constant -0.182574183 : f32
    %1571 = vector.broadcast %cst_206 : f32 to vector<8x256xf32>
    %1572 = arith.mulf %1571, %1570 : vector<8x256xf32>
    %1573 = arith.addf %1561, %1572 : vector<8x256xf32>
    %1574 = vector.extract_strided_slice %1357 {offsets = [24, 0], sizes = [8, 256], strides = [1, 1]} : vector<80x256xf32> to vector<8x256xf32>
    %1575 = vector.extract_strided_slice %1361 {offsets = [176, 0], sizes = [8, 256], strides = [1, 1]} : vector<320x256xf32> to vector<8x256xf32>
    %1576 = arith.mulf %1574, %1575 : vector<8x256xf32>
    %cst_207 = arith.constant 0.182574183 : f32
    %1577 = vector.broadcast %cst_207 : f32 to vector<8x256xf32>
    %1578 = arith.mulf %1577, %1576 : vector<8x256xf32>
    %1579 = arith.addf %1531, %1578 : vector<8x256xf32>
    %1580 = vector.extract_strided_slice %1357 {offsets = [24, 0], sizes = [8, 256], strides = [1, 1]} : vector<80x256xf32> to vector<8x256xf32>
    %1581 = vector.extract_strided_slice %1361 {offsets = [184, 0], sizes = [8, 256], strides = [1, 1]} : vector<320x256xf32> to vector<8x256xf32>
    %1582 = arith.mulf %1580, %1581 : vector<8x256xf32>
    %cst_208 = arith.constant 0.365148365 : f32
    %1583 = vector.broadcast %cst_208 : f32 to vector<8x256xf32>
    %1584 = arith.mulf %1583, %1582 : vector<8x256xf32>
    %1585 = arith.addf %1537, %1584 : vector<8x256xf32>
    %1586 = vector.extract_strided_slice %1357 {offsets = [32, 0], sizes = [8, 256], strides = [1, 1]} : vector<80x256xf32> to vector<8x256xf32>
    %1587 = vector.extract_strided_slice %1361 {offsets = [200, 0], sizes = [8, 256], strides = [1, 1]} : vector<320x256xf32> to vector<8x256xf32>
    %1588 = arith.mulf %1586, %1587 : vector<8x256xf32>
    %1589 = arith.addf %1585, %1588 : vector<8x256xf32>
    %1590 = vector.extract_strided_slice %1357 {offsets = [40, 0], sizes = [8, 256], strides = [1, 1]} : vector<80x256xf32> to vector<8x256xf32>
    %1591 = vector.extract_strided_slice %1361 {offsets = [200, 0], sizes = [8, 256], strides = [1, 1]} : vector<320x256xf32> to vector<8x256xf32>
    %1592 = arith.mulf %1590, %1591 : vector<8x256xf32>
    %1593 = arith.addf %1579, %1592 : vector<8x256xf32>
    %1594 = vector.extract_strided_slice %1357 {offsets = [48, 0], sizes = [8, 256], strides = [1, 1]} : vector<80x256xf32> to vector<8x256xf32>
    %1595 = vector.extract_strided_slice %1361 {offsets = [200, 0], sizes = [8, 256], strides = [1, 1]} : vector<320x256xf32> to vector<8x256xf32>
    %1596 = arith.mulf %1594, %1595 : vector<8x256xf32>
    %1597 = arith.addf %1573, %1596 : vector<8x256xf32>
    %1598 = vector.extract_strided_slice %1357 {offsets = [56, 0], sizes = [8, 256], strides = [1, 1]} : vector<80x256xf32> to vector<8x256xf32>
    %1599 = vector.extract_strided_slice %1361 {offsets = [200, 0], sizes = [8, 256], strides = [1, 1]} : vector<320x256xf32> to vector<8x256xf32>
    %1600 = arith.mulf %1598, %1599 : vector<8x256xf32>
    %1601 = arith.addf %1567, %1600 : vector<8x256xf32>
    %1602 = vector.extract_strided_slice %1357 {offsets = [64, 0], sizes = [8, 256], strides = [1, 1]} : vector<80x256xf32> to vector<8x256xf32>
    %1603 = vector.extract_strided_slice %1361 {offsets = [200, 0], sizes = [8, 256], strides = [1, 1]} : vector<320x256xf32> to vector<8x256xf32>
    %1604 = arith.mulf %1602, %1603 : vector<8x256xf32>
    %1605 = arith.addf %1549, %1604 : vector<8x256xf32>
    %1606 = vector.extract_strided_slice %1357 {offsets = [32, 0], sizes = [8, 256], strides = [1, 1]} : vector<80x256xf32> to vector<8x256xf32>
    %1607 = vector.extract_strided_slice %1361 {offsets = [208, 0], sizes = [8, 256], strides = [1, 1]} : vector<320x256xf32> to vector<8x256xf32>
    %1608 = arith.mulf %1606, %1607 : vector<8x256xf32>
    %cst_209 = arith.constant 0.182574183 : f32
    %1609 = vector.broadcast %cst_209 : f32 to vector<8x256xf32>
    %1610 = arith.mulf %1609, %1608 : vector<8x256xf32>
    %1611 = arith.addf %1597, %1610 : vector<8x256xf32>
    %1612 = vector.extract_strided_slice %1357 {offsets = [32, 0], sizes = [8, 256], strides = [1, 1]} : vector<80x256xf32> to vector<8x256xf32>
    %1613 = vector.extract_strided_slice %1361 {offsets = [216, 0], sizes = [8, 256], strides = [1, 1]} : vector<320x256xf32> to vector<8x256xf32>
    %1614 = arith.mulf %1612, %1613 : vector<8x256xf32>
    %cst_210 = arith.constant -0.182574183 : f32
    %1615 = vector.broadcast %cst_210 : f32 to vector<8x256xf32>
    %1616 = arith.mulf %1615, %1614 : vector<8x256xf32>
    %1617 = arith.addf %1593, %1616 : vector<8x256xf32>
    %1618 = vector.extract_strided_slice %1357 {offsets = [32, 0], sizes = [8, 256], strides = [1, 1]} : vector<80x256xf32> to vector<8x256xf32>
    %1619 = vector.extract_strided_slice %1361 {offsets = [224, 0], sizes = [8, 256], strides = [1, 1]} : vector<320x256xf32> to vector<8x256xf32>
    %1620 = arith.mulf %1618, %1619 : vector<8x256xf32>
    %cst_211 = arith.constant -0.365148365 : f32
    %1621 = vector.broadcast %cst_211 : f32 to vector<8x256xf32>
    %1622 = arith.mulf %1621, %1620 : vector<8x256xf32>
    %1623 = arith.addf %1601, %1622 : vector<8x256xf32>
    %1624 = vector.extract_strided_slice %1357 {offsets = [40, 0], sizes = [8, 256], strides = [1, 1]} : vector<80x256xf32> to vector<8x256xf32>
    %1625 = vector.extract_strided_slice %1361 {offsets = [208, 0], sizes = [8, 256], strides = [1, 1]} : vector<320x256xf32> to vector<8x256xf32>
    %1626 = arith.mulf %1624, %1625 : vector<8x256xf32>
    %cst_212 = arith.constant 0.182574183 : f32
    %1627 = vector.broadcast %cst_212 : f32 to vector<8x256xf32>
    %1628 = arith.mulf %1627, %1626 : vector<8x256xf32>
    %1629 = arith.addf %1623, %1628 : vector<8x256xf32>
    %1630 = vector.extract_strided_slice %1357 {offsets = [40, 0], sizes = [8, 256], strides = [1, 1]} : vector<80x256xf32> to vector<8x256xf32>
    %1631 = vector.extract_strided_slice %1361 {offsets = [208, 0], sizes = [8, 256], strides = [1, 1]} : vector<320x256xf32> to vector<8x256xf32>
    %1632 = arith.mulf %1630, %1631 : vector<8x256xf32>
    %cst_213 = arith.constant 0.316227764 : f32
    %1633 = vector.broadcast %cst_213 : f32 to vector<8x256xf32>
    %1634 = arith.mulf %1633, %1632 : vector<8x256xf32>
    %1635 = arith.addf %1605, %1634 : vector<8x256xf32>
    %1636 = vector.extract_strided_slice %1357 {offsets = [40, 0], sizes = [8, 256], strides = [1, 1]} : vector<80x256xf32> to vector<8x256xf32>
    %1637 = vector.extract_strided_slice %1361 {offsets = [216, 0], sizes = [8, 256], strides = [1, 1]} : vector<320x256xf32> to vector<8x256xf32>
    %1638 = arith.mulf %1636, %1637 : vector<8x256xf32>
    %cst_214 = arith.constant 0.182574183 : f32
    %1639 = vector.broadcast %cst_214 : f32 to vector<8x256xf32>
    %1640 = arith.mulf %1639, %1638 : vector<8x256xf32>
    %1641 = arith.addf %1589, %1640 : vector<8x256xf32>
    %1642 = vector.extract_strided_slice %1357 {offsets = [40, 0], sizes = [8, 256], strides = [1, 1]} : vector<80x256xf32> to vector<8x256xf32>
    %1643 = vector.extract_strided_slice %1361 {offsets = [224, 0], sizes = [8, 256], strides = [1, 1]} : vector<320x256xf32> to vector<8x256xf32>
    %1644 = arith.mulf %1642, %1643 : vector<8x256xf32>
    %cst_215 = arith.constant -0.182574183 : f32
    %1645 = vector.broadcast %cst_215 : f32 to vector<8x256xf32>
    %1646 = arith.mulf %1645, %1644 : vector<8x256xf32>
    %1647 = arith.addf %1611, %1646 : vector<8x256xf32>
    %1648 = vector.extract_strided_slice %1357 {offsets = [48, 0], sizes = [8, 256], strides = [1, 1]} : vector<80x256xf32> to vector<8x256xf32>
    %1649 = vector.extract_strided_slice %1361 {offsets = [208, 0], sizes = [8, 256], strides = [1, 1]} : vector<320x256xf32> to vector<8x256xf32>
    %1650 = arith.mulf %1648, %1649 : vector<8x256xf32>
    %cst_216 = arith.constant -0.182574183 : f32
    %1651 = vector.broadcast %cst_216 : f32 to vector<8x256xf32>
    %1652 = arith.mulf %1651, %1650 : vector<8x256xf32>
    %1653 = arith.addf %1641, %1652 : vector<8x256xf32>
    %1654 = vector.extract_strided_slice %1357 {offsets = [48, 0], sizes = [8, 256], strides = [1, 1]} : vector<80x256xf32> to vector<8x256xf32>
    %1655 = vector.extract_strided_slice %1361 {offsets = [216, 0], sizes = [8, 256], strides = [1, 1]} : vector<320x256xf32> to vector<8x256xf32>
    %1656 = arith.mulf %1654, %1655 : vector<8x256xf32>
    %cst_217 = arith.constant 0.182574183 : f32
    %1657 = vector.broadcast %cst_217 : f32 to vector<8x256xf32>
    %1658 = arith.mulf %1657, %1656 : vector<8x256xf32>
    %1659 = arith.addf %1629, %1658 : vector<8x256xf32>
    %1660 = vector.extract_strided_slice %1357 {offsets = [48, 0], sizes = [8, 256], strides = [1, 1]} : vector<80x256xf32> to vector<8x256xf32>
    %1661 = vector.extract_strided_slice %1361 {offsets = [216, 0], sizes = [8, 256], strides = [1, 1]} : vector<320x256xf32> to vector<8x256xf32>
    %1662 = arith.mulf %1660, %1661 : vector<8x256xf32>
    %cst_218 = arith.constant -0.316227764 : f32
    %1663 = vector.broadcast %cst_218 : f32 to vector<8x256xf32>
    %1664 = arith.mulf %1663, %1662 : vector<8x256xf32>
    %1665 = arith.addf %1635, %1664 : vector<8x256xf32>
    %1666 = vector.extract_strided_slice %1357 {offsets = [48, 0], sizes = [8, 256], strides = [1, 1]} : vector<80x256xf32> to vector<8x256xf32>
    %1667 = vector.extract_strided_slice %1361 {offsets = [224, 0], sizes = [8, 256], strides = [1, 1]} : vector<320x256xf32> to vector<8x256xf32>
    %1668 = arith.mulf %1666, %1667 : vector<8x256xf32>
    %cst_219 = arith.constant 0.182574183 : f32
    %1669 = vector.broadcast %cst_219 : f32 to vector<8x256xf32>
    %1670 = arith.mulf %1669, %1668 : vector<8x256xf32>
    %1671 = arith.addf %1617, %1670 : vector<8x256xf32>
    %1672 = vector.extract_strided_slice %1357 {offsets = [56, 0], sizes = [8, 256], strides = [1, 1]} : vector<80x256xf32> to vector<8x256xf32>
    %1673 = vector.extract_strided_slice %1361 {offsets = [208, 0], sizes = [8, 256], strides = [1, 1]} : vector<320x256xf32> to vector<8x256xf32>
    %1674 = arith.mulf %1672, %1673 : vector<8x256xf32>
    %cst_220 = arith.constant -0.182574183 : f32
    %1675 = vector.broadcast %cst_220 : f32 to vector<8x256xf32>
    %1676 = arith.mulf %1675, %1674 : vector<8x256xf32>
    %1677 = arith.addf %1671, %1676 : vector<8x256xf32>
    %1678 = vector.extract_strided_slice %1357 {offsets = [56, 0], sizes = [8, 256], strides = [1, 1]} : vector<80x256xf32> to vector<8x256xf32>
    %1679 = vector.extract_strided_slice %1361 {offsets = [216, 0], sizes = [8, 256], strides = [1, 1]} : vector<320x256xf32> to vector<8x256xf32>
    %1680 = arith.mulf %1678, %1679 : vector<8x256xf32>
    %cst_221 = arith.constant -0.182574183 : f32
    %1681 = vector.broadcast %cst_221 : f32 to vector<8x256xf32>
    %1682 = arith.mulf %1681, %1680 : vector<8x256xf32>
    %1683 = arith.addf %1647, %1682 : vector<8x256xf32>
    %1684 = vector.extract_strided_slice %1357 {offsets = [56, 0], sizes = [8, 256], strides = [1, 1]} : vector<80x256xf32> to vector<8x256xf32>
    %1685 = vector.extract_strided_slice %1361 {offsets = [224, 0], sizes = [8, 256], strides = [1, 1]} : vector<320x256xf32> to vector<8x256xf32>
    %1686 = arith.mulf %1684, %1685 : vector<8x256xf32>
    %cst_222 = arith.constant 0.365148365 : f32
    %1687 = vector.broadcast %cst_222 : f32 to vector<8x256xf32>
    %1688 = arith.mulf %1687, %1686 : vector<8x256xf32>
    %1689 = arith.addf %1653, %1688 : vector<8x256xf32>
    %1690 = vector.extract_strided_slice %1357 {offsets = [64, 0], sizes = [8, 256], strides = [1, 1]} : vector<80x256xf32> to vector<8x256xf32>
    %1691 = vector.extract_strided_slice %1361 {offsets = [208, 0], sizes = [8, 256], strides = [1, 1]} : vector<320x256xf32> to vector<8x256xf32>
    %1692 = arith.mulf %1690, %1691 : vector<8x256xf32>
    %cst_223 = arith.constant -0.316227764 : f32
    %1693 = vector.broadcast %cst_223 : f32 to vector<8x256xf32>
    %1694 = arith.mulf %1693, %1692 : vector<8x256xf32>
    %1695 = arith.addf %1677, %1694 : vector<8x256xf32>
    %1696 = vector.extract_strided_slice %1357 {offsets = [64, 0], sizes = [8, 256], strides = [1, 1]} : vector<80x256xf32> to vector<8x256xf32>
    %1697 = vector.extract_strided_slice %1361 {offsets = [216, 0], sizes = [8, 256], strides = [1, 1]} : vector<320x256xf32> to vector<8x256xf32>
    %1698 = arith.mulf %1696, %1697 : vector<8x256xf32>
    %cst_224 = arith.constant 0.316227764 : f32
    %1699 = vector.broadcast %cst_224 : f32 to vector<8x256xf32>
    %1700 = arith.mulf %1699, %1698 : vector<8x256xf32>
    %1701 = arith.addf %1683, %1700 : vector<8x256xf32>
    %1702 = vector.extract_strided_slice %1357 {offsets = [32, 0], sizes = [8, 256], strides = [1, 1]} : vector<80x256xf32> to vector<8x256xf32>
    %1703 = vector.extract_strided_slice %1361 {offsets = [232, 0], sizes = [8, 256], strides = [1, 1]} : vector<320x256xf32> to vector<8x256xf32>
    %1704 = arith.mulf %1702, %1703 : vector<8x256xf32>
    %cst_225 = arith.constant -0.239045724 : f32
    %1705 = vector.broadcast %cst_225 : f32 to vector<8x256xf32>
    %1706 = arith.mulf %1705, %1704 : vector<8x256xf32>
    %1707 = arith.addf %1665, %1706 : vector<8x256xf32>
    %1708 = vector.extract_strided_slice %1357 {offsets = [32, 0], sizes = [8, 256], strides = [1, 1]} : vector<80x256xf32> to vector<8x256xf32>
    %1709 = vector.extract_strided_slice %1361 {offsets = [240, 0], sizes = [8, 256], strides = [1, 1]} : vector<320x256xf32> to vector<8x256xf32>
    %1710 = arith.mulf %1708, %1709 : vector<8x256xf32>
    %cst_226 = arith.constant 0.207019672 : f32
    %1711 = vector.broadcast %cst_226 : f32 to vector<8x256xf32>
    %1712 = arith.mulf %1711, %1710 : vector<8x256xf32>
    %1713 = arith.addf %1701, %1712 : vector<8x256xf32>
    %1714 = vector.extract_strided_slice %1357 {offsets = [32, 0], sizes = [8, 256], strides = [1, 1]} : vector<80x256xf32> to vector<8x256xf32>
    %1715 = vector.extract_strided_slice %1361 {offsets = [248, 0], sizes = [8, 256], strides = [1, 1]} : vector<320x256xf32> to vector<8x256xf32>
    %1716 = arith.mulf %1714, %1715 : vector<8x256xf32>
    %cst_227 = arith.constant 0.207019672 : f32
    %1717 = vector.broadcast %cst_227 : f32 to vector<8x256xf32>
    %1718 = arith.mulf %1717, %1716 : vector<8x256xf32>
    %1719 = arith.addf %1695, %1718 : vector<8x256xf32>
    %1720 = vector.extract_strided_slice %1357 {offsets = [32, 0], sizes = [8, 256], strides = [1, 1]} : vector<80x256xf32> to vector<8x256xf32>
    %1721 = vector.extract_strided_slice %1361 {offsets = [264, 0], sizes = [8, 256], strides = [1, 1]} : vector<320x256xf32> to vector<8x256xf32>
    %1722 = arith.mulf %1720, %1721 : vector<8x256xf32>
    %cst_228 = arith.constant -0.239045724 : f32
    %1723 = vector.broadcast %cst_228 : f32 to vector<8x256xf32>
    %1724 = arith.mulf %1723, %1722 : vector<8x256xf32>
    %1725 = arith.addf %1689, %1724 : vector<8x256xf32>
    %1726 = vector.extract_strided_slice %1357 {offsets = [40, 0], sizes = [8, 256], strides = [1, 1]} : vector<80x256xf32> to vector<8x256xf32>
    %1727 = vector.extract_strided_slice %1361 {offsets = [232, 0], sizes = [8, 256], strides = [1, 1]} : vector<320x256xf32> to vector<8x256xf32>
    %1728 = arith.mulf %1726, %1727 : vector<8x256xf32>
    %cst_229 = arith.constant 0.207019672 : f32
    %1729 = vector.broadcast %cst_229 : f32 to vector<8x256xf32>
    %1730 = arith.mulf %1729, %1728 : vector<8x256xf32>
    %1731 = arith.addf %1713, %1730 : vector<8x256xf32>
    %1732 = vector.extract_strided_slice %1357 {offsets = [40, 0], sizes = [8, 256], strides = [1, 1]} : vector<80x256xf32> to vector<8x256xf32>
    %1733 = vector.extract_strided_slice %1361 {offsets = [240, 0], sizes = [8, 256], strides = [1, 1]} : vector<320x256xf32> to vector<8x256xf32>
    %1734 = arith.mulf %1732, %1733 : vector<8x256xf32>
    %cst_230 = arith.constant -0.207019672 : f32
    %1735 = vector.broadcast %cst_230 : f32 to vector<8x256xf32>
    %1736 = arith.mulf %1735, %1734 : vector<8x256xf32>
    %1737 = arith.addf %1659, %1736 : vector<8x256xf32>
    %1738 = vector.extract_strided_slice %1357 {offsets = [40, 0], sizes = [8, 256], strides = [1, 1]} : vector<80x256xf32> to vector<8x256xf32>
    %1739 = vector.extract_strided_slice %1361 {offsets = [240, 0], sizes = [8, 256], strides = [1, 1]} : vector<320x256xf32> to vector<8x256xf32>
    %1740 = arith.mulf %1738, %1739 : vector<8x256xf32>
    %cst_231 = arith.constant 0.119522862 : f32
    %1741 = vector.broadcast %cst_231 : f32 to vector<8x256xf32>
    %1742 = arith.mulf %1741, %1740 : vector<8x256xf32>
    %1743 = arith.addf %1707, %1742 : vector<8x256xf32>
    %1744 = vector.extract_strided_slice %1357 {offsets = [40, 0], sizes = [8, 256], strides = [1, 1]} : vector<80x256xf32> to vector<8x256xf32>
    %1745 = vector.extract_strided_slice %1361 {offsets = [248, 0], sizes = [8, 256], strides = [1, 1]} : vector<320x256xf32> to vector<8x256xf32>
    %1746 = arith.mulf %1744, %1745 : vector<8x256xf32>
    %cst_232 = arith.constant 0.207019672 : f32
    %1747 = vector.broadcast %cst_232 : f32 to vector<8x256xf32>
    %1748 = arith.mulf %1747, %1746 : vector<8x256xf32>
    %1749 = arith.addf %1725, %1748 : vector<8x256xf32>
    %1750 = vector.extract_strided_slice %1357 {offsets = [40, 0], sizes = [8, 256], strides = [1, 1]} : vector<80x256xf32> to vector<8x256xf32>
    %1751 = vector.extract_strided_slice %1361 {offsets = [256, 0], sizes = [8, 256], strides = [1, 1]} : vector<320x256xf32> to vector<8x256xf32>
    %1752 = arith.mulf %1750, %1751 : vector<8x256xf32>
    %cst_233 = arith.constant -0.207019672 : f32
    %1753 = vector.broadcast %cst_233 : f32 to vector<8x256xf32>
    %1754 = arith.mulf %1753, %1752 : vector<8x256xf32>
    %1755 = arith.addf %1719, %1754 : vector<8x256xf32>
    %1756 = vector.extract_strided_slice %1357 {offsets = [40, 0], sizes = [8, 256], strides = [1, 1]} : vector<80x256xf32> to vector<8x256xf32>
    %1757 = vector.extract_strided_slice %1361 {offsets = [264, 0], sizes = [8, 256], strides = [1, 1]} : vector<320x256xf32> to vector<8x256xf32>
    %1758 = arith.mulf %1756, %1757 : vector<8x256xf32>
    %cst_234 = arith.constant 0.119522862 : f32
    %1759 = vector.broadcast %cst_234 : f32 to vector<8x256xf32>
    %1760 = arith.mulf %1759, %1758 : vector<8x256xf32>
    %1761 = arith.addf %1755, %1760 : vector<8x256xf32>
    %1762 = vector.extract_strided_slice %1357 {offsets = [48, 0], sizes = [8, 256], strides = [1, 1]} : vector<80x256xf32> to vector<8x256xf32>
    %1763 = vector.extract_strided_slice %1361 {offsets = [232, 0], sizes = [8, 256], strides = [1, 1]} : vector<320x256xf32> to vector<8x256xf32>
    %1764 = arith.mulf %1762, %1763 : vector<8x256xf32>
    %cst_235 = arith.constant 0.207019672 : f32
    %1765 = vector.broadcast %cst_235 : f32 to vector<8x256xf32>
    %1766 = arith.mulf %1765, %1764 : vector<8x256xf32>
    %1767 = arith.addf %1761, %1766 : vector<8x256xf32>
    %1768 = vector.extract_strided_slice %1357 {offsets = [48, 0], sizes = [8, 256], strides = [1, 1]} : vector<80x256xf32> to vector<8x256xf32>
    %1769 = vector.extract_strided_slice %1361 {offsets = [240, 0], sizes = [8, 256], strides = [1, 1]} : vector<320x256xf32> to vector<8x256xf32>
    %1770 = arith.mulf %1768, %1769 : vector<8x256xf32>
    %cst_236 = arith.constant 0.207019672 : f32
    %1771 = vector.broadcast %cst_236 : f32 to vector<8x256xf32>
    %1772 = arith.mulf %1771, %1770 : vector<8x256xf32>
    %1773 = arith.addf %1749, %1772 : vector<8x256xf32>
    %1774 = vector.extract_strided_slice %1357 {offsets = [48, 0], sizes = [8, 256], strides = [1, 1]} : vector<80x256xf32> to vector<8x256xf32>
    %1775 = vector.extract_strided_slice %1361 {offsets = [248, 0], sizes = [8, 256], strides = [1, 1]} : vector<320x256xf32> to vector<8x256xf32>
    %1776 = arith.mulf %1774, %1775 : vector<8x256xf32>
    %cst_237 = arith.constant 0.207019672 : f32
    %1777 = vector.broadcast %cst_237 : f32 to vector<8x256xf32>
    %1778 = arith.mulf %1777, %1776 : vector<8x256xf32>
    %1779 = arith.addf %1737, %1778 : vector<8x256xf32>
    %1780 = vector.extract_strided_slice %1357 {offsets = [48, 0], sizes = [8, 256], strides = [1, 1]} : vector<80x256xf32> to vector<8x256xf32>
    %1781 = vector.extract_strided_slice %1361 {offsets = [248, 0], sizes = [8, 256], strides = [1, 1]} : vector<320x256xf32> to vector<8x256xf32>
    %1782 = arith.mulf %1780, %1781 : vector<8x256xf32>
    %cst_238 = arith.constant 0.119522862 : f32
    %1783 = vector.broadcast %cst_238 : f32 to vector<8x256xf32>
    %1784 = arith.mulf %1783, %1782 : vector<8x256xf32>
    %1785 = arith.addf %1743, %1784 : vector<8x256xf32>
    %1786 = vector.extract_strided_slice %1357 {offsets = [48, 0], sizes = [8, 256], strides = [1, 1]} : vector<80x256xf32> to vector<8x256xf32>
    %1787 = vector.extract_strided_slice %1361 {offsets = [256, 0], sizes = [8, 256], strides = [1, 1]} : vector<320x256xf32> to vector<8x256xf32>
    %1788 = arith.mulf %1786, %1787 : vector<8x256xf32>
    %cst_239 = arith.constant 0.207019672 : f32
    %1789 = vector.broadcast %cst_239 : f32 to vector<8x256xf32>
    %1790 = arith.mulf %1789, %1788 : vector<8x256xf32>
    %1791 = arith.addf %1731, %1790 : vector<8x256xf32>
    %1792 = vector.extract_strided_slice %1357 {offsets = [48, 0], sizes = [8, 256], strides = [1, 1]} : vector<80x256xf32> to vector<8x256xf32>
    %1793 = vector.extract_strided_slice %1361 {offsets = [264, 0], sizes = [8, 256], strides = [1, 1]} : vector<320x256xf32> to vector<8x256xf32>
    %1794 = arith.mulf %1792, %1793 : vector<8x256xf32>
    %cst_240 = arith.constant 0.119522862 : f32
    %1795 = vector.broadcast %cst_240 : f32 to vector<8x256xf32>
    %1796 = arith.mulf %1795, %1794 : vector<8x256xf32>
    %1797 = arith.addf %1791, %1796 : vector<8x256xf32>
    %1798 = vector.extract_strided_slice %1357 {offsets = [56, 0], sizes = [8, 256], strides = [1, 1]} : vector<80x256xf32> to vector<8x256xf32>
    %1799 = vector.extract_strided_slice %1361 {offsets = [240, 0], sizes = [8, 256], strides = [1, 1]} : vector<320x256xf32> to vector<8x256xf32>
    %1800 = arith.mulf %1798, %1799 : vector<8x256xf32>
    %cst_241 = arith.constant -0.207019672 : f32
    %1801 = vector.broadcast %cst_241 : f32 to vector<8x256xf32>
    %1802 = arith.mulf %1801, %1800 : vector<8x256xf32>
    %1803 = arith.addf %1767, %1802 : vector<8x256xf32>
    %1804 = vector.extract_strided_slice %1357 {offsets = [56, 0], sizes = [8, 256], strides = [1, 1]} : vector<80x256xf32> to vector<8x256xf32>
    %1805 = vector.extract_strided_slice %1361 {offsets = [248, 0], sizes = [8, 256], strides = [1, 1]} : vector<320x256xf32> to vector<8x256xf32>
    %1806 = arith.mulf %1804, %1805 : vector<8x256xf32>
    %cst_242 = arith.constant 0.207019672 : f32
    %1807 = vector.broadcast %cst_242 : f32 to vector<8x256xf32>
    %1808 = arith.mulf %1807, %1806 : vector<8x256xf32>
    %1809 = arith.addf %1797, %1808 : vector<8x256xf32>
    %1810 = vector.extract_strided_slice %1357 {offsets = [56, 0], sizes = [8, 256], strides = [1, 1]} : vector<80x256xf32> to vector<8x256xf32>
    %1811 = vector.extract_strided_slice %1361 {offsets = [256, 0], sizes = [8, 256], strides = [1, 1]} : vector<320x256xf32> to vector<8x256xf32>
    %1812 = arith.mulf %1810, %1811 : vector<8x256xf32>
    %cst_243 = arith.constant -0.239045724 : f32
    %1813 = vector.broadcast %cst_243 : f32 to vector<8x256xf32>
    %1814 = arith.mulf %1813, %1812 : vector<8x256xf32>
    %1815 = arith.addf %1785, %1814 : vector<8x256xf32>
    %1816 = vector.extract_strided_slice %1357 {offsets = [56, 0], sizes = [8, 256], strides = [1, 1]} : vector<80x256xf32> to vector<8x256xf32>
    %1817 = vector.extract_strided_slice %1361 {offsets = [264, 0], sizes = [8, 256], strides = [1, 1]} : vector<320x256xf32> to vector<8x256xf32>
    %1818 = arith.mulf %1816, %1817 : vector<8x256xf32>
    %cst_244 = arith.constant -0.239045724 : f32
    %1819 = vector.broadcast %cst_244 : f32 to vector<8x256xf32>
    %1820 = arith.mulf %1819, %1818 : vector<8x256xf32>
    %1821 = arith.addf %1779, %1820 : vector<8x256xf32>
    %1822 = vector.extract_strided_slice %1357 {offsets = [64, 0], sizes = [8, 256], strides = [1, 1]} : vector<80x256xf32> to vector<8x256xf32>
    %1823 = vector.extract_strided_slice %1361 {offsets = [232, 0], sizes = [8, 256], strides = [1, 1]} : vector<320x256xf32> to vector<8x256xf32>
    %1824 = arith.mulf %1822, %1823 : vector<8x256xf32>
    %cst_245 = arith.constant -0.239045724 : f32
    %1825 = vector.broadcast %cst_245 : f32 to vector<8x256xf32>
    %1826 = arith.mulf %1825, %1824 : vector<8x256xf32>
    %1827 = arith.addf %1773, %1826 : vector<8x256xf32>
    %1828 = vector.extract_strided_slice %1357 {offsets = [64, 0], sizes = [8, 256], strides = [1, 1]} : vector<80x256xf32> to vector<8x256xf32>
    %1829 = vector.extract_strided_slice %1361 {offsets = [240, 0], sizes = [8, 256], strides = [1, 1]} : vector<320x256xf32> to vector<8x256xf32>
    %1830 = arith.mulf %1828, %1829 : vector<8x256xf32>
    %cst_246 = arith.constant 0.119522862 : f32
    %1831 = vector.broadcast %cst_246 : f32 to vector<8x256xf32>
    %1832 = arith.mulf %1831, %1830 : vector<8x256xf32>
    %1833 = arith.addf %1803, %1832 : vector<8x256xf32>
    %1834 = vector.extract_strided_slice %1357 {offsets = [64, 0], sizes = [8, 256], strides = [1, 1]} : vector<80x256xf32> to vector<8x256xf32>
    %1835 = vector.extract_strided_slice %1361 {offsets = [248, 0], sizes = [8, 256], strides = [1, 1]} : vector<320x256xf32> to vector<8x256xf32>
    %1836 = arith.mulf %1834, %1835 : vector<8x256xf32>
    %cst_247 = arith.constant 0.119522862 : f32
    %1837 = vector.broadcast %cst_247 : f32 to vector<8x256xf32>
    %1838 = arith.mulf %1837, %1836 : vector<8x256xf32>
    %1839 = arith.addf %1809, %1838 : vector<8x256xf32>
    %1840 = vector.extract_strided_slice %1357 {offsets = [64, 0], sizes = [8, 256], strides = [1, 1]} : vector<80x256xf32> to vector<8x256xf32>
    %1841 = vector.extract_strided_slice %1361 {offsets = [256, 0], sizes = [8, 256], strides = [1, 1]} : vector<320x256xf32> to vector<8x256xf32>
    %1842 = arith.mulf %1840, %1841 : vector<8x256xf32>
    %cst_248 = arith.constant -0.239045724 : f32
    %1843 = vector.broadcast %cst_248 : f32 to vector<8x256xf32>
    %1844 = arith.mulf %1843, %1842 : vector<8x256xf32>
    %1845 = arith.addf %1821, %1844 : vector<8x256xf32>
    %1846 = vector.extract_strided_slice %1357 {offsets = [64, 0], sizes = [8, 256], strides = [1, 1]} : vector<80x256xf32> to vector<8x256xf32>
    %1847 = vector.extract_strided_slice %1361 {offsets = [264, 0], sizes = [8, 256], strides = [1, 1]} : vector<320x256xf32> to vector<8x256xf32>
    %1848 = arith.mulf %1846, %1847 : vector<8x256xf32>
    %cst_249 = arith.constant 0.239045724 : f32
    %1849 = vector.broadcast %cst_249 : f32 to vector<8x256xf32>
    %1850 = arith.mulf %1849, %1848 : vector<8x256xf32>
    %1851 = arith.addf %1815, %1850 : vector<8x256xf32>
    %1852 = vector.extract_strided_slice %1357 {offsets = [32, 0], sizes = [8, 256], strides = [1, 1]} : vector<80x256xf32> to vector<8x256xf32>
    %1853 = vector.extract_strided_slice %1361 {offsets = [272, 0], sizes = [8, 256], strides = [1, 1]} : vector<320x256xf32> to vector<8x256xf32>
    %1854 = arith.mulf %1852, %1853 : vector<8x256xf32>
    %1855 = arith.addf %1827, %1854 : vector<8x256xf32>
    %1856 = vector.extract_strided_slice %1357 {offsets = [40, 0], sizes = [8, 256], strides = [1, 1]} : vector<80x256xf32> to vector<8x256xf32>
    %1857 = vector.extract_strided_slice %1361 {offsets = [272, 0], sizes = [8, 256], strides = [1, 1]} : vector<320x256xf32> to vector<8x256xf32>
    %1858 = arith.mulf %1856, %1857 : vector<8x256xf32>
    %1859 = arith.addf %1833, %1858 : vector<8x256xf32>
    %1860 = vector.extract_strided_slice %1357 {offsets = [48, 0], sizes = [8, 256], strides = [1, 1]} : vector<80x256xf32> to vector<8x256xf32>
    %1861 = vector.extract_strided_slice %1361 {offsets = [272, 0], sizes = [8, 256], strides = [1, 1]} : vector<320x256xf32> to vector<8x256xf32>
    %1862 = arith.mulf %1860, %1861 : vector<8x256xf32>
    %1863 = arith.addf %1839, %1862 : vector<8x256xf32>
    %1864 = vector.extract_strided_slice %1357 {offsets = [56, 0], sizes = [8, 256], strides = [1, 1]} : vector<80x256xf32> to vector<8x256xf32>
    %1865 = vector.extract_strided_slice %1361 {offsets = [272, 0], sizes = [8, 256], strides = [1, 1]} : vector<320x256xf32> to vector<8x256xf32>
    %1866 = arith.mulf %1864, %1865 : vector<8x256xf32>
    %1867 = arith.addf %1845, %1866 : vector<8x256xf32>
    %1868 = vector.extract_strided_slice %1357 {offsets = [64, 0], sizes = [8, 256], strides = [1, 1]} : vector<80x256xf32> to vector<8x256xf32>
    %1869 = vector.extract_strided_slice %1361 {offsets = [272, 0], sizes = [8, 256], strides = [1, 1]} : vector<320x256xf32> to vector<8x256xf32>
    %1870 = arith.mulf %1868, %1869 : vector<8x256xf32>
    %1871 = arith.addf %1851, %1870 : vector<8x256xf32>
    %1872 = vector.extract_strided_slice %1357 {offsets = [72, 0], sizes = [8, 256], strides = [1, 1]} : vector<80x256xf32> to vector<8x256xf32>
    %1873 = vector.extract_strided_slice %1361 {offsets = [280, 0], sizes = [8, 256], strides = [1, 1]} : vector<320x256xf32> to vector<8x256xf32>
    %1874 = arith.mulf %1872, %1873 : vector<8x256xf32>
    %1875 = arith.addf %1855, %1874 : vector<8x256xf32>
    %1876 = vector.extract_strided_slice %1357 {offsets = [72, 0], sizes = [8, 256], strides = [1, 1]} : vector<80x256xf32> to vector<8x256xf32>
    %1877 = vector.extract_strided_slice %1361 {offsets = [288, 0], sizes = [8, 256], strides = [1, 1]} : vector<320x256xf32> to vector<8x256xf32>
    %1878 = arith.mulf %1876, %1877 : vector<8x256xf32>
    %1879 = arith.addf %1859, %1878 : vector<8x256xf32>
    %1880 = vector.extract_strided_slice %1357 {offsets = [72, 0], sizes = [8, 256], strides = [1, 1]} : vector<80x256xf32> to vector<8x256xf32>
    %1881 = vector.extract_strided_slice %1361 {offsets = [296, 0], sizes = [8, 256], strides = [1, 1]} : vector<320x256xf32> to vector<8x256xf32>
    %1882 = arith.mulf %1880, %1881 : vector<8x256xf32>
    %1883 = arith.addf %1863, %1882 : vector<8x256xf32>
    %1884 = vector.extract_strided_slice %1357 {offsets = [72, 0], sizes = [8, 256], strides = [1, 1]} : vector<80x256xf32> to vector<8x256xf32>
    %1885 = vector.extract_strided_slice %1361 {offsets = [304, 0], sizes = [8, 256], strides = [1, 1]} : vector<320x256xf32> to vector<8x256xf32>
    %1886 = arith.mulf %1884, %1885 : vector<8x256xf32>
    %1887 = arith.addf %1867, %1886 : vector<8x256xf32>
    %1888 = vector.extract_strided_slice %1357 {offsets = [72, 0], sizes = [8, 256], strides = [1, 1]} : vector<80x256xf32> to vector<8x256xf32>
    %1889 = vector.extract_strided_slice %1361 {offsets = [312, 0], sizes = [8, 256], strides = [1, 1]} : vector<320x256xf32> to vector<8x256xf32>
    %1890 = arith.mulf %1888, %1889 : vector<8x256xf32>
    %1891 = arith.addf %1871, %1890 : vector<8x256xf32>
    %cst_250 = arith.constant dense<0.000000e+00> : vector<256xf32>
    %1892 = vector.multi_reduction <add>, %1408, %cst_250 [0] : vector<8x256xf32> to vector<256xf32>
    %1893 = vector.shape_cast %1892 : vector<256xf32> to vector<1x256xf32>
    %cst_251 = arith.constant dense<0.000000e+00> : vector<256xf32>
    %1894 = vector.multi_reduction <add>, %1875, %cst_251 [0] : vector<8x256xf32> to vector<256xf32>
    %1895 = vector.shape_cast %1894 : vector<256xf32> to vector<1x256xf32>
    %cst_252 = arith.constant dense<0.000000e+00> : vector<256xf32>
    %1896 = vector.multi_reduction <add>, %1879, %cst_252 [0] : vector<8x256xf32> to vector<256xf32>
    %1897 = vector.shape_cast %1896 : vector<256xf32> to vector<1x256xf32>
    %cst_253 = arith.constant dense<0.000000e+00> : vector<256xf32>
    %1898 = vector.multi_reduction <add>, %1883, %cst_253 [0] : vector<8x256xf32> to vector<256xf32>
    %1899 = vector.shape_cast %1898 : vector<256xf32> to vector<1x256xf32>
    %cst_254 = arith.constant dense<0.000000e+00> : vector<256xf32>
    %1900 = vector.multi_reduction <add>, %1887, %cst_254 [0] : vector<8x256xf32> to vector<256xf32>
    %1901 = vector.shape_cast %1900 : vector<256xf32> to vector<1x256xf32>
    %cst_255 = arith.constant dense<0.000000e+00> : vector<256xf32>
    %1902 = vector.multi_reduction <add>, %1891, %cst_255 [0] : vector<8x256xf32> to vector<256xf32>
    %1903 = vector.shape_cast %1902 : vector<256xf32> to vector<1x256xf32>
    %cst_256 = arith.constant 0.000000e+00 : f32
    %1904 = vector.broadcast %cst_256 : f32 to vector<2x256xf32>
    %1905 = tpu.concatenate %1893, %1895, %1897, %1899, %1901, %1903, %1904 in 0 : vector<1x256xf32>, vector<1x256xf32>, vector<1x256xf32>, vector<1x256xf32>, vector<1x256xf32>, vector<1x256xf32>, vector<2x256xf32> -> vector<8x256xf32>
    %c0_257 = arith.constant 0 : index
    %c0_258 = arith.constant 0 : index
    %1906 = vector.load %arg8[%c0_257, %c0_258] : memref<8x256xf32, #tpu.memory_space<vmem>>, vector<8x256xf32>
    tpu.vector_store %arg8[%c0_257, %c0_258], %1905 {strides = array<i32>} : memref<8x256xf32, #tpu.memory_space<vmem>>, vector<8x256xf32>,
    return
  }
  func.func @transform_0(%arg0: i32) -> (i32, i32) {
    %c0_i32 = arith.constant 0 : i32
    %c0_i32_0 = arith.constant 0 : i32
    return %c0_i32, %arg0 : i32, i32
  }
  func.func @transform_1(%arg0: i32) -> (i32, i32, i32) {
    %c0_i32 = arith.constant 0 : i32
    %c0_i32_0 = arith.constant 0 : i32
    %c0_i32_1 = arith.constant 0 : i32
    %c0_i32_2 = arith.constant 0 : i32
    return %c0_i32, %c0_i32_0, %c0_i32_1 : i32, i32, i32
  }
  func.func @transform_2(%arg0: i32) -> (i32, i32, i32) {
    %c0_i32 = arith.constant 0 : i32
    %c0_i32_0 = arith.constant 0 : i32
    %c0_i32_1 = arith.constant 0 : i32
    %c0_i32_2 = arith.constant 0 : i32
    return %c0_i32, %c0_i32_0, %c0_i32_1 : i32, i32, i32
  }
  func.func @transform_3(%arg0: i32) -> (i32, i32, i32) {
    %c0_i32 = arith.constant 0 : i32
    %c0_i32_0 = arith.constant 0 : i32
    %c0_i32_1 = arith.constant 0 : i32
    %c0_i32_2 = arith.constant 0 : i32
    return %c0_i32, %c0_i32_0, %c0_i32_1 : i32, i32, i32
  }
  func.func @transform_4(%arg0: i32) -> (i32, i32, i32) {
    %c0_i32 = arith.constant 0 : i32
    %c0_i32_0 = arith.constant 0 : i32
    %c0_i32_1 = arith.constant 0 : i32
    %c0_i32_2 = arith.constant 0 : i32
    return %c0_i32, %c0_i32_0, %c0_i32_1 : i32, i32, i32
  }
  func.func @transform_5(%arg0: i32) -> (i32, i32, i32) {
    %c0_i32 = arith.constant 0 : i32
    %c0_i32_0 = arith.constant 0 : i32
    %c0_i32_1 = arith.constant 0 : i32
    %c0_i32_2 = arith.constant 0 : i32
    return %c0_i32, %c0_i32_0, %c0_i32_1 : i32, i32, i32
  }
  func.func @transform_6(%arg0: i32) -> (i32, i32) {
    %c0_i32 = arith.constant 0 : i32
    %c0_i32_0 = arith.constant 0 : i32
    %c0_i32_1 = arith.constant 0 : i32
    return %c0_i32, %c0_i32_0 : i32, i32
  }
  func.func @transform_7(%arg0: i32) -> (i32, i32) {
    %c0_i32 = arith.constant 0 : i32
    %c0_i32_0 = arith.constant 0 : i32
    return %c0_i32, %arg0 : i32, i32
  }
}

</mosaic_0001>

<bundles_post_ra>
// kernel: tpu_custom_call.1
= control target key start
LH: loop header
LB: loop body
LE: loop exit
PB: predicated region body
PF: predicated region fallthrough
CT: control target
= control target key end

     0   :  { %12 = vsyncpa [#allocation4], 0  ;;  %s11444_s0 = inlined_call_operand.vmem [shape: f32[80,512], index: 0, kind: input, shape index: {}]   ;;  %s11445_s1 = inlined_call_operand.vmem [shape: bf16[5,80,80], index: 1, kind: input, shape index: {}]   ;;  %s11446_s2 = inlined_call_operand.vmem [shape: f32[5,80,1], index: 2, kind: input, shape index: {}]   ;;  %s11447_s3 = inlined_call_operand.vmem [shape: bf16[4,160,80], index: 3, kind: input, shape index: {}]   ;;  %s11448_s4 = inlined_call_operand.vmem [shape: f32[4,160,1], index: 4, kind: input, shape index: {}]   ;;  %s11449_s5 = inlined_call_operand.vmem [shape: bf16[3,320,80], index: 5, kind: input, shape index: {}]   ;;  %s11450_s6 = inlined_call_operand.vmem [shape: bf16[320,80], index: 6, kind: input, shape index: {}]   ;;  %s11451_s7 = inlined_call_operand.hbm [shape: f32[8,512], index: 7, kind: output, shape index: {}]  }
   0x1   :  { %14 = vsyncpa [#allocation4 + $0x1], 0  ;;  %s7746_s24 = smov 0   ;;  %s7748_s25 = smov 0  }
   0x2   :  { %s7750_s26 = smov 0   ;;  %s7752_s27 = smov 0  }
   0x3 LB: > { %s6712_s28 = sadd.s32 4294967295, %s7702_s27   ;;  %s6713_s29 = sadd.s32 4294967294, %s7702_s27   ;;  %s7702_s27 = sphi %s7752_s27, %s11691_s27   ;;  %s7698_s26 = sphi %s7750_s26, %s11690_s26   ;;  %s7694_s25 = sphi %s7748_s25, %s11689_s25   ;;  %s7690_s24 = sphi %s7746_s24, %s11688_s24  }
   0x4   : > { %s7769_s30 = sadd.s32 1, %s7702_s27   ;;  %s27_s8 = sadd.s32 1, %s7698_s26 }
   0x5   : > { %s24_s9 = ssub.s32 %s7702_s27, %s7769_s30  ;;  %p34_p0 = scmp.ne.s32.totalorder %s7698_s26, %s7694_s25 }
   0x6   : > { %p25_p1 = scmp.eq.s32.totalorder %s24_s9, 0  ;;  %p35_p2 = scmp.eq.s32.totalorder %s7702_s27, 0 }
   0x7   : > { %p190_p3 = scmp.eq.s32.totalorder %s6712_s28, 1  ;;  %p195_p4 = scmp.ne.s32.totalorder %s7694_s25, %s7690_s24 }
   0x8   : > { %s7782_s10 = scalar_select %p25_p1, %s7698_s26, %s27_s8  }
   0x9   : > { %p36_p5 = por %p35_p2, %p34_p0  ;;  %p7784_p6 = por %p190_p3, %p34_p0 }
   0xa   : > { %p196_p7 = scmp.eq.s32.totalorder %s6713_s29, 1  ;;  %p6715_p9 = scmp.ge.s32.totalorder %s7702_s27, 2 }
   0xc   : > { %p7788_p8 = por %p196_p7, %p195_p4  ;;  %230 = sbr.rel (%p6715_p9) target bundleno = 33 (0x21), region = 40 }
  0x13   : > { %233 = sbr.rel (!%p36_p5) target bundleno = 33 (0x21), region = 44  ;;  %s235_s13 = sand.u32 (%p36_p5), 1, %s7698_s26  }
  0x14   : > { %s7319_s14 = sshll.u32 (%p36_p5), %s7702_s27, 4  ;;  %s7331_s15 = smul.u32 (%p36_p5), 160, %s235_s13 }
  0x15   : > { %s7800_s18 = scalar_lea.vmem (%p36_p5), %s11444_s0, %s7319_s14 }
  0x16   : > { %v253_v0 = vld [vmem:[%s7800_s18] sm:$0xff] (%p36_p5)  ;;  %v255_v1 = vld [vmem:[%s7800_s18 + $0x8] sm:$0xff] (%p36_p5)  ;;  %s7808_s19 = scalar_lea.vmem (%p36_p5), [#allocation2], %s7331_s15 }
  0x17   : > { %v257_v2 = vld [vmem:[%s7800_s18 + $0x20] sm:$0xff] (%p36_p5)  ;;  %v259_v3 = vld [vmem:[%s7800_s18 + $0x28] sm:$0xff] (%p36_p5)  ;;  %254 = vst [vmem:[%s7808_s19] sm:$0xff] (%p36_p5), %v253_v0  ;;  %256 = vst [vmem:[%s7808_s19 + $0x8] sm:$0xff] (%p36_p5), %v255_v1 }
  0x18   : > { %v261_v4 = vld [vmem:[%s7800_s18 + $0x40] sm:$0xff] (%p36_p5)  ;;  %v263_v5 = vld [vmem:[%s7800_s18 + $0x48] sm:$0xff] (%p36_p5)  ;;  %258 = vst [vmem:[%s7808_s19 + $0x10] sm:$0xff] (%p36_p5), %v257_v2  ;;  %260 = vst [vmem:[%s7808_s19 + $0x18] sm:$0xff] (%p36_p5), %v259_v3 }
  0x19   : > { %262 = vst [vmem:[%s7808_s19 + $0x20] sm:$0xff] (%p36_p5), %v261_v4  ;;  %264 = vst [vmem:[%s7808_s19 + $0x28] sm:$0xff] (%p36_p5), %v263_v5  ;;  %v265_v6 = vld [vmem:[%s7800_s18 + $0x60] sm:$0xff] (%p36_p5)  ;;  %v267_v7 = vld [vmem:[%s7800_s18 + $0x68] sm:$0xff] (%p36_p5) }
  0x1a   : > { %v269_v8 = vld [vmem:[%s7800_s18 + $0x80] sm:$0xff]  ;;  %266 = vst [vmem:[%s7808_s19 + $0x30] sm:$0xff] %v265_v6  ;;  %268 = vst [vmem:[%s7808_s19 + $0x38] sm:$0xff] %v267_v7  ;;  %v271_v9 = vld [vmem:[%s7800_s18 + $0x88] sm:$0xff] }
  0x1b   : > { %270 = vst [vmem:[%s7808_s19 + $0x40] sm:$0xff] %v269_v8  ;;  %v273_v10 = vld [vmem:[%s7800_s18 + $0xa0] sm:$0xff]  ;;  %v275_v11 = vld [vmem:[%s7800_s18 + $0xa8] sm:$0xff]  ;;  %272 = vst [vmem:[%s7808_s19 + $0x48] sm:$0xff] %v271_v9 }
  0x1c   : > { %274 = vst [vmem:[%s7808_s19 + $0x50] sm:$0xff] %v273_v10  ;;  %276 = vst [vmem:[%s7808_s19 + $0x58] sm:$0xff] %v275_v11  ;;  %v277_v12 = vld [vmem:[%s7800_s18 + $0xc0] sm:$0xff]  ;;  %v279_v13 = vld [vmem:[%s7800_s18 + $0xc8] sm:$0xff] }
  0x1d   : > { %v281_v14 = vld [vmem:[%s7800_s18 + $0xe0] sm:$0xff]  ;;  %278 = vst [vmem:[%s7808_s19 + $0x60] sm:$0xff] %v277_v12  ;;  %280 = vst [vmem:[%s7808_s19 + $0x68] sm:$0xff] %v279_v13  ;;  %v283_v15 = vld [vmem:[%s7800_s18 + $0xe8] sm:$0xff] }
  0x1e   : > { %282 = vst [vmem:[%s7808_s19 + $0x70] sm:$0xff] %v281_v14  ;;  %v285_v16 = vld [vmem:[%s7800_s18 + $0x100] sm:$0xff]  ;;  %v287_v17 = vld [vmem:[%s7800_s18 + $0x108] sm:$0xff]  ;;  %284 = vst [vmem:[%s7808_s19 + $0x78] sm:$0xff] %v283_v15 }
  0x1f   : > { %286 = vst [vmem:[%s7808_s19 + $0x80] sm:$0xff] %v285_v16  ;;  %288 = vst [vmem:[%s7808_s19 + $0x88] sm:$0xff] %v287_v17  ;;  %v289_v18 = vld [vmem:[%s7800_s18 + $0x120] sm:$0xff]  ;;  %v291_v19 = vld [vmem:[%s7800_s18 + $0x128] sm:$0xff] }
  0x20   : > { %290 = vst [vmem:[%s7808_s19 + $0x90] sm:$0xff] %v289_v18  ;;  %292 = vst [vmem:[%s7808_s19 + $0x98] sm:$0xff] %v291_v19 }
  0x21 PF: > { %p6718_p10 = scmp.ge.s32.totalorder %s7702_s27, 1  ;;  %p297_p11 = scmp.lt.s32.totalorder %s7702_s27, 3 }
  0x23   : > { %p298_p12 = pnand %p6718_p10, %p297_p11 }
  0x25   : > { %301 = sbr.rel (%p298_p12) target bundleno = 4224 (0x1080), region = 67 }
  0x2c   : > { %v380_v20 = vld [vmem:[%s11446_s2 + $0x10] sm:$0xff]  ;;  %v378_v21 = vld [vmem:[%s11446_s2] sm:$0xff]  ;;  %s7853_s29 = sand.u32 1, %s7694_s25   ;;  %v11452_v22 = vmov 0   ;;  %v381_v23 = vld [vmem:[%s11446_s2 + $0x18] sm:$0xff]  ;;  %vm463_vm0 = vcmask 654336  }
  0x2d   : > { %7374 = vset.pattern.permute.xlu1 %v11452_v22  ;;  %7373 = vset.pattern.permute.xlu0 %v11452_v22  ;;  %s7332_s8 = smul.u32 160, %s7853_s29  ;;  %v379_v24 = vld [vmem:[%s11446_s2 + $0x8] sm:$0xff]  ;;  %v382_v38 = vld [vmem:[%s11446_s2 + $0x20] sm:$0xff]  ;;  %v385_v44 = vld [vmem:[%s11446_s2 + $0x38] sm:$0xff]  ;;  %s6719_s21 = sshll.u32 %s7853_s29, 4 }
  0x2e   : > { %400 = vperm.xlu1 %7374, %v380_v20   ;;  %390 = vperm.xlu0 %7373, %v378_v21   ;;  %v383_v37 = vld [vmem:[%s11446_s2 + $0x28] sm:$0xff]  ;;  %v384_v47 = vld [vmem:[%s11446_s2 + $0x30] sm:$0xff]  ;;  %v386_v55 = vld [vmem:[%s11446_s2 + $0x40] sm:$0xff]  ;;  %s7320_s22 = sshll.u32 %s6712_s28, 8  ;;  %s6634_s28 = scalar_lea.sflag [#allocation4], %s7853_s29 }
  0x2f   : > { %511 = vmatprep.mubr.bf16.mxu0 %v11452_v22  ;;  %716 = vmatprep.mubr.bf16.mxu1 %v11452_v22  ;;  %s7866_s16 = scalar_lea.vmem [#allocation2], %s7332_s8  ;;  %v387_v54 = vld [vmem:[%s11446_s2 + $0x48] sm:$0xff]  ;;  %v6742_v60 = vld [vmem:[%s11446_s2 + $0x60] sm:$0xff]  ;;  %v6741_v61 = vld [vmem:[%s11446_s2 + $0x58] sm:$0xff]  ;;  %s11400_s13 = scalar_lea.hbm %s11451_s7, %s7320_s22 }
  0x30   : > { %v339_v25 = vld [vmem:[%s7866_s16 + $0x8] sm:$0xff]  ;;  %v341_v26 = vld [vmem:[%s7866_s16 + $0x18] sm:$0xff]  ;;  %v338_v27 = vld [vmem:[%s7866_s16] sm:$0xff]  ;;  %s7705_s15 = smov [#allocation3]  }
  0x31   : > { %v369_v28 = vpack.c.bf16 %v341_v26, %v339_v25  ;;  %v340_v29 = vld [vmem:[%s7866_s16 + $0x10] sm:$0xff]  ;;  %v343_v30 = vld [vmem:[%s7866_s16 + $0x28] sm:$0xff]  ;;  %v345_v31 = vld [vmem:[%s7866_s16 + $0x38] sm:$0xff]  ;;  %s7644_s17 = sshll.u32 %s7705_s15, 4  ;;  %s7645_s17 = int_to_ptr.vmem [resolvable:$false] %s7644_s17 }
  0x32   : > { %405 = vperm.xlu1 %7374, %v381_v23   ;;  %395 = vperm.xlu0 %7373, %v379_v24   ;;  %v368_v32 = vpack.c.bf16 %v340_v29, %v338_v27  ;;  %v371_v33 = vpack.c.bf16 %v345_v31, %v343_v30  ;;  %v342_v34 = vld [vmem:[%s7866_s16 + $0x20] sm:$0xff]  ;;  %v344_v35 = vld [vmem:[%s7866_s16 + $0x30] sm:$0xff]  ;;  %v347_v36 = vld [vmem:[%s7866_s16 + $0x48] sm:$0xff]  ;;  %s7646_s18 = scalar_lea.vmem %s7645_s17, 512 }
  0x33   : > { %479 = vmatprep.subr.bf16.mxu0 %v369_v28  ;;  %v349_v39 = vld [vmem:[%s7866_s16 + $0x58] sm:$0xff]  ;;  %v370_v40 = vpack.c.bf16 %v344_v35, %v342_v34  ;;  %v346_v42 = vld [vmem:[%s7866_s16 + $0x40] sm:$0xff]  ;;  %v348_v43 = vld [vmem:[%s7866_s16 + $0x50] sm:$0xff] }
  0x34   : > { %480 = vmatpush1.bf16.msra.mxu0 %v368_v32  ;;  %v373_v41 = vpack.c.bf16 %v349_v39, %v347_v36  ;;  %v351_v45 = vld [vmem:[%s7866_s16 + $0x68] sm:$0xff]  ;;  %v353_v46 = vld [vmem:[%s7866_s16 + $0x78] sm:$0xff]  ;;  %v372_v48 = vpack.c.bf16 %v348_v43, %v346_v42  ;;  %v350_v50 = vld [vmem:[%s7866_s16 + $0x60] sm:$0xff] }
  0x35   : > { %481 = vmatprep.subr.bf16.mxu0 %v371_v33  ;;  %v375_v49 = vpack.c.bf16 %v353_v46, %v351_v45  ;;  %v352_v51 = vld [vmem:[%s7866_s16 + $0x70] sm:$0xff]  ;;  %v355_v52 = vld [vmem:[%s7866_s16 + $0x88] sm:$0xff]  ;;  %v357_v53 = vld [vmem:[%s7866_s16 + $0x98] sm:$0xff] }
  0x36   : > { %415 = vperm.xlu1 %7374, %v383_v37   ;;  %410 = vperm.xlu0 %7373, %v382_v38   ;;  %v374_v56 = vpack.c.bf16 %v352_v51, %v350_v50  ;;  %v377_v57 = vpack.c.bf16 %v357_v53, %v355_v52  ;;  %v354_v58 = vld [vmem:[%s7866_s16 + $0x80] sm:$0xff]  ;;  %v356_v59 = vld [vmem:[%s7866_s16 + $0x90] sm:$0xff]  ;;  %v6743_v0 = vld [vmem:[%s11446_s2 + $0x68] sm:$0xff]  ;;  %s334_s16 = scalar_lea.vmem [#allocation3], %s6719_s21 }
  0x37   : > { %v376_v62 = vpack.c.bf16 %v356_v59, %v354_v58  ;;  %v6744_v63 = vld [vmem:[%s11446_s2 + $0x70] sm:$0xff]  ;;  %v7375_v1 = vld [vmem:[%s11445_s1] sm:$0xff]   ;;  %v6745_v3 = vld [vmem:[%s11446_s2 + $0x78] sm:$0xff]  ;;  %s6648_s23 = sshll.u32 %s334_s16, 4  ;;  %s11402_s23 = int_to_ptr.vmem [resolvable:$true] %s6648_s23 }
  0x38   : > { %482 = vmatpush1.bf16.msra.mxu0 %v370_v40  ;;  %v6746_v2 = vld [vmem:[%s11446_s2 + $0x80] sm:$0xff]  ;;  %v6748_v4 = vld [vmem:[%s11446_s2 + $0x90] sm:$0xff]  ;;  %v6747_v5 = vld [vmem:[%s11446_s2 + $0x88] sm:$0xff]  ;;  %s7640_s14 = scalar_lea.vmem %s11402_s23, 256  ;;  %p7647_p2 = scmp.lt.s32.totalorder %s11402_s23, %s7645_s17 }
  0x39   : > { %483 = vmatprep.subr.bf16.mxu0 %v373_v41  ;;  %v7376_v6 = vld [vmem:[%s11445_s1 + $0x8] sm:$0xff]   ;;  %v6749_v7 = vld [vmem:[%s11446_s2 + $0x98] sm:$0xff]  ;;  %v6740_v8 = vld [vmem:[%s11446_s2 + $0x50] sm:$0xff]  ;;  %p7641_p13 = scmp.ne.s32.totalorder %s11402_s23, %s7640_s14  ;;  %p7648_p3 = scmp.lt.s32.totalorder %s7646_s18, %s7640_s14 }
  0x3a   : > { %425 = vperm.xlu1 %7374, %v385_v44   ;;  %420 = vperm.xlu0 %7373, %v384_v47   ;;  %v936_v9 = vld [vmem:[%s11448_s4 + $0x58] sm:$0xff]  ;;  %v935_v10 = vld [vmem:[%s11448_s4 + $0x50] sm:$0xff]  ;;  %v938_v12 = vld [vmem:[%s11448_s4 + $0x68] sm:$0xff] }
  0x3b   : > { %v7377_v11 = vld [vmem:[%s11445_s1 + $0x10] sm:$0xff]   ;;  %v937_v13 = vld [vmem:[%s11448_s4 + $0x60] sm:$0xff]  ;;  %v940_v14 = vld [vmem:[%s11448_s4 + $0x78] sm:$0xff]  ;;  %p7642_p0 = pnand %p7641_p13, %p7784_p6  ;;  %p7649_p4 = por %p7648_p3, %p7647_p2 }
  0x3c   : > { %484 = vmatpush1.bf16.msra.mxu0 %v372_v48  ;;  %v939_v15 = vld [vmem:[%s11448_s4 + $0x70] sm:$0xff]  ;;  %v7378_v16 = vld [vmem:[%s11445_s1 + $0x18] sm:$0xff]   ;;  %v942_v17 = vld [vmem:[%s11448_s4 + $0x88] sm:$0xff] }
  0x3d   : > { %485 = vmatprep.subr.bf16.mxu0 %v375_v49  ;;  %v941_v18 = vld [vmem:[%s11448_s4 + $0x80] sm:$0xff]  ;;  %v944_v19 = vld [vmem:[%s11448_s4 + $0x98] sm:$0xff]  ;;  %v943_v20 = vld [vmem:[%s11448_s4 + $0x90] sm:$0xff]  ;;  %p7643_p1 = pneg %p7642_p0 }
  0x3e   : > { %435 = vperm.xlu1 %7374, %v387_v54   ;;  %430 = vperm.xlu0 %7373, %v386_v55   ;;  %v7379_v21 = vld [vmem:[%s11445_s1 + $0x20] sm:$0xff]   ;;  %v926_v23 = vld [vmem:[%s11448_s4 + $0x8] sm:$0xff]  ;;  %v928_v25 = vld [vmem:[%s11448_s4 + $0x18] sm:$0xff] }
  0x3f   : > { %v925_v24 = vld [vmem:[%s11448_s4] sm:$0xff]  ;;  %v927_v26 = vld [vmem:[%s11448_s4 + $0x10] sm:$0xff]  ;;  %v930_v27 = vld [vmem:[%s11448_s4 + $0x28] sm:$0xff]  ;;  %p7650_p5 = pnand %p7649_p4, %p7643_p1 }
  0x40   : > { %486 = vmatpush1.bf16.msra.mxu0 %v374_v56  ;;  %v929_v28 = vld [vmem:[%s11448_s4 + $0x20] sm:$0xff]  ;;  %v932_v29 = vld [vmem:[%s11448_s4 + $0x38] sm:$0xff]  ;;  %v931_v30 = vld [vmem:[%s11448_s4 + $0x30] sm:$0xff] }
  0x41   : > { %487 = vmatprep.subr.bf16.mxu0 %v377_v57  ;;  %v6839_v31 = vld [vmem:[%s11446_s2 + $0xa8] sm:$0xff]  ;;  %v933_v32 = vld [vmem:[%s11448_s4 + $0x40] sm:$0xff]  ;;  %v6841_v33 = vld [vmem:[%s11446_s2 + $0xb8] sm:$0xff] }
  0x42   : > { %606 = vperm.xlu1 %7374, %v6742_v60   ;;  %601 = vperm.xlu0 %7373, %v6741_v61   ;;  %v6840_v34 = vld [vmem:[%s11446_s2 + $0xb0] sm:$0xff]  ;;  %v6843_v35 = vld [vmem:[%s11446_s2 + $0xc8] sm:$0xff]  ;;  %v6842_v36 = vld [vmem:[%s11446_s2 + $0xc0] sm:$0xff] }
  0x43   : > { %v6845_v37 = vld [vmem:[%s11446_s2 + $0xd8] sm:$0xff]  ;;  %v6844_v38 = vld [vmem:[%s11446_s2 + $0xd0] sm:$0xff]  ;;  %v6838_v39 = vld [vmem:[%s11446_s2 + $0xa0] sm:$0xff] }
  0x44   : > { %488 = vmatpush1.bf16.msra.mxu0 %v376_v62  ;;  %v6846_v40 = vld [vmem:[%s11446_s2 + $0xe0] sm:$0xff]  ;;  %v6896_v41 = vld [vmem:[%s11448_s4 + $0xf0] sm:$0xff]  ;;  %v6847_v42 = vld [vmem:[%s11446_s2 + $0xe8] sm:$0xff] }
  0x45   : > { %v6898_v43 = vld [vmem:[%s11448_s4 + $0x100] sm:$0xff]  ;;  %v6897_v44 = vld [vmem:[%s11448_s4 + $0xf8] sm:$0xff]  ;;  %v6900_v45 = vld [vmem:[%s11448_s4 + $0x110] sm:$0xff] }
  0x46   : > { %616 = vperm.xlu1 %7374, %v6744_v63   ;;  %611 = vperm.xlu0 %7373, %v6743_v0   ;;  %v6899_v46 = vld [vmem:[%s11448_s4 + $0x108] sm:$0xff]  ;;  %v6902_v47 = vld [vmem:[%s11448_s4 + $0x120] sm:$0xff]  ;;  %v6901_v48 = vld [vmem:[%s11448_s4 + $0x118] sm:$0xff] }
  0x47   : > { %6725 = vmatmul.mubr.msk.bf16.vlgmr.msra.gmra.mrb[0].mxu0 %vm463_vm0, %v7375_v1  ;;  %v6904_v49 = vld [vmem:[%s11448_s4 + $0x130] sm:$0xff]  ;;  %v6903_v50 = vld [vmem:[%s11448_s4 + $0x128] sm:$0xff]  ;;  %v6886_v51 = vld [vmem:[%s11448_s4 + $0xa0] sm:$0xff] }
  0x48   : > { %521 = vmatprep.mubr.bf16.mxu0 %v11452_v22  ;;  %v6905_v52 = vld [vmem:[%s11448_s4 + $0x138] sm:$0xff]  ;;  %v6888_v53 = vld [vmem:[%s11448_s4 + $0xb0] sm:$0xff]  ;;  %v6887_v54 = vld [vmem:[%s11448_s4 + $0xa8] sm:$0xff] }
  0x49   : > { %v6890_v55 = vld [vmem:[%s11448_s4 + $0xc0] sm:$0xff]  ;;  %v6889_v56 = vld [vmem:[%s11448_s4 + $0xb8] sm:$0xff]  ;;  %v6892_v57 = vld [vmem:[%s11448_s4 + $0xd0] sm:$0xff] }
  0x4a   : > { %626 = vperm.xlu1 %7374, %v6746_v2   ;;  %621 = vperm.xlu0 %7373, %v6745_v3   ;;  %v6891_v58 = vld [vmem:[%s11448_s4 + $0xc8] sm:$0xff]  ;;  %v6894_v59 = vld [vmem:[%s11448_s4 + $0xe0] sm:$0xff]  ;;  %v6893_v60 = vld [vmem:[%s11448_s4 + $0xd8] sm:$0xff] }
  0x4b   : > { %v7018_v61 = vld [vmem:[%s11446_s2 + $0x100] sm:$0xff]  ;;  %v7017_v62 = vld [vmem:[%s11446_s2 + $0xf8] sm:$0xff]  ;;  %v7020_v63 = vld [vmem:[%s11446_s2 + $0x110] sm:$0xff] }
  0x4c   : > { %v7019_v0 = vld [vmem:[%s11446_s2 + $0x108] sm:$0xff]  ;;  %v7022_v1 = vld [vmem:[%s11446_s2 + $0x120] sm:$0xff]  ;;  %v7021_v2 = vld [vmem:[%s11446_s2 + $0x118] sm:$0xff] }
  0x4d   : > { %v7024_v3 = vld [vmem:[%s11446_s2 + $0x130] sm:$0xff] }
  0x4e   : > { %636 = vperm.xlu1 %7374, %v6748_v4   ;;  %631 = vperm.xlu0 %7373, %v6747_v5   ;;  %v7023_v4 = vld [vmem:[%s11446_s2 + $0x128] sm:$0xff]  ;;  %v7025_v5 = vld [vmem:[%s11446_s2 + $0x138] sm:$0xff] }
  0x4f   : > { %6726 = vmatmul.mubr.msk.bf16.gmra.mrb[4].mxu0 %vm463_vm0, %v7376_v6  ;;  %v7016_v6 = vld [vmem:[%s11446_s2 + $0xf0] sm:$0xff] }
  0x50   : > { %531 = vmatprep.mubr.bf16.mxu0 %v11452_v22 }
  0x52   : > { %641 = vperm.xlu1 %7374, %v6749_v7   ;;  %596 = vperm.xlu0 %7373, %v6740_v8   ;;  %v7075_v7 = vld [vmem:[%s11448_s4 + $0x198] sm:$0xff]  ;;  %v7074_v8 = vld [vmem:[%s11448_s4 + $0x190] sm:$0xff] }
  0x56   : > { %1001 = vperm.xlu1 %7374, %v936_v9   ;;  %996 = vperm.xlu0 %7373, %v935_v10   ;;  %v7077_v9 = vld [vmem:[%s11448_s4 + $0x1a8] sm:$0xff]  ;;  %v7076_v10 = vld [vmem:[%s11448_s4 + $0x1a0] sm:$0xff] }
  0x57   : > { %6727 = vmatmul.mubr.msk.bf16.gmra.mrb[8].mxu0 %vm463_vm0, %v7377_v11  ;;  %v7079_v11 = vld [vmem:[%s11448_s4 + $0x1b8] sm:$0xff] }
  0x58   : > { %541 = vmatprep.mubr.bf16.mxu0 %v11452_v22 }
  0x5a   : > { %1011 = vperm.xlu1 %7374, %v938_v12   ;;  %1006 = vperm.xlu0 %7373, %v937_v13   ;;  %v7078_v12 = vld [vmem:[%s11448_s4 + $0x1b0] sm:$0xff]  ;;  %v7081_v13 = vld [vmem:[%s11448_s4 + $0x1c8] sm:$0xff] }
  0x5e   : > { %1021 = vperm.xlu1 %7374, %v940_v14   ;;  %1016 = vperm.xlu0 %7373, %v939_v15   ;;  %v7080_v14 = vld [vmem:[%s11448_s4 + $0x1c0] sm:$0xff] }
  0x5f   : > { %6728 = vmatmul.mubr.msk.bf16.gmra.mrb[12].mxu0 %vm463_vm0, %v7378_v16  ;;  %v7083_v16 = vld [vmem:[%s11448_s4 + $0x1d8] sm:$0xff] }
  0x60   : > { %551 = vmatprep.mubr.bf16.mxu0 %v11452_v22 }
  0x62   : > { %1031 = vperm.xlu1 %7374, %v942_v17   ;;  %1026 = vperm.xlu0 %7373, %v941_v18   ;;  %v7082_v17 = vld [vmem:[%s11448_s4 + $0x1d0] sm:$0xff] }
  0x66   : > { %1041 = vperm.xlu1 %7374, %v944_v19   ;;  %1036 = vperm.xlu0 %7373, %v943_v20   ;;  %v7065_v19 = vld [vmem:[%s11448_s4 + $0x148] sm:$0xff]  ;;  %v7064_v20 = vld [vmem:[%s11448_s4 + $0x140] sm:$0xff] }
  0x67   : > { %6729 = vmatmul.mubr.msk.bf16.gmra.mrb[16].mxu0 %vm463_vm0, %v7379_v21 }
  0x68   : > { %1156 = vmatprep.mubr.bf16.mxu0 %v11452_v22 }
  0x6a   : > { %952 = vperm.xlu1 %7374, %v926_v23   ;;  %947 = vperm.xlu0 %7373, %v925_v24   ;;  %v7067_v24 = vld [vmem:[%s11448_s4 + $0x158] sm:$0xff] }
  0x6e   : > { %962 = vperm.xlu1 %7374, %v928_v25   ;;  %957 = vperm.xlu0 %7373, %v927_v26   ;;  %v7066_v25 = vld [vmem:[%s11448_s4 + $0x150] sm:$0xff] }
  0x72   : > { %972 = vperm.xlu1 %7374, %v930_v27   ;;  %967 = vperm.xlu0 %7373, %v929_v28   ;;  %v7069_v27 = vld [vmem:[%s11448_s4 + $0x168] sm:$0xff]  ;;  %v7068_v28 = vld [vmem:[%s11448_s4 + $0x160] sm:$0xff] }
  0x76   : > { %982 = vperm.xlu1 %7374, %v932_v29   ;;  %977 = vperm.xlu0 %7373, %v931_v30   ;;  %v7071_v30 = vld [vmem:[%s11448_s4 + $0x178] sm:$0xff] }
  0x7a   : > { %2085 = vperm.xlu1 %7374, %v6839_v31   ;;  %987 = vperm.xlu0 %7373, %v933_v32   ;;  %v7070_v31 = vld [vmem:[%s11448_s4 + $0x170] sm:$0xff] }
  0x7e   : > { %2095 = vperm.xlu1 %7374, %v6841_v33   ;;  %2090 = vperm.xlu0 %7373, %v6840_v34   ;;  %v7194_v34 = vld [vmem:[%s11446_s2 + $0x140] sm:$0xff] }
  0x82   : > { %2105 = vperm.xlu1 %7374, %v6843_v35   ;;  %2100 = vperm.xlu0 %7373, %v6842_v36   ;;  %v7072_v35 = vld [vmem:[%s11448_s4 + $0x180] sm:$0xff] }
  0x86   : > { %2115 = vperm.xlu1 %7374, %v6845_v37   ;;  %2110 = vperm.xlu0 %7373, %v6844_v38   ;;  %v7196_v37 = vld [vmem:[%s11446_s2 + $0x150] sm:$0xff]  ;;  %v7195_v38 = vld [vmem:[%s11446_s2 + $0x148] sm:$0xff] }
  0x8a   : > { %2080 = vperm.xlu1 %7374, %v6838_v39   ;;  %2120 = vperm.xlu0 %7373, %v6846_v40   ;;  %v7198_v40 = vld [vmem:[%s11446_s2 + $0x160] sm:$0xff] }
  0x8e   : > { %2482 = vperm.xlu1 %7374, %v6896_v41   ;;  %2125 = vperm.xlu0 %7373, %v6847_v42   ;;  %v7197_v41 = vld [vmem:[%s11446_s2 + $0x158] sm:$0xff] }
  0x92   : > { %2492 = vperm.xlu1 %7374, %v6898_v43   ;;  %2487 = vperm.xlu0 %7373, %v6897_v44   ;;  %v7200_v44 = vld [vmem:[%s11446_s2 + $0x170] sm:$0xff] }
  0x96   : > { %2502 = vperm.xlu1 %7374, %v6900_v45   ;;  %2497 = vperm.xlu0 %7373, %v6899_v46   ;;  %v7199_v45 = vld [vmem:[%s11446_s2 + $0x168] sm:$0xff] }
  0x9a   : > { %2512 = vperm.xlu1 %7374, %v6902_v47   ;;  %2507 = vperm.xlu0 %7373, %v6901_v48   ;;  %v7202_v47 = vld [vmem:[%s11446_s2 + $0x180] sm:$0xff]  ;;  %v7201_v48 = vld [vmem:[%s11446_s2 + $0x178] sm:$0xff] }
  0x9e   : > { %2522 = vperm.xlu1 %7374, %v6904_v49   ;;  %2517 = vperm.xlu0 %7373, %v6903_v50   ;;  %v7244_v50 = vld [vmem:[%s11448_s4 + $0x230] sm:$0xff] }
  0xa2   : > { %2433 = vperm.xlu1 %7374, %v6886_v51   ;;  %2527 = vperm.xlu0 %7373, %v6905_v52   ;;  %v7203_v51 = vld [vmem:[%s11446_s2 + $0x188] sm:$0xff] }
  0xa6   : > { %2443 = vperm.xlu1 %7374, %v6888_v53   ;;  %2438 = vperm.xlu0 %7373, %v6887_v54   ;;  %v7246_v54 = vld [vmem:[%s11448_s4 + $0x240] sm:$0xff] }
  0xaa   : > { %2453 = vperm.xlu1 %7374, %v6890_v55   ;;  %2448 = vperm.xlu0 %7373, %v6889_v56   ;;  %v7245_v55 = vld [vmem:[%s11448_s4 + $0x238] sm:$0xff] }
  0xad   : > { %v8159_v15 = vpop.permute.xlu0 %390  ;;  %v8167_v18 = vpop.permute.xlu1 %400 }
  0xae   : > { %2463 = vperm.xlu1 %7374, %v6892_v57   ;;  %2458 = vperm.xlu0 %7373, %v6891_v58   ;;  %v7248_v57 = vld [vmem:[%s11448_s4 + $0x250] sm:$0xff]  ;;  %v7247_v58 = vld [vmem:[%s11448_s4 + $0x248] sm:$0xff] }
  0xb1   : > { %v8175_v21 = vpop.permute.xlu0 %395  ;;  %v8177_v23 = vpop.permute.xlu1 %405 }
  0xb2   : > { %2473 = vperm.xlu1 %7374, %v6894_v59   ;;  %2468 = vperm.xlu0 %7373, %v6893_v60   ;;  %v7250_v60 = vld [vmem:[%s11448_s4 + $0x260] sm:$0xff] }
  0xb5   : > { %v8185_v26 = vpop.permute.xlu0 %410  ;;  %v8193_v29 = vpop.permute.xlu1 %415 }
  0xb6   : > { %3577 = vperm.xlu1 %7374, %v7018_v61   ;;  %3572 = vperm.xlu0 %7373, %v7017_v62   ;;  %v7249_v61 = vld [vmem:[%s11448_s4 + $0x258] sm:$0xff] }
  0xb9   : > { %v8201_v32 = vpop.permute.xlu0 %420  ;;  %v8203_v33 = vpop.permute.xlu1 %425 }
  0xba   : > { %3587 = vperm.xlu1 %7374, %v7020_v63   ;;  %3582 = vperm.xlu0 %7373, %v7019_v0   ;;  %v7252_v0 = vld [vmem:[%s11448_s4 + $0x270] sm:$0xff] }
  0xbd   : > { %v8211_v36 = vpop.permute.xlu0 %430  ;;  %v8219_v39 = vpop.permute.xlu1 %435 }
  0xbe   : > { %3597 = vperm.xlu1 %7374, %v7022_v1   ;;  %3592 = vperm.xlu0 %7373, %v7021_v2   ;;  %v7251_v1 = vld [vmem:[%s11448_s4 + $0x268] sm:$0xff] }
  0xc1   : > { %v8227_v42 = vpop.permute.xlu0 %601  ;;  %v8229_v43 = vpop.permute.xlu1 %606 }
  0xc2   : > { %3607 = vperm.xlu1 %7374, %v7024_v3   ;;  %3602 = vperm.xlu0 %7373, %v7023_v4   ;;  %v7236_v3 = vld [vmem:[%s11448_s4 + $0x1f0] sm:$0xff]  ;;  %v7253_v4 = vld [vmem:[%s11448_s4 + $0x278] sm:$0xff] }
  0xc5   : > { %v8237_v46 = vpop.permute.xlu0 %611  ;;  %v8245_v49 = vpop.permute.xlu1 %616 }
  0xc6   : > { %3612 = vperm.xlu1 %7374, %v7025_v5   ;;  %3567 = vperm.xlu0 %7373, %v7016_v6   ;;  %v7234_v6 = vld [vmem:[%s11448_s4 + $0x1e0] sm:$0xff] }
  0xc9   : > { %v8253_v52 = vpop.permute.xlu0 %621  ;;  %v8255_v53 = vpop.permute.xlu1 %626 }
  0xca   : > { %3974 = vperm.xlu1 %7374, %v7075_v7   ;;  %3969 = vperm.xlu0 %7373, %v7074_v8   ;;  %v7235_v7 = vld [vmem:[%s11448_s4 + $0x1e8] sm:$0xff] }
  0xcd   : > { %v8263_v56 = vpop.permute.xlu0 %631  ;;  %v8271_v59 = vpop.permute.xlu1 %636 }
  0xce   : > { %3984 = vperm.xlu1 %7374, %v7077_v9   ;;  %3979 = vperm.xlu0 %7373, %v7076_v10  }
  0xd1   : > { %v8279_v62 = vpop.permute.xlu0 %596  ;;  %v8281_v63 = vpop.permute.xlu1 %641 }
  0xd2   : > { %3994 = vperm.xlu1 %7374, %v7079_v11   ;;  %3989 = vperm.xlu0 %7373, %v7078_v12   ;;  %v7238_v12 = vld [vmem:[%s11448_s4 + $0x200] sm:$0xff] }
  0xd5   : > { %v8289_v2 = vpop.permute.xlu0 %996  ;;  %v8297_v5 = vpop.permute.xlu1 %1001 }
  0xd6   : > { %4004 = vperm.xlu1 %7374, %v7081_v13   ;;  %3999 = vperm.xlu0 %7373, %v7080_v14   ;;  %v7237_v13 = vld [vmem:[%s11448_s4 + $0x1f8] sm:$0xff] }
  0xd9   : > { %v8305_v8 = vpop.permute.xlu0 %1006  ;;  %v8307_v9 = vpop.permute.xlu1 %1011 }
  0xda   : > { %4014 = vperm.xlu1 %7374, %v7083_v16   ;;  %4009 = vperm.xlu0 %7373, %v7082_v17  }
  0xde   : > { %3925 = vperm.xlu1 %7374, %v7065_v19   ;;  %3920 = vperm.xlu0 %7373, %v7064_v20   ;;  %v8317_v19 = vpop.permute.xlu0 %1016 }
  0xe2   : > { %3935 = vperm.xlu1 %7374, %v7067_v24   ;;  %3930 = vperm.xlu0 %7373, %v7066_v25   ;;  %v7240_v24 = vld [vmem:[%s11448_s4 + $0x210] sm:$0xff]  ;;  %v7239_v25 = vld [vmem:[%s11448_s4 + $0x208] sm:$0xff] }
  0xe6   : > { %3945 = vperm.xlu1 %7374, %v7069_v27   ;;  %3940 = vperm.xlu0 %7373, %v7068_v28  }
  0xea   : > { %3955 = vperm.xlu1 %7374, %v7071_v30   ;;  %3950 = vperm.xlu0 %7373, %v7070_v31   ;;  %v8327_v31 = vpop.permute.xlu1 %1021 }
  0xee   : > { %5054 = vperm.xlu1 %7374, %v7194_v34   ;;  %3960 = vperm.xlu0 %7373, %v7072_v35  }
  0xf2   : > { %5064 = vperm.xlu1 %7374, %v7196_v37   ;;  %5059 = vperm.xlu0 %7373, %v7195_v38   ;;  %v7242_v38 = vld [vmem:[%s11448_s4 + $0x220] sm:$0xff] }
  0xf6   : > { %5074 = vperm.xlu1 %7374, %v7198_v40   ;;  %5069 = vperm.xlu0 %7373, %v7197_v41   ;;  %v7241_v40 = vld [vmem:[%s11448_s4 + $0x218] sm:$0xff] }
  0xfa   : > { %5084 = vperm.xlu1 %7374, %v7200_v44   ;;  %5079 = vperm.xlu0 %7373, %v7199_v45   ;;  %v8339_v45 = vpop.permute.xlu1 %1031 }
  0xfe   : > { %5094 = vperm.xlu1 %7374, %v7202_v47   ;;  %5089 = vperm.xlu0 %7373, %v7201_v48  }
 0x102   : > { %5329 = vperm.xlu1 %7374, %v7244_v50   ;;  %5099 = vperm.xlu0 %7373, %v7203_v51   ;;  %v7243_v51 = vld [vmem:[%s11448_s4 + $0x228] sm:$0xff] }
 0x106   : > { %5339 = vperm.xlu1 %7374, %v7246_v54   ;;  %5334 = vperm.xlu0 %7373, %v7245_v55  }
 0x10a   : > { %5349 = vperm.xlu1 %7374, %v7248_v57   ;;  %5344 = vperm.xlu0 %7373, %v7247_v58  }
 0x10e   : > { %5359 = vperm.xlu1 %7374, %v7250_v60   ;;  %5354 = vperm.xlu0 %7373, %v7249_v61  }
 0x112   : > { %5369 = vperm.xlu1 %7374, %v7252_v0   ;;  %5364 = vperm.xlu0 %7373, %v7251_v1  }
 0x116   : > { %5289 = vperm.xlu1 %7374, %v7236_v3   ;;  %5374 = vperm.xlu0 %7373, %v7253_v4  }
 0x11a   : > { %5279 = vperm.xlu1 %7374, %v7234_v6   ;;  %5284 = vperm.xlu0 %7373, %v7235_v7   ;;  %v513_v10 = vpop.f32.mrb[0].mxu0 }
 0x11b   : > { %v515_v11 = vpop.f32.mrb[1].mxu0  ;;  %v514_v16 = vadd.f32 %v513_v10, %v8159_v15 }
 0x11c   : > { %v517_v14 = vpop.f32.mrb[2].mxu0  ;;  %v516_v27 = vadd.f32 %v515_v11, %v8159_v15  ;;  %v8335_v15 = vpop.permute.xlu0 %1026 }
 0x11d   : > { %v518_v17 = vadd.f32 %v517_v14, %v8175_v21  ;;  %v519_v20 = vpop.f32.mrb[3].mxu0 }
 0x11e   : > { %5299 = vperm.xlu1 %7374, %v7238_v12   ;;  %5294 = vperm.xlu0 %7373, %v7237_v13   ;;  %v520_v28 = vadd.f32 %v519_v20, %v8175_v21 }
 0x11f   : > { %v573_v30 = vpack.c.bf16 %v518_v17, %v514_v16 }
 0x120   : > { %v574_v34 = vpack.c.bf16 %v520_v28, %v516_v27  ;;  %v8346_v57 = vpop.permute.xlu0 %1036 }
 0x122   : > { %5309 = vperm.xlu1 %7374, %v7240_v24   ;;  %5304 = vperm.xlu0 %7373, %v7239_v25   ;;  %v523_v35 = vpop.f32.mrb[4].mxu0 }
 0x123   : > { %684 = vmatprep.subr.bf16.mxu1 %v574_v34  ;;  %v525_v37 = vpop.f32.mrb[5].mxu0  ;;  %v524_v41 = vadd.f32 %v523_v35, %v8167_v18 }
 0x124   : > { %685 = vmatpush1.bf16.msra.mxu1 %v573_v30  ;;  %v527_v21 = vpop.f32.mrb[6].mxu0  ;;  %v526_v48 = vadd.f32 %v525_v37, %v8167_v18 }
 0x125   : > { %v528_v44 = vadd.f32 %v527_v21, %v8177_v23  ;;  %v529_v47 = vpop.f32.mrb[7].mxu0 }
 0x126   : > { %5319 = vperm.xlu1 %7374, %v7242_v38   ;;  %5314 = vperm.xlu0 %7373, %v7241_v40   ;;  %v530_v50 = vadd.f32 %v529_v47, %v8177_v23  ;;  %v7381_v38 = vld [vmem:[%s11445_s1 + $0x30] sm:$0xff]   ;;  %v7384_v40 = vld [vmem:[%s11445_s1 + $0x48] sm:$0xff]  }
 0x127   : > { %v575_v54 = vpack.c.bf16 %v528_v44, %v524_v41 }
 0x128   : > { %v576_v55 = vpack.c.bf16 %v530_v50, %v526_v48 }
 0x12a   : > { %5324 = vperm.xlu0 %7373, %v7243_v51   ;;  %v533_v58 = vpop.f32.mrb[8].mxu0  ;;  %686 = vmatprep.subr.bf16.mxu1 %v576_v55 }
 0x12b   : > { %v535_v60 = vpop.f32.mrb[9].mxu0  ;;  %687 = vmatpush1.bf16.msra.mxu1 %v575_v54  ;;  %v534_v0 = vadd.f32 %v533_v58, %v8185_v26 }
 0x12c   : > { %v537_v61 = vpop.f32.mrb[10].mxu0  ;;  %v536_v23 = vadd.f32 %v535_v60, %v8185_v26 }
 0x12d   : > { %v538_v18 = vadd.f32 %v537_v61, %v8193_v29  ;;  %v539_v1 = vpop.f32.mrb[11].mxu0 }
 0x12e   : > { %v540_v3 = vadd.f32 %v539_v1, %v8193_v29 }
 0x12f   : > { %v577_v4 = vpack.c.bf16 %v538_v18, %v534_v0 }
 0x130   : > { %v578_v6 = vpack.c.bf16 %v540_v3, %v536_v23 }
 0x132   : > { %v543_v7 = vpop.f32.mrb[12].mxu0  ;;  %688 = vmatprep.subr.bf16.mxu1 %v578_v6 }
 0x133   : > { %v545_v10 = vpop.f32.mrb[13].mxu0  ;;  %689 = vmatpush1.bf16.msra.mxu1 %v577_v4  ;;  %v544_v12 = vadd.f32 %v543_v7, %v8201_v32 }
 0x134   : > { %v547_v11 = vpop.f32.mrb[14].mxu0  ;;  %v546_v16 = vadd.f32 %v545_v10, %v8201_v32 }
 0x135   : > { %v548_v13 = vadd.f32 %v547_v11, %v8203_v33  ;;  %v549_v14 = vpop.f32.mrb[15].mxu0 }
 0x136   : > { %v550_v17 = vadd.f32 %v549_v14, %v8203_v33  ;;  %v7380_v33 = vld [vmem:[%s11445_s1 + $0x28] sm:$0xff]  }
 0x137   : > { %v579_v20 = vpack.c.bf16 %v548_v13, %v544_v12 }
 0x138   : > { %v580_v26 = vpack.c.bf16 %v550_v17, %v546_v16 }
 0x13a   : > { %v553_v24 = vpop.f32.mrb[16].mxu0  ;;  %690 = vmatprep.subr.bf16.mxu1 %v580_v26 }
 0x13b   : > { %v555_v29 = vpop.f32.mrb[17].mxu0  ;;  %691 = vmatpush1.bf16.msra.mxu1 %v579_v20  ;;  %v554_v27 = vadd.f32 %v553_v24, %v8211_v36 }
 0x13c   : > { %v557_v25 = vpop.f32.mrb[18].mxu0  ;;  %v556_v34 = vadd.f32 %v555_v29, %v8211_v36  ;;  %v7382_v36 = vld [vmem:[%s11445_s1 + $0x38] sm:$0xff]  }
 0x13d   : > { %v558_v28 = vadd.f32 %v557_v25, %v8219_v39  ;;  %v559_v30 = vpop.f32.mrb[19].mxu0 }
 0x13e   : > { %v560_v35 = vadd.f32 %v559_v30, %v8219_v39  ;;  %v7383_v39 = vld [vmem:[%s11445_s1 + $0x40] sm:$0xff]  }
 0x13f   : > { %v581_v37 = vpack.c.bf16 %v558_v28, %v554_v27 }
 0x140   : > { %v582_v32 = vpack.c.bf16 %v560_v35, %v556_v34 }
 0x142   : > { %692 = vmatprep.subr.bf16.mxu1 %v582_v32 }
 0x143   : > { %693 = vmatpush1.bf16.msra.mxu1 %v581_v37 }
 0x146   : > { %6755 = vmatmul.mubr.msk.bf16.vlgmr.msra.gmra.mrb[0].mxu1 %vm463_vm0, %v7380_v33 }
 0x147   : > { %726 = vmatprep.mubr.bf16.mxu1 %v11452_v22 }
 0x14e   : > { %6756 = vmatmul.mubr.msk.bf16.gmra.mrb[4].mxu1 %vm463_vm0, %v7381_v38 }
 0x14f   : > { %736 = vmatprep.mubr.bf16.mxu1 %v11452_v22 }
 0x156   : > { %6757 = vmatmul.mubr.msk.bf16.gmra.mrb[8].mxu1 %vm463_vm0, %v7382_v36 }
 0x157   : > { %746 = vmatprep.mubr.bf16.mxu1 %v11452_v22 }
 0x15e   : > { %6758 = vmatmul.mubr.msk.bf16.gmra.mrb[12].mxu1 %vm463_vm0, %v7383_v39 }
 0x15f   : > { %756 = vmatprep.mubr.bf16.mxu1 %v11452_v22 }
 0x166   : > { %6759 = vmatmul.mubr.msk.bf16.gmra.mrb[16].mxu1 %vm463_vm0, %v7384_v40 }
 0x167   : > { %1567 = vmatprep.mubr.bf16.mxu1 %v11452_v22 }
 0x219   : > { %v718_v21 = vpop.f32.mrb[0].mxu1 }
 0x21a   : > { %v720_v41 = vpop.f32.mrb[1].mxu1  ;;  %v8412_v3 = vadd.f32 %v718_v21, %v8279_v62 }
 0x21b   : > { %v722_v44 = vpop.f32.mrb[2].mxu1  ;;  %v8415_v4 = vadd.f32 %v720_v41, %v8279_v62 }
 0x21c   : > { %v724_v47 = vpop.f32.mrb[3].mxu1  ;;  %v8386_v48 = vadd.f32 %v722_v44, %v8227_v42 }
 0x21d   : > { %v8389_v50 = vadd.f32 %v724_v47, %v8227_v42  ;;  %v768_v16 = vand.u32 2147483647, %v8415_v4 }
 0x21e   : > { %v783_v61 = vmul.f32 %v8386_v48, %v8386_v48 }
 0x21f   : > { %v784_v1 = vmul.f32 %v8389_v50, %v8389_v50  ;;  %v6761_v28 = vmul.f32 -1.442695, %v768_v16 }
 0x221   : > { %v728_v51 = vpop.f32.mrb[4].mxu1 }
 0x222   : > { %v8392_v54 = vadd.f32 %v728_v51, %v8229_v43  ;;  %v730_v55 = vpop.f32.mrb[5].mxu1 }
 0x223   : > { %v8395_v58 = vadd.f32 %v730_v55, %v8229_v43  ;;  %v732_v60 = vpop.f32.mrb[6].mxu1 }
 0x224   : > { %v785_v0 = vmul.f32 %v8392_v54, %v8392_v54  ;;  %v8402_v18 = vadd.f32 %v732_v60, %v8237_v46  ;;  %v734_v42 = vpop.f32.mrb[7].mxu1 }
 0x225   : > { %v786_v23 = vmul.f32 %v8395_v58, %v8395_v58  ;;  %v8409_v43 = vadd.f32 %v734_v42, %v8237_v46  ;;  %v767_v46 = vand.u32 2147483647, %v8412_v3 }
 0x226   : > { %v787_v6 = vadd.f32 %v785_v0, %v783_v61  ;;  %v789_v7 = vmul.f32 %v8402_v18, %v8402_v18 }
 0x227   : > { %v788_v10 = vadd.f32 %v786_v23, %v784_v1  ;;  %v790_v11 = vmul.f32 %v8409_v43, %v8409_v43  ;;  %v6760_v27 = vmul.f32 -1.442695, %v767_v46 }
 0x228   : > { %v791_v12 = vadd.f32 %v789_v7, %v787_v6 }
 0x229   : > { %v792_v13 = vadd.f32 %v790_v11, %v788_v10  ;;  %v738_v14 = vpop.f32.mrb[8].mxu1 }
 0x22a   : > { %7520 = vrsqrt.f32 %v791_v12  ;;  %v740_v17 = vpop.f32.mrb[9].mxu1  ;;  %v8424_v20 = vadd.f32 %v738_v14, %v8245_v49  ;;  %vm795_vm1 = vcmp.eq.f32.partialorder %v791_v12, inf  ;;  %vm797_vm2 = vcmp.eq.f32.partialorder %v791_v12, 0.0 }
 0x22b   : > { %7522 = vrsqrt.f32 %v792_v13  ;;  %v742_v62 = vpop.f32.mrb[10].mxu1  ;;  %v8427_v26 = vadd.f32 %v740_v17, %v8245_v49  ;;  %v798_v55 = vand.u32 2147483648, %v791_v12  ;;  %vm802_vm3 = vcmp.eq.f32.partialorder %v792_v13, inf }
 0x22c   : > { %v744_v24 = vpop.f32.mrb[11].mxu1  ;;  %v8430_v29 = vadd.f32 %v742_v62, %v8253_v52  ;;  %v825_v30 = vmul.f32 %v8424_v20, %v8424_v20  ;;  %7524 = vpow2.f32 %v6760_v27  ;;  %v805_v23 = vand.u32 2147483648, %v792_v13 }
 0x22d   : > { %v8433_v25 = vadd.f32 %v744_v24, %v8253_v52  ;;  %v826_v34 = vmul.f32 %v8427_v26, %v8427_v26  ;;  %7526 = vpow2.f32 %v6761_v28  ;;  %vm804_vm4 = vcmp.eq.f32.partialorder %v792_v13, 0.0 }
 0x22e   : > { %v827_v35 = vmul.f32 %v8430_v29, %v8430_v29 }
 0x22f   : > { %v828_v49 = vmul.f32 %v8433_v25, %v8433_v25 }
 0x230   : > { %v829_v37 = vadd.f32 %v827_v35, %v825_v30 }
 0x231   : > { %v830_v32 = vadd.f32 %v828_v49, %v826_v34  ;;  %v748_v33 = vpop.f32.mrb[12].mxu1 }
 0x232   : > { %v8444_v52 = vadd.f32 %v748_v33, %v8255_v53  ;;  %v750_v38 = vpop.f32.mrb[13].mxu1 }
 0x233   : > { %v8447_v36 = vadd.f32 %v750_v38, %v8255_v53  ;;  %v752_v39 = vpop.f32.mrb[14].mxu1 }
 0x234   : > { %v7521_v40 = vpop.eup %7520  ;;  %v831_v21 = vmul.f32 %v8444_v52, %v8444_v52  ;;  %v8452_v41 = vadd.f32 %v752_v39, %v8263_v56  ;;  %v754_v44 = vpop.f32.mrb[15].mxu1 }
 0x235   : > { %v7523_v47 = vpop.eup %7522  ;;  %v794_v51 = vmul.f32 %v7521_v40, %v791_v12  ;;  %v832_v60 = vmul.f32 %v8447_v36, %v8447_v36  ;;  %v8457_v53 = vadd.f32 %v754_v44, %v8263_v56 }
 0x236   : > { %v801_v61 = vmul.f32 %v7523_v47, %v792_v13  ;;  %v833_v0 = vadd.f32 %v831_v21, %v829_v37  ;;  %v835_v42 = vmul.f32 %v8452_v41, %v8452_v41  ;;  %v7525_v34 = vpop.eup %7524 }
 0x237   : > { %v796_v1 = vsel %vm795_vm1, %v791_v12, %v794_v51  ;;  %v834_v6 = vadd.f32 %v832_v60, %v830_v32  ;;  %v836_v7 = vmul.f32 %v8457_v53, %v8457_v53  ;;  %v7527_v49 = vpop.eup %7526  ;;  %v775_v39 = vadd.f32 1.0, %v7525_v34 }
 0x238   : > { %v799_v10 = vsel %vm797_vm2, %v798_v55, %v796_v1  ;;  %v803_v11 = vsel %vm802_vm3, %v792_v13, %v801_v61  ;;  %v837_v14 = vadd.f32 %v835_v42, %v833_v0  ;;  %v776_v40 = vadd.f32 1.0, %v7527_v49 }
 0x239   : > { %v6762_v46 = vmul.f32 -1.442695, %v799_v10  ;;  %v806_v56 = vsel %vm804_vm4, %v805_v23, %v803_v11  ;;  %v838_v16 = vadd.f32 %v836_v7, %v834_v6  ;;  %v758_v17 = vpop.f32.mrb[16].mxu1 }
 0x23a   : > { %v6763_v62 = vmul.f32 -1.442695, %v806_v56  ;;  %v8465_v24 = vadd.f32 %v758_v17, %v8271_v59  ;;  %v760_v27 = vpop.f32.mrb[17].mxu1 }
 0x23b   : > { %7528 = vpow2.f32 %v6762_v46  ;;  %v8468_v28 = vadd.f32 %v760_v27, %v8271_v59  ;;  %v762_v30 = vpop.f32.mrb[18].mxu1 }
 0x23c   : > { %7530 = vpow2.f32 %v6763_v62  ;;  %v839_v12 = vmul.f32 %v8465_v24, %v8465_v24  ;;  %v8473_v13 = vadd.f32 %v762_v30, %v8281_v63  ;;  %v764_v35 = vpop.f32.mrb[19].mxu1 }
 0x23d   : > { %v840_v37 = vmul.f32 %v8468_v28, %v8468_v28  ;;  %v8478_v33 = vadd.f32 %v764_v35, %v8281_v63 }
 0x23e   : > { %v841_v32 = vadd.f32 %v839_v12, %v837_v14  ;;  %v879_v38 = vand.u32 2147483647, %v8473_v13 }
 0x23f   : > { %v842_v59 = vadd.f32 %v840_v37, %v838_v16  ;;  %v880_v21 = vand.u32 2147483647, %v8478_v33 }
 0x240   : > { %7532 = vrsqrt.f32 %v841_v32  ;;  %v6766_v44 = vmul.f32 -1.442695, %v879_v38  ;;  %vm845_vm5 = vcmp.eq.f32.partialorder %v841_v32, inf  ;;  %v848_v1 = vand.u32 2147483648, %v841_v32 }
 0x241   : > { %7534 = vrsqrt.f32 %v842_v59  ;;  %v6767_v60 = vmul.f32 -1.442695, %v880_v21  ;;  %vm847_vm6 = vcmp.eq.f32.partialorder %v841_v32, 0.0  ;;  %vm852_vm7 = vcmp.eq.f32.partialorder %v842_v59, inf }
 0x242   : > { %7536 = vrcp.f32 %v775_v39  ;;  %v855_v7 = vand.u32 2147483648, %v842_v59  ;;  %vm854_vm8 = vcmp.eq.f32.partialorder %v842_v59, 0.0 }
 0x243   : > { %7538 = vrcp.f32 %v776_v40 }
 0x244   : > { %7540 = vpow2.f32 %v6766_v44 }
 0x245   : > { %v7529_v47 = vpop.eup %7528 }
 0x246   : > { %v7531_v51 = vpop.eup %7530  ;;  %v813_v55 = vadd.f32 1.0, %v7529_v47 }
 0x247   : > { %v814_v61 = vadd.f32 1.0, %v7531_v51 }
 0x248   : > { %7542 = vrcp.f32 %v813_v55 }
 0x249   : > { %7544 = vrcp.f32 %v814_v61 }
 0x24a   : > { %v7533_v63 = vpop.eup %7532  ;;  %7546 = vpow2.f32 %v6767_v60 }
 0x24b   : > { %v7535_v0 = vpop.eup %7534  ;;  %v844_v42 = vmul.f32 %v7533_v63, %v841_v32 }
 0x24c   : > { %v851_v23 = vmul.f32 %v7535_v0, %v842_v59  ;;  %v7537_v14 = vpop.eup %7536 }
 0x24d   : > { %v846_v6 = vsel %vm845_vm5, %v841_v32, %v844_v42  ;;  %v7539_v16 = vpop.eup %7538  ;;  %v781_v34 = vmul.f32 %v7537_v14, %v8412_v3 }
 0x24e   : > { %v849_v10 = vsel %vm847_vm6, %v848_v1, %v846_v6  ;;  %v853_v11 = vsel %vm852_vm7, %v842_v59, %v851_v23  ;;  %v7541_v62 = vpop.eup %7540  ;;  %v782_v32 = vmul.f32 %v7539_v16, %v8415_v4  ;;  %v7393_v16 = vld [vmem:[%s11447_s3 + $0x40] sm:$0xff]  }
 0x24f   : > { %v6764_v46 = vmul.f32 -1.442695, %v849_v10  ;;  %v856_v56 = vsel %vm854_vm8, %v855_v7, %v853_v11  ;;  %v887_v44 = vadd.f32 1.0, %v7541_v62 }
 0x250   : > { %v6765_v17 = vmul.f32 -1.442695, %v856_v56  ;;  %v7392_v56 = vld [vmem:[%s11447_s3 + $0x38] sm:$0xff]  }
 0x251   : > { %7548 = vpow2.f32 %v6764_v46 }
 0x252   : > { %v7543_v27 = vpop.eup %7542  ;;  %7550 = vpow2.f32 %v6765_v17  ;;  %v7394_v17 = vld [vmem:[%s11447_s3 + $0x48] sm:$0xff]  }
 0x253   : > { %v7545_v30 = vpop.eup %7544  ;;  %v823_v12 = vmul.f32 %v7543_v27, %v8402_v18  ;;  %v819_v35 = vmul.f32 %v7543_v27, %v8386_v48  ;;  %v821_v49 = vmul.f32 %v7543_v27, %v8392_v54  ;;  %7552 = vrcp.f32 %v887_v44 }
 0x254   : > { %v7547_v37 = vpop.eup %7546  ;;  %v824_v59 = vmul.f32 %v7545_v30, %v8409_v43  ;;  %v820_v38 = vmul.f32 %v7545_v30, %v8389_v50  ;;  %v822_v39 = vmul.f32 %v7545_v30, %v8395_v58 }
 0x255   : > { %v915_v40 = vpack.c.bf16 %v819_v35, %v781_v34  ;;  %v917_v21 = vpack.c.bf16 %v823_v12, %v821_v49  ;;  %v888_v51 = vadd.f32 1.0, %v7547_v37 }
 0x256   : > { %v916_v47 = vpack.c.bf16 %v820_v38, %v782_v32  ;;  %v918_v3 = vpack.c.bf16 %v824_v59, %v822_v39 }
 0x257   : > { %7554 = vrcp.f32 %v888_v51 }
 0x258   : > { %1124 = vmatprep.subr.bf16.mxu0 %v916_v47 }
 0x259   : > { %1125 = vmatpush1.bf16.msra.mxu0 %v915_v40 }
 0x25a   : > { %1126 = vmatprep.subr.bf16.mxu0 %v918_v3 }
 0x25b   : > { %v7549_v48 = vpop.eup %7548 }
 0x25c   : > { %v7551_v54 = vpop.eup %7550  ;;  %v863_v18 = vadd.f32 1.0, %v7549_v48 }
 0x25d   : > { %v864_v4 = vadd.f32 1.0, %v7551_v54  ;;  %1127 = vmatpush1.bf16.msra.mxu0 %v917_v21  ;;  %v7553_v50 = vpop.eup %7552 }
 0x25e   : > { %7556 = vrcp.f32 %v863_v18  ;;  %v893_v55 = vmul.f32 %v7553_v50, %v8473_v13 }
 0x25f   : > { %7558 = vrcp.f32 %v864_v4 }
 0x261   : > { %v7555_v58 = vpop.eup %7554 }
 0x262   : > { %v894_v60 = vmul.f32 %v7555_v58, %v8478_v33 }
 0x268   : > { %v7557_v43 = vpop.eup %7556 }
 0x269   : > { %v7559_v61 = vpop.eup %7558  ;;  %v877_v63 = vmul.f32 %v7557_v43, %v8465_v24  ;;  %v869_v0 = vmul.f32 %v7557_v43, %v8424_v20  ;;  %v871_v42 = vmul.f32 %v7557_v43, %v8430_v29  ;;  %v873_v1 = vmul.f32 %v7557_v43, %v8444_v52  ;;  %v7387_v52 = vld [vmem:[%s11447_s3 + $0x10] sm:$0xff]  }
 0x26a   : > { %v878_v23 = vmul.f32 %v7559_v61, %v8468_v28  ;;  %v870_v6 = vmul.f32 %v7559_v61, %v8427_v26  ;;  %v872_v7 = vmul.f32 %v7559_v61, %v8433_v25  ;;  %v874_v10 = vmul.f32 %v7559_v61, %v8447_v36  ;;  %v7385_v26 = vld [vmem:[%s11447_s3] sm:$0xff]   ;;  %v7386_v25 = vld [vmem:[%s11447_s3 + $0x8] sm:$0xff]   ;;  %v7388_v36 = vld [vmem:[%s11447_s3 + $0x18] sm:$0xff]  }
 0x26b   : > { %v919_v13 = vpack.c.bf16 %v871_v42, %v869_v0  ;;  %v876_v33 = vmul.f32 %v7559_v61, %v8457_v53  ;;  %v875_v11 = vmul.f32 %v7557_v43, %v8452_v41  ;;  %v923_v24 = vpack.c.bf16 %v893_v55, %v877_v63  ;;  %v7389_v41 = vld [vmem:[%s11447_s3 + $0x20] sm:$0xff]   ;;  %v7390_v53 = vld [vmem:[%s11447_s3 + $0x28] sm:$0xff]   ;;  %v7391_v28 = vld [vmem:[%s11447_s3 + $0x30] sm:$0xff]  }
 0x26c   : > { %v920_v14 = vpack.c.bf16 %v872_v7, %v870_v6  ;;  %v924_v20 = vpack.c.bf16 %v894_v60, %v878_v23 }
 0x26d   : > { %v922_v46 = vpack.c.bf16 %v876_v33, %v874_v10  ;;  %v921_v29 = vpack.c.bf16 %v875_v11, %v873_v1 }
 0x26e   : > { %1128 = vmatprep.subr.bf16.mxu0 %v920_v14 }
 0x26f   : > { %1129 = vmatpush1.bf16.msra.mxu0 %v919_v13 }
 0x270   : > { %1130 = vmatprep.subr.bf16.mxu0 %v922_v46 }
 0x273   : > { %1131 = vmatpush1.bf16.msra.mxu0 %v921_v29 }
 0x274   : > { %1132 = vmatprep.subr.bf16.mxu0 %v924_v20 }
 0x277   : > { %1133 = vmatpush1.bf16.msra.mxu0 %v923_v24 }
 0x27a   : > { %6778 = vmatmul.mubr.msk.bf16.vlgmr.msra.gmra.mrb[20].mxu0 %vm463_vm0, %v7385_v26 }
 0x27b   : > { %1166 = vmatprep.mubr.bf16.mxu0 %v11452_v22 }
 0x282   : > { %6779 = vmatmul.mubr.msk.bf16.gmra.mrb[24].mxu0 %vm463_vm0, %v7386_v25 }
 0x283   : > { %1176 = vmatprep.mubr.bf16.mxu0 %v11452_v22 }
 0x28a   : > { %6780 = vmatmul.mubr.msk.bf16.gmra.mrb[28].mxu0 %vm463_vm0, %v7387_v52 }
 0x28b   : > { %1186 = vmatprep.mubr.bf16.mxu0 %v11452_v22 }
 0x292   : > { %6781 = vmatmul.mubr.msk.bf16.gmra.mrb[32].mxu0 %vm463_vm0, %v7388_v36 }
 0x293   : > { %1196 = vmatprep.mubr.bf16.mxu0 %v11452_v22 }
 0x29a   : > { %6782 = vmatmul.mubr.msk.bf16.gmra.mrb[36].mxu0 %vm463_vm0, %v7389_v41 }
 0x29b   : > { %1204 = vmatprep.mubr.bf16.mxu0 %v11452_v22 }
 0x2a2   : > { %6783 = vmatmul.mubr.msk.bf16.gmra.mrb[40].mxu0 %vm463_vm0, %v7390_v53 }
 0x2a3   : > { %1214 = vmatprep.mubr.bf16.mxu0 %v11452_v22 }
 0x2aa   : > { %6784 = vmatmul.mubr.msk.bf16.gmra.mrb[44].mxu0 %vm463_vm0, %v7391_v28 }
 0x2ab   : > { %1224 = vmatprep.mubr.bf16.mxu0 %v11452_v22 }
 0x2b2   : > { %6785 = vmatmul.mubr.msk.bf16.gmra.mrb[48].mxu0 %vm463_vm0, %v7392_v56 }
 0x2b3   : > { %1234 = vmatprep.mubr.bf16.mxu0 %v11452_v22 }
 0x2ba   : > { %6786 = vmatmul.mubr.msk.bf16.gmra.mrb[52].mxu0 %vm463_vm0, %v7393_v16 }
 0x2bb   : > { %1244 = vmatprep.mubr.bf16.mxu0 %v11452_v22 }
 0x2c2   : > { %6787 = vmatmul.mubr.msk.bf16.gmra.mrb[56].mxu0 %vm463_vm0, %v7394_v17 }
 0x2c3   : > { %1497 = vmatprep.mubr.bf16.mxu0 %v11452_v22 }
 0x34d   : > { %v8552_v62 = vpop.f32.mrb[20].mxu0 }
 0x34e   : > { %v8554_v27 = vpop.f32.mrb[21].mxu0 }
 0x34f   : > { %v8556_v30 = vpop.f32.mrb[22].mxu0 }
 0x350   : > { %v8558_v34 = vpop.f32.mrb[23].mxu0 }
 0x355   : > { %v8560_v12 = vpop.f32.mrb[24].mxu0 }
 0x356   : > { %v8562_v35 = vpop.f32.mrb[25].mxu0 }
 0x357   : > { %v8564_v49 = vpop.f32.mrb[26].mxu0 }
 0x358   : > { %v8566_v37 = vpop.f32.mrb[27].mxu0 }
 0x35d   : > { %v8568_v32 = vpop.f32.mrb[28].mxu0 }
 0x35e   : > { %v8570_v59 = vpop.f32.mrb[29].mxu0 }
 0x35f   : > { %v8572_v38 = vpop.f32.mrb[30].mxu0 }
 0x360   : > { %v8574_v39 = vpop.f32.mrb[31].mxu0 }
 0x365   : > { %v8576_v40 = vpop.f32.mrb[32].mxu0 }
 0x366   : > { %v8578_v21 = vpop.f32.mrb[33].mxu0 }
 0x367   : > { %v8580_v44 = vpop.f32.mrb[34].mxu0 }
 0x368   : > { %v8582_v47 = vpop.f32.mrb[35].mxu0 }
 0x36d   : > { %v8584_v3 = vpop.f32.mrb[36].mxu0 }
 0x36e   : > { %v8586_v51 = vpop.f32.mrb[37].mxu0 }
 0x36f   : > { %v1202_v48 = vpop.f32.mrb[38].mxu0 }
 0x370   : > { %v1203_v54 = vpop.f32.mrb[39].mxu0 }
 0x375   : > { %v1206_v18 = vpop.f32.mrb[40].mxu0 }
 0x376   : > { %v1208_v4 = vpop.f32.mrb[41].mxu0  ;;  %v1207_v58 = vadd.f32 %v1206_v18, %v8289_v2  ;;  %v1042_v18 = vpop.permute.xlu1 %1041 }
 0x377   : > { %v1210_v50 = vpop.f32.mrb[42].mxu0  ;;  %v1209_v60 = vadd.f32 %v1208_v4, %v8289_v2 }
 0x378   : > { %v1211_v43 = vadd.f32 %v1210_v50, %v8297_v5  ;;  %v1212_v55 = vpop.f32.mrb[43].mxu0 }
 0x379   : > { %v1213_v61 = vadd.f32 %v1212_v55, %v8297_v5 }
 0x37a   : > { %v1295_v63 = vpack.c.bf16 %v1211_v43, %v1207_v58 }
 0x37b   : > { %v1296_v0 = vpack.c.bf16 %v1213_v61, %v1209_v60 }
 0x37d   : > { %v1216_v42 = vpop.f32.mrb[44].mxu0  ;;  %1465 = vmatprep.subr.bf16.mxu0 %v1296_v0  ;;  %7321 = vmatprep.subr.bf16.mxu1 %v1296_v0  ;;  %v7398_v0 = vld [vmem:[%s11449_s5 + $0x40] sm:$0xff]  }
 0x37e   : > { %v1218_v1 = vpop.f32.mrb[45].mxu0  ;;  %1466 = vmatpush1.bf16.msra.mxu0 %v1295_v63  ;;  %7326 = vmatpush1.bf16.msra.mxu1 %v1295_v63  ;;  %v1217_v6 = vadd.f32 %v1216_v42, %v8305_v8  ;;  %v7396_v63 = vld [vmem:[%s11449_s5 + $0x38] sm:$0xff]   ;;  %v7399_v42 = vld [vmem:[%s11449_s5 + $0x10] sm:$0xff]  }
 0x37f   : > { %v1220_v23 = vpop.f32.mrb[46].mxu0  ;;  %v1219_v13 = vadd.f32 %v1218_v1, %v8305_v8  ;;  %v7400_v1 = vld [vmem:[%s11449_s5 + $0x48] sm:$0xff]  }
 0x380   : > { %v1221_v7 = vadd.f32 %v1220_v23, %v8307_v9  ;;  %v1222_v10 = vpop.f32.mrb[47].mxu0  ;;  %v7401_v23 = vld [vmem:[%s11449_s5 + $0x18] sm:$0xff]  }
 0x381   : > { %v1223_v2 = vadd.f32 %v1222_v10, %v8307_v9  ;;  %v7404_v10 = vld [vmem:[%s11449_s5 + $0x58] sm:$0xff]  }
 0x382   : > { %v1297_v33 = vpack.c.bf16 %v1221_v7, %v1217_v6  ;;  %v7402_v6 = vld [vmem:[%s11449_s5 + $0x50] sm:$0xff]   ;;  %v7403_v7 = vld [vmem:[%s11449_s5 + $0x20] sm:$0xff]  }
 0x383   : > { %v1298_v5 = vpack.c.bf16 %v1223_v2, %v1219_v13  ;;  %v7405_v13 = vld [vmem:[%s11449_s5 + $0x28] sm:$0xff]   ;;  %v7406_v2 = vld [vmem:[%s11449_s5 + $0x60] sm:$0xff]  }
 0x385   : > { %v1226_v11 = vpop.f32.mrb[48].mxu0  ;;  %1467 = vmatprep.subr.bf16.mxu0 %v1298_v5  ;;  %7322 = vmatprep.subr.bf16.mxu1 %v1298_v5  ;;  %v7408_v5 = vld [vmem:[%s11449_s5 + $0x68] sm:$0xff]  }
 0x386   : > { %v1228_v24 = vpop.f32.mrb[49].mxu0  ;;  %1468 = vmatpush1.bf16.msra.mxu0 %v1297_v33  ;;  %7327 = vmatpush1.bf16.msra.mxu1 %v1297_v33  ;;  %v1227_v20 = vadd.f32 %v1226_v11, %v8317_v19  ;;  %v7407_v33 = vld [vmem:[%s11449_s5 + $0x30] sm:$0xff]  }
 0x387   : > { %v1230_v14 = vpop.f32.mrb[50].mxu0  ;;  %v1229_v26 = vadd.f32 %v1228_v24, %v8317_v19  ;;  %v7409_v11 = vld [vmem:[%s11449_s5 + $0x70] sm:$0xff]   ;;  %v7410_v24 = vld [vmem:[%s11449_s5 + $0x78] sm:$0xff]  }
 0x388   : > { %v1231_v46 = vadd.f32 %v1230_v14, %v8327_v31  ;;  %v1232_v29 = vpop.f32.mrb[51].mxu0  ;;  %v7411_v14 = vld [vmem:[%s11449_s5 + $0x80] sm:$0xff]  }
 0x389   : > { %v1233_v8 = vadd.f32 %v1232_v29, %v8327_v31  ;;  %v7414_v29 = vld [vmem:[%s11449_s5 + $0x98] sm:$0xff]  }
 0x38a   : > { %v1299_v25 = vpack.c.bf16 %v1231_v46, %v1227_v20  ;;  %v7412_v20 = vld [vmem:[%s11449_s5 + $0x88] sm:$0xff]   ;;  %v7413_v46 = vld [vmem:[%s11449_s5 + $0x90] sm:$0xff]  }
 0x38b   : > { %v1300_v9 = vpack.c.bf16 %v1233_v8, %v1229_v26  ;;  %v953_v26 = vpop.permute.xlu1 %952  ;;  %v948_v8 = vpop.permute.xlu0 %947 }
 0x38d   : > { %v1236_v52 = vpop.f32.mrb[52].mxu0  ;;  %1469 = vmatprep.subr.bf16.mxu0 %v1300_v9  ;;  %7323 = vmatprep.subr.bf16.mxu1 %v1300_v9 }
 0x38e   : > { %v1238_v36 = vpop.f32.mrb[53].mxu0  ;;  %1470 = vmatpush1.bf16.msra.mxu0 %v1299_v25  ;;  %7328 = vmatpush1.bf16.msra.mxu1 %v1299_v25  ;;  %v1237_v53 = vadd.f32 %v1236_v52, %v8335_v15  ;;  %v8707_v52 = vadd.f32 %v8552_v62, %v948_v8  ;;  %v8725_v62 = vadd.f32 %v8556_v30, %v953_v26 }
 0x38f   : > { %v1240_v41 = vpop.f32.mrb[54].mxu0  ;;  %v1239_v16 = vadd.f32 %v1238_v36, %v8335_v15  ;;  %v963_v25 = vpop.permute.xlu1 %962 }
 0x390   : > { %v1241_v28 = vadd.f32 %v1240_v41, %v8339_v45  ;;  %v1242_v56 = vpop.f32.mrb[55].mxu0  ;;  %v958_v9 = vpop.permute.xlu0 %957  ;;  %v8713_v41 = vadd.f32 %v8564_v49, %v963_v25 }
 0x391   : > { %v1243_v19 = vadd.f32 %v1242_v56, %v8339_v45  ;;  %v7395_v45 = vld [vmem:[%s11449_s5] sm:$0xff]   ;;  %v8710_v36 = vadd.f32 %v8560_v12, %v958_v9  ;;  %v8722_v56 = vadd.f32 %v8566_v37, %v963_v25 }
 0x392   : > { %v1301_v17 = vpack.c.bf16 %v1241_v28, %v1237_v53  ;;  %v8716_v53 = vadd.f32 %v8554_v27, %v948_v8  ;;  %v8719_v28 = vadd.f32 %v8562_v35, %v958_v9 }
 0x393   : > { %v1302_v31 = vpack.c.bf16 %v1243_v19, %v1239_v16  ;;  %11491 = vst [vmem:[#allocation7_spill] sm:$0xff] %v8722_v56 }
 0x394   : > { %11490 = vst [vmem:[#allocation6_spill] sm:$0xff] %v8719_v28 }
 0x395   : > { %v1246_v48 = vpop.f32.mrb[56].mxu0  ;;  %1471 = vmatprep.subr.bf16.mxu0 %v1302_v31  ;;  %7324 = vmatprep.subr.bf16.mxu1 %v1302_v31  ;;  %v8737_v31 = vadd.f32 %v8558_v34, %v953_v26 }
 0x396   : > { %v1248_v54 = vpop.f32.mrb[57].mxu0  ;;  %1472 = vmatpush1.bf16.msra.mxu0 %v1301_v17  ;;  %7329 = vmatpush1.bf16.msra.mxu1 %v1301_v17  ;;  %v1247_v50 = vadd.f32 %v1246_v48, %v8346_v57 }
 0x397   : > { %v1250_v4 = vpop.f32.mrb[58].mxu0  ;;  %v1249_v55 = vadd.f32 %v1248_v54, %v8346_v57  ;;  %v7397_v57 = vld [vmem:[%s11449_s5 + $0x8] sm:$0xff]   ;;  %11495 = vst [vmem:[#allocation11_spill] sm:$0xff] %v8737_v31 }
 0x398   : > { %v1251_v58 = vadd.f32 %v1250_v4, %v1042_v18  ;;  %v1252_v43 = vpop.f32.mrb[59].mxu0 }
 0x399   : > { %v1253_v60 = vadd.f32 %v1252_v43, %v1042_v18 }
 0x39a   : > { %v1303_v15 = vpack.c.bf16 %v1251_v58, %v1247_v50 }
 0x39b   : > { %v1304_v61 = vpack.c.bf16 %v1253_v60, %v1249_v55 }
 0x39d   : > { %1473 = vmatprep.subr.bf16.mxu0 %v1304_v61  ;;  %7325 = vmatprep.subr.bf16.mxu1 %v1304_v61  ;;  %v968_v61 = vpop.permute.xlu0 %967 }
 0x39e   : > { %1474 = vmatpush1.bf16.msra.mxu0 %v1303_v15  ;;  %7330 = vmatpush1.bf16.msra.mxu1 %v1303_v15 }
 0x3a1   : > { %6808 = vmatmul.mubr.msk.bf16.vlgmr.msra.gmra.mrb[60].mxu0 %vm463_vm0, %v7395_v45  ;;  %6815 = vmatmul.mubr.msk.bf16.vlgmr.msra.gmra.mrb[20].mxu1 %vm463_vm0, %v7396_v63 }
 0x3a2   : > { %1507 = vmatprep.mubr.bf16.mxu0 %v11452_v22  ;;  %1577 = vmatprep.mubr.bf16.mxu1 %v11452_v22 }
 0x3a9   : > { %6809 = vmatmul.mubr.msk.bf16.gmra.mrb[64].mxu0 %vm463_vm0, %v7397_v57  ;;  %6816 = vmatmul.mubr.msk.bf16.gmra.mrb[24].mxu1 %vm463_vm0, %v7398_v0 }
 0x3aa   : > { %1517 = vmatprep.mubr.bf16.mxu0 %v11452_v22  ;;  %1587 = vmatprep.mubr.bf16.mxu1 %v11452_v22 }
 0x3b1   : > { %6810 = vmatmul.mubr.msk.bf16.gmra.mrb[68].mxu0 %vm463_vm0, %v7399_v42  ;;  %6817 = vmatmul.mubr.msk.bf16.gmra.mrb[28].mxu1 %vm463_vm0, %v7400_v1 }
 0x3b2   : > { %1527 = vmatprep.mubr.bf16.mxu0 %v11452_v22  ;;  %1597 = vmatprep.mubr.bf16.mxu1 %v11452_v22 }
 0x3b9   : > { %6811 = vmatmul.mubr.msk.bf16.gmra.mrb[72].mxu0 %vm463_vm0, %v7401_v23  ;;  %6818 = vmatmul.mubr.msk.bf16.gmra.mrb[32].mxu1 %vm463_vm0, %v7402_v6 }
 0x3ba   : > { %1537 = vmatprep.mubr.bf16.mxu0 %v11452_v22  ;;  %1607 = vmatprep.mubr.bf16.mxu1 %v11452_v22 }
 0x3c1   : > { %6812 = vmatmul.mubr.msk.bf16.gmra.mrb[76].mxu0 %vm463_vm0, %v7403_v7  ;;  %6819 = vmatmul.mubr.msk.bf16.gmra.mrb[36].mxu1 %vm463_vm0, %v7404_v10 }
 0x3c2   : > { %1547 = vmatprep.mubr.bf16.mxu0 %v11452_v22  ;;  %1617 = vmatprep.mubr.bf16.mxu1 %v11452_v22 }
 0x3c9   : > { %6813 = vmatmul.mubr.msk.bf16.gmra.mrb[80].mxu0 %vm463_vm0, %v7405_v13  ;;  %6820 = vmatmul.mubr.msk.bf16.gmra.mrb[40].mxu1 %vm463_vm0, %v7406_v2 }
 0x3ca   : > { %1557 = vmatprep.mubr.bf16.mxu0 %v11452_v22  ;;  %1627 = vmatprep.mubr.bf16.mxu1 %v11452_v22 }
 0x3d1   : > { %6814 = vmatmul.mubr.msk.bf16.gmra.mrb[84].mxu0 %vm463_vm0, %v7407_v33  ;;  %6821 = vmatmul.mubr.msk.bf16.gmra.mrb[44].mxu1 %vm463_vm0, %v7408_v5 }
 0x3d2   : > { %1637 = vmatprep.mubr.bf16.mxu1 %v11452_v22  ;;  %2200 = vmatprep.mubr.bf16.mxu0 %v11452_v22 }
 0x3d9   : > { %6822 = vmatmul.mubr.msk.bf16.gmra.mrb[48].mxu1 %vm463_vm0, %v7409_v11 }
 0x3da   : > { %1647 = vmatprep.mubr.bf16.mxu1 %v11452_v22 }
 0x3e1   : > { %6823 = vmatmul.mubr.msk.bf16.gmra.mrb[52].mxu1 %vm463_vm0, %v7410_v24 }
 0x3e2   : > { %1657 = vmatprep.mubr.bf16.mxu1 %v11452_v22 }
 0x3e9   : > { %6824 = vmatmul.mubr.msk.bf16.gmra.mrb[56].mxu1 %vm463_vm0, %v7411_v14 }
 0x3ea   : > { %1667 = vmatprep.mubr.bf16.mxu1 %v11452_v22 }
 0x3f1   : > { %6825 = vmatmul.mubr.msk.bf16.gmra.mrb[60].mxu1 %vm463_vm0, %v7412_v20 }
 0x3f2   : > { %1677 = vmatprep.mubr.bf16.mxu1 %v11452_v22 }
 0x3f9   : > { %6826 = vmatmul.mubr.msk.bf16.gmra.mrb[64].mxu1 %vm463_vm0, %v7413_v46  ;;  %v973_v46 = vpop.permute.xlu1 %972 }
 0x3fa   : > { %1687 = vmatprep.mubr.bf16.mxu1 %v11452_v22 }
 0x401   : > { %6827 = vmatmul.mubr.msk.bf16.gmra.mrb[68].mxu1 %vm463_vm0, %v7414_v29  ;;  %v978_v29 = vpop.permute.xlu0 %977 }
 0x402   : > { %2984 = vmatprep.mubr.bf16.mxu1 %v11452_v22 }
 0x474   : > { %v1499_v16 = vpop.f32.mrb[60].mxu0  ;;  %v1569_v19 = vpop.f32.mrb[20].mxu1 }
 0x475   : > { %v8728_v12 = vmul.f32 %v1499_v16, %v8707_v52  ;;  %v8731_v49 = vmul.f32 %v1569_v19, %v8710_v36  ;;  %v8734_v27 = vmul.f32 %v1569_v19, %v8713_v41  ;;  %v1501_v17 = vpop.f32.mrb[61].mxu0  ;;  %v1571_v35 = vpop.f32.mrb[21].mxu1 }
 0x476   : > { %v8740_v37 = vmul.f32 %v1501_v17, %v8716_v53  ;;  %v8743_v30 = vmul.f32 %v1571_v35, %v8719_v28  ;;  %v8746_v48 = vmul.f32 %v1571_v35, %v8722_v56  ;;  %v1503_v54 = vpop.f32.mrb[62].mxu0  ;;  %v1573_v18 = vpop.f32.mrb[22].mxu1 }
 0x477   : > { %11492 = vst [vmem:[#allocation8_spill] sm:$0xff] %v8728_v12  ;;  %11493 = vst [vmem:[#allocation9_spill] sm:$0xff] %v8731_v49  ;;  %v8749_v4 = vmul.f32 %v1503_v54, %v8707_v52  ;;  %v8752_v50 = vmul.f32 %v1573_v18, %v8725_v62  ;;  %v8755_v34 = vmul.f32 %v1573_v18, %v8713_v41  ;;  %v1505_v58 = vpop.f32.mrb[63].mxu0  ;;  %v1575_v43 = vpop.f32.mrb[23].mxu1 }
 0x478   : > { %11494 = vst [vmem:[#allocation10_spill] sm:$0xff] %v8734_v27  ;;  %11496 = vst [vmem:[#allocation12_spill] sm:$0xff] %v8740_v37  ;;  %v8758_v55 = vmul.f32 %v1505_v58, %v8716_v53  ;;  %v8761_v60 = vmul.f32 %v1575_v43, %v8737_v31  ;;  %v8764_v15 = vmul.f32 %v1575_v43, %v8722_v56 }
 0x479   : > { %11497 = vst [vmem:[#allocation13_spill] sm:$0xff] %v8743_v30  ;;  %11498 = vst [vmem:[#allocation14_spill] sm:$0xff] %v8746_v48 }
 0x47a   : > { %11499 = vst [vmem:[#allocation15_spill] sm:$0xff] %v8752_v50  ;;  %11500 = vst [vmem:[#allocation16_spill] sm:$0xff] %v8755_v34 }
 0x47b   : > { %11501 = vst [vmem:[#allocation17_spill] sm:$0xff] %v8758_v55  ;;  %11502 = vst [vmem:[#allocation18_spill] sm:$0xff] %v8761_v60 }
 0x47c   : > { %11503 = vst [vmem:[#allocation19_spill] sm:$0xff] %v8764_v15  ;;  %v1509_v45 = vpop.f32.mrb[64].mxu0  ;;  %v1579_v63 = vpop.f32.mrb[24].mxu1 }
 0x47d   : > { %v8767_v57 = vmul.f32 %v1509_v45, %v8707_v52  ;;  %v8770_v0 = vmul.f32 %v1579_v63, %v8725_v62  ;;  %v8773_v42 = vmul.f32 %v1579_v63, %v8710_v36  ;;  %v1511_v1 = vpop.f32.mrb[65].mxu0  ;;  %v1581_v23 = vpop.f32.mrb[25].mxu1 }
 0x47e   : > { %v8776_v6 = vmul.f32 %v1511_v1, %v8716_v53  ;;  %v8779_v7 = vmul.f32 %v1581_v23, %v8737_v31  ;;  %v8782_v10 = vmul.f32 %v1581_v23, %v8719_v28  ;;  %v1513_v13 = vpop.f32.mrb[66].mxu0  ;;  %v1583_v2 = vpop.f32.mrb[26].mxu1 }
 0x47f   : > { %11504 = vst [vmem:[#allocation20_spill] sm:$0xff] %v8767_v57  ;;  %11505 = vst [vmem:[#allocation21_spill] sm:$0xff] %v8770_v0  ;;  %v8785_v33 = vmul.f32 %v1513_v13, %v8707_v52  ;;  %v8788_v5 = vmul.f32 %v1583_v2, %v8725_v62  ;;  %v1515_v11 = vpop.f32.mrb[67].mxu0  ;;  %v1585_v24 = vpop.f32.mrb[27].mxu1 }
 0x480   : > { %11506 = vst [vmem:[#allocation22_spill] sm:$0xff] %v8773_v42  ;;  %11507 = vst [vmem:[#allocation23_spill] sm:$0xff] %v8776_v6  ;;  %v8791_v14 = vmul.f32 %v1515_v11, %v8716_v53  ;;  %v8794_v20 = vmul.f32 %v1585_v24, %v8737_v31  ;;  %v983_v13 = vpop.permute.xlu1 %982  ;;  %v988_v2 = vpop.permute.xlu0 %987  ;;  %v8815_v11 = vadd.f32 %v8568_v32, %v968_v61 }
 0x481   : > { %11508 = vst [vmem:[#allocation24_spill] sm:$0xff] %v8779_v7  ;;  %11509 = vst [vmem:[#allocation25_spill] sm:$0xff] %v8782_v10  ;;  %v8818_v24 = vadd.f32 %v8570_v59, %v968_v61  ;;  %v8836_v32 = vadd.f32 %v8578_v21, %v978_v29  ;;  %v8839_v59 = vadd.f32 %v8582_v47, %v983_v13 }
 0x482   : > { %11510 = vst [vmem:[#allocation26_spill] sm:$0xff] %v8785_v33  ;;  %11511 = vst [vmem:[#allocation27_spill] sm:$0xff] %v8791_v14 }
 0x484   : > { %v1519_v26 = vpop.f32.mrb[68].mxu0  ;;  %v1589_v8 = vpop.f32.mrb[28].mxu1 }
 0x485   : > { %v1706_v25 = vmul.f32 %v1519_v26, %v8707_v52  ;;  %v8798_v9 = vmul.f32 %v1589_v8, %v8710_v36  ;;  %v1521_v16 = vpop.f32.mrb[69].mxu0  ;;  %v1591_v19 = vpop.f32.mrb[29].mxu1  ;;  %v8821_v26 = vadd.f32 %v8572_v38, %v973_v46  ;;  %v8824_v8 = vadd.f32 %v8574_v39, %v973_v46 }
 0x486   : > { %v1707_v17 = vmul.f32 %v1521_v16, %v8716_v53  ;;  %v8802_v35 = vmul.f32 %v1591_v19, %v8719_v28  ;;  %v1523_v54 = vpop.f32.mrb[70].mxu0  ;;  %v1593_v18 = vpop.f32.mrb[30].mxu1  ;;  %v8827_v16 = vadd.f32 %v8580_v44, %v983_v13  ;;  %v8830_v19 = vadd.f32 %v8584_v3, %v988_v2 }
 0x487   : > { %v1708_v58 = vmul.f32 %v1523_v54, %v8707_v52  ;;  %v8806_v43 = vmul.f32 %v1593_v18, %v8713_v41  ;;  %v1525_v45 = vpop.f32.mrb[71].mxu0  ;;  %v1595_v63 = vpop.f32.mrb[31].mxu1  ;;  %v8833_v54 = vadd.f32 %v8576_v40, %v978_v29  ;;  %v8842_v38 = vadd.f32 %v8586_v51, %v988_v2 }
 0x488   : > { %v8809_v1 = vmul.f32 %v1525_v45, %v8716_v53  ;;  %v8812_v23 = vmul.f32 %v1595_v63, %v8722_v56  ;;  %11514 = vst [vmem:[#allocation30_spill] sm:$0xff] %v8830_v19 }
 0x489   : > { %11512 = vst [vmem:[#allocation28_spill] sm:$0xff] %v8806_v43 }
 0x48a   : > { %11513 = vst [vmem:[#allocation29_spill] sm:$0xff] %v8812_v23 }
 0x48c   : > { %v1529_v39 = vpop.f32.mrb[72].mxu0  ;;  %v1599_v61 = vpop.f32.mrb[32].mxu1 }
 0x48d   : > { %v1710_v44 = vmul.f32 %v1529_v39, %v8707_v52  ;;  %v1531_v46 = vpop.f32.mrb[73].mxu0  ;;  %v1601_v18 = vpop.f32.mrb[33].mxu1  ;;  %v1790_v3 = vmul.f32 %v1599_v61, %v8827_v16  ;;  %v1794_v40 = vmul.f32 %v1599_v61, %v8830_v19  ;;  %v1778_v45 = vmul.f32 %v1599_v61, %v8815_v11 }
 0x48e   : > { %v8849_v21 = vmul.f32 %v1531_v46, %v8716_v53  ;;  %v1533_v47 = vpop.f32.mrb[74].mxu0  ;;  %v8851_v29 = vpop.f32.mrb[34].mxu1  ;;  %v1791_v51 = vmul.f32 %v1601_v18, %v8839_v59  ;;  %v1795_v63 = vmul.f32 %v1601_v18, %v8842_v38  ;;  %v1779_v13 = vmul.f32 %v1601_v18, %v8818_v24 }
 0x48f   : > { %11515 = vst [vmem:[#allocation31_spill] sm:$0xff] %v8851_v29  ;;  %v1712_v2 = vmul.f32 %v1533_v47, %v8707_v52  ;;  %v1535_v39 = vpop.f32.mrb[75].mxu0  ;;  %v8857_v22 = vpop.f32.mrb[35].mxu1  ;;  %v1816_v23 = vmul.f32 %v8851_v29, %v8821_v26  ;;  %v1780_v43 = vadd.f32 %v1778_v45, %v1706_v25  ;;  %v1782_v46 = vmul.f32 %v1599_v61, %v8821_v26 }
 0x490   : > { %11516 = vst [vmem:[#allocation32_spill] sm:$0xff] %v8857_v22  ;;  %v1713_v30 = vmul.f32 %v1535_v39, %v8716_v53  ;;  %v1817_v49 = vmul.f32 %v8857_v22, %v8824_v8  ;;  %v1781_v37 = vadd.f32 %v1779_v13, %v1707_v17  ;;  %v1786_v15 = vmul.f32 %v1599_v61, %v8833_v54 }
 0x491   : > { %v8866_v48 = vadd.f32 %v1790_v3, %v1712_v2  ;;  %v8868_v47 = vmul.f32 0.18257418, %v1816_v23  ;;  %v1822_v60 = vmul.f32 0.31622776, %v1816_v23  ;;  %v1784_v12 = vadd.f32 %v1782_v46, %v1708_v58 }
 0x492   : > { %v8870_v10 = vadd.f32 %v1791_v51, %v1713_v30  ;;  %v8872_v7 = vmul.f32 0.18257418, %v1817_v49  ;;  %v1823_v25 = vmul.f32 0.31622776, %v1817_v49  ;;  %v1788_v45 = vadd.f32 %v1786_v15, %v1710_v44 }
 0x493   : > { %v1798_v39 = vmul.f32 %v8851_v29, %v8815_v11  ;;  %v1838_v17 = vmul.f32 %v8851_v29, %v8833_v54  ;;  %v1860_v61 = vmul.f32 %v8851_v29, %v8827_v16  ;;  %v8881_v3 = vmul.f32 %v1601_v18, %v8824_v8 }
 0x494   : > { %11517 = vst [vmem:[#allocation33_spill] sm:$0xff] %v8872_v7  ;;  %v1539_v23 = vpop.f32.mrb[76].mxu0  ;;  %v1609_v58 = vpop.f32.mrb[36].mxu1  ;;  %v8884_v30 = vmul.f32 %v1601_v18, %v8836_v32  ;;  %v8888_v49 = vmul.f32 %v8857_v22, %v8818_v24  ;;  %v8892_v15 = vmul.f32 %v8857_v22, %v8836_v32  ;;  %v8896_v44 = vmul.f32 %v8857_v22, %v8839_v59 }
 0x495   : > { %v1714_v51 = vmul.f32 %v1539_v23, %v8707_v52  ;;  %v1804_v13 = vmul.f32 %v1609_v58, %v8815_v11  ;;  %v1826_v2 = vmul.f32 %v1609_v58, %v8821_v26  ;;  %v1844_v18 = vmul.f32 %v1609_v58, %v8833_v54  ;;  %v1541_v46 = vpop.f32.mrb[77].mxu0  ;;  %v1611_v7 = vpop.f32.mrb[37].mxu1 }
 0x496   : > { %11518 = vst [vmem:[#allocation34_spill] sm:$0xff] %v8892_v15  ;;  %11519 = vst [vmem:[#allocation35_spill] sm:$0xff] %v8896_v44  ;;  %v1866_v29 = vmul.f32 %v1609_v58, %v8827_v16  ;;  %v1884_v14 = vmul.f32 %v1609_v58, %v8830_v19  ;;  %v1715_v15 = vmul.f32 %v1541_v46, %v8716_v53  ;;  %v1543_v22 = vpop.f32.mrb[78].mxu0  ;;  %v1613_v44 = vpop.f32.mrb[38].mxu1 }
 0x497   : > { %v1805_v34 = vmul.f32 %v1611_v7, %v8818_v24  ;;  %v1796_v27 = vadd.f32 %v1794_v40, %v1714_v51  ;;  %v1806_v23 = vmul.f32 -0.18257418, %v1804_v13  ;;  %v1828_v6 = vmul.f32 0.18257418, %v1826_v2  ;;  %v1545_v31 = vpop.f32.mrb[79].mxu0  ;;  %v1615_v33 = vpop.f32.mrb[39].mxu1 }
 0x498   : > { %v8906_v55 = vmul.f32 0.18257418, %v1844_v18  ;;  %v8908_v56 = vmul.f32 -0.31622776, %v1844_v18  ;;  %v1868_v42 = vmul.f32 -0.18257418, %v1866_v29  ;;  %v1797_v50 = vadd.f32 %v1795_v63, %v1715_v15 }
 0x499   : > { %v8910_v0 = vmul.f32 0.31622776, %v1884_v14  ;;  %v8912_v28 = vadd.f32 %v1822_v60, %v1796_v27  ;;  %v1830_v58 = vadd.f32 %v1828_v6, %v1780_v43  ;;  %v1807_v19 = vmul.f32 -0.18257418, %v1805_v34 }
 0x49a   : > { %11520 = vst [vmem:[#allocation36_spill] sm:$0xff] %v8906_v55  ;;  %11521 = vst [vmem:[#allocation37_spill] sm:$0xff] %v8908_v56  ;;  %v1827_v46 = vmul.f32 %v1611_v7, %v8824_v8  ;;  %v8915_v57 = vadd.f32 %v1823_v25, %v1797_v50  ;;  %v8918_v40 = vmul.f32 %v1611_v7, %v8836_v32  ;;  %v1800_v27 = vmul.f32 0.18257418, %v1798_v39 }
 0x49b   : > { %11522 = vst [vmem:[#allocation38_spill] sm:$0xff] %v8910_v0  ;;  %11523 = vst [vmem:[#allocation39_spill] sm:$0xff] %v8912_v28  ;;  %v1867_v51 = vmul.f32 %v1611_v7, %v8839_v59  ;;  %v1885_v29 = vmul.f32 %v1611_v7, %v8842_v38  ;;  %v1716_v63 = vmul.f32 %v1543_v22, %v8707_v52  ;;  %v1840_v18 = vmul.f32 -0.18257418, %v1838_v17 }
 0x49c   : > { %11524 = vst [vmem:[#allocation40_spill] sm:$0xff] %v8915_v57  ;;  %11525 = vst [vmem:[#allocation41_spill] sm:$0xff] %v8918_v40  ;;  %v1829_v14 = vmul.f32 0.18257418, %v1827_v46  ;;  %v1808_v60 = vadd.f32 %v1806_v23, %v1784_v12  ;;  %v1810_v43 = vmul.f32 %v1613_v44, %v8815_v11  ;;  %v1832_v50 = vmul.f32 %v1613_v44, %v8821_v26  ;;  %v1549_v25 = vpop.f32.mrb[80].mxu0  ;;  %v1619_v15 = vpop.f32.mrb[40].mxu1 }
 0x49d   : > { %v8923_v6 = vmul.f32 -0.18257418, %v1867_v51  ;;  %v8925_v34 = vmul.f32 0.31622776, %v1885_v29  ;;  %v1768_v2 = vadd.f32 %v8788_v5, %v1716_v63  ;;  %v1802_v7 = vadd.f32 %v1800_v27, %v1788_v45  ;;  %v1551_v46 = vpop.f32.mrb[81].mxu0  ;;  %v8932_v22 = vpop.f32.mrb[41].mxu1 }
 0x49e   : > { %v8929_v13 = vadd.f32 %v1829_v14, %v1781_v37  ;;  %v1812_v52 = vmul.f32 -0.36514837, %v1810_v43  ;;  %v1834_v12 = vmul.f32 -0.18257418, %v1832_v50  ;;  %v1854_v39 = vmul.f32 %v1613_v44, %v8833_v54  ;;  %v1553_v14 = vpop.f32.mrb[82].mxu0  ;;  %v1623_v5 = vpop.f32.mrb[42].mxu1 }
 0x49f   : > { %11526 = vst [vmem:[#allocation42_spill] sm:$0xff] %v8923_v6  ;;  %11527 = vst [vmem:[#allocation43_spill] sm:$0xff] %v8925_v34  ;;  %v1862_v23 = vmul.f32 -0.18257418, %v1860_v61  ;;  %v8936_v51 = vadd.f32 %v8798_v9, %v1768_v2  ;;  %v1842_v29 = vadd.f32 %v1840_v18, %v1830_v58  ;;  %v1872_v57 = vmul.f32 %v1613_v44, %v8827_v16  ;;  %v1555_v43 = vpop.f32.mrb[83].mxu0  ;;  %v1625_v50 = vpop.f32.mrb[43].mxu1 }
 0x4a0   : > { %v1717_v37 = vmul.f32 %v1545_v31, %v8716_v53  ;;  %v1814_v45 = vadd.f32 %v1812_v52, %v8866_v48  ;;  %v1836_v17 = vadd.f32 %v1834_v12, %v1802_v7  ;;  %v1856_v63 = vmul.f32 0.18257418, %v1854_v39 }
 0x4a1   : > { %v1785_v27 = vadd.f32 %v8881_v3, %v8809_v1  ;;  %v1874_v61 = vmul.f32 0.36514837, %v1872_v57  ;;  %v1789_v58 = vadd.f32 %v8884_v30, %v8849_v21  ;;  %v1801_v44 = vmul.f32 0.18257418, %v8888_v49 }
 0x4a2   : > { %v1769_v9 = vadd.f32 %v8794_v20, %v1717_v37  ;;  %v8948_v53 = vadd.f32 %v8868_v47, %v1814_v45  ;;  %v1858_v31 = vadd.f32 %v1856_v63, %v1808_v60  ;;  %v8950_v48 = vadd.f32 %v1868_v42, %v1836_v17  ;;  %v11533_v17 = vld [vmem:[#allocation20_spill] sm:$0xff] }
 0x4a3   : > { %v1809_v2 = vadd.f32 %v1807_v19, %v1785_v27  ;;  %v8952_v7 = vadd.f32 %v1874_v61, %v1842_v29  ;;  %v1803_v57 = vadd.f32 %v1801_v44, %v1789_v58  ;;  %v1811_v20 = vmul.f32 %v1615_v33, %v8818_v24  ;;  %v11534_v27 = vld [vmem:[#allocation26_spill] sm:$0xff] }
 0x4a4   : > { %11528 = vst [vmem:[#allocation44_spill] sm:$0xff] %v8948_v53  ;;  %11529 = vst [vmem:[#allocation45_spill] sm:$0xff] %v8950_v48  ;;  %v8955_v1 = vadd.f32 %v8802_v35, %v1769_v9  ;;  %v8958_v3 = vadd.f32 %v1862_v23, %v1858_v31  ;;  %v1833_v21 = vmul.f32 %v1615_v33, %v8824_v8  ;;  %v1559_v49 = vpop.f32.mrb[84].mxu0  ;;  %v1629_v42 = vpop.f32.mrb[44].mxu1  ;;  %v11536_v31 = vld [vmem:[#allocation11_spill] sm:$0xff] }
 0x4a5   : > { %11530 = vst [vmem:[#allocation46_spill] sm:$0xff] %v8952_v7  ;;  %v1855_v30 = vmul.f32 %v1615_v33, %v8836_v32  ;;  %v1873_v47 = vmul.f32 %v1615_v33, %v8839_v59  ;;  %v1813_v60 = vmul.f32 -0.36514837, %v1811_v20  ;;  %v1718_v19 = vmul.f32 %v1549_v25, %v8725_v62  ;;  %v1561_v52 = vpop.f32.mrb[85].mxu0  ;;  %v1631_v12 = vpop.f32.mrb[45].mxu1  ;;  %v11544_v7 = vld [vmem:[#allocation10_spill] sm:$0xff] }
 0x4a6   : > { %11531 = vst [vmem:[#allocation47_spill] sm:$0xff] %v8958_v3  ;;  %v1722_v18 = vmul.f32 %v1549_v25, %v8710_v36  ;;  %v1726_v35 = vmul.f32 %v1549_v25, %v8713_v41  ;;  %v1835_v39 = vmul.f32 -0.18257418, %v1833_v21  ;;  %v1890_v37 = vmul.f32 %v1619_v15, %v8815_v11  ;;  %v1563_v9 = vpop.f32.mrb[86].mxu0  ;;  %v1633_v58 = vpop.f32.mrb[46].mxu1  ;;  %v11537_v21 = vld [vmem:[#allocation6_spill] sm:$0xff] }
 0x4a7   : > { %v1857_v23 = vmul.f32 0.18257418, %v1855_v30  ;;  %v8966_v29 = vmul.f32 0.36514837, %v1873_v47  ;;  %v8970_v45 = vadd.f32 %v1813_v60, %v8870_v10  ;;  %v1720_v33 = vadd.f32 %v1718_v19, %v8749_v4  ;;  %v1565_v15 = vpop.f32.mrb[87].mxu0  ;;  %v1635_v47 = vpop.f32.mrb[47].mxu1 }
 0x4a8   : > { %v1724_v63 = vadd.f32 %v1722_v18, %v11533_v17  ;;  %v1728_v61 = vadd.f32 %v1726_v35, %v11534_v27  ;;  %v8975_v25 = vadd.f32 %v1835_v39, %v1803_v57  ;;  %v1719_v20 = vmul.f32 %v1551_v46, %v11536_v31  ;;  %v11538_v10 = vld [vmem:[#allocation15_spill] sm:$0xff]  ;;  %v11539_v4 = vld [vmem:[#allocation21_spill] sm:$0xff]  ;;  %v11540_v18 = vld [vmem:[#allocation22_spill] sm:$0xff] }
 0x4a9   : > { %11532 = vst [vmem:[#allocation48_spill] sm:$0xff] %v8966_v29  ;;  %v8977_v44 = vadd.f32 %v1857_v23, %v1809_v2  ;;  %v1723_v30 = vmul.f32 %v1551_v46, %v11537_v21  ;;  %v8986_v17 = vadd.f32 %v11540_v18, %v1720_v33  ;;  %v11541_v35 = vld [vmem:[#allocation7_spill] sm:$0xff]  ;;  %v11542_v57 = vld [vmem:[#allocation17_spill] sm:$0xff]  ;;  %v1891_v56 = vmul.f32 %v8932_v22, %v8818_v24 }
 0x4aa   : > { %11535 = vst [vmem:[#allocation20_spill] sm:$0xff] %v8975_v25  ;;  %v8982_v60 = vadd.f32 %v11538_v10, %v1728_v61  ;;  %v1748_v19 = vsub.f32 %v1724_v63, %v11539_v4  ;;  %v1727_v27 = vmul.f32 %v1551_v46, %v11541_v35  ;;  %v1721_v39 = vadd.f32 %v1719_v20, %v11542_v57  ;;  %v11543_v2 = vld [vmem:[#allocation23_spill] sm:$0xff]  ;;  %v11545_v61 = vld [vmem:[#allocation16_spill] sm:$0xff]  ;;  %v11548_v20 = vld [vmem:[#allocation25_spill] sm:$0xff] }
 0x4ab   : > { %v1725_v23 = vadd.f32 %v1723_v30, %v11543_v2  ;;  %v1730_v28 = vmul.f32 %v1553_v14, %v8725_v62  ;;  %v11546_v10 = vld [vmem:[#allocation27_spill] sm:$0xff]  ;;  %v1894_v4 = vmul.f32 %v1623_v5, %v8821_v26  ;;  %v11547_v46 = vld [vmem:[#allocation24_spill] sm:$0xff]  ;;  %v1731_v22 = vmul.f32 %v1555_v43, %v11536_v31  ;;  %v11550_v14 = vld [vmem:[#allocation18_spill] sm:$0xff] }
 0x4ac   : > { %v8995_v34 = vadd.f32 %v11544_v7, %v1748_v19  ;;  %v1729_v33 = vadd.f32 %v1727_v27, %v11546_v10  ;;  %v9003_v57 = vadd.f32 %v11548_v20, %v1721_v39  ;;  %v11549_v30 = vld [vmem:[#allocation8_spill] sm:$0xff]  ;;  %v1639_v62 = vpop.f32.mrb[48].mxu1  ;;  %v1895_v19 = vmul.f32 %v1625_v50, %v8824_v8  ;;  %v11551_v10 = vld [vmem:[#allocation14_spill] sm:$0xff] }
 0x4ad   : > { %v1749_v18 = vsub.f32 %v1725_v23, %v11547_v46  ;;  %v1732_v2 = vadd.f32 %v1730_v28, %v11549_v30  ;;  %v1734_v63 = vmul.f32 %v1559_v49, %v8710_v36  ;;  %v1898_v27 = vmul.f32 %v1629_v42, %v8833_v54  ;;  %v1641_v5 = vpop.f32.mrb[49].mxu1  ;;  %v11552_v46 = vld [vmem:[#allocation19_spill] sm:$0xff]  ;;  %v11553_v20 = vld [vmem:[#allocation12_spill] sm:$0xff] }
 0x4ae   : > { %v9008_v7 = vadd.f32 %v11550_v14, %v1729_v33  ;;  %v1733_v28 = vadd.f32 %v1731_v22, %v11553_v20  ;;  %v1735_v43 = vmul.f32 %v1561_v52, %v11537_v21  ;;  %v1643_v31 = vpop.f32.mrb[50].mxu1  ;;  %v1899_v33 = vmul.f32 %v1631_v12, %v8836_v32 }
 0x4af   : > { %v1761_v23 = vadd.f32 %v11551_v10, %v1749_v18  ;;  %v1736_v30 = vadd.f32 %v1734_v63, %v1732_v2  ;;  %v1738_v50 = vmul.f32 %v1563_v9, %v8713_v41  ;;  %v1902_v36 = vmul.f32 %v1633_v58, %v8827_v16  ;;  %v1645_v49 = vpop.f32.mrb[51].mxu1  ;;  %v11554_v10 = vld [vmem:[#allocation30_spill] sm:$0xff] }
 0x4b0   : > { %v1737_v42 = vadd.f32 %v1735_v43, %v1733_v28  ;;  %v1739_v14 = vmul.f32 %v1565_v15, %v11541_v35  ;;  %v1903_v18 = vmul.f32 %v1635_v47, %v8839_v59  ;;  %v1906_v39 = vmul.f32 %v1639_v62, %v11554_v10 }
 0x4b1   : > { %v1740_v3 = vadd.f32 %v1738_v50, %v1736_v30  ;;  %v1907_v22 = vmul.f32 %v1641_v5, %v8842_v38  ;;  %v1928_v52 = vmul.f32 %v1643_v31, %v8821_v26  ;;  %v1952_v21 = vmul.f32 %v1643_v31, %v8833_v54  ;;  %v11555_v30 = vld [vmem:[#allocation9_spill] sm:$0xff] }
 0x4b2   : > { %v1741_v12 = vadd.f32 %v1739_v14, %v1737_v42  ;;  %v1976_v41 = vmul.f32 %v1643_v31, %v8827_v16  ;;  %v1929_v9 = vmul.f32 %v1645_v49, %v8824_v8  ;;  %v1953_v58 = vmul.f32 %v1645_v49, %v8836_v32 }
 0x4b3   : > { %v1892_v63 = vadd.f32 %v1890_v37, %v1740_v3  ;;  %v1930_v15 = vmul.f32 0.18257418, %v1928_v52  ;;  %v9030_v35 = vmul.f32 -0.18257418, %v1952_v21  ;;  %v1977_v47 = vmul.f32 %v1645_v49, %v8839_v59  ;;  %v11556_v3 = vld [vmem:[#allocation13_spill] sm:$0xff] }
 0x4b4   : > { %v1893_v2 = vadd.f32 %v1891_v56, %v1741_v12  ;;  %v9033_v62 = vmul.f32 0.36514837, %v1976_v41  ;;  %v9035_v5 = vmul.f32 0.18257418, %v1929_v9  ;;  %v9037_v20 = vmul.f32 -0.18257418, %v1953_v58 }
 0x4b5   : > { %v1896_v28 = vadd.f32 %v1894_v4, %v1892_v63  ;;  %v9039_v43 = vmul.f32 0.36514837, %v1977_v47  ;;  %v1649_v31 = vpop.f32.mrb[52].mxu1  ;;  %v1752_v50 = vsub.f32 %v8982_v60, %v11555_v30 }
 0x4b6   : > { %v1897_v42 = vadd.f32 %v1895_v19, %v1893_v2  ;;  %v1910_v49 = vmul.f32 %v1649_v31, %v8815_v11  ;;  %v1958_v56 = vmul.f32 %v1649_v31, %v8833_v54  ;;  %v1982_v14 = vmul.f32 %v1649_v31, %v8827_v16  ;;  %v1651_v52 = vpop.f32.mrb[53].mxu1 }
 0x4b7   : > { %v1900_v21 = vadd.f32 %v1898_v27, %v1896_v28  ;;  %v1994_v4 = vmul.f32 %v1649_v31, %v11554_v10  ;;  %v1911_v12 = vmul.f32 %v1651_v52, %v8818_v24  ;;  %v1959_v41 = vmul.f32 %v1651_v52, %v8836_v32  ;;  %v1653_v9 = vpop.f32.mrb[54].mxu1 }
 0x4b8   : > { %v1901_v60 = vadd.f32 %v1899_v33, %v1897_v42  ;;  %v1912_v58 = vmul.f32 -0.18257418, %v1910_v49  ;;  %v9051_v63 = vmul.f32 0.18257418, %v1958_v56  ;;  %v9053_v19 = vmul.f32 -0.18257418, %v1982_v14 }
 0x4b9   : > { %v1904_v47 = vadd.f32 %v1902_v36, %v1900_v21  ;;  %v9055_v2 = vmul.f32 -0.31622776, %v1994_v4  ;;  %v1913_v30 = vmul.f32 -0.18257418, %v1911_v12  ;;  %v9057_v37 = vmul.f32 0.18257418, %v1959_v41 }
 0x4ba   : > { %v1905_v27 = vadd.f32 %v1903_v18, %v1901_v60  ;;  %v1914_v28 = vadd.f32 %v1912_v58, %v8995_v34  ;;  %v1983_v31 = vmul.f32 %v1651_v52, %v8839_v59  ;;  %v1995_v0 = vmul.f32 %v1651_v52, %v8842_v38  ;;  %v1655_v48 = vpop.f32.mrb[55].mxu1 }
 0x4bb   : > { %v9062_v33 = vadd.f32 %v1906_v39, %v1904_v47  ;;  %v1915_v42 = vadd.f32 %v1913_v30, %v1761_v23  ;;  %v1916_v49 = vmul.f32 %v1653_v9, %v8815_v11  ;;  %v1934_v36 = vmul.f32 %v1653_v9, %v8821_v26 }
 0x4bc   : > { %v9066_v56 = vadd.f32 %v1907_v22, %v1905_v27  ;;  %v9068_v14 = vmul.f32 -0.18257418, %v1983_v31  ;;  %v9070_v21 = vmul.f32 -0.31622776, %v1995_v0  ;;  %v1988_v34 = vmul.f32 %v1653_v9, %v8827_v16  ;;  %v1659_v18 = vpop.f32.mrb[56].mxu1 }
 0x4bd   : > { %v1918_v4 = vmul.f32 0.18257418, %v1916_v49  ;;  %v1936_v12 = vmul.f32 -0.18257418, %v1934_v36  ;;  %v2000_v52 = vmul.f32 %v1653_v9, %v11554_v10  ;;  %v1917_v39 = vmul.f32 %v1655_v48, %v8818_v24  ;;  %v1661_v23 = vpop.f32.mrb[57].mxu1 }
 0x4be   : > { %v1990_v41 = vmul.f32 -0.18257418, %v1988_v34  ;;  %v1935_v60 = vmul.f32 %v1655_v48, %v8824_v8  ;;  %v1989_v22 = vmul.f32 %v1655_v48, %v8839_v59  ;;  %v2001_v58 = vmul.f32 %v1655_v48, %v8842_v38  ;;  %v1663_v47 = vpop.f32.mrb[58].mxu1 }
 0x4bf   : > { %v2002_v0 = vmul.f32 0.31622776, %v2000_v52  ;;  %v1919_v30 = vmul.f32 0.18257418, %v1917_v39  ;;  %v11557_v27 = vsub.f32 %v8986_v17, %v11545_v61  ;;  %v1922_v49 = vmul.f32 %v1659_v18, %v8815_v11  ;;  %v1665_v9 = vpop.f32.mrb[59].mxu1 }
 0x4c0   : > { %v1937_v36 = vmul.f32 -0.18257418, %v1935_v60  ;;  %v1991_v40 = vmul.f32 -0.18257418, %v1989_v22  ;;  %v9082_v29 = vmul.f32 0.31622776, %v2001_v58  ;;  %v1932_v34 = vadd.f32 %v1930_v15, %v1914_v28 }
 0x4c1   : > { %v1920_v31 = vadd.f32 %v1918_v4, %v11557_v27  ;;  %v1924_v55 = vmul.f32 -0.36514837, %v1922_v49  ;;  %v1940_v53 = vmul.f32 %v1659_v18, %v8821_v26  ;;  %v1964_v48 = vmul.f32 %v1659_v18, %v8833_v54 }
 0x4c2   : > { %v11558_v52 = vsub.f32 %v9003_v57, %v11552_v46  ;;  %v1923_v17 = vmul.f32 %v1661_v23, %v8818_v24  ;;  %v1933_v61 = vadd.f32 %v9035_v5, %v1915_v42  ;;  %v1941_v4 = vmul.f32 %v1661_v23, %v8824_v8 }
 0x4c3   : > { %v1965_v60 = vmul.f32 %v1661_v23, %v8836_v32  ;;  %v1926_v22 = vadd.f32 %v1924_v55, %v1752_v50  ;;  %v1942_v58 = vmul.f32 0.18257418, %v1940_v53  ;;  %v1966_v15 = vmul.f32 0.18257418, %v1964_v48 }
 0x4c4   : > { %v1921_v39 = vadd.f32 %v1919_v30, %v11558_v52  ;;  %v1946_v28 = vmul.f32 %v1663_v47, %v8821_v26  ;;  %v1925_v27 = vmul.f32 -0.36514837, %v1923_v17  ;;  %v1943_v49 = vmul.f32 0.18257418, %v1941_v4  ;;  %v1669_v25 = vpop.f32.mrb[60].mxu1 }
 0x4c5   : > { %v1967_v18 = vmul.f32 0.18257418, %v1965_v60  ;;  %v1970_v6 = vmul.f32 %v1663_v47, %v8833_v54  ;;  %v1938_v57 = vadd.f32 %v1936_v12, %v1926_v22  ;;  %v1944_v46 = vadd.f32 %v1942_v58, %v1920_v31  ;;  %v1671_v50 = vpop.f32.mrb[61].mxu1  ;;  %v11560_v60 = vld [vmem:[#allocation28_spill] sm:$0xff] }
 0x4c6   : > { %v1968_v30 = vadd.f32 %v1966_v15, %v1932_v34  ;;  %v1948_v52 = vmul.f32 0.31622776, %v1946_v28  ;;  %v11559_v5 = vsub.f32 %v9008_v7, %v11556_v3  ;;  %v1945_v23 = vadd.f32 %v1943_v49, %v1921_v39  ;;  %v1673_v12 = vpop.f32.mrb[62].mxu1 }
 0x4c7   : > { %v1969_v55 = vadd.f32 %v1967_v18, %v1933_v61  ;;  %v1972_v53 = vmul.f32 -0.31622776, %v1970_v6  ;;  %v1962_v48 = vadd.f32 %v9051_v63, %v1938_v57  ;;  %v1947_v4 = vmul.f32 %v1665_v9, %v8824_v8  ;;  %v1675_v3 = vpop.f32.mrb[63].mxu1  ;;  %v11561_v63 = vld [vmem:[#allocation29_spill] sm:$0xff] }
 0x4c8   : > { %v1927_v42 = vadd.f32 %v1925_v27, %v11559_v5  ;;  %v1950_v17 = vadd.f32 %v1948_v52, %v1944_v46  ;;  %v1971_v47 = vmul.f32 %v1665_v9, %v8836_v32  ;;  %v1776_v22 = vadd.f32 %v11560_v60, %v8936_v51 }
 0x4c9   : > { %v1974_v34 = vadd.f32 %v1972_v53, %v1968_v30  ;;  %v2006_v7 = vmul.f32 %v1669_v25, %v8815_v11  ;;  %v1949_v6 = vmul.f32 0.31622776, %v1947_v4  ;;  %v1777_v58 = vadd.f32 %v11561_v63, %v8955_v1 }
 0x4ca   : > { %v1939_v31 = vadd.f32 %v1937_v36, %v1927_v42  ;;  %v1956_v39 = vadd.f32 %v9030_v35, %v1950_v17  ;;  %v1973_v61 = vmul.f32 -0.31622776, %v1971_v47  ;;  %v2007_v9 = vmul.f32 %v1671_v50, %v8818_v24 }
 0x4cb   : > { %v1992_v15 = vadd.f32 %v1990_v41, %v1974_v34  ;;  %v2008_v28 = vadd.f32 %v2006_v7, %v1776_v22  ;;  %v2010_v36 = vmul.f32 %v1673_v12, %v8821_v26  ;;  %v1951_v49 = vadd.f32 %v1949_v6, %v1945_v23  ;;  %v11562_v34 = vld [vmem:[#allocation34_spill] sm:$0xff] }
 0x4cc   : > { %v1986_v27 = vadd.f32 %v9053_v19, %v1956_v39  ;;  %v1975_v51 = vadd.f32 %v1973_v61, %v1969_v55  ;;  %v2011_v25 = vmul.f32 %v1675_v3, %v8824_v8  ;;  %v2009_v35 = vadd.f32 %v2007_v9, %v1777_v58  ;;  %v1679_v46 = vpop.f32.mrb[64].mxu1  ;;  %v11567_v9 = vld [vmem:[#allocation20_spill] sm:$0xff] }
 0x4cd   : > { %v9111_v18 = vadd.f32 %v2002_v0, %v1992_v15  ;;  %v2012_v57 = vadd.f32 %v2010_v36, %v2008_v28  ;;  %v1963_v30 = vadd.f32 %v9057_v37, %v1939_v31  ;;  %v1957_v1 = vadd.f32 %v9037_v20, %v1951_v49  ;;  %v1681_v5 = vpop.f32.mrb[65].mxu1  ;;  %v11568_v36 = vld [vmem:[#allocation42_spill] sm:$0xff]  ;;  %v11569_v49 = vld [vmem:[#allocation44_spill] sm:$0xff] }
 0x4ce   : > { %v1993_v41 = vadd.f32 %v1991_v40, %v1975_v51  ;;  %v2014_v52 = vmul.f32 %v1679_v46, %v8833_v54  ;;  %v1998_v42 = vadd.f32 %v9055_v2, %v1986_v27  ;;  %v2013_v19 = vadd.f32 %v2011_v25, %v2009_v35  ;;  %v1683_v55 = vpop.f32.mrb[66].mxu1  ;;  %v11570_v51 = vld [vmem:[#allocation36_spill] sm:$0xff]  ;;  %v11573_v46 = vld [vmem:[#allocation45_spill] sm:$0xff] }
 0x4cf   : > { %v2015_v23 = vmul.f32 %v1681_v5, %v8836_v32  ;;  %v1981_v0 = vadd.f32 %v9039_v43, %v1963_v30  ;;  %v1980_v53 = vadd.f32 %v9033_v62, %v1962_v48  ;;  %v2018_v17 = vmul.f32 %v1683_v55, %v8827_v16  ;;  %v1685_v20 = vpop.f32.mrb[67].mxu1  ;;  %v11563_v48 = vld [vmem:[#allocation35_spill] sm:$0xff]  ;;  %v11571_v35 = vld [vmem:[#allocation48_spill] sm:$0xff]  ;;  %v11574_v30 = vld [vmem:[#allocation38_spill] sm:$0xff] }
 0x4d0   : > { %v2016_v50 = vadd.f32 %v2014_v52, %v2012_v57  ;;  %v1987_v37 = vadd.f32 %v9068_v14, %v1957_v1  ;;  %v2057_v40 = vpack.c.bf16 %v1998_v42, %v9062_v33  ;;  %v2019_v47 = vmul.f32 %v1685_v20, %v8839_v59  ;;  %v11564_v14 = vld [vmem:[#allocation32_spill] sm:$0xff]  ;;  %v11565_v33 = vld [vmem:[#allocation31_spill] sm:$0xff]  ;;  %v11572_v57 = vld [vmem:[#allocation41_spill] sm:$0xff] }
 0x4d1   : > { %v2017_v4 = vadd.f32 %v2015_v23, %v2013_v19  ;;  %v2005_v2 = vadd.f32 %v9082_v29, %v1993_v41  ;;  %v2059_v12 = vpack.c.bf16 %v1980_v53, %v9111_v18  ;;  %v1841_v62 = vmul.f32 -0.18257418, %v11562_v34  ;;  %v11575_v5 = vld [vmem:[#allocation47_spill] sm:$0xff] }
 0x4d2   : > { %v2020_v31 = vadd.f32 %v2018_v17, %v2016_v50  ;;  %v1999_v43 = vadd.f32 %v9070_v21, %v1987_v37  ;;  %v1863_v60 = vmul.f32 -0.18257418, %v11563_v48  ;;  %v1879_v3 = vmul.f32 %v11564_v14, %v8842_v38  ;;  %v11566_v21 = vld [vmem:[#allocation33_spill] sm:$0xff]  ;;  %v11576_v19 = vld [vmem:[#allocation43_spill] sm:$0xff] }
 0x4d3   : > { %v2021_v22 = vadd.f32 %v2019_v47, %v2017_v4  ;;  %v2060_v7 = vpack.c.bf16 %v1981_v0, %v2005_v2  ;;  %v1878_v39 = vmul.f32 %v11565_v33, %v11554_v10  ;;  %v1843_v29 = vadd.f32 %v1841_v62, %v8929_v13  ;;  %v11577_v2 = vld [vmem:[#allocation46_spill] sm:$0xff]  ;;  %v11579_v14 = vld [vmem:[#allocation37_spill] sm:$0xff] }
 0x4d4   : > { %v2058_v6 = vpack.c.bf16 %v1999_v43, %v9066_v56  ;;  %v1865_v61 = vadd.f32 %v1863_v60, %v8977_v44  ;;  %v1821_v63 = vadd.f32 %v11566_v21, %v8970_v45  ;;  %v1689_v58 = vpop.f32.mrb[68].mxu1  ;;  %v1881_v15 = vmul.f32 -0.31622776, %v1879_v3 }
 0x4d5   : > { %v1880_v28 = vmul.f32 -0.31622776, %v1878_v39  ;;  %v1871_v27 = vadd.f32 %v11568_v36, %v11567_v9  ;;  %v1848_v25 = vadd.f32 %v11570_v51, %v11569_v49  ;;  %v2022_v18 = vmul.f32 %v1689_v58, %v11554_v10  ;;  %v1691_v56 = vpop.f32.mrb[69].mxu1  ;;  %v11580_v39 = vld [vmem:[#allocation40_spill] sm:$0xff]  ;;  %v7416_v58 = vld [vmem:[%s11445_s1 + $0x58] sm:$0xff]   ;;  %v2086_v36 = vpop.permute.xlu1 %2085 }
 0x4d6   : > { %2168 = vmatprep.subr.bf16.mxu0 %v2058_v6  ;;  %v1877_v13 = vadd.f32 %v11571_v35, %v1843_v29  ;;  %v1847_v44 = vmul.f32 0.18257418, %v11572_v57  ;;  %v1888_v45 = vadd.f32 %v11574_v30, %v11573_v46  ;;  %v2023_v1 = vmul.f32 %v1691_v56, %v8842_v38  ;;  %v1693_v41 = vpop.f32.mrb[70].mxu1  ;;  %v7419_v9 = vld [vmem:[%s11445_s1 + $0x70] sm:$0xff]  }
 0x4d7   : > { %2169 = vmatpush1.bf16.msra.mxu0 %v2057_v40  ;;  %v1883_v52 = vadd.f32 %v1881_v15, %v1865_v61  ;;  %v1882_v42 = vadd.f32 %v1880_v28, %v11575_v5  ;;  %v1889_v23 = vadd.f32 %v11576_v19, %v1871_v27  ;;  %v2024_v55 = vadd.f32 %v2022_v18, %v2020_v31  ;;  %v1695_v17 = vpop.f32.mrb[71].mxu1  ;;  %v7417_v15 = vld [vmem:[%s11445_s1 + $0x60] sm:$0xff]   ;;  %v7418_v28 = vld [vmem:[%s11445_s1 + $0x68] sm:$0xff]  }
 0x4d8   : > { %2170 = vmatprep.subr.bf16.mxu0 %v2060_v7  ;;  %v2026_v0 = vmul.f32 %v1693_v41, %v8815_v11  ;;  %v2030_v53 = vmul.f32 %v1693_v41, %v8821_v26  ;;  %v2034_v50 = vmul.f32 %v1693_v41, %v8833_v54  ;;  %v2025_v37 = vadd.f32 %v2023_v1, %v2021_v22  ;;  %v11578_v7 = vld [vmem:[#allocation39_spill] sm:$0xff] }
 0x4d9   : > { %v2038_v20 = vmul.f32 %v1693_v41, %v8827_v16  ;;  %v2042_v40 = vmul.f32 %v1693_v41, %v11554_v10  ;;  %v2027_v4 = vmul.f32 %v1695_v17, %v8818_v24  ;;  %v2031_v47 = vmul.f32 %v1695_v17, %v8824_v8  ;;  %v2096_v27 = vpop.permute.xlu1 %2095 }
 0x4da   : > { %v2028_v43 = vadd.f32 %v2026_v0, %v11577_v2  ;;  %v2032_v34 = vadd.f32 %v2030_v53, %v1882_v42  ;;  %v1849_v31 = vadd.f32 %v1847_v44, %v1821_v63  ;;  %v2035_v26 = vmul.f32 %v1695_v17, %v8836_v32 }
 0x4db   : > { %2171 = vmatpush1.bf16.msra.mxu0 %v2059_v12  ;;  %v2029_v11 = vadd.f32 %v2027_v4, %v1877_v13  ;;  %v2039_v54 = vmul.f32 %v1695_v17, %v8839_v59  ;;  %v2036_v62 = vadd.f32 %v2034_v50, %v1888_v45  ;;  %v2033_v48 = vadd.f32 %v2031_v47, %v1883_v52 }
 0x4dc   : > { %v2061_v60 = vpack.c.bf16 %v2032_v34, %v2028_v43  ;;  %v2040_v16 = vadd.f32 %v2038_v20, %v1848_v25  ;;  %v1851_v10 = vmul.f32 -0.31622776, %v11572_v57  ;;  %v2037_v22 = vadd.f32 %v2035_v26, %v1889_v23  ;;  %v2091_v57 = vpop.permute.xlu0 %2090 }
 0x4dd   : > { %v2041_v24 = vadd.f32 %v2039_v54, %v1849_v31  ;;  %v2043_v8 = vmul.f32 %v1695_v17, %v8842_v38  ;;  %v1852_v3 = vadd.f32 %v11579_v14, %v11578_v7  ;;  %v2062_v33 = vpack.c.bf16 %v2033_v48, %v2029_v11  ;;  %v7415_v38 = vld [vmem:[%s11445_s1 + $0x50] sm:$0xff]   ;;  %v2106_v49 = vpop.permute.xlu1 %2105 }
 0x4de   : > { %v2063_v12 = vpack.c.bf16 %v2040_v16, %v2036_v62  ;;  %v1853_v6 = vadd.f32 %v1851_v10, %v11580_v39  ;;  %v11581_v63 = vmov 0  }
 0x4df   : > { %v2064_v32 = vpack.c.bf16 %v2041_v24, %v2037_v22  ;;  %v2044_v29 = vadd.f32 %v2042_v40, %v1852_v3  ;;  %2172 = vmatprep.subr.bf16.mxu0 %v2062_v33 }
 0x4e0   : > { %v2045_v59 = vadd.f32 %v2043_v8, %v1853_v6  ;;  %2173 = vmatpush1.bf16.msra.mxu0 %v2061_v60  ;;  %v2101_v2 = vpop.permute.xlu0 %2100 }
 0x4e1   : > { %v2065_v61 = vpack.c.bf16 %v2024_v55, %v2044_v29  ;;  %2174 = vmatprep.subr.bf16.mxu0 %v2064_v32  ;;  %v9190_v35 = vpop.permute.xlu1 %2115 }
 0x4e2   : > { %v2066_v21 = vpack.c.bf16 %v2025_v37, %v2045_v59 }
 0x4e4   : > { %2175 = vmatpush1.bf16.msra.mxu0 %v2063_v12  ;;  %v2111_v8 = vpop.permute.xlu0 %2110 }
 0x4e5   : > { %2176 = vmatprep.subr.bf16.mxu0 %v2066_v21  ;;  %v2081_v23 = vpop.permute.xlu1 %2080 }
 0x4e8   : > { %2177 = vmatpush1.bf16.msra.mxu0 %v2065_v61 }
 0x4eb   : > { %6853 = vmatmul.mubr.msk.bf16.vlgmr.msra.gmra.mrb[88].mxu0 %vm463_vm0, %v7415_v38 }
 0x4ec   : > { %2210 = vmatprep.mubr.bf16.mxu0 %v11581_v63 }
 0x4f3   : > { %6854 = vmatmul.mubr.msk.bf16.gmra.mrb[92].mxu0 %vm463_vm0, %v7416_v58 }
 0x4f4   : > { %2220 = vmatprep.mubr.bf16.mxu0 %v11581_v63 }
 0x4fb   : > { %6855 = vmatmul.mubr.msk.bf16.gmra.mrb[96].mxu0 %vm463_vm0, %v7417_v15 }
 0x4fc   : > { %2230 = vmatprep.mubr.bf16.mxu0 %v11581_v63 }
 0x503   : > { %6856 = vmatmul.mubr.msk.bf16.gmra.mrb[100].mxu0 %vm463_vm0, %v7418_v28 }
 0x504   : > { %2240 = vmatprep.mubr.bf16.mxu0 %v11581_v63 }
 0x50b   : > { %6857 = vmatmul.mubr.msk.bf16.gmra.mrb[104].mxu0 %vm463_vm0, %v7419_v9  ;;  %v2121_v9 = vpop.permute.xlu0 %2120 }
 0x50c   : > { %2642 = vmatprep.mubr.bf16.mxu0 %v11581_v63 }
 0x5be   : > { %v2202_v51 = vpop.f32.mrb[88].mxu0 }
 0x5bf   : > { %v2204_v25 = vpop.f32.mrb[89].mxu0  ;;  %v9212_v50 = vadd.f32 %v2202_v51, %v2081_v23 }
 0x5c0   : > { %v2206_v18 = vpop.f32.mrb[90].mxu0  ;;  %v9214_v17 = vadd.f32 %v2204_v25, %v2081_v23 }
 0x5c1   : > { %v2208_v56 = vpop.f32.mrb[91].mxu0  ;;  %v9192_v13 = vadd.f32 %v2206_v18, %v2086_v36  ;;  %v2251_v31 = vand.u32 2147483647, %v9212_v50 }
 0x5c2   : > { %v9194_v44 = vadd.f32 %v2208_v56, %v2086_v36  ;;  %v2252_v11 = vand.u32 2147483647, %v9214_v17 }
 0x5c3   : > { %v2267_v52 = vmul.f32 %v9192_v13, %v9192_v13  ;;  %v6858_v22 = vmul.f32 -1.442695, %v2251_v31 }
 0x5c4   : > { %v2268_v55 = vmul.f32 %v9194_v44, %v9194_v44  ;;  %v6859_v24 = vmul.f32 -1.442695, %v2252_v11 }
 0x5c6   : > { %v2212_v46 = vpop.f32.mrb[92].mxu0 }
 0x5c7   : > { %v9196_v30 = vadd.f32 %v2212_v46, %v2091_v57  ;;  %v2214_v45 = vpop.f32.mrb[93].mxu0 }
 0x5c8   : > { %v9198_v1 = vadd.f32 %v2214_v45, %v2091_v57  ;;  %v2216_v41 = vpop.f32.mrb[94].mxu0 }
 0x5c9   : > { %v2269_v5 = vmul.f32 %v9196_v30, %v9196_v30  ;;  %v9204_v42 = vadd.f32 %v2216_v41, %v2096_v27  ;;  %v2218_v19 = vpop.f32.mrb[95].mxu0 }
 0x5ca   : > { %v2270_v0 = vmul.f32 %v9198_v1, %v9198_v1  ;;  %v9210_v53 = vadd.f32 %v2218_v19, %v2096_v27 }
 0x5cb   : > { %v2271_v37 = vadd.f32 %v2269_v5, %v2267_v52  ;;  %v2273_v20 = vmul.f32 %v9204_v42, %v9204_v42 }
 0x5cc   : > { %v2272_v40 = vadd.f32 %v2270_v0, %v2268_v55  ;;  %v2274_v4 = vmul.f32 %v9210_v53, %v9210_v53 }
 0x5cd   : > { %v2275_v47 = vadd.f32 %v2273_v20, %v2271_v37 }
 0x5ce   : > { %v2276_v43 = vadd.f32 %v2274_v4, %v2272_v40  ;;  %v2222_v34 = vpop.f32.mrb[96].mxu0  ;;  %v2126_v4 = vpop.permute.xlu0 %2125 }
 0x5cf   : > { %7560 = vrsqrt.f32 %v2275_v47  ;;  %v2224_v26 = vpop.f32.mrb[97].mxu0  ;;  %v9222_v62 = vadd.f32 %v2222_v34, %v2101_v2  ;;  %vm2279_vm9 = vcmp.eq.f32.partialorder %v2275_v47, inf  ;;  %vm2281_vm10 = vcmp.eq.f32.partialorder %v2275_v47, 0.0 }
 0x5d0   : > { %7562 = vrsqrt.f32 %v2276_v43  ;;  %v2226_v54 = vpop.f32.mrb[98].mxu0  ;;  %v9224_v48 = vadd.f32 %v2224_v26, %v2101_v2  ;;  %v2282_v27 = vand.u32 2147483648, %v2275_v47  ;;  %vm2286_vm11 = vcmp.eq.f32.partialorder %v2276_v43, inf }
 0x5d1   : > { %v2228_v60 = vpop.f32.mrb[99].mxu0  ;;  %v9226_v16 = vadd.f32 %v2226_v54, %v2106_v49  ;;  %v2309_v7 = vmul.f32 %v9222_v62, %v9222_v62  ;;  %7564 = vpow2.f32 %v6858_v22  ;;  %v2289_v46 = vand.u32 2147483648, %v2276_v43 }
 0x5d2   : > { %v9228_v10 = vadd.f32 %v2228_v60, %v2106_v49  ;;  %v2310_v14 = vmul.f32 %v9224_v48, %v9224_v48  ;;  %7566 = vpow2.f32 %v6859_v24  ;;  %vm2288_vm12 = vcmp.eq.f32.partialorder %v2276_v43, 0.0 }
 0x5d3   : > { %v2311_v3 = vmul.f32 %v9226_v16, %v9226_v16 }
 0x5d4   : > { %v2312_v33 = vmul.f32 %v9228_v10, %v9228_v10 }
 0x5d5   : > { %v2313_v12 = vadd.f32 %v2311_v3, %v2309_v7 }
 0x5d6   : > { %v2314_v39 = vadd.f32 %v2312_v33, %v2310_v14  ;;  %v2232_v6 = vpop.f32.mrb[100].mxu0 }
 0x5d7   : > { %v9238_v32 = vadd.f32 %v2232_v6, %v2111_v8  ;;  %v2234_v29 = vpop.f32.mrb[101].mxu0 }
 0x5d8   : > { %v9240_v59 = vadd.f32 %v2234_v29, %v2111_v8  ;;  %v2236_v61 = vpop.f32.mrb[102].mxu0 }
 0x5d9   : > { %v7561_v21 = vpop.eup %7560  ;;  %v2315_v38 = vmul.f32 %v9238_v32, %v9238_v32  ;;  %v9245_v58 = vadd.f32 %v2236_v61, %v9190_v35  ;;  %v2238_v15 = vpop.f32.mrb[103].mxu0 }
 0x5da   : > { %v7563_v28 = vpop.eup %7562  ;;  %v2278_v36 = vmul.f32 %v7561_v21, %v2275_v47  ;;  %v2316_v49 = vmul.f32 %v9240_v59, %v9240_v59  ;;  %v9250_v51 = vadd.f32 %v2238_v15, %v9190_v35 }
 0x5db   : > { %v2285_v25 = vmul.f32 %v7563_v28, %v2276_v43  ;;  %v2317_v18 = vadd.f32 %v2315_v38, %v2313_v12  ;;  %v2319_v56 = vmul.f32 %v9245_v58, %v9245_v58  ;;  %v7565_v31 = vpop.eup %7564 }
 0x5dc   : > { %v2280_v57 = vsel %vm2279_vm9, %v2275_v47, %v2278_v36  ;;  %v2318_v45 = vadd.f32 %v2316_v49, %v2314_v39  ;;  %v2320_v41 = vmul.f32 %v9250_v51, %v9250_v51  ;;  %v7567_v26 = vpop.eup %7566  ;;  %v2259_v7 = vadd.f32 1.0, %v7565_v31 }
 0x5dd   : > { %v2283_v52 = vsel %vm2281_vm10, %v2282_v27, %v2280_v57  ;;  %v2287_v5 = vsel %vm2286_vm11, %v2276_v43, %v2285_v25  ;;  %v2321_v19 = vadd.f32 %v2319_v56, %v2317_v18  ;;  %v2260_v14 = vadd.f32 1.0, %v7567_v26 }
 0x5de   : > { %v6860_v23 = vmul.f32 -1.442695, %v2283_v52  ;;  %v2290_v35 = vsel %vm2288_vm12, %v2289_v46, %v2287_v5  ;;  %v2322_v55 = vadd.f32 %v2320_v41, %v2318_v45  ;;  %v2242_v0 = vpop.f32.mrb[104].mxu0  ;;  %vm6616_vm10 = vcmask 1041408  }
 0x5df   : > { %v6861_v37 = vmul.f32 -1.442695, %v2290_v35  ;;  %v9257_v20 = vadd.f32 %v2242_v0, %v2121_v9  ;;  %v2244_v40 = vpop.f32.mrb[105].mxu0  ;;  %vm6619_vm11 = vcmask 1042432   ;;  %vm6622_vm12 = vcmask 1043456  }
 0x5e0   : > { %7568 = vpow2.f32 %v6860_v23  ;;  %v9259_v2 = vadd.f32 %v2244_v40, %v2121_v9  ;;  %v2246_v34 = vpop.f32.mrb[106].mxu0 }
 0x5e1   : > { %7570 = vpow2.f32 %v6861_v37  ;;  %v2323_v47 = vmul.f32 %v9257_v20, %v9257_v20  ;;  %v9263_v43 = vadd.f32 %v2246_v34, %v2126_v4  ;;  %v2248_v11 = vpop.f32.mrb[107].mxu0 }
 0x5e2   : > { %v2324_v54 = vmul.f32 %v9259_v2, %v9259_v2  ;;  %v9267_v22 = vadd.f32 %v2248_v11, %v2126_v4 }
 0x5e3   : > { %v2325_v60 = vadd.f32 %v2323_v47, %v2321_v19  ;;  %v2363_v8 = vand.u32 2147483647, %v9263_v43 }
 0x5e4   : > { %v2326_v24 = vadd.f32 %v2324_v54, %v2322_v55  ;;  %v2364_v3 = vand.u32 2147483647, %v9267_v22 }
 0x5e5   : > { %7572 = vrsqrt.f32 %v2325_v60  ;;  %v6864_v33 = vmul.f32 -1.442695, %v2363_v8  ;;  %vm2329_vm13 = vcmp.eq.f32.partialorder %v2325_v60, inf  ;;  %v2332_v28 = vand.u32 2147483648, %v2325_v60 }
 0x5e6   : > { %7574 = vrsqrt.f32 %v2326_v24  ;;  %v6865_v29 = vmul.f32 -1.442695, %v2364_v3  ;;  %vm2331_vm14 = vcmp.eq.f32.partialorder %v2325_v60, 0.0  ;;  %vm2336_vm15 = vcmp.eq.f32.partialorder %v2326_v24, inf }
 0x5e7   : > { %7576 = vrcp.f32 %v2259_v7  ;;  %v2339_v27 = vand.u32 2147483648, %v2326_v24  ;;  %vm2338_vm1 = vcmp.eq.f32.partialorder %v2326_v24, 0.0 }
 0x5e8   : > { %7578 = vrcp.f32 %v2260_v14 }
 0x5e9   : > { %7580 = vpow2.f32 %v6864_v33 }
 0x5ea   : > { %v7569_v12 = vpop.eup %7568 }
 0x5eb   : > { %v7571_v39 = vpop.eup %7570  ;;  %v2297_v6 = vadd.f32 1.0, %v7569_v12 }
 0x5ec   : > { %v2298_v61 = vadd.f32 1.0, %v7571_v39 }
 0x5ed   : > { %7582 = vrcp.f32 %v2297_v6 }
 0x5ee   : > { %7584 = vrcp.f32 %v2298_v61 }
 0x5ef   : > { %v7573_v21 = vpop.eup %7572  ;;  %7586 = vpow2.f32 %v6865_v29 }
 0x5f0   : > { %v7575_v38 = vpop.eup %7574  ;;  %v2328_v15 = vmul.f32 %v7573_v21, %v2325_v60 }
 0x5f1   : > { %v2335_v9 = vmul.f32 %v7575_v38, %v2326_v24  ;;  %v7577_v18 = vpop.eup %7576 }
 0x5f2   : > { %v2330_v36 = vsel %vm2329_vm13, %v2325_v60, %v2328_v15  ;;  %v7579_v46 = vpop.eup %7578  ;;  %v2265_v19 = vmul.f32 %v7577_v18, %v9212_v50  ;;  %v7427_v15 = vld [vmem:[%s11447_s3 + $0x88] sm:$0xff]   ;;  %vm6625_vm13 = vcmask 1044480  }
 0x5f3   : > { %v2333_v49 = vsel %vm2331_vm14, %v2332_v28, %v2330_v36  ;;  %v2337_v25 = vsel %vm2336_vm15, %v2326_v24, %v2335_v9  ;;  %v7581_v41 = vpop.eup %7580  ;;  %v2266_v37 = vmul.f32 %v7579_v46, %v9214_v17  ;;  %v7428_v28 = vld [vmem:[%s11447_s3 + $0x90] sm:$0xff]   ;;  %v7429_v9 = vld [vmem:[%s11447_s3 + $0x98] sm:$0xff]   ;;  %vm6628_vm14 = vcmask 1045504  }
 0x5f4   : > { %v6862_v56 = vmul.f32 -1.442695, %v2333_v49  ;;  %v2340_v57 = vsel %vm2338_vm1, %v2339_v27, %v2337_v25  ;;  %v2371_v11 = vadd.f32 1.0, %v7581_v41 }
 0x5f5   : > { %v6863_v45 = vmul.f32 -1.442695, %v2340_v57 }
 0x5f6   : > { %7588 = vpow2.f32 %v6862_v56 }
 0x5f7   : > { %v7583_v52 = vpop.eup %7582  ;;  %7590 = vpow2.f32 %v6863_v45 }
 0x5f8   : > { %v7585_v5 = vpop.eup %7584  ;;  %v2305_v23 = vmul.f32 %v7583_v52, %v9196_v30  ;;  %v2307_v35 = vmul.f32 %v7583_v52, %v9204_v42  ;;  %v2303_v55 = vmul.f32 %v7583_v52, %v9192_v13  ;;  %7592 = vrcp.f32 %v2371_v11  ;;  %v2488_v11 = vpop.permute.xlu0 %2487 }
 0x5f9   : > { %v7587_v0 = vpop.eup %7586  ;;  %v2308_v40 = vmul.f32 %v7585_v5, %v9210_v53  ;;  %v2304_v4 = vmul.f32 %v7585_v5, %v9194_v44  ;;  %v2306_v34 = vmul.f32 %v7585_v5, %v9198_v1 }
 0x5fa   : > { %v2402_v31 = vpack.c.bf16 %v2307_v35, %v2305_v23  ;;  %v2400_v47 = vpack.c.bf16 %v2303_v55, %v2265_v19  ;;  %v2372_v54 = vadd.f32 1.0, %v7587_v0 }
 0x5fb   : > { %v2401_v26 = vpack.c.bf16 %v2304_v4, %v2266_v37  ;;  %v2403_v50 = vpack.c.bf16 %v2308_v40, %v2306_v34 }
 0x5fc   : > { %7594 = vrcp.f32 %v2372_v54 }
 0x5fd   : > { %2610 = vmatprep.subr.bf16.mxu0 %v2401_v26 }
 0x5fe   : > { %2611 = vmatpush1.bf16.msra.mxu0 %v2400_v47 }
 0x5ff   : > { %2612 = vmatprep.subr.bf16.mxu0 %v2403_v50 }
 0x600   : > { %v7589_v13 = vpop.eup %7588 }
 0x601   : > { %v7591_v30 = vpop.eup %7590  ;;  %v2347_v42 = vadd.f32 1.0, %v7589_v13 }
 0x602   : > { %v2348_v17 = vadd.f32 1.0, %v7591_v30  ;;  %2613 = vmatpush1.bf16.msra.mxu0 %v2402_v31  ;;  %v7593_v44 = vpop.eup %7592  ;;  %v2483_v31 = vpop.permute.xlu1 %2482 }
 0x603   : > { %7596 = vrcp.f32 %v2347_v42  ;;  %v2377_v60 = vmul.f32 %v7593_v44, %v9263_v43 }
 0x604   : > { %7598 = vrcp.f32 %v2348_v17 }
 0x606   : > { %v7595_v1 = vpop.eup %7594 }
 0x607   : > { %v2378_v24 = vmul.f32 %v7595_v1, %v9267_v22 }
 0x60d   : > { %v7597_v53 = vpop.eup %7596 }
 0x60e   : > { %v7599_v8 = vpop.eup %7598  ;;  %v2361_v7 = vmul.f32 %v7597_v53, %v9257_v20  ;;  %v2353_v14 = vmul.f32 %v7597_v53, %v9222_v62  ;;  %v2355_v3 = vmul.f32 %v7597_v53, %v9226_v16  ;;  %v2357_v33 = vmul.f32 %v7597_v53, %v9238_v32  ;;  %v7422_v32 = vld [vmem:[%s11447_s3 + $0x60] sm:$0xff]  }
 0x60f   : > { %v2362_v12 = vmul.f32 %v7599_v8, %v9259_v2  ;;  %v2354_v39 = vmul.f32 %v7599_v8, %v9224_v48  ;;  %v2356_v6 = vmul.f32 %v7599_v8, %v9228_v10  ;;  %v2358_v29 = vmul.f32 %v7599_v8, %v9240_v59  ;;  %v7420_v48 = vld [vmem:[%s11447_s3 + $0x50] sm:$0xff]   ;;  %v7421_v10 = vld [vmem:[%s11447_s3 + $0x58] sm:$0xff]   ;;  %v7423_v59 = vld [vmem:[%s11447_s3 + $0x68] sm:$0xff]  }
 0x610   : > { %v2408_v43 = vpack.c.bf16 %v2377_v60, %v2361_v7  ;;  %v2404_v61 = vpack.c.bf16 %v2355_v3, %v2353_v14  ;;  %v2360_v22 = vmul.f32 %v7599_v8, %v9250_v51  ;;  %v2359_v20 = vmul.f32 %v7597_v53, %v9245_v58  ;;  %v7424_v58 = vld [vmem:[%s11447_s3 + $0x70] sm:$0xff]   ;;  %v7425_v51 = vld [vmem:[%s11447_s3 + $0x78] sm:$0xff]   ;;  %v7426_v2 = vld [vmem:[%s11447_s3 + $0x80] sm:$0xff]   ;;  %v2493_v53 = vpop.permute.xlu1 %2492 }
 0x611   : > { %v2405_v21 = vpack.c.bf16 %v2356_v6, %v2354_v39  ;;  %v2409_v62 = vpack.c.bf16 %v2378_v24, %v2362_v12  ;;  %v2498_v24 = vpop.permute.xlu0 %2497 }
 0x612   : > { %v2407_v38 = vpack.c.bf16 %v2360_v22, %v2358_v29  ;;  %v2406_v16 = vpack.c.bf16 %v2359_v20, %v2357_v33 }
 0x613   : > { %2614 = vmatprep.subr.bf16.mxu0 %v2405_v21 }
 0x614   : > { %2615 = vmatpush1.bf16.msra.mxu0 %v2404_v61 }
 0x615   : > { %2616 = vmatprep.subr.bf16.mxu0 %v2407_v38  ;;  %v2508_v22 = vpop.permute.xlu0 %2507 }
 0x618   : > { %2617 = vmatpush1.bf16.msra.mxu0 %v2406_v16 }
 0x619   : > { %2618 = vmatprep.subr.bf16.mxu0 %v2409_v62 }
 0x61c   : > { %2619 = vmatpush1.bf16.msra.mxu0 %v2408_v43  ;;  %v2503_v43 = vpop.permute.xlu1 %2502 }
 0x61f   : > { %6916 = vmatmul.mubr.msk.bf16.vlgmr.msra.gmra.mrb[108].mxu0 %vm463_vm0, %v7420_v48 }
 0x620   : > { %2652 = vmatprep.mubr.bf16.mxu0 %v11581_v63 }
 0x627   : > { %6917 = vmatmul.mubr.msk.bf16.gmra.mrb[112].mxu0 %vm463_vm0, %v7421_v10 }
 0x628   : > { %2662 = vmatprep.mubr.bf16.mxu0 %v11581_v63 }
 0x62f   : > { %6918 = vmatmul.mubr.msk.bf16.gmra.mrb[116].mxu0 %vm463_vm0, %v7422_v32 }
 0x630   : > { %2672 = vmatprep.mubr.bf16.mxu0 %v11581_v63 }
 0x637   : > { %6919 = vmatmul.mubr.msk.bf16.gmra.mrb[120].mxu0 %vm463_vm0, %v7423_v59 }
 0x638   : > { %2682 = vmatprep.mubr.bf16.mxu0 %v11581_v63 }
 0x63f   : > { %6920 = vmatmul.mubr.msk.bf16.gmra.mrb[124].mxu0 %vm463_vm0, %v7424_v58  ;;  %v2513_v58 = vpop.permute.xlu1 %2512 }
 0x640   : > { %2690 = vmatprep.mubr.bf16.mxu0 %v11581_v63 }
 0x647   : > { %6921 = vmatmul.mubr.msk.bf16.gmra.mrb[128].mxu0 %vm463_vm0, %v7425_v51 }
 0x648   : > { %2700 = vmatprep.mubr.bf16.mxu0 %v11581_v63 }
 0x64f   : > { %6922 = vmatmul.mubr.msk.bf16.gmra.mrb[132].mxu0 %vm463_vm0, %v7426_v2  ;;  %v2518_v2 = vpop.permute.xlu0 %2517 }
 0x650   : > { %2710 = vmatprep.mubr.bf16.mxu0 %v11581_v63 }
 0x657   : > { %6923 = vmatmul.mubr.msk.bf16.gmra.mrb[136].mxu0 %vm463_vm0, %v7427_v15 }
 0x658   : > { %2720 = vmatprep.mubr.bf16.mxu0 %v11581_v63 }
 0x65f   : > { %6924 = vmatmul.mubr.msk.bf16.gmra.mrb[140].mxu0 %vm463_vm0, %v7428_v28 }
 0x660   : > { %2730 = vmatprep.mubr.bf16.mxu0 %v11581_v63 }
 0x667   : > { %6925 = vmatmul.mubr.msk.bf16.gmra.mrb[144].mxu0 %vm463_vm0, %v7429_v9 }
 0x668   : > { %3687 = vmatprep.mubr.bf16.mxu0 %v11581_v63 }
 0x6f2   : > { %v9341_v36 = vpop.f32.mrb[108].mxu0 }
 0x6f3   : > { %v9343_v27 = vpop.f32.mrb[109].mxu0 }
 0x6f4   : > { %v9345_v49 = vpop.f32.mrb[110].mxu0 }
 0x6f5   : > { %v9347_v25 = vpop.f32.mrb[111].mxu0 }
 0x6fa   : > { %v9349_v18 = vpop.f32.mrb[112].mxu0 }
 0x6fb   : > { %v9351_v56 = vpop.f32.mrb[113].mxu0 }
 0x6fc   : > { %v9353_v57 = vpop.f32.mrb[114].mxu0 }
 0x6fd   : > { %v9355_v46 = vpop.f32.mrb[115].mxu0 }
 0x702   : > { %v9357_v45 = vpop.f32.mrb[116].mxu0 }
 0x703   : > { %v9359_v41 = vpop.f32.mrb[117].mxu0 }
 0x704   : > { %v9361_v52 = vpop.f32.mrb[118].mxu0 }
 0x705   : > { %v9363_v5 = vpop.f32.mrb[119].mxu0 }
 0x70a   : > { %v9365_v19 = vpop.f32.mrb[120].mxu0 }
 0x70b   : > { %v9367_v23 = vpop.f32.mrb[121].mxu0 }
 0x70c   : > { %v9369_v35 = vpop.f32.mrb[122].mxu0 }
 0x70d   : > { %v9371_v55 = vpop.f32.mrb[123].mxu0 }
 0x712   : > { %v9373_v0 = vpop.f32.mrb[124].mxu0 }
 0x713   : > { %v9375_v37 = vpop.f32.mrb[125].mxu0 }
 0x714   : > { %v2688_v40 = vpop.f32.mrb[126].mxu0 }
 0x715   : > { %v2689_v4 = vpop.f32.mrb[127].mxu0 }
 0x71a   : > { %v2692_v34 = vpop.f32.mrb[128].mxu0 }
 0x71b   : > { %v2694_v47 = vpop.f32.mrb[129].mxu0  ;;  %v2693_v50 = vadd.f32 %v2692_v34, %v2483_v31 }
 0x71c   : > { %v2696_v26 = vpop.f32.mrb[130].mxu0  ;;  %v2695_v30 = vadd.f32 %v2694_v47, %v2483_v31 }
 0x71d   : > { %v2697_v54 = vadd.f32 %v2696_v26, %v2488_v11  ;;  %v2698_v13 = vpop.f32.mrb[131].mxu0  ;;  %v2523_v26 = vpop.permute.xlu1 %2522 }
 0x71e   : > { %v2699_v42 = vadd.f32 %v2698_v13, %v2488_v11 }
 0x71f   : > { %v2782_v17 = vpack.c.bf16 %v2697_v54, %v2693_v50  ;;  %v2528_v54 = vpop.permute.xlu0 %2527 }
 0x720   : > { %v2783_v44 = vpack.c.bf16 %v2699_v42, %v2695_v30 }
 0x722   : > { %v2702_v1 = vpop.f32.mrb[132].mxu0  ;;  %2952 = vmatprep.subr.bf16.mxu1 %v2783_v44 }
 0x723   : > { %v2704_v60 = vpop.f32.mrb[133].mxu0  ;;  %2953 = vmatpush1.bf16.msra.mxu1 %v2782_v17  ;;  %v2703_v7 = vadd.f32 %v2702_v1, %v2493_v53 }
 0x724   : > { %v2706_v8 = vpop.f32.mrb[134].mxu0  ;;  %v2705_v33 = vadd.f32 %v2704_v60, %v2493_v53 }
 0x725   : > { %v2707_v14 = vadd.f32 %v2706_v8, %v2498_v24  ;;  %v2708_v3 = vpop.f32.mrb[135].mxu0  ;;  %v7431_v8 = vld [vmem:[%s11449_s5 + $0xa8] sm:$0xff]  }
 0x726   : > { %v2709_v12 = vadd.f32 %v2708_v3, %v2498_v24  ;;  %v7430_v24 = vld [vmem:[%s11449_s5 + $0xa0] sm:$0xff]  }
 0x727   : > { %v2784_v39 = vpack.c.bf16 %v2707_v14, %v2703_v7  ;;  %v7432_v7 = vld [vmem:[%s11449_s5 + $0xb0] sm:$0xff]   ;;  %v7433_v14 = vld [vmem:[%s11449_s5 + $0xb8] sm:$0xff]   ;;  %v7434_v3 = vld [vmem:[%s11449_s5 + $0xc0] sm:$0xff]  }
 0x728   : > { %v2785_v6 = vpack.c.bf16 %v2709_v12, %v2705_v33  ;;  %v7435_v33 = vld [vmem:[%s11449_s5 + $0xc8] sm:$0xff]   ;;  %v7436_v12 = vld [vmem:[%s11449_s5 + $0xd0] sm:$0xff]  }
 0x72a   : > { %v2712_v29 = vpop.f32.mrb[136].mxu0  ;;  %2954 = vmatprep.subr.bf16.mxu1 %v2785_v6  ;;  %v7438_v6 = vld [vmem:[%s11449_s5 + $0xe0] sm:$0xff]  }
 0x72b   : > { %v2714_v61 = vpop.f32.mrb[137].mxu0  ;;  %2955 = vmatpush1.bf16.msra.mxu1 %v2784_v39  ;;  %v2713_v21 = vadd.f32 %v2712_v29, %v2503_v43  ;;  %v7437_v39 = vld [vmem:[%s11449_s5 + $0xd8] sm:$0xff]   ;;  %v7439_v29 = vld [vmem:[%s11449_s5 + $0xe8] sm:$0xff]  }
 0x72c   : > { %v2716_v20 = vpop.f32.mrb[138].mxu0  ;;  %v2715_v16 = vadd.f32 %v2714_v61, %v2503_v43  ;;  %v7440_v43 = vld [vmem:[%s11449_s5 + $0xf0] sm:$0xff]   ;;  %v7441_v61 = vld [vmem:[%s11449_s5 + $0xf8] sm:$0xff]  }
 0x72d   : > { %v2717_v62 = vadd.f32 %v2716_v20, %v2508_v22  ;;  %v2718_v38 = vpop.f32.mrb[139].mxu0  ;;  %v7443_v20 = vld [vmem:[%s11449_s5 + $0x108] sm:$0xff]  }
 0x72e   : > { %v2719_v48 = vadd.f32 %v2718_v38, %v2508_v22  ;;  %v7442_v22 = vld [vmem:[%s11449_s5 + $0x100] sm:$0xff]  }
 0x72f   : > { %v2786_v10 = vpack.c.bf16 %v2717_v62, %v2713_v21  ;;  %v7444_v21 = vld [vmem:[%s11449_s5 + $0x110] sm:$0xff]   ;;  %v7445_v62 = vld [vmem:[%s11449_s5 + $0x118] sm:$0xff]   ;;  %v7446_v38 = vld [vmem:[%s11449_s5 + $0x120] sm:$0xff]  }
 0x730   : > { %v2787_v32 = vpack.c.bf16 %v2719_v48, %v2715_v16  ;;  %v7447_v16 = vld [vmem:[%s11449_s5 + $0x128] sm:$0xff]   ;;  %v7448_v48 = vld [vmem:[%s11449_s5 + $0x130] sm:$0xff]  }
 0x732   : > { %v2722_v59 = vpop.f32.mrb[140].mxu0  ;;  %2956 = vmatprep.subr.bf16.mxu1 %v2787_v32  ;;  %v2434_v32 = vpop.permute.xlu1 %2433 }
 0x733   : > { %v2724_v51 = vpop.f32.mrb[141].mxu0  ;;  %2957 = vmatpush1.bf16.msra.mxu1 %v2786_v10  ;;  %v2723_v28 = vadd.f32 %v2722_v59, %v2513_v58  ;;  %v7449_v10 = vld [vmem:[%s11449_s5 + $0x138] sm:$0xff]   ;;  %v2645_v59 = vadd.f32 %v9341_v36, %v2434_v32 }
 0x734   : > { %v2726_v15 = vpop.f32.mrb[142].mxu0  ;;  %v2725_v4 = vadd.f32 %v2724_v51, %v2513_v58  ;;  %v2647_v58 = vadd.f32 %v9343_v27, %v2434_v32 }
 0x735   : > { %v2727_v9 = vadd.f32 %v2726_v15, %v2518_v2  ;;  %v2728_v40 = vpop.f32.mrb[143].mxu0 }
 0x736   : > { %v2729_v34 = vadd.f32 %v2728_v40, %v2518_v2 }
 0x737   : > { %v2788_v31 = vpack.c.bf16 %v2727_v9, %v2723_v28 }
 0x738   : > { %v2789_v47 = vpack.c.bf16 %v2729_v34, %v2725_v4 }
 0x73a   : > { %v2732_v11 = vpop.f32.mrb[144].mxu0  ;;  %2958 = vmatprep.subr.bf16.mxu1 %v2789_v47 }
 0x73b   : > { %v2734_v50 = vpop.f32.mrb[145].mxu0  ;;  %2959 = vmatpush1.bf16.msra.mxu1 %v2788_v31  ;;  %v2733_v30 = vadd.f32 %v2732_v11, %v2523_v26 }
 0x73c   : > { %v2736_v13 = vpop.f32.mrb[146].mxu0  ;;  %v2735_v44 = vadd.f32 %v2734_v50, %v2523_v26 }
 0x73d   : > { %v2737_v42 = vadd.f32 %v2736_v13, %v2528_v54  ;;  %v2738_v17 = vpop.f32.mrb[147].mxu0 }
 0x73e   : > { %v2739_v1 = vadd.f32 %v2738_v17, %v2528_v54 }
 0x73f   : > { %v2790_v53 = vpack.c.bf16 %v2737_v42, %v2733_v30 }
 0x740   : > { %v2791_v60 = vpack.c.bf16 %v2739_v1, %v2735_v44 }
 0x742   : > { %2960 = vmatprep.subr.bf16.mxu1 %v2791_v60 }
 0x743   : > { %2961 = vmatpush1.bf16.msra.mxu1 %v2790_v53 }
 0x746   : > { %6986 = vmatmul.mubr.msk.bf16.vlgmr.msra.gmra.mrb[72].mxu1 %vm463_vm0, %v7430_v24 }
 0x747   : > { %2994 = vmatprep.mubr.bf16.mxu1 %v11581_v63 }
 0x74e   : > { %6987 = vmatmul.mubr.msk.bf16.gmra.mrb[76].mxu1 %vm463_vm0, %v7431_v8 }
 0x74f   : > { %3004 = vmatprep.mubr.bf16.mxu1 %v11581_v63 }
 0x756   : > { %6988 = vmatmul.mubr.msk.bf16.gmra.mrb[80].mxu1 %vm463_vm0, %v7432_v7 }
 0x757   : > { %3014 = vmatprep.mubr.bf16.mxu1 %v11581_v63 }
 0x75e   : > { %6989 = vmatmul.mubr.msk.bf16.gmra.mrb[84].mxu1 %vm463_vm0, %v7433_v14 }
 0x75f   : > { %3024 = vmatprep.mubr.bf16.mxu1 %v11581_v63 }
 0x766   : > { %6990 = vmatmul.mubr.msk.bf16.gmra.mrb[88].mxu1 %vm463_vm0, %v7434_v3 }
 0x767   : > { %3034 = vmatprep.mubr.bf16.mxu1 %v11581_v63 }
 0x76e   : > { %6991 = vmatmul.mubr.msk.bf16.gmra.mrb[92].mxu1 %vm463_vm0, %v7435_v33 }
 0x76f   : > { %3044 = vmatprep.mubr.bf16.mxu1 %v11581_v63 }
 0x776   : > { %6992 = vmatmul.mubr.msk.bf16.gmra.mrb[96].mxu1 %vm463_vm0, %v7436_v12 }
 0x777   : > { %3054 = vmatprep.mubr.bf16.mxu1 %v11581_v63 }
 0x77e   : > { %6993 = vmatmul.mubr.msk.bf16.gmra.mrb[100].mxu1 %vm463_vm0, %v7437_v39 }
 0x77f   : > { %3064 = vmatprep.mubr.bf16.mxu1 %v11581_v63 }
 0x786   : > { %6994 = vmatmul.mubr.msk.bf16.gmra.mrb[104].mxu1 %vm463_vm0, %v7438_v6  ;;  %v2439_v6 = vpop.permute.xlu0 %2438 }
 0x787   : > { %3074 = vmatprep.mubr.bf16.mxu1 %v11581_v63 }
 0x78e   : > { %6995 = vmatmul.mubr.msk.bf16.gmra.mrb[108].mxu1 %vm463_vm0, %v7439_v29 }
 0x78f   : > { %3084 = vmatprep.mubr.bf16.mxu1 %v11581_v63 }
 0x796   : > { %6996 = vmatmul.mubr.msk.bf16.gmra.mrb[112].mxu1 %vm463_vm0, %v7440_v43 }
 0x797   : > { %3094 = vmatprep.mubr.bf16.mxu1 %v11581_v63 }
 0x79e   : > { %6997 = vmatmul.mubr.msk.bf16.gmra.mrb[116].mxu1 %vm463_vm0, %v7441_v61 }
 0x79f   : > { %3104 = vmatprep.mubr.bf16.mxu1 %v11581_v63 }
 0x7a6   : > { %6998 = vmatmul.mubr.msk.bf16.gmra.mrb[120].mxu1 %vm463_vm0, %v7442_v22 }
 0x7a7   : > { %3114 = vmatprep.mubr.bf16.mxu1 %v11581_v63 }
 0x7ae   : > { %6999 = vmatmul.mubr.msk.bf16.gmra.mrb[124].mxu1 %vm463_vm0, %v7443_v20 }
 0x7af   : > { %3124 = vmatprep.mubr.bf16.mxu1 %v11581_v63 }
 0x7b6   : > { %7000 = vmatmul.mubr.msk.bf16.gmra.mrb[128].mxu1 %vm463_vm0, %v7444_v21 }
 0x7b7   : > { %3134 = vmatprep.mubr.bf16.mxu1 %v11581_v63 }
 0x7be   : > { %7001 = vmatmul.mubr.msk.bf16.gmra.mrb[132].mxu1 %vm463_vm0, %v7445_v62 }
 0x7bf   : > { %3144 = vmatprep.mubr.bf16.mxu1 %v11581_v63 }
 0x7c6   : > { %7002 = vmatmul.mubr.msk.bf16.gmra.mrb[136].mxu1 %vm463_vm0, %v7446_v38 }
 0x7c7   : > { %3154 = vmatprep.mubr.bf16.mxu1 %v11581_v63 }
 0x7ce   : > { %7003 = vmatmul.mubr.msk.bf16.gmra.mrb[140].mxu1 %vm463_vm0, %v7447_v16  ;;  %v2444_v16 = vpop.permute.xlu1 %2443 }
 0x7cf   : > { %3164 = vmatprep.mubr.bf16.mxu1 %v11581_v63  ;;  %v9511_v32 = vadd.f32 %v9349_v18, %v2444_v16 }
 0x7d6   : > { %7004 = vmatmul.mubr.msk.bf16.gmra.mrb[144].mxu1 %vm463_vm0, %v7448_v48  ;;  %v2449_v48 = vpop.permute.xlu0 %2448 }
 0x7d7   : > { %3174 = vmatprep.mubr.bf16.mxu1 %v11581_v63 }
 0x7de   : > { %7005 = vmatmul.mubr.msk.bf16.gmra.mrb[148].mxu1 %vm463_vm0, %v7449_v10  ;;  %v9508_v10 = vadd.f32 %v9345_v49, %v2439_v6 }
 0x7df   : > { %5174 = vmatprep.mubr.bf16.mxu1 %v11581_v63 }
 0x819   : > { %v2986_v51 = vpop.f32.mrb[72].mxu1 }
 0x81a   : > { %v9479_v2 = vmul.f32 %v2986_v51, %v2645_v59  ;;  %v2988_v15 = vpop.f32.mrb[73].mxu1  ;;  %v9514_v51 = vadd.f32 %v9353_v57, %v2449_v48 }
 0x81b   : > { %v9481_v28 = vmul.f32 %v2988_v15, %v2647_v58  ;;  %v2990_v9 = vpop.f32.mrb[74].mxu1  ;;  %v9517_v15 = vadd.f32 %v9347_v25, %v2439_v6 }
 0x81c   : > { %v3187_v40 = vmul.f32 %v2990_v9, %v2645_v59  ;;  %v2992_v4 = vpop.f32.mrb[75].mxu1 }
 0x81d   : > { %v3188_v34 = vmul.f32 %v2992_v4, %v2647_v58 }
 0x821   : > { %v2996_v31 = vpop.f32.mrb[76].mxu1 }
 0x822   : > { %v3189_v47 = vmul.f32 %v2996_v31, %v2645_v59  ;;  %v2998_v11 = vpop.f32.mrb[77].mxu1 }
 0x823   : > { %v3190_v26 = vmul.f32 %v2998_v11, %v2647_v58  ;;  %v3000_v50 = vpop.f32.mrb[78].mxu1 }
 0x824   : > { %v3191_v54 = vmul.f32 %v3000_v50, %v2645_v59  ;;  %v3002_v13 = vpop.f32.mrb[79].mxu1 }
 0x825   : > { %v3192_v36 = vmul.f32 %v3002_v13, %v2647_v58 }
 0x829   : > { %v3006_v30 = vpop.f32.mrb[80].mxu1 }
 0x82a   : > { %v9483_v27 = vmul.f32 %v3006_v30, %v2645_v59  ;;  %v3008_v42 = vpop.f32.mrb[81].mxu1 }
 0x82b   : > { %v9485_v17 = vmul.f32 %v3008_v42, %v2647_v58  ;;  %v3010_v44 = vpop.f32.mrb[82].mxu1 }
 0x82c   : > { %v9487_v1 = vmul.f32 %v3010_v44, %v2645_v59  ;;  %v3012_v53 = vpop.f32.mrb[83].mxu1 }
 0x82d   : > { %v9489_v60 = vmul.f32 %v3012_v53, %v2647_v58 }
 0x831   : > { %v3016_v24 = vpop.f32.mrb[84].mxu1 }
 0x832   : > { %v9491_v8 = vmul.f32 %v3016_v24, %v2645_v59  ;;  %v3018_v7 = vpop.f32.mrb[85].mxu1 }
 0x833   : > { %v9493_v14 = vmul.f32 %v3018_v7, %v2647_v58  ;;  %v3020_v3 = vpop.f32.mrb[86].mxu1 }
 0x834   : > { %v9495_v33 = vmul.f32 %v3020_v3, %v2645_v59  ;;  %v3022_v12 = vpop.f32.mrb[87].mxu1 }
 0x835   : > { %v9497_v39 = vmul.f32 %v3022_v12, %v2647_v58 }
 0x839   : > { %v3026_v29 = vpop.f32.mrb[88].mxu1 }
 0x83a   : > { %v9499_v43 = vmul.f32 %v3026_v29, %v2645_v59  ;;  %v3028_v61 = vpop.f32.mrb[89].mxu1 }
 0x83b   : > { %v9501_v22 = vmul.f32 %v3028_v61, %v2647_v58  ;;  %v3030_v20 = vpop.f32.mrb[90].mxu1 }
 0x83c   : > { %v9503_v21 = vmul.f32 %v3030_v20, %v2645_v59  ;;  %v3032_v62 = vpop.f32.mrb[91].mxu1  ;;  %v9520_v59 = vadd.f32 %v9351_v56, %v2444_v16 }
 0x83d   : > { %v9505_v38 = vmul.f32 %v3032_v62, %v2647_v58  ;;  %v9523_v58 = vadd.f32 %v9355_v46, %v2449_v48 }
 0x841   : > { %v3036_v9 = vpop.f32.mrb[92].mxu1 }
 0x842   : > { %v3205_v4 = vmul.f32 %v3036_v9, %v9508_v10  ;;  %v3209_v49 = vmul.f32 %v3036_v9, %v9511_v32  ;;  %v3213_v18 = vmul.f32 %v3036_v9, %v9514_v51  ;;  %v3038_v31 = vpop.f32.mrb[93].mxu1 }
 0x843   : > { %v3206_v57 = vmul.f32 %v3038_v31, %v9517_v15  ;;  %v3210_v11 = vmul.f32 %v3038_v31, %v9520_v59  ;;  %v3214_v25 = vmul.f32 %v3038_v31, %v9523_v58  ;;  %v3040_v50 = vpop.f32.mrb[94].mxu1 }
 0x844   : > { %v3207_v56 = vadd.f32 %v3205_v4, %v3187_v40  ;;  %v3211_v13 = vadd.f32 %v3209_v49, %v3189_v47  ;;  %v3215_v30 = vadd.f32 %v3213_v18, %v3191_v54  ;;  %v3217_v46 = vmul.f32 %v3040_v50, %v9508_v10  ;;  %v3042_v42 = vpop.f32.mrb[95].mxu1 }
 0x845   : > { %v3208_v44 = vadd.f32 %v3206_v57, %v3188_v34  ;;  %v3212_v53 = vadd.f32 %v3210_v11, %v3190_v26  ;;  %v3216_v24 = vadd.f32 %v3214_v25, %v3192_v36  ;;  %v3218_v7 = vmul.f32 %v3042_v42, %v9517_v15 }
 0x846   : > { %v3219_v3 = vadd.f32 %v3217_v46, %v9479_v2 }
 0x847   : > { %v3220_v12 = vadd.f32 %v3218_v7, %v9481_v28 }
 0x849   : > { %v3046_v6 = vpop.f32.mrb[96].mxu1 }
 0x84a   : > { %v3221_v29 = vmul.f32 %v3046_v6, %v9511_v32  ;;  %v3048_v61 = vpop.f32.mrb[97].mxu1 }
 0x84b   : > { %v3222_v40 = vmul.f32 %v3048_v61, %v9520_v59  ;;  %v3050_v47 = vpop.f32.mrb[98].mxu1 }
 0x84c   : > { %v3223_v54 = vadd.f32 %v3221_v29, %v3219_v3  ;;  %v3225_v20 = vmul.f32 %v3050_v47, %v9514_v51  ;;  %v3052_v62 = vpop.f32.mrb[99].mxu1 }
 0x84d   : > { %v3224_v34 = vadd.f32 %v3222_v40, %v3220_v12  ;;  %v3226_v26 = vmul.f32 %v3052_v62, %v9523_v58 }
 0x84e   : > { %v9539_v36 = vadd.f32 %v3225_v20, %v3223_v54  ;;  %v2454_v54 = vpop.permute.xlu1 %2453 }
 0x84f   : > { %v9541_v16 = vadd.f32 %v3226_v26, %v3224_v34 }
 0x851   : > { %v3056_v2 = vpop.f32.mrb[100].mxu1 }
 0x852   : > { %v9544_v28 = vmul.f32 %v3056_v2, %v9511_v32  ;;  %v3245_v48 = vmul.f32 %v3056_v2, %v9514_v51  ;;  %v3058_v9 = vpop.f32.mrb[101].mxu1 }
 0x853   : > { %v9548_v4 = vmul.f32 %v3058_v9, %v9520_v59  ;;  %v3246_v49 = vmul.f32 %v3058_v9, %v9523_v58  ;;  %v3060_v18 = vpop.f32.mrb[102].mxu1 }
 0x854   : > { %11582 = vst [vmem:[#allocation26_spill] sm:$0xff] %v9544_v28  ;;  %v3229_v31 = vmul.f32 %v3060_v18, %v9508_v10  ;;  %v9553_v57 = vmul.f32 %v3060_v18, %v9514_v51  ;;  %v3062_v11 = vpop.f32.mrb[103].mxu1 }
 0x855   : > { %11583 = vst [vmem:[#allocation11_spill] sm:$0xff] %v9548_v4  ;;  %v3230_v25 = vmul.f32 %v3062_v11, %v9517_v15  ;;  %v9557_v50 = vmul.f32 %v3062_v11, %v9523_v58 }
 0x856   : > { %11584 = vst [vmem:[#allocation6_spill] sm:$0xff] %v9553_v57  ;;  %v9559_v46 = vadd.f32 %v3229_v31, %v3215_v30 }
 0x857   : > { %11585 = vst [vmem:[#allocation15_spill] sm:$0xff] %v9557_v50  ;;  %v9561_v42 = vadd.f32 %v3230_v25, %v3216_v24 }
 0x858   : > { %11586 = vst [vmem:[#allocation21_spill] sm:$0xff] %v9559_v46 }
 0x859   : > { %11587 = vst [vmem:[#allocation22_spill] sm:$0xff] %v9561_v42  ;;  %v3066_v12 = vpop.f32.mrb[104].mxu1 }
 0x85a   : > { %v3233_v6 = vmul.f32 %v3066_v12, %v9508_v10  ;;  %v3241_v29 = vmul.f32 %v3066_v12, %v9511_v32  ;;  %v3068_v61 = vpop.f32.mrb[105].mxu1 }
 0x85b   : > { %v3234_v40 = vmul.f32 %v3068_v61, %v9517_v15  ;;  %v3242_v47 = vmul.f32 %v3068_v61, %v9520_v59  ;;  %v3070_v30 = vpop.f32.mrb[106].mxu1 }
 0x85c   : > { %v3235_v24 = vsub.f32 %v3211_v13, %v3233_v6  ;;  %v9571_v20 = vadd.f32 %v3241_v29, %v3207_v56  ;;  %v3253_v62 = vmul.f32 %v3070_v30, %v9508_v10  ;;  %v3072_v34 = vpop.f32.mrb[107].mxu1  ;;  %v2459_v13 = vpop.permute.xlu0 %2458 }
 0x85d   : > { %v3236_v26 = vsub.f32 %v3212_v53, %v3234_v40  ;;  %v9574_v2 = vadd.f32 %v3242_v47, %v3208_v44  ;;  %v3254_v9 = vmul.f32 %v3072_v34, %v9517_v15  ;;  %v2464_v44 = vpop.permute.xlu1 %2463 }
 0x85e   : > { %11588 = vst [vmem:[#allocation7_spill] sm:$0xff] %v9571_v20  ;;  %v9577_v18 = vadd.f32 %v3245_v48, %v3235_v24  ;;  %v3255_v11 = vadd.f32 %v3253_v62, %v9503_v21  ;;  %v9597_v24 = vadd.f32 %v9359_v41, %v2454_v54  ;;  %v9602_v62 = vadd.f32 %v9361_v52, %v2459_v13 }
 0x85f   : > { %11589 = vst [vmem:[#allocation17_spill] sm:$0xff] %v9574_v2  ;;  %v9582_v25 = vadd.f32 %v3246_v49, %v3236_v26  ;;  %v3256_v10 = vadd.f32 %v3254_v9, %v9505_v38  ;;  %v9594_v38 = vadd.f32 %v9357_v45, %v2454_v54  ;;  %v9614_v45 = vadd.f32 %v9367_v23, %v2464_v44 }
 0x860   : > { %v2469_v30 = vpop.permute.xlu0 %2468 }
 0x861   : > { %v3076_v53 = vpop.f32.mrb[108].mxu1  ;;  %v9611_v34 = vadd.f32 %v9369_v35, %v2469_v30  ;;  %v9617_v41 = vadd.f32 %v9371_v55, %v2469_v30 }
 0x862   : > { %v3257_v12 = vmul.f32 %v3076_v53, %v9511_v32  ;;  %v3078_v15 = vpop.f32.mrb[109].mxu1 }
 0x863   : > { %v3258_v48 = vmul.f32 %v3078_v15, %v9520_v59  ;;  %v3080_v6 = vpop.f32.mrb[110].mxu1  ;;  %v2474_v59 = vpop.permute.xlu1 %2473 }
 0x864   : > { %v3259_v29 = vadd.f32 %v3257_v12, %v3255_v11  ;;  %v3261_v61 = vmul.f32 %v3080_v6, %v9514_v51  ;;  %v3082_v21 = vpop.f32.mrb[111].mxu1  ;;  %v9605_v51 = vadd.f32 %v9363_v5, %v2459_v13  ;;  %v9620_v54 = vadd.f32 %v9373_v0, %v2474_v59 }
 0x865   : > { %v3260_v49 = vadd.f32 %v3258_v48, %v3256_v10  ;;  %v3262_v40 = vmul.f32 %v3082_v21, %v9523_v58  ;;  %v9608_v58 = vadd.f32 %v9365_v19, %v2464_v44  ;;  %v9623_v52 = vadd.f32 %v9375_v37, %v2474_v59 }
 0x866   : > { %v9591_v47 = vadd.f32 %v3261_v61, %v3259_v29 }
 0x867   : > { %v9599_v32 = vadd.f32 %v3262_v40, %v3260_v49 }
 0x868   : > { %11590 = vst [vmem:[#allocation23_spill] sm:$0xff] %v9591_v47 }
 0x869   : > { %11591 = vst [vmem:[#allocation10_spill] sm:$0xff] %v9599_v32  ;;  %v3086_v5 = vpop.f32.mrb[112].mxu1 }
 0x86a   : > { %v3265_v26 = vmul.f32 %v3086_v5, %v9594_v38  ;;  %v3269_v19 = vmul.f32 %v3086_v5, %v9602_v62  ;;  %v3273_v35 = vmul.f32 %v3086_v5, %v9608_v58  ;;  %v3277_v9 = vmul.f32 %v3086_v5, %v9611_v34  ;;  %v3088_v23 = vpop.f32.mrb[113].mxu1 }
 0x86b   : > { %v3281_v11 = vmul.f32 %v3086_v5, %v9620_v54  ;;  %v3266_v55 = vmul.f32 %v3088_v23, %v9597_v24  ;;  %v3270_v0 = vmul.f32 %v3088_v23, %v9605_v51  ;;  %v3274_v10 = vmul.f32 %v3088_v23, %v9614_v45  ;;  %v3090_v37 = vpop.f32.mrb[114].mxu1 }
 0x86c   : > { %v3267_v13 = vadd.f32 %v3265_v26, %v9483_v27  ;;  %v3271_v53 = vadd.f32 %v3269_v19, %v9487_v1  ;;  %v3275_v44 = vadd.f32 %v3273_v35, %v9491_v8  ;;  %v9637_v12 = vmul.f32 %v3088_v23, %v9617_v41  ;;  %v3092_v15 = vpop.f32.mrb[115].mxu1 }
 0x86d   : > { %v3283_v48 = vadd.f32 %v3281_v11, %v9499_v43  ;;  %v3268_v6 = vadd.f32 %v3266_v55, %v9485_v17  ;;  %v9642_v29 = vadd.f32 %v3270_v0, %v9489_v60  ;;  %v9645_v61 = vadd.f32 %v3274_v10, %v9493_v14 }
 0x86e   : > { %v3282_v27 = vmul.f32 %v3088_v23, %v9623_v52  ;;  %v3285_v1 = vmul.f32 %v3090_v37, %v9594_v38  ;;  %v3303_v8 = vmul.f32 %v3090_v37, %v9602_v62  ;;  %v3325_v21 = vmul.f32 %v3090_v37, %v9608_v58 }
 0x86f   : > { %v3347_v49 = vmul.f32 %v3090_v37, %v9611_v34  ;;  %v3365_v43 = vmul.f32 %v3090_v37, %v9620_v54  ;;  %v3286_v17 = vmul.f32 %v3092_v15, %v9597_v24  ;;  %v3304_v60 = vmul.f32 %v3092_v15, %v9605_v51 }
 0x870   : > { %v9656_v40 = vadd.f32 %v3282_v27, %v9501_v22  ;;  %v3287_v14 = vmul.f32 0.18257418, %v3285_v1  ;;  %v9658_v30 = vmul.f32 0.18257418, %v3303_v8  ;;  %v3309_v59 = vmul.f32 0.31622776, %v3303_v8 }
 0x871   : > { %v3327_v5 = vmul.f32 -0.18257418, %v3325_v21  ;;  %v9660_v26 = vmul.f32 -0.18257418, %v3347_v49  ;;  %v9662_v19 = vmul.f32 -0.31622776, %v3365_v43  ;;  %v3326_v35 = vmul.f32 %v3092_v15, %v9614_v45 }
 0x872   : > { %v9665_v23 = vadd.f32 %v3309_v59, %v3283_v48  ;;  %v3288_v11 = vmul.f32 0.18257418, %v3286_v17  ;;  %v9667_v55 = vmul.f32 0.18257418, %v3304_v60  ;;  %v9669_v0 = vmul.f32 0.31622776, %v3304_v60 }
 0x873   : > { %v9671_v22 = vmul.f32 -0.18257418, %v3326_v35  ;;  %v3348_v10 = vmul.f32 %v3092_v15, %v9617_v41  ;;  %v3366_v37 = vmul.f32 %v3092_v15, %v9623_v52  ;;  %v3096_v27 = vpop.f32.mrb[116].mxu1  ;;  %v3279_v1 = vadd.f32 %v3277_v9, %v9495_v33 }
 0x874   : > { %v3291_v8 = vmul.f32 %v3096_v27, %v9594_v38  ;;  %v3313_v21 = vmul.f32 %v3096_v27, %v9602_v62  ;;  %v3331_v48 = vmul.f32 %v3096_v27, %v9608_v58  ;;  %v3353_v49 = vmul.f32 %v3096_v27, %v9611_v34  ;;  %v3098_v43 = vpop.f32.mrb[117].mxu1 }
 0x875   : > { %v9680_v17 = vmul.f32 -0.18257418, %v3348_v10  ;;  %v9682_v60 = vmul.f32 -0.31622776, %v3366_v37  ;;  %v3371_v59 = vmul.f32 %v3096_v27, %v9620_v54  ;;  %v3292_v15 = vmul.f32 %v3098_v43, %v9597_v24  ;;  %v3100_v35 = vpop.f32.mrb[118].mxu1 }
 0x876   : > { %v3293_v3 = vmul.f32 -0.18257418, %v3291_v8  ;;  %v3315_v33 = vmul.f32 0.18257418, %v3313_v21  ;;  %v9686_v9 = vmul.f32 0.18257418, %v3331_v48  ;;  %v3314_v7 = vmul.f32 %v3098_v43, %v9605_v51 }
 0x877   : > { %v9689_v56 = vmul.f32 -0.31622776, %v3331_v48  ;;  %v3355_v31 = vmul.f32 -0.18257418, %v3353_v49  ;;  %v9691_v63 = vmul.f32 0.31622776, %v3371_v59  ;;  %v9694_v10 = vmul.f32 %v3098_v43, %v9614_v45 }
 0x878   : > { %v3317_v37 = vadd.f32 %v3315_v33, %v3267_v13  ;;  %v3294_v32 = vmul.f32 -0.18257418, %v3292_v15  ;;  %v3316_v27 = vmul.f32 0.18257418, %v3314_v7  ;;  %v3354_v47 = vmul.f32 %v3098_v43, %v9617_v41  ;;  %v3102_v4 = vpop.f32.mrb[119].mxu1 }
 0x879   : > { %v3372_v8 = vmul.f32 %v3098_v43, %v9623_v52  ;;  %v3289_v21 = vadd.f32 %v3287_v14, %v3275_v44  ;;  %v3295_v42 = vadd.f32 %v3293_v3, %v3271_v53  ;;  %v3297_v28 = vmul.f32 %v3100_v35, %v9594_v38  ;;  %v3106_v48 = vpop.f32.mrb[120].mxu1 }
 0x87a   : > { %v3318_v46 = vadd.f32 %v3316_v27, %v3268_v6  ;;  %v3356_v49 = vmul.f32 -0.18257418, %v3354_v47  ;;  %v3319_v59 = vmul.f32 %v3100_v35, %v9602_v62  ;;  %v3329_v50 = vadd.f32 %v3327_v5, %v3317_v37  ;;  %v3108_v2 = vpop.f32.mrb[121].mxu1 }
 0x87b   : > { %v3374_v57 = vmul.f32 0.31622776, %v3372_v8  ;;  %v3299_v13 = vmul.f32 -0.36514837, %v3297_v28  ;;  %v3341_v7 = vmul.f32 %v3100_v35, %v9608_v58  ;;  %v3359_v15 = vmul.f32 %v3100_v35, %v9611_v34  ;;  %v3110_v33 = vpop.f32.mrb[122].mxu1 }
 0x87c   : > { %v3321_v20 = vmul.f32 -0.18257418, %v3319_v59  ;;  %v3280_v3 = vadd.f32 %v9637_v12, %v9497_v39  ;;  %v3290_v53 = vadd.f32 %v3288_v11, %v9645_v61  ;;  %v3296_v44 = vadd.f32 %v3294_v32, %v9642_v29  ;;  %v3112_v47 = vpop.f32.mrb[123].mxu1 }
 0x87d   : > { %v3301_v6 = vadd.f32 %v3299_v13, %v3279_v1  ;;  %v3343_v14 = vmul.f32 0.18257418, %v3341_v7  ;;  %v3361_v5 = vmul.f32 0.36514837, %v3359_v15  ;;  %v3298_v43 = vmul.f32 %v3102_v4, %v9597_v24 }
 0x87e   : > { %v3323_v28 = vadd.f32 %v3321_v20, %v3289_v21  ;;  %v3320_v37 = vmul.f32 %v3102_v4, %v9605_v51  ;;  %v3342_v35 = vmul.f32 %v3102_v4, %v9614_v45  ;;  %v3360_v27 = vmul.f32 %v3102_v4, %v9617_v41 }
 0x87f   : > { %v3307_v8 = vadd.f32 %v9658_v30, %v3301_v6  ;;  %v3345_v39 = vadd.f32 %v3343_v14, %v3295_v42  ;;  %v9711_v12 = vadd.f32 %v3361_v5, %v3329_v50  ;;  %v3300_v61 = vmul.f32 -0.36514837, %v3298_v43 }
 0x880   : > { %v3357_v32 = vadd.f32 %v3355_v31, %v3323_v28  ;;  %v3322_v29 = vmul.f32 -0.18257418, %v3320_v37  ;;  %v3344_v11 = vmul.f32 0.18257418, %v3342_v35  ;;  %v3362_v1 = vmul.f32 0.36514837, %v3360_v27 }
 0x881   : > { %v3351_v59 = vadd.f32 %v9660_v26, %v3345_v39  ;;  %v3302_v13 = vadd.f32 %v3300_v61, %v3280_v3  ;;  %v3377_v20 = vmul.f32 %v3106_v48, %v9594_v38  ;;  %v3378_v21 = vmul.f32 %v3108_v2, %v9597_v24  ;;  %v3116_v7 = vpop.f32.mrb[124].mxu1 }
 0x882   : > { %v3324_v15 = vadd.f32 %v3322_v29, %v3290_v53  ;;  %v3346_v4 = vadd.f32 %v3344_v11, %v3296_v44  ;;  %v3381_v30 = vmul.f32 %v3110_v33, %v9602_v62  ;;  %v3382_v50 = vmul.f32 %v3112_v47, %v9605_v51  ;;  %v3118_v42 = vpop.f32.mrb[125].mxu1 }
 0x883   : > { %v3379_v31 = vadd.f32 %v3377_v20, %v9539_v36  ;;  %v3380_v6 = vadd.f32 %v3378_v21, %v9541_v16  ;;  %v3385_v14 = vmul.f32 %v3116_v7, %v9608_v58  ;;  %v3386_v26 = vmul.f32 %v3118_v42, %v9614_v45  ;;  %v3120_v3 = vpop.f32.mrb[126].mxu1 }
 0x884   : > { %v3389_v48 = vmul.f32 %v3120_v3, %v9611_v34  ;;  %v3122_v2 = vpop.f32.mrb[127].mxu1  ;;  %v3330_v53 = vadd.f32 %v9671_v22, %v3318_v46  ;;  %v3352_v44 = vadd.f32 %v9680_v17, %v3346_v4  ;;  %v9726_v33 = vadd.f32 %v9662_v19, %v3351_v59 }
 0x885   : > { %v3383_v47 = vadd.f32 %v3381_v30, %v3379_v31  ;;  %v3384_v5 = vadd.f32 %v3382_v50, %v3380_v6  ;;  %v3390_v36 = vmul.f32 %v3122_v2, %v9617_v41  ;;  %v3308_v16 = vadd.f32 %v9667_v55, %v3302_v13 }
 0x886   : > { %v9730_v43 = vadd.f32 %v3362_v1, %v3330_v53  ;;  %v9733_v28 = vadd.f32 %v9682_v60, %v3352_v44  ;;  %v3334_v37 = vmul.f32 0.18257418, %v9694_v10  ;;  %v3358_v35 = vadd.f32 %v3356_v49, %v3324_v15 }
 0x887   : > { %v3387_v46 = vadd.f32 %v3385_v14, %v3383_v47  ;;  %v3388_v22 = vadd.f32 %v3386_v26, %v3384_v5  ;;  %v9737_v17 = vadd.f32 %v9686_v9, %v3307_v8  ;;  %v9740_v19 = vadd.f32 %v9691_v63, %v3357_v32 }
 0x888   : > { %11592 = vst [vmem:[#allocation16_spill] sm:$0xff] %v9733_v28  ;;  %v9742_v27 = vadd.f32 %v3334_v37, %v3308_v16  ;;  %v9744_v39 = vadd.f32 %v3374_v57, %v3358_v35  ;;  %v3312_v55 = vadd.f32 %v9669_v0, %v9656_v40  ;;  %v3338_v60 = vmul.f32 -0.31622776, %v9694_v10 }
 0x889   : > { %11593 = vst [vmem:[#allocation27_spill] sm:$0xff] %v9737_v17  ;;  %11594 = vst [vmem:[#allocation24_spill] sm:$0xff] %v9740_v19  ;;  %v3391_v61 = vadd.f32 %v3389_v48, %v3387_v46  ;;  %v3392_v29 = vadd.f32 %v3390_v36, %v3388_v22  ;;  %v3126_v49 = vpop.f32.mrb[128].mxu1  ;;  %v9751_v11 = vadd.f32 %v9689_v56, %v9665_v23 }
 0x88a   : > { %11595 = vst [vmem:[#allocation25_spill] sm:$0xff] %v9742_v27  ;;  %11596 = vst [vmem:[#allocation8_spill] sm:$0xff] %v9744_v39  ;;  %v3393_v9 = vmul.f32 %v3126_v49, %v9620_v54  ;;  %v3128_v63 = vpop.f32.mrb[129].mxu1  ;;  %v9754_v8 = vadd.f32 %v3338_v60, %v3312_v55 }
 0x88b   : > { %11597 = vst [vmem:[#allocation18_spill] sm:$0xff] %v9751_v11  ;;  %v3394_v57 = vmul.f32 %v3128_v63, %v9623_v52  ;;  %v3130_v32 = vpop.f32.mrb[130].mxu1 }
 0x88c   : > { %11598 = vst [vmem:[#allocation14_spill] sm:$0xff] %v9754_v8  ;;  %v9757_v1 = vadd.f32 %v3393_v9, %v3391_v61  ;;  %v3415_v40 = vmul.f32 %v3130_v32, %v9602_v62  ;;  %v3439_v0 = vmul.f32 %v3130_v32, %v9608_v58  ;;  %v3463_v10 = vmul.f32 %v3130_v32, %v9611_v34  ;;  %v3132_v59 = vpop.f32.mrb[131].mxu1 }
 0x88d   : > { %v9762_v13 = vadd.f32 %v3394_v57, %v3392_v29  ;;  %v3416_v56 = vmul.f32 %v3132_v59, %v9605_v51  ;;  %v3440_v23 = vmul.f32 %v3132_v59, %v9614_v45  ;;  %v3464_v20 = vmul.f32 %v3132_v59, %v9617_v41 }
 0x88e   : > { %v3417_v21 = vmul.f32 0.18257418, %v3415_v40  ;;  %v9767_v7 = vmul.f32 -0.18257418, %v3439_v0  ;;  %v9769_v15 = vmul.f32 0.36514837, %v3463_v10 }
 0x88f   : > { %v3418_v4 = vmul.f32 0.18257418, %v3416_v56  ;;  %v9771_v30 = vmul.f32 -0.18257418, %v3440_v23  ;;  %v9783_v47 = vmul.f32 0.36514837, %v3464_v20 }
 0x890   : > { %v11599_v20 = vld [vmem:[#allocation7_spill] sm:$0xff] }
 0x891   : > { %v3136_v50 = vpop.f32.mrb[132].mxu1 }
 0x892   : > { %v3397_v42 = vmul.f32 %v3136_v50, %v9594_v38  ;;  %v3445_v31 = vmul.f32 %v3136_v50, %v9608_v58  ;;  %v3469_v6 = vmul.f32 %v3136_v50, %v9611_v34  ;;  %v3481_v14 = vmul.f32 %v3136_v50, %v9620_v54  ;;  %v3138_v26 = vpop.f32.mrb[133].mxu1  ;;  %v11600_v50 = vld [vmem:[#allocation6_spill] sm:$0xff] }
 0x893   : > { %v3398_v3 = vmul.f32 %v3138_v26, %v9597_v24  ;;  %v3446_v48 = vmul.f32 %v3138_v26, %v9614_v45  ;;  %v3470_v2 = vmul.f32 %v3138_v26, %v9617_v41  ;;  %v9781_v53 = vmul.f32 %v3138_v26, %v9623_v52  ;;  %v3140_v44 = vpop.f32.mrb[134].mxu1 }
 0x894   : > { %v3399_v5 = vmul.f32 -0.18257418, %v3397_v42  ;;  %v3447_v36 = vmul.f32 0.18257418, %v3445_v31  ;;  %v3403_v16 = vmul.f32 %v3140_v44, %v9594_v38  ;;  %v9786_v37 = vmul.f32 -0.18257418, %v3469_v6 }
 0x895   : > { %v9788_v35 = vmul.f32 -0.31622776, %v3481_v14  ;;  %v3400_v46 = vmul.f32 -0.18257418, %v3398_v3  ;;  %v3421_v22 = vmul.f32 %v3140_v44, %v9602_v62  ;;  %v9792_v60 = vmul.f32 0.18257418, %v3446_v48 }
 0x896   : > { %v3401_v55 = vadd.f32 %v3399_v5, %v9577_v18  ;;  %v9794_v61 = vmul.f32 -0.18257418, %v3470_v2  ;;  %v3405_v29 = vmul.f32 0.18257418, %v3403_v16  ;;  %v3475_v63 = vmul.f32 %v3140_v44, %v9611_v34  ;;  %v3142_v32 = vpop.f32.mrb[135].mxu1 }
 0x897   : > { %v3402_v49 = vadd.f32 %v3400_v46, %v9582_v25  ;;  %v3423_v9 = vmul.f32 -0.18257418, %v3421_v22  ;;  %v3487_v57 = vmul.f32 %v3140_v44, %v9620_v54  ;;  %v3404_v40 = vmul.f32 %v3142_v32, %v9597_v24  ;;  %v11602_v22 = vld [vmem:[#allocation17_spill] sm:$0xff] }
 0x898   : > { %v3422_v0 = vmul.f32 %v3142_v32, %v9605_v51  ;;  %v3476_v10 = vmul.f32 %v3142_v32, %v9617_v41  ;;  %v3488_v18 = vmul.f32 %v3142_v32, %v9623_v52  ;;  %v3477_v59 = vmul.f32 -0.18257418, %v3475_v63  ;;  %v11603_v63 = vld [vmem:[#allocation15_spill] sm:$0xff] }
 0x899   : > { %v3489_v56 = vmul.f32 0.31622776, %v3487_v57  ;;  %v3146_v23 = vpop.f32.mrb[136].mxu1  ;;  %v11601_v25 = vsub.f32 %v11599_v20, %v11600_v50  ;;  %v3419_v31 = vadd.f32 %v3417_v21, %v3401_v55  ;;  %v3406_v6 = vmul.f32 0.18257418, %v3404_v40  ;;  %v11606_v50 = vld [vmem:[#allocation26_spill] sm:$0xff] }
 0x89a   : > { %v3424_v14 = vmul.f32 -0.18257418, %v3422_v0  ;;  %v3478_v26 = vmul.f32 -0.18257418, %v3476_v10  ;;  %v3409_v3 = vmul.f32 %v3146_v23, %v9594_v38  ;;  %v9807_v48 = vmul.f32 0.31622776, %v3488_v18 }
 0x89b   : > { %v3407_v42 = vadd.f32 %v3405_v29, %v11601_v25  ;;  %v3427_v2 = vmul.f32 %v3146_v23, %v9602_v62  ;;  %v3451_v44 = vmul.f32 %v3146_v23, %v9608_v58  ;;  %v3148_v5 = vpop.f32.mrb[137].mxu1  ;;  %v3420_v16 = vadd.f32 %v3418_v4, %v3402_v49  ;;  %v11605_v23 = vld [vmem:[#allocation21_spill] sm:$0xff] }
 0x89c   : > { %v3411_v46 = vmul.f32 -0.36514837, %v3409_v3  ;;  %v11604_v57 = vsub.f32 %v11602_v22, %v11603_v63  ;;  %v3410_v21 = vmul.f32 %v3148_v5, %v9597_v24  ;;  %v3428_v55 = vmul.f32 %v3148_v5, %v9605_v51  ;;  %v3150_v29 = vpop.f32.mrb[138].mxu1 }
 0x89d   : > { %v3429_v40 = vmul.f32 0.18257418, %v3427_v2  ;;  %v3453_v0 = vmul.f32 0.18257418, %v3451_v44  ;;  %v3452_v10 = vmul.f32 %v3148_v5, %v9614_v45  ;;  %v3433_v18 = vmul.f32 %v3150_v29, %v9602_v62  ;;  %v3152_v20 = vpop.f32.mrb[139].mxu1  ;;  %v11608_v2 = vld [vmem:[#allocation22_spill] sm:$0xff] }
 0x89e   : > { %v3408_v32 = vadd.f32 %v3406_v6, %v11604_v57  ;;  %v11607_v4 = vsub.f32 %v11605_v23, %v11606_v50  ;;  %v3412_v25 = vmul.f32 -0.36514837, %v3410_v21  ;;  %v3430_v3 = vmul.f32 0.18257418, %v3428_v55  ;;  %v11609_v44 = vld [vmem:[#allocation11_spill] sm:$0xff] }
 0x89f   : > { %v3457_v6 = vmul.f32 %v3150_v29, %v9608_v58  ;;  %v3431_v22 = vadd.f32 %v3429_v40, %v3407_v42  ;;  %v3455_v63 = vadd.f32 %v3453_v0, %v3419_v31  ;;  %v3454_v57 = vmul.f32 0.18257418, %v3452_v10 }
 0x8a0   : > { %v3413_v49 = vadd.f32 %v3411_v46, %v11607_v4  ;;  %v3435_v8 = vmul.f32 0.31622776, %v3433_v18  ;;  %v11610_v27 = vsub.f32 %v11608_v2, %v11609_v44  ;;  %v3432_v39 = vadd.f32 %v3430_v3, %v3408_v32  ;;  %v11612_v4 = vld [vmem:[#allocation10_spill] sm:$0xff] }
 0x8a1   : > { %v3459_v28 = vmul.f32 -0.31622776, %v3457_v6  ;;  %v3456_v17 = vadd.f32 %v3454_v57, %v3420_v16  ;;  %v3434_v23 = vmul.f32 %v3152_v20, %v9605_v51  ;;  %v3458_v46 = vmul.f32 %v3152_v20, %v9614_v45  ;;  %v3156_v21 = vpop.f32.mrb[140].mxu1 }
 0x8a2   : > { %v3425_v11 = vadd.f32 %v3423_v9, %v3413_v49  ;;  %v3414_v5 = vadd.f32 %v3412_v25, %v11610_v27  ;;  %v3437_v19 = vadd.f32 %v3435_v8, %v3431_v22  ;;  %v3493_v31 = vmul.f32 %v3156_v21, %v9594_v38  ;;  %v3158_v40 = vpop.f32.mrb[141].mxu1  ;;  %v11611_v8 = vld [vmem:[#allocation23_spill] sm:$0xff] }
 0x8a3   : > { %v3461_v42 = vadd.f32 %v3459_v28, %v3455_v63  ;;  %v3436_v0 = vmul.f32 0.31622776, %v3434_v23  ;;  %v3460_v10 = vmul.f32 -0.31622776, %v3458_v46  ;;  %v3494_v27 = vmul.f32 %v3158_v40, %v9597_v24  ;;  %v3160_v32 = vpop.f32.mrb[142].mxu1 }
 0x8a4   : > { %v3449_v55 = vadd.f32 %v3447_v36, %v3425_v11  ;;  %v3426_v29 = vadd.f32 %v3424_v14, %v3414_v5  ;;  %v3443_v9 = vadd.f32 %v9767_v7, %v3437_v19  ;;  %v3495_v18 = vadd.f32 %v3493_v31, %v11611_v8  ;;  %v3162_v20 = vpop.f32.mrb[143].mxu1 }
 0x8a5   : > { %v3479_v16 = vadd.f32 %v3477_v59, %v3461_v42  ;;  %v3497_v50 = vmul.f32 %v3160_v32, %v9602_v62  ;;  %v3438_v36 = vadd.f32 %v3436_v0, %v3432_v39  ;;  %v3462_v14 = vadd.f32 %v3460_v10, %v3456_v17 }
 0x8a6   : > { %v3450_v11 = vadd.f32 %v9792_v60, %v3426_v29  ;;  %v3473_v28 = vadd.f32 %v9786_v37, %v3443_v9  ;;  %v3496_v49 = vadd.f32 %v3494_v27, %v11612_v4  ;;  %v3498_v25 = vmul.f32 %v3162_v20, %v9605_v51  ;;  %v11615_v4 = vld [vmem:[#allocation16_spill] sm:$0xff] }
 0x8a7   : > { %v3491_v19 = vadd.f32 %v3489_v56, %v3479_v16  ;;  %v3499_v7 = vadd.f32 %v3497_v50, %v3495_v18  ;;  %v3444_v59 = vadd.f32 %v9771_v30, %v3438_v36  ;;  %v3480_v6 = vadd.f32 %v3478_v26, %v3462_v14  ;;  %v11614_v14 = vld [vmem:[#allocation27_spill] sm:$0xff] }
 0x8a8   : > { %v3468_v3 = vadd.f32 %v9783_v47, %v3450_v11  ;;  %v3485_v22 = vadd.f32 %v9788_v35, %v3473_v28  ;;  %v3467_v63 = vadd.f32 %v9769_v15, %v3449_v55  ;;  %v3484_v60 = vmul.f32 -0.31622776, %v9781_v53  ;;  %v11613_v28 = vld [vmem:[#allocation24_spill] sm:$0xff] }
 0x8a9   : > { %v3500_v37 = vadd.f32 %v3498_v25, %v3496_v49  ;;  %v3166_v39 = vpop.f32.mrb[144].mxu1  ;;  %v3474_v17 = vadd.f32 %v9794_v61, %v3444_v59  ;;  %v3492_v57 = vadd.f32 %v9807_v48, %v3480_v6  ;;  %v11618_v25 = vld [vmem:[#allocation18_spill] sm:$0xff] }
 0x8aa   : > { %v3544_v56 = vpack.c.bf16 %v3485_v22, %v9757_v1  ;;  %v3546_v2 = vpack.c.bf16 %v3467_v63, %v3491_v19  ;;  %v3501_v47 = vmul.f32 %v3166_v39, %v9608_v58  ;;  %v3168_v44 = vpop.f32.mrb[145].mxu1  ;;  %v11620_v63 = vmov 0   ;;  %v7453_v39 = vld [vmem:[%s11445_s1 + $0x90] sm:$0xff]  }
 0x8ab   : > { %v3502_v30 = vmul.f32 %v3168_v44, %v9614_v45  ;;  %v3170_v26 = vpop.f32.mrb[146].mxu1  ;;  %v3486_v35 = vadd.f32 %v3484_v60, %v3474_v17  ;;  %v3547_v5 = vpack.c.bf16 %v3468_v3, %v3492_v57  ;;  %v7451_v60 = vld [vmem:[%s11445_s1 + $0x80] sm:$0xff]   ;;  %v7454_v17 = vld [vmem:[%s11445_s1 + $0x98] sm:$0xff]  }
 0x8ac   : > { %v3503_v15 = vadd.f32 %v3501_v47, %v3499_v7  ;;  %v3505_v53 = vmul.f32 %v3170_v26, %v9611_v34  ;;  %v3172_v23 = vpop.f32.mrb[147].mxu1 }
 0x8ad   : > { %v3504_v46 = vadd.f32 %v3502_v30, %v3500_v37  ;;  %v3545_v61 = vpack.c.bf16 %v3486_v35, %v9762_v13  ;;  %v3506_v1 = vmul.f32 %v3172_v23, %v9617_v41  ;;  %v7452_v37 = vld [vmem:[%s11445_s1 + $0x88] sm:$0xff]  }
 0x8ae   : > { %v3507_v21 = vadd.f32 %v3505_v53, %v3503_v15  ;;  %v3578_v15 = vpop.permute.xlu1 %3577 }
 0x8af   : > { %3655 = vmatprep.subr.bf16.mxu0 %v3545_v61  ;;  %v3508_v48 = vadd.f32 %v3506_v1, %v3504_v46 }
 0x8b0   : > { %3656 = vmatpush1.bf16.msra.mxu0 %v3544_v56  ;;  %v3573_v56 = vpop.permute.xlu0 %3572 }
 0x8b1   : > { %3657 = vmatprep.subr.bf16.mxu0 %v3547_v5  ;;  %v3176_v55 = vpop.f32.mrb[148].mxu1 }
 0x8b2   : > { %v3509_v29 = vmul.f32 %v3176_v55, %v9620_v54  ;;  %v3178_v42 = vpop.f32.mrb[149].mxu1 }
 0x8b3   : > { %v3510_v31 = vmul.f32 %v3178_v42, %v9623_v52  ;;  %v3180_v40 = vpop.f32.mrb[150].mxu1 }
 0x8b4   : > { %3658 = vmatpush1.bf16.msra.mxu0 %v3546_v2  ;;  %v3511_v9 = vadd.f32 %v3509_v29, %v3507_v21  ;;  %v3513_v0 = vmul.f32 %v3180_v40, %v9594_v38  ;;  %v3517_v13 = vmul.f32 %v3180_v40, %v9602_v62  ;;  %v3521_v10 = vmul.f32 %v3180_v40, %v9608_v58  ;;  %v3182_v27 = vpop.f32.mrb[151].mxu1  ;;  %v3583_v57 = vpop.permute.xlu0 %3582 }
 0x8b5   : > { %v3512_v32 = vadd.f32 %v3510_v31, %v3508_v48  ;;  %v3525_v16 = vmul.f32 %v3180_v40, %v9611_v34  ;;  %v3529_v8 = vmul.f32 %v3180_v40, %v9620_v54  ;;  %v3514_v18 = vmul.f32 %v3182_v27, %v9597_v24  ;;  %v11616_v24 = vld [vmem:[#allocation8_spill] sm:$0xff] }
 0x8b6   : > { %v3518_v50 = vmul.f32 %v3182_v27, %v9605_v51  ;;  %v3515_v20 = vadd.f32 %v3513_v0, %v9711_v12  ;;  %v3519_v11 = vadd.f32 %v3517_v13, %v9726_v33  ;;  %v3522_v38 = vmul.f32 %v3182_v27, %v9614_v45  ;;  %v11617_v12 = vld [vmem:[#allocation25_spill] sm:$0xff] }
 0x8b7   : > { %v3516_v62 = vadd.f32 %v3514_v18, %v9730_v43  ;;  %v3526_v58 = vmul.f32 %v3182_v27, %v9617_v41  ;;  %v3523_v36 = vadd.f32 %v3521_v10, %v11613_v28  ;;  %v3527_v34 = vadd.f32 %v3525_v16, %v11614_v14  ;;  %v11619_v43 = vld [vmem:[#allocation14_spill] sm:$0xff] }
 0x8b8   : > { %v3520_v54 = vadd.f32 %v3518_v50, %v11615_v4  ;;  %v3548_v49 = vpack.c.bf16 %v3519_v11, %v3515_v20  ;;  %v3524_v19 = vadd.f32 %v3522_v38, %v11616_v24  ;;  %v3530_v51 = vmul.f32 %v3182_v27, %v9623_v52  ;;  %v7450_v52 = vld [vmem:[%s11445_s1 + $0x78] sm:$0xff]   ;;  %v3593_v2 = vpop.permute.xlu0 %3592  ;;  %v3588_v50 = vpop.permute.xlu1 %3587 }
 0x8b9   : > { %v3528_v7 = vadd.f32 %v3526_v58, %v11617_v12  ;;  %v3550_v33 = vpack.c.bf16 %v3527_v34, %v3523_v36  ;;  %v3531_v45 = vadd.f32 %v3529_v8, %v11618_v25 }
 0x8ba   : > { %v3549_v3 = vpack.c.bf16 %v3520_v54, %v3516_v62  ;;  %v3532_v59 = vadd.f32 %v3530_v51, %v11619_v43 }
 0x8bb   : > { %v3551_v41 = vpack.c.bf16 %v3528_v7, %v3524_v19  ;;  %v3552_v6 = vpack.c.bf16 %v3511_v9, %v3531_v45 }
 0x8bc   : > { %3659 = vmatprep.subr.bf16.mxu0 %v3549_v3  ;;  %v3553_v22 = vpack.c.bf16 %v3512_v32, %v3532_v59  ;;  %v9896_v35 = vpop.permute.xlu0 %3602  ;;  %v3598_v19 = vpop.permute.xlu1 %3597 }
 0x8bd   : > { %3660 = vmatpush1.bf16.msra.mxu0 %v3548_v49 }
 0x8be   : > { %3661 = vmatprep.subr.bf16.mxu0 %v3551_v41 }
 0x8c0   : > { %v3568_v31 = vpop.permute.xlu0 %3567 }
 0x8c1   : > { %3662 = vmatpush1.bf16.msra.mxu0 %v3550_v33 }
 0x8c2   : > { %3663 = vmatprep.subr.bf16.mxu0 %v3553_v22 }
 0x8c5   : > { %3664 = vmatpush1.bf16.msra.mxu0 %v3552_v6 }
 0x8c8   : > { %7031 = vmatmul.mubr.msk.bf16.vlgmr.msra.gmra.mrb[148].mxu0 %vm463_vm0, %v7450_v52 }
 0x8c9   : > { %3697 = vmatprep.mubr.bf16.mxu0 %v11620_v63 }
 0x8d0   : > { %7032 = vmatmul.mubr.msk.bf16.gmra.mrb[152].mxu0 %vm463_vm0, %v7451_v60 }
 0x8d1   : > { %3707 = vmatprep.mubr.bf16.mxu0 %v11620_v63 }
 0x8d8   : > { %7033 = vmatmul.mubr.msk.bf16.gmra.mrb[156].mxu0 %vm463_vm0, %v7452_v37 }
 0x8d9   : > { %3717 = vmatprep.mubr.bf16.mxu0 %v11620_v63 }
 0x8e0   : > { %7034 = vmatmul.mubr.msk.bf16.gmra.mrb[160].mxu0 %vm463_vm0, %v7453_v39 }
 0x8e1   : > { %3727 = vmatprep.mubr.bf16.mxu0 %v11620_v63 }
 0x8e8   : > { %7035 = vmatmul.mubr.msk.bf16.gmra.mrb[164].mxu0 %vm463_vm0, %v7454_v17  ;;  %v3608_v17 = vpop.permute.xlu1 %3607 }
 0x8e9   : > { %4129 = vmatprep.mubr.bf16.mxu0 %v11620_v63 }
 0x99b   : > { %v3689_v47 = vpop.f32.mrb[148].mxu0 }
 0x99c   : > { %v3691_v44 = vpop.f32.mrb[149].mxu0  ;;  %v9918_v13 = vadd.f32 %v3689_v47, %v3568_v31 }
 0x99d   : > { %v3693_v30 = vpop.f32.mrb[150].mxu0  ;;  %v9920_v10 = vadd.f32 %v3691_v44, %v3568_v31 }
 0x99e   : > { %v3695_v26 = vpop.f32.mrb[151].mxu0  ;;  %v9898_v5 = vadd.f32 %v3693_v30, %v3573_v56  ;;  %v3738_v38 = vand.u32 2147483647, %v9918_v13 }
 0x99f   : > { %v9900_v53 = vadd.f32 %v3695_v26, %v3573_v56  ;;  %v3739_v62 = vand.u32 2147483647, %v9920_v10 }
 0x9a0   : > { %v3754_v48 = vmul.f32 %v9898_v5, %v9898_v5  ;;  %v7036_v49 = vmul.f32 -1.442695, %v3738_v38 }
 0x9a1   : > { %v3755_v40 = vmul.f32 %v9900_v53, %v9900_v53  ;;  %v7037_v24 = vmul.f32 -1.442695, %v3739_v62 }
 0x9a3   : > { %v3699_v23 = vpop.f32.mrb[152].mxu0 }
 0x9a4   : > { %v9902_v46 = vadd.f32 %v3699_v23, %v3578_v15  ;;  %v3701_v61 = vpop.f32.mrb[153].mxu0 }
 0x9a5   : > { %v9904_v1 = vadd.f32 %v3701_v61, %v3578_v15  ;;  %v3703_v21 = vpop.f32.mrb[154].mxu0 }
 0x9a6   : > { %v3756_v55 = vmul.f32 %v9902_v46, %v9902_v46  ;;  %v9910_v29 = vadd.f32 %v3703_v21, %v3583_v57  ;;  %v3705_v42 = vpop.f32.mrb[155].mxu0 }
 0x9a7   : > { %v3757_v9 = vmul.f32 %v9904_v1, %v9904_v1  ;;  %v9916_v0 = vadd.f32 %v3705_v42, %v3583_v57 }
 0x9a8   : > { %v3758_v27 = vadd.f32 %v3756_v55, %v3754_v48  ;;  %v3760_v32 = vmul.f32 %v9910_v29, %v9910_v29 }
 0x9a9   : > { %v3759_v16 = vadd.f32 %v3757_v9, %v3755_v40  ;;  %v3761_v8 = vmul.f32 %v9916_v0, %v9916_v0 }
 0x9aa   : > { %v3762_v18 = vadd.f32 %v3760_v32, %v3758_v27 }
 0x9ab   : > { %v3763_v20 = vadd.f32 %v3761_v8, %v3759_v16  ;;  %v3709_v11 = vpop.f32.mrb[156].mxu0  ;;  %v3613_v8 = vpop.permute.xlu1 %3612 }
 0x9ac   : > { %7600 = vrsqrt.f32 %v3762_v18  ;;  %v3711_v58 = vpop.f32.mrb[157].mxu0  ;;  %v9928_v36 = vadd.f32 %v3709_v11, %v3588_v50  ;;  %vm3766_vm2 = vcmp.eq.f32.partialorder %v3762_v18, inf  ;;  %vm3768_vm3 = vcmp.eq.f32.partialorder %v3762_v18, 0.0 }
 0x9ad   : > { %7602 = vrsqrt.f32 %v3763_v20  ;;  %v3713_v28 = vpop.f32.mrb[158].mxu0  ;;  %v9930_v14 = vadd.f32 %v3711_v58, %v3588_v50  ;;  %v3769_v57 = vand.u32 2147483648, %v3762_v18  ;;  %vm3773_vm4 = vcmp.eq.f32.partialorder %v3763_v20, inf }
 0x9ae   : > { %v3715_v34 = vpop.f32.mrb[159].mxu0  ;;  %v9932_v4 = vadd.f32 %v3713_v28, %v3593_v2  ;;  %v3796_v51 = vmul.f32 %v9928_v36, %v9928_v36  ;;  %7604 = vpow2.f32 %v7036_v49  ;;  %v3776_v23 = vand.u32 2147483648, %v3763_v20 }
 0x9af   : > { %v9934_v54 = vadd.f32 %v3715_v34, %v3593_v2  ;;  %v3797_v12 = vmul.f32 %v9930_v14, %v9930_v14  ;;  %7606 = vpow2.f32 %v7037_v24  ;;  %vm3775_vm5 = vcmp.eq.f32.partialorder %v3763_v20, 0.0 }
 0x9b0   : > { %v3798_v7 = vmul.f32 %v9932_v4, %v9932_v4 }
 0x9b1   : > { %v3799_v33 = vmul.f32 %v9934_v54, %v9934_v54 }
 0x9b2   : > { %v3800_v25 = vadd.f32 %v3798_v7, %v3796_v51 }
 0x9b3   : > { %v3801_v45 = vadd.f32 %v3799_v33, %v3797_v12  ;;  %v3719_v3 = vpop.f32.mrb[160].mxu0 }
 0x9b4   : > { %v9944_v43 = vadd.f32 %v3719_v3, %v3598_v19  ;;  %v3721_v59 = vpop.f32.mrb[161].mxu0 }
 0x9b5   : > { %v9946_v41 = vadd.f32 %v3721_v59, %v3598_v19  ;;  %v3723_v6 = vpop.f32.mrb[162].mxu0 }
 0x9b6   : > { %v7601_v22 = vpop.eup %7600  ;;  %v3802_v52 = vmul.f32 %v9944_v43, %v9944_v43  ;;  %v9951_v60 = vadd.f32 %v3723_v6, %v9896_v35  ;;  %v3725_v37 = vpop.f32.mrb[163].mxu0 }
 0x9b7   : > { %v7603_v39 = vpop.eup %7602  ;;  %v3765_v56 = vmul.f32 %v7601_v22, %v3762_v18  ;;  %v3803_v2 = vmul.f32 %v9946_v41, %v9946_v41  ;;  %v9956_v47 = vadd.f32 %v3725_v37, %v9896_v35 }
 0x9b8   : > { %v3772_v44 = vmul.f32 %v7603_v39, %v3763_v20  ;;  %v3804_v30 = vadd.f32 %v3802_v52, %v3800_v25  ;;  %v3806_v26 = vmul.f32 %v9951_v60, %v9951_v60  ;;  %v7605_v38 = vpop.eup %7604 }
 0x9b9   : > { %v3767_v15 = vsel %vm3766_vm2, %v3762_v18, %v3765_v56  ;;  %v3805_v61 = vadd.f32 %v3803_v2, %v3801_v45  ;;  %v3807_v21 = vmul.f32 %v9956_v47, %v9956_v47  ;;  %v7607_v58 = vpop.eup %7606  ;;  %v3746_v51 = vadd.f32 1.0, %v7605_v38 }
 0x9ba   : > { %v3770_v48 = vsel %vm3768_vm3, %v3769_v57, %v3767_v15  ;;  %v3774_v55 = vsel %vm3773_vm4, %v3763_v20, %v3772_v44  ;;  %v3808_v42 = vadd.f32 %v3806_v26, %v3804_v30  ;;  %v3747_v12 = vadd.f32 1.0, %v7607_v58 }
 0x9bb   : > { %v7038_v31 = vmul.f32 -1.442695, %v3770_v48  ;;  %v3777_v35 = vsel %vm3775_vm5, %v3776_v23, %v3774_v55  ;;  %v3809_v40 = vadd.f32 %v3807_v21, %v3805_v61  ;;  %v3729_v9 = vpop.f32.mrb[164].mxu0 }
 0x9bc   : > { %v7039_v27 = vmul.f32 -1.442695, %v3777_v35  ;;  %v9963_v32 = vadd.f32 %v3729_v9, %v3608_v17  ;;  %v3731_v16 = vpop.f32.mrb[165].mxu0 }
 0x9bd   : > { %7608 = vpow2.f32 %v7038_v31  ;;  %v9965_v50 = vadd.f32 %v3731_v16, %v3608_v17  ;;  %v3733_v11 = vpop.f32.mrb[166].mxu0 }
 0x9be   : > { %7610 = vpow2.f32 %v7039_v27  ;;  %v3810_v18 = vmul.f32 %v9963_v32, %v9963_v32  ;;  %v9969_v20 = vadd.f32 %v3733_v11, %v3613_v8  ;;  %v3735_v62 = vpop.f32.mrb[167].mxu0 }
 0x9bf   : > { %v3811_v28 = vmul.f32 %v9965_v50, %v9965_v50  ;;  %v9973_v49 = vadd.f32 %v3735_v62, %v3613_v8 }
 0x9c0   : > { %v3812_v34 = vadd.f32 %v3810_v18, %v3808_v42  ;;  %v3850_v19 = vand.u32 2147483647, %v9969_v20 }
 0x9c1   : > { %v3813_v24 = vadd.f32 %v3811_v28, %v3809_v40  ;;  %v3851_v7 = vand.u32 2147483647, %v9973_v49 }
 0x9c2   : > { %7612 = vrsqrt.f32 %v3812_v34  ;;  %v7042_v33 = vmul.f32 -1.442695, %v3850_v19  ;;  %vm3816_vm6 = vcmp.eq.f32.partialorder %v3812_v34, inf  ;;  %v3819_v39 = vand.u32 2147483648, %v3812_v34 }
 0x9c3   : > { %7614 = vrsqrt.f32 %v3813_v24  ;;  %v7043_v59 = vmul.f32 -1.442695, %v3851_v7  ;;  %vm3818_vm7 = vcmp.eq.f32.partialorder %v3812_v34, 0.0  ;;  %vm3823_vm8 = vcmp.eq.f32.partialorder %v3813_v24, inf }
 0x9c4   : > { %7616 = vrcp.f32 %v3746_v51  ;;  %v3826_v57 = vand.u32 2147483648, %v3813_v24  ;;  %vm3825_vm9 = vcmp.eq.f32.partialorder %v3813_v24, 0.0 }
 0x9c5   : > { %7618 = vrcp.f32 %v3747_v12 }
 0x9c6   : > { %7620 = vpow2.f32 %v7042_v33 }
 0x9c7   : > { %v7609_v25 = vpop.eup %7608 }
 0x9c8   : > { %v7611_v45 = vpop.eup %7610  ;;  %v3784_v3 = vadd.f32 1.0, %v7609_v25 }
 0x9c9   : > { %v3785_v6 = vadd.f32 1.0, %v7611_v45 }
 0x9ca   : > { %7622 = vrcp.f32 %v3784_v3 }
 0x9cb   : > { %7624 = vrcp.f32 %v3785_v6 }
 0x9cc   : > { %v7613_v22 = vpop.eup %7612  ;;  %7626 = vpow2.f32 %v7043_v59 }
 0x9cd   : > { %v7615_v52 = vpop.eup %7614  ;;  %v3815_v37 = vmul.f32 %v7613_v22, %v3812_v34 }
 0x9ce   : > { %v3822_v17 = vmul.f32 %v7615_v52, %v3813_v24  ;;  %v7617_v30 = vpop.eup %7616 }
 0x9cf   : > { %v3817_v56 = vsel %vm3816_vm6, %v3812_v34, %v3815_v37  ;;  %v7619_v23 = vpop.eup %7618  ;;  %v3752_v42 = vmul.f32 %v7617_v30, %v9918_v13  ;;  %v7462_v37 = vld [vmem:[%s11447_s3 + $0xd8] sm:$0xff]  }
 0x9d0   : > { %v3820_v2 = vsel %vm3818_vm7, %v3819_v39, %v3817_v56  ;;  %v3824_v44 = vsel %vm3823_vm8, %v3813_v24, %v3822_v17  ;;  %v7621_v21 = vpop.eup %7620  ;;  %v3753_v27 = vmul.f32 %v7619_v23, %v9920_v10  ;;  %v7463_v39 = vld [vmem:[%s11447_s3 + $0xe0] sm:$0xff]   ;;  %v7464_v17 = vld [vmem:[%s11447_s3 + $0xe8] sm:$0xff]  }
 0x9d1   : > { %v7040_v26 = vmul.f32 -1.442695, %v3820_v2  ;;  %v3827_v15 = vsel %vm3825_vm9, %v3826_v57, %v3824_v44  ;;  %v3858_v62 = vadd.f32 1.0, %v7621_v21 }
 0x9d2   : > { %v7041_v61 = vmul.f32 -1.442695, %v3827_v15 }
 0x9d3   : > { %7628 = vpow2.f32 %v7040_v26 }
 0x9d4   : > { %v7623_v48 = vpop.eup %7622  ;;  %7630 = vpow2.f32 %v7041_v61 }
 0x9d5   : > { %v7625_v55 = vpop.eup %7624  ;;  %v3792_v31 = vmul.f32 %v7623_v48, %v9902_v46  ;;  %v3794_v35 = vmul.f32 %v7623_v48, %v9910_v29  ;;  %v3790_v40 = vmul.f32 %v7623_v48, %v9898_v5  ;;  %7632 = vrcp.f32 %v3858_v62  ;;  %v3970_v62 = vpop.permute.xlu0 %3969 }
 0x9d6   : > { %v7627_v9 = vpop.eup %7626  ;;  %v3795_v16 = vmul.f32 %v7625_v55, %v9916_v0  ;;  %v3791_v8 = vmul.f32 %v7625_v55, %v9900_v53  ;;  %v3793_v11 = vmul.f32 %v7625_v55, %v9904_v1 }
 0x9d7   : > { %v3889_v38 = vpack.c.bf16 %v3794_v35, %v3792_v31  ;;  %v3887_v18 = vpack.c.bf16 %v3790_v40, %v3752_v42  ;;  %v3859_v28 = vadd.f32 1.0, %v7627_v9 }
 0x9d8   : > { %v3888_v58 = vpack.c.bf16 %v3791_v8, %v3753_v27  ;;  %v3890_v13 = vpack.c.bf16 %v3795_v16, %v3793_v11 }
 0x9d9   : > { %7634 = vrcp.f32 %v3859_v28 }
 0x9da   : > { %4097 = vmatprep.subr.bf16.mxu0 %v3888_v58 }
 0x9db   : > { %4098 = vmatpush1.bf16.msra.mxu0 %v3887_v18 }
 0x9dc   : > { %4099 = vmatprep.subr.bf16.mxu0 %v3890_v13 }
 0x9dd   : > { %v7629_v5 = vpop.eup %7628 }
 0x9de   : > { %v7631_v46 = vpop.eup %7630  ;;  %v3834_v29 = vadd.f32 1.0, %v7629_v5 }
 0x9df   : > { %v3835_v10 = vadd.f32 1.0, %v7631_v46  ;;  %4100 = vmatpush1.bf16.msra.mxu0 %v3889_v38  ;;  %v7633_v53 = vpop.eup %7632  ;;  %v3975_v38 = vpop.permute.xlu1 %3974 }
 0x9e0   : > { %7636 = vrcp.f32 %v3834_v29  ;;  %v3864_v34 = vmul.f32 %v7633_v53, %v9969_v20 }
 0x9e1   : > { %7638 = vrcp.f32 %v3835_v10 }
 0x9e3   : > { %v7635_v1 = vpop.eup %7634 }
 0x9e4   : > { %v3865_v24 = vmul.f32 %v7635_v1, %v9973_v49 }
 0x9ea   : > { %v7637_v0 = vpop.eup %7636 }
 0x9eb   : > { %v7639_v19 = vpop.eup %7638  ;;  %v3848_v51 = vmul.f32 %v7637_v0, %v9963_v32  ;;  %v3840_v12 = vmul.f32 %v7637_v0, %v9928_v36  ;;  %v3842_v7 = vmul.f32 %v7637_v0, %v9932_v4  ;;  %v3844_v33 = vmul.f32 %v7637_v0, %v9944_v43  ;;  %v7457_v43 = vld [vmem:[%s11447_s3 + $0xb0] sm:$0xff]  }
 0x9ec   : > { %v3849_v25 = vmul.f32 %v7639_v19, %v9965_v50  ;;  %v3841_v45 = vmul.f32 %v7639_v19, %v9930_v14  ;;  %v3843_v3 = vmul.f32 %v7639_v19, %v9934_v54  ;;  %v3845_v59 = vmul.f32 %v7639_v19, %v9946_v41  ;;  %v7455_v14 = vld [vmem:[%s11447_s3 + $0xa0] sm:$0xff]   ;;  %v7456_v54 = vld [vmem:[%s11447_s3 + $0xa8] sm:$0xff]   ;;  %v7458_v41 = vld [vmem:[%s11447_s3 + $0xb8] sm:$0xff]  }
 0x9ed   : > { %v3895_v20 = vpack.c.bf16 %v3864_v34, %v3848_v51  ;;  %v3891_v6 = vpack.c.bf16 %v3842_v7, %v3840_v12  ;;  %v3847_v49 = vmul.f32 %v7639_v19, %v9956_v47  ;;  %v3846_v32 = vmul.f32 %v7637_v0, %v9951_v60  ;;  %v7459_v60 = vld [vmem:[%s11447_s3 + $0xc0] sm:$0xff]   ;;  %v7460_v47 = vld [vmem:[%s11447_s3 + $0xc8] sm:$0xff]   ;;  %v7461_v50 = vld [vmem:[%s11447_s3 + $0xd0] sm:$0xff]   ;;  %v3985_v0 = vpop.permute.xlu1 %3984 }
 0x9ee   : > { %v3892_v22 = vpack.c.bf16 %v3843_v3, %v3841_v45  ;;  %v3896_v36 = vpack.c.bf16 %v3865_v24, %v3849_v25  ;;  %v3980_v24 = vpop.permute.xlu0 %3979 }
 0x9ef   : > { %v3894_v52 = vpack.c.bf16 %v3847_v49, %v3845_v59  ;;  %v3893_v4 = vpack.c.bf16 %v3846_v32, %v3844_v33 }
 0x9f0   : > { %4101 = vmatprep.subr.bf16.mxu0 %v3892_v22 }
 0x9f1   : > { %4102 = vmatpush1.bf16.msra.mxu0 %v3891_v6 }
 0x9f2   : > { %4103 = vmatprep.subr.bf16.mxu0 %v3894_v52  ;;  %v3990_v49 = vpop.permute.xlu0 %3989 }
 0x9f5   : > { %4104 = vmatpush1.bf16.msra.mxu0 %v3893_v4 }
 0x9f6   : > { %4105 = vmatprep.subr.bf16.mxu0 %v3896_v36 }
 0x9f9   : > { %4106 = vmatpush1.bf16.msra.mxu0 %v3895_v20  ;;  %v3995_v20 = vpop.permute.xlu1 %3994 }
 0x9fc   : > { %7094 = vmatmul.mubr.msk.bf16.vlgmr.msra.gmra.mrb[168].mxu0 %vm463_vm0, %v7455_v14 }
 0x9fd   : > { %4139 = vmatprep.mubr.bf16.mxu0 %v11620_v63 }
 0xa04   : > { %7095 = vmatmul.mubr.msk.bf16.gmra.mrb[172].mxu0 %vm463_vm0, %v7456_v54 }
 0xa05   : > { %4149 = vmatprep.mubr.bf16.mxu0 %v11620_v63 }
 0xa0c   : > { %7096 = vmatmul.mubr.msk.bf16.gmra.mrb[176].mxu0 %vm463_vm0, %v7457_v43 }
 0xa0d   : > { %4159 = vmatprep.mubr.bf16.mxu0 %v11620_v63 }
 0xa14   : > { %7097 = vmatmul.mubr.msk.bf16.gmra.mrb[180].mxu0 %vm463_vm0, %v7458_v41 }
 0xa15   : > { %4169 = vmatprep.mubr.bf16.mxu0 %v11620_v63 }
 0xa1c   : > { %7098 = vmatmul.mubr.msk.bf16.gmra.mrb[184].mxu0 %vm463_vm0, %v7459_v60  ;;  %v4005_v60 = vpop.permute.xlu1 %4004 }
 0xa1d   : > { %4177 = vmatprep.mubr.bf16.mxu0 %v11620_v63 }
 0xa24   : > { %7099 = vmatmul.mubr.msk.bf16.gmra.mrb[188].mxu0 %vm463_vm0, %v7460_v47 }
 0xa25   : > { %4187 = vmatprep.mubr.bf16.mxu0 %v11620_v63 }
 0xa2c   : > { %7100 = vmatmul.mubr.msk.bf16.gmra.mrb[192].mxu0 %vm463_vm0, %v7461_v50  ;;  %v4000_v50 = vpop.permute.xlu0 %3999 }
 0xa2d   : > { %4197 = vmatprep.mubr.bf16.mxu0 %v11620_v63 }
 0xa34   : > { %7101 = vmatmul.mubr.msk.bf16.gmra.mrb[196].mxu0 %vm463_vm0, %v7462_v37 }
 0xa35   : > { %4207 = vmatprep.mubr.bf16.mxu0 %v11620_v63 }
 0xa3c   : > { %7102 = vmatmul.mubr.msk.bf16.gmra.mrb[200].mxu0 %vm463_vm0, %v7463_v39 }
 0xa3d   : > { %4217 = vmatprep.mubr.bf16.mxu0 %v11620_v63 }
 0xa44   : > { %7103 = vmatmul.mubr.msk.bf16.gmra.mrb[204].mxu0 %vm463_vm0, %v7464_v17 }
 0xa45   : > { %4471 = vmatprep.mubr.bf16.mxu0 %v11620_v63 }
 0xacf   : > { %v10047_v56 = vpop.f32.mrb[168].mxu0 }
 0xad0   : > { %v10049_v57 = vpop.f32.mrb[169].mxu0 }
 0xad1   : > { %v10051_v2 = vpop.f32.mrb[170].mxu0 }
 0xad2   : > { %v10053_v44 = vpop.f32.mrb[171].mxu0 }
 0xad7   : > { %v10055_v30 = vpop.f32.mrb[172].mxu0 }
 0xad8   : > { %v10057_v26 = vpop.f32.mrb[173].mxu0 }
 0xad9   : > { %v10059_v15 = vpop.f32.mrb[174].mxu0 }
 0xada   : > { %v10061_v23 = vpop.f32.mrb[175].mxu0 }
 0xadf   : > { %v10063_v61 = vpop.f32.mrb[176].mxu0 }
 0xae0   : > { %v10065_v21 = vpop.f32.mrb[177].mxu0 }
 0xae1   : > { %v10067_v48 = vpop.f32.mrb[178].mxu0 }
 0xae2   : > { %v10069_v55 = vpop.f32.mrb[179].mxu0 }
 0xae7   : > { %v10071_v42 = vpop.f32.mrb[180].mxu0 }
 0xae8   : > { %v10073_v31 = vpop.f32.mrb[181].mxu0 }
 0xae9   : > { %v10075_v35 = vpop.f32.mrb[182].mxu0 }
 0xaea   : > { %v10077_v40 = vpop.f32.mrb[183].mxu0 }
 0xaef   : > { %v10079_v9 = vpop.f32.mrb[184].mxu0 }
 0xaf0   : > { %v10081_v27 = vpop.f32.mrb[185].mxu0 }
 0xaf1   : > { %v4175_v16 = vpop.f32.mrb[186].mxu0 }
 0xaf2   : > { %v4176_v8 = vpop.f32.mrb[187].mxu0 }
 0xaf7   : > { %v4179_v11 = vpop.f32.mrb[188].mxu0 }
 0xaf8   : > { %v4181_v18 = vpop.f32.mrb[189].mxu0  ;;  %v4180_v13 = vadd.f32 %v4179_v11, %v3970_v62 }
 0xaf9   : > { %v4183_v58 = vpop.f32.mrb[190].mxu0  ;;  %v4182_v46 = vadd.f32 %v4181_v18, %v3970_v62 }
 0xafa   : > { %v4184_v28 = vadd.f32 %v4183_v58, %v3975_v38  ;;  %v4185_v5 = vpop.f32.mrb[191].mxu0  ;;  %v4015_v58 = vpop.permute.xlu1 %4014 }
 0xafb   : > { %v4186_v29 = vadd.f32 %v4185_v5, %v3975_v38 }
 0xafc   : > { %v4269_v10 = vpack.c.bf16 %v4184_v28, %v4180_v13  ;;  %v4010_v28 = vpop.permute.xlu0 %4009 }
 0xafd   : > { %v4270_v53 = vpack.c.bf16 %v4186_v29, %v4182_v46 }
 0xaff   : > { %v4189_v1 = vpop.f32.mrb[192].mxu0  ;;  %4439 = vmatprep.subr.bf16.mxu0 %v4270_v53 }
 0xb00   : > { %v4191_v34 = vpop.f32.mrb[193].mxu0  ;;  %4440 = vmatpush1.bf16.msra.mxu0 %v4269_v10  ;;  %v4190_v51 = vadd.f32 %v4189_v1, %v3980_v24 }
 0xb01   : > { %v4193_v19 = vpop.f32.mrb[194].mxu0  ;;  %v4192_v33 = vadd.f32 %v4191_v34, %v3980_v24  ;;  %v7465_v24 = vld [vmem:[%s11449_s5 + $0x140] sm:$0xff]  }
 0xb02   : > { %v4194_v12 = vadd.f32 %v4193_v19, %v3985_v0  ;;  %v4195_v7 = vpop.f32.mrb[195].mxu0  ;;  %v7466_v19 = vld [vmem:[%s11449_s5 + $0x148] sm:$0xff]  }
 0xb03   : > { %v4196_v25 = vadd.f32 %v4195_v7, %v3985_v0  ;;  %v7469_v7 = vld [vmem:[%s11449_s5 + $0x160] sm:$0xff]  }
 0xb04   : > { %v4271_v45 = vpack.c.bf16 %v4194_v12, %v4190_v51  ;;  %v7467_v51 = vld [vmem:[%s11449_s5 + $0x150] sm:$0xff]   ;;  %v7468_v12 = vld [vmem:[%s11449_s5 + $0x158] sm:$0xff]  }
 0xb05   : > { %v4272_v3 = vpack.c.bf16 %v4196_v25, %v4192_v33  ;;  %v7470_v33 = vld [vmem:[%s11449_s5 + $0x168] sm:$0xff]   ;;  %v7471_v25 = vld [vmem:[%s11449_s5 + $0x170] sm:$0xff]  }
 0xb07   : > { %v4199_v59 = vpop.f32.mrb[196].mxu0  ;;  %4441 = vmatprep.subr.bf16.mxu0 %v4272_v3  ;;  %v7473_v3 = vld [vmem:[%s11449_s5 + $0x180] sm:$0xff]  }
 0xb08   : > { %v4201_v6 = vpop.f32.mrb[197].mxu0  ;;  %4442 = vmatpush1.bf16.msra.mxu0 %v4271_v45  ;;  %v4200_v22 = vadd.f32 %v4199_v59, %v3990_v49  ;;  %v7472_v45 = vld [vmem:[%s11449_s5 + $0x178] sm:$0xff]   ;;  %v7474_v59 = vld [vmem:[%s11449_s5 + $0x188] sm:$0xff]  }
 0xb09   : > { %v4203_v32 = vpop.f32.mrb[198].mxu0  ;;  %v4202_v4 = vadd.f32 %v4201_v6, %v3990_v49  ;;  %v7476_v6 = vld [vmem:[%s11449_s5 + $0x198] sm:$0xff]   ;;  %v7477_v49 = vld [vmem:[%s11449_s5 + $0x1a0] sm:$0xff]  }
 0xb0a   : > { %v4204_v36 = vadd.f32 %v4203_v32, %v3995_v20  ;;  %v4205_v52 = vpop.f32.mrb[199].mxu0  ;;  %v7478_v32 = vld [vmem:[%s11449_s5 + $0x1a8] sm:$0xff]  }
 0xb0b   : > { %v4206_v14 = vadd.f32 %v4205_v52, %v3995_v20  ;;  %v7475_v20 = vld [vmem:[%s11449_s5 + $0x190] sm:$0xff]   ;;  %v7481_v52 = vld [vmem:[%s11449_s5 + $0x1c0] sm:$0xff]  }
 0xb0c   : > { %v4273_v54 = vpack.c.bf16 %v4204_v36, %v4200_v22  ;;  %v7479_v22 = vld [vmem:[%s11449_s5 + $0x1b0] sm:$0xff]   ;;  %v7480_v36 = vld [vmem:[%s11449_s5 + $0x1b8] sm:$0xff]  }
 0xb0d   : > { %v4274_v43 = vpack.c.bf16 %v4206_v14, %v4202_v4  ;;  %v7482_v4 = vld [vmem:[%s11449_s5 + $0x1c8] sm:$0xff]   ;;  %v7483_v14 = vld [vmem:[%s11449_s5 + $0x1d0] sm:$0xff]  }
 0xb0f   : > { %v4209_v41 = vpop.f32.mrb[200].mxu0  ;;  %4443 = vmatprep.subr.bf16.mxu0 %v4274_v43  ;;  %v3921_v43 = vpop.permute.xlu0 %3920 }
 0xb10   : > { %v4211_v47 = vpop.f32.mrb[201].mxu0  ;;  %4444 = vmatpush1.bf16.msra.mxu0 %v4273_v54  ;;  %v4210_v39 = vadd.f32 %v4209_v41, %v4000_v50  ;;  %v7484_v54 = vld [vmem:[%s11449_s5 + $0x1d8] sm:$0xff]   ;;  %v4132_v41 = vadd.f32 %v10047_v56, %v3921_v43 }
 0xb11   : > { %v4213_v37 = vpop.f32.mrb[202].mxu0  ;;  %v4212_v8 = vadd.f32 %v4211_v47, %v4000_v50 }
 0xb12   : > { %v4214_v17 = vadd.f32 %v4213_v37, %v4005_v60  ;;  %v4215_v16 = vpop.f32.mrb[203].mxu0 }
 0xb13   : > { %v4216_v11 = vadd.f32 %v4215_v16, %v4005_v60  ;;  %v4134_v60 = vadd.f32 %v10049_v57, %v3921_v43 }
 0xb14   : > { %v4275_v38 = vpack.c.bf16 %v4214_v17, %v4210_v39 }
 0xb15   : > { %v4276_v18 = vpack.c.bf16 %v4216_v11, %v4212_v8 }
 0xb17   : > { %v4219_v62 = vpop.f32.mrb[204].mxu0  ;;  %4445 = vmatprep.subr.bf16.mxu0 %v4276_v18 }
 0xb18   : > { %v4221_v13 = vpop.f32.mrb[205].mxu0  ;;  %4446 = vmatpush1.bf16.msra.mxu0 %v4275_v38  ;;  %v4220_v46 = vadd.f32 %v4219_v62, %v4010_v28 }
 0xb19   : > { %v4223_v5 = vpop.f32.mrb[206].mxu0  ;;  %v4222_v53 = vadd.f32 %v4221_v13, %v4010_v28 }
 0xb1a   : > { %v4224_v29 = vadd.f32 %v4223_v5, %v4015_v58  ;;  %v4225_v10 = vpop.f32.mrb[207].mxu0 }
 0xb1b   : > { %v4226_v1 = vadd.f32 %v4225_v10, %v4015_v58 }
 0xb1c   : > { %v4277_v0 = vpack.c.bf16 %v4224_v29, %v4220_v46 }
 0xb1d   : > { %v4278_v34 = vpack.c.bf16 %v4226_v1, %v4222_v53 }
 0xb1f   : > { %4447 = vmatprep.subr.bf16.mxu0 %v4278_v34 }
 0xb20   : > { %4448 = vmatpush1.bf16.msra.mxu0 %v4277_v0 }
 0xb23   : > { %7164 = vmatmul.mubr.msk.bf16.vlgmr.msra.gmra.mrb[208].mxu0 %vm463_vm0, %v7465_v24 }
 0xb24   : > { %4481 = vmatprep.mubr.bf16.mxu0 %v11620_v63 }
 0xb2b   : > { %7165 = vmatmul.mubr.msk.bf16.gmra.mrb[212].mxu0 %vm463_vm0, %v7466_v19 }
 0xb2c   : > { %4491 = vmatprep.mubr.bf16.mxu0 %v11620_v63 }
 0xb33   : > { %7166 = vmatmul.mubr.msk.bf16.gmra.mrb[216].mxu0 %vm463_vm0, %v7467_v51 }
 0xb34   : > { %4501 = vmatprep.mubr.bf16.mxu0 %v11620_v63 }
 0xb3b   : > { %7167 = vmatmul.mubr.msk.bf16.gmra.mrb[220].mxu0 %vm463_vm0, %v7468_v12 }
 0xb3c   : > { %4511 = vmatprep.mubr.bf16.mxu0 %v11620_v63 }
 0xb43   : > { %7168 = vmatmul.mubr.msk.bf16.gmra.mrb[224].mxu0 %vm463_vm0, %v7469_v7 }
 0xb44   : > { %4521 = vmatprep.mubr.bf16.mxu0 %v11620_v63 }
 0xb4b   : > { %7169 = vmatmul.mubr.msk.bf16.gmra.mrb[228].mxu0 %vm463_vm0, %v7470_v33 }
 0xb4c   : > { %4531 = vmatprep.mubr.bf16.mxu0 %v11620_v63 }
 0xb53   : > { %7170 = vmatmul.mubr.msk.bf16.gmra.mrb[232].mxu0 %vm463_vm0, %v7471_v25 }
 0xb54   : > { %4541 = vmatprep.mubr.bf16.mxu0 %v11620_v63 }
 0xb5b   : > { %7171 = vmatmul.mubr.msk.bf16.gmra.mrb[236].mxu0 %vm463_vm0, %v7472_v45 }
 0xb5c   : > { %4551 = vmatprep.mubr.bf16.mxu0 %v11620_v63 }
 0xb63   : > { %7172 = vmatmul.mubr.msk.bf16.gmra.mrb[240].mxu0 %vm463_vm0, %v7473_v3  ;;  %v3926_v3 = vpop.permute.xlu1 %3925 }
 0xb64   : > { %4561 = vmatprep.mubr.bf16.mxu0 %v11620_v63 }
 0xb6b   : > { %7173 = vmatmul.mubr.msk.bf16.gmra.mrb[244].mxu0 %vm463_vm0, %v7474_v59 }
 0xb6c   : > { %4571 = vmatprep.mubr.bf16.mxu0 %v11620_v63 }
 0xb73   : > { %7174 = vmatmul.mubr.msk.bf16.gmra.mrb[248].mxu0 %vm463_vm0, %v7475_v20 }
 0xb74   : > { %4581 = vmatprep.mubr.bf16.mxu0 %v11620_v63 }
 0xb7b   : > { %7175 = vmatmul.mubr.msk.bf16.gmra.mrb[252].mxu0 %vm463_vm0, %v7476_v6 }
 0xb7c   : > { %4591 = vmatprep.mubr.bf16.mxu0 %v11620_v63 }
 0xb83   : > { %7176 = vmatmul.mubr.msk.bf16.gmra.mrb[0].mxu0 %vm463_vm0, %v7477_v49 }
 0xb84   : > { %4601 = vmatprep.mubr.bf16.mxu0 %v11620_v63 }
 0xb8b   : > { %7177 = vmatmul.mubr.msk.bf16.gmra.mrb[4].mxu0 %vm463_vm0, %v7478_v32 }
 0xb8c   : > { %4611 = vmatprep.mubr.bf16.mxu0 %v11620_v63 }
 0xb93   : > { %7178 = vmatmul.mubr.msk.bf16.gmra.mrb[8].mxu0 %vm463_vm0, %v7479_v22 }
 0xb94   : > { %4621 = vmatprep.mubr.bf16.mxu0 %v11620_v63 }
 0xb9b   : > { %7179 = vmatmul.mubr.msk.bf16.gmra.mrb[12].mxu0 %vm463_vm0, %v7480_v36 }
 0xb9c   : > { %4631 = vmatprep.mubr.bf16.mxu0 %v11620_v63 }
 0xba3   : > { %7180 = vmatmul.mubr.msk.bf16.gmra.mrb[16].mxu0 %vm463_vm0, %v7481_v52 }
 0xba4   : > { %4641 = vmatprep.mubr.bf16.mxu0 %v11620_v63 }
 0xbab   : > { %7181 = vmatmul.mubr.msk.bf16.gmra.mrb[20].mxu0 %vm463_vm0, %v7482_v4  ;;  %v3936_v4 = vpop.permute.xlu1 %3935 }
 0xbac   : > { %4651 = vmatprep.mubr.bf16.mxu0 %v11620_v63 }
 0xbb3   : > { %7182 = vmatmul.mubr.msk.bf16.gmra.mrb[24].mxu0 %vm463_vm0, %v7483_v14  ;;  %v3931_v14 = vpop.permute.xlu0 %3930 }
 0xbb4   : > { %4661 = vmatprep.mubr.bf16.mxu0 %v11620_v63  ;;  %v10216_v43 = vadd.f32 %v10055_v30, %v3931_v14 }
 0xbbb   : > { %7183 = vmatmul.mubr.msk.bf16.gmra.mrb[28].mxu0 %vm463_vm0, %v7484_v54  ;;  %v10213_v54 = vadd.f32 %v10051_v2, %v3926_v3 }
 0xbf6   : > { %v4473_v47 = vpop.f32.mrb[208].mxu0 }
 0xbf7   : > { %v10184_v50 = vmul.f32 %v4473_v47, %v4132_v41  ;;  %v4475_v37 = vpop.f32.mrb[209].mxu0  ;;  %v10219_v47 = vadd.f32 %v10059_v15, %v3936_v4 }
 0xbf8   : > { %v10186_v39 = vmul.f32 %v4475_v37, %v4134_v60  ;;  %v4477_v17 = vpop.f32.mrb[210].mxu0  ;;  %v10222_v37 = vadd.f32 %v10053_v44, %v3926_v3 }
 0xbf9   : > { %v4674_v16 = vmul.f32 %v4477_v17, %v4132_v41  ;;  %v4479_v8 = vpop.f32.mrb[211].mxu0 }
 0xbfa   : > { %v4675_v11 = vmul.f32 %v4479_v8, %v4134_v60 }
 0xbfe   : > { %v4483_v38 = vpop.f32.mrb[212].mxu0 }
 0xbff   : > { %v4676_v18 = vmul.f32 %v4483_v38, %v4132_v41  ;;  %v4485_v62 = vpop.f32.mrb[213].mxu0 }
 0xc00   : > { %v4677_v58 = vmul.f32 %v4485_v62, %v4134_v60  ;;  %v4487_v13 = vpop.f32.mrb[214].mxu0 }
 0xc01   : > { %v4678_v28 = vmul.f32 %v4487_v13, %v4132_v41  ;;  %v4489_v5 = vpop.f32.mrb[215].mxu0 }
 0xc02   : > { %v4679_v56 = vmul.f32 %v4489_v5, %v4134_v60 }
 0xc06   : > { %v4493_v46 = vpop.f32.mrb[216].mxu0 }
 0xc07   : > { %v10188_v57 = vmul.f32 %v4493_v46, %v4132_v41  ;;  %v4495_v29 = vpop.f32.mrb[217].mxu0 }
 0xc08   : > { %v10190_v10 = vmul.f32 %v4495_v29, %v4134_v60  ;;  %v4497_v53 = vpop.f32.mrb[218].mxu0 }
 0xc09   : > { %v10192_v1 = vmul.f32 %v4497_v53, %v4132_v41  ;;  %v4499_v0 = vpop.f32.mrb[219].mxu0 }
 0xc0a   : > { %v10194_v34 = vmul.f32 %v4499_v0, %v4134_v60 }
 0xc0e   : > { %v4503_v24 = vpop.f32.mrb[220].mxu0 }
 0xc0f   : > { %v10196_v19 = vmul.f32 %v4503_v24, %v4132_v41  ;;  %v4505_v51 = vpop.f32.mrb[221].mxu0 }
 0xc10   : > { %v10198_v12 = vmul.f32 %v4505_v51, %v4134_v60  ;;  %v4507_v7 = vpop.f32.mrb[222].mxu0 }
 0xc11   : > { %v10200_v33 = vmul.f32 %v4507_v7, %v4132_v41  ;;  %v4509_v25 = vpop.f32.mrb[223].mxu0 }
 0xc12   : > { %v10202_v45 = vmul.f32 %v4509_v25, %v4134_v60 }
 0xc16   : > { %v4513_v59 = vpop.f32.mrb[224].mxu0 }
 0xc17   : > { %v10204_v20 = vmul.f32 %v4513_v59, %v4132_v41  ;;  %v4515_v6 = vpop.f32.mrb[225].mxu0 }
 0xc18   : > { %v10206_v49 = vmul.f32 %v4515_v6, %v4134_v60  ;;  %v4517_v32 = vpop.f32.mrb[226].mxu0 }
 0xc19   : > { %v10208_v22 = vmul.f32 %v4517_v32, %v4132_v41  ;;  %v4519_v36 = vpop.f32.mrb[227].mxu0  ;;  %v10225_v41 = vadd.f32 %v10057_v26, %v3931_v14 }
 0xc1a   : > { %v10210_v52 = vmul.f32 %v4519_v36, %v4134_v60  ;;  %v10228_v60 = vadd.f32 %v10061_v23, %v3936_v4 }
 0xc1e   : > { %v4523_v17 = vpop.f32.mrb[228].mxu0 }
 0xc1f   : > { %v4692_v8 = vmul.f32 %v4523_v17, %v10213_v54  ;;  %v4696_v2 = vmul.f32 %v4523_v17, %v10216_v43  ;;  %v4700_v30 = vmul.f32 %v4523_v17, %v10219_v47  ;;  %v4525_v38 = vpop.f32.mrb[229].mxu0 }
 0xc20   : > { %v4693_v15 = vmul.f32 %v4525_v38, %v10222_v37  ;;  %v4697_v62 = vmul.f32 %v4525_v38, %v10225_v41  ;;  %v4701_v44 = vmul.f32 %v4525_v38, %v10228_v60  ;;  %v4527_v13 = vpop.f32.mrb[230].mxu0 }
 0xc21   : > { %v4694_v26 = vadd.f32 %v4692_v8, %v4674_v16  ;;  %v4698_v5 = vadd.f32 %v4696_v2, %v4676_v18  ;;  %v4702_v46 = vadd.f32 %v4700_v30, %v4678_v28  ;;  %v4704_v23 = vmul.f32 %v4527_v13, %v10213_v54  ;;  %v4529_v29 = vpop.f32.mrb[231].mxu0 }
 0xc22   : > { %v4695_v53 = vadd.f32 %v4693_v15, %v4675_v11  ;;  %v4699_v0 = vadd.f32 %v4697_v62, %v4677_v58  ;;  %v4703_v24 = vadd.f32 %v4701_v44, %v4679_v56  ;;  %v4705_v51 = vmul.f32 %v4529_v29, %v10222_v37 }
 0xc23   : > { %v4706_v7 = vadd.f32 %v4704_v23, %v10184_v50 }
 0xc24   : > { %v4707_v25 = vadd.f32 %v4705_v51, %v10186_v39 }
 0xc26   : > { %v4533_v3 = vpop.f32.mrb[232].mxu0 }
 0xc27   : > { %v4708_v59 = vmul.f32 %v4533_v3, %v10216_v43  ;;  %v4535_v6 = vpop.f32.mrb[233].mxu0 }
 0xc28   : > { %v4709_v16 = vmul.f32 %v4535_v6, %v10225_v41  ;;  %v4537_v18 = vpop.f32.mrb[234].mxu0 }
 0xc29   : > { %v4710_v28 = vadd.f32 %v4708_v59, %v4706_v7  ;;  %v4712_v32 = vmul.f32 %v4537_v18, %v10219_v47  ;;  %v4539_v36 = vpop.f32.mrb[235].mxu0 }
 0xc2a   : > { %v4711_v11 = vadd.f32 %v4709_v16, %v4707_v25  ;;  %v4713_v58 = vmul.f32 %v4539_v36, %v10228_v60 }
 0xc2b   : > { %v10244_v56 = vadd.f32 %v4712_v32, %v4710_v28  ;;  %v3941_v28 = vpop.permute.xlu0 %3940 }
 0xc2c   : > { %v10246_v4 = vadd.f32 %v4713_v58, %v4711_v11 }
 0xc2e   : > { %v4543_v50 = vpop.f32.mrb[236].mxu0 }
 0xc2f   : > { %v10249_v39 = vmul.f32 %v4543_v50, %v10216_v43  ;;  %v4732_v14 = vmul.f32 %v4543_v50, %v10219_v47  ;;  %v4545_v17 = vpop.f32.mrb[237].mxu0 }
 0xc30   : > { %v10253_v8 = vmul.f32 %v4545_v17, %v10225_v41  ;;  %v4733_v2 = vmul.f32 %v4545_v17, %v10228_v60  ;;  %v4547_v30 = vpop.f32.mrb[238].mxu0 }
 0xc31   : > { %11621 = vst [vmem:[#allocation19_spill] sm:$0xff] %v10249_v39  ;;  %v4716_v38 = vmul.f32 %v4547_v30, %v10213_v54  ;;  %v10258_v15 = vmul.f32 %v4547_v30, %v10219_v47  ;;  %v4549_v62 = vpop.f32.mrb[239].mxu0 }
 0xc32   : > { %11622 = vst [vmem:[#allocation12_spill] sm:$0xff] %v10253_v8  ;;  %v4717_v44 = vmul.f32 %v4549_v62, %v10222_v37  ;;  %v10262_v13 = vmul.f32 %v4549_v62, %v10228_v60 }
 0xc33   : > { %11623 = vst [vmem:[#allocation30_spill] sm:$0xff] %v10258_v15  ;;  %v10264_v23 = vadd.f32 %v4716_v38, %v4702_v46 }
 0xc34   : > { %11624 = vst [vmem:[#allocation9_spill] sm:$0xff] %v10262_v13  ;;  %v10266_v29 = vadd.f32 %v4717_v44, %v4703_v24 }
 0xc35   : > { %11625 = vst [vmem:[#allocation13_spill] sm:$0xff] %v10264_v23 }
 0xc36   : > { %11626 = vst [vmem:[#allocation28_spill] sm:$0xff] %v10266_v29  ;;  %v4553_v25 = vpop.f32.mrb[240].mxu0 }
 0xc37   : > { %v4720_v3 = vmul.f32 %v4553_v25, %v10213_v54  ;;  %v4728_v59 = vmul.f32 %v4553_v25, %v10216_v43  ;;  %v4555_v6 = vpop.f32.mrb[241].mxu0 }
 0xc38   : > { %v4721_v16 = vmul.f32 %v4555_v6, %v10222_v37  ;;  %v4729_v18 = vmul.f32 %v4555_v6, %v10225_v41  ;;  %v4557_v46 = vpop.f32.mrb[242].mxu0 }
 0xc39   : > { %v4722_v24 = vsub.f32 %v4698_v5, %v4720_v3  ;;  %v10276_v32 = vadd.f32 %v4728_v59, %v4694_v26  ;;  %v4740_v36 = vmul.f32 %v4557_v46, %v10213_v54  ;;  %v4559_v11 = vpop.f32.mrb[243].mxu0  ;;  %v3946_v5 = vpop.permute.xlu1 %3945 }
 0xc3a   : > { %v4723_v58 = vsub.f32 %v4699_v0, %v4721_v16  ;;  %v10279_v50 = vadd.f32 %v4729_v18, %v4695_v53  ;;  %v4741_v17 = vmul.f32 %v4559_v11, %v10222_v37  ;;  %v3951_v53 = vpop.permute.xlu0 %3950 }
 0xc3b   : > { %11627 = vst [vmem:[#allocation29_spill] sm:$0xff] %v10276_v32  ;;  %v10282_v30 = vadd.f32 %v4732_v14, %v4722_v24  ;;  %v4742_v62 = vadd.f32 %v4740_v36, %v10208_v22  ;;  %v10302_v24 = vadd.f32 %v10065_v21, %v3941_v28  ;;  %v10307_v36 = vadd.f32 %v10067_v48, %v3946_v5 }
 0xc3c   : > { %11628 = vst [vmem:[#allocation34_spill] sm:$0xff] %v10279_v50  ;;  %v10287_v44 = vadd.f32 %v4733_v2, %v4723_v58  ;;  %v4743_v54 = vadd.f32 %v4741_v17, %v10210_v52  ;;  %v10299_v52 = vadd.f32 %v10063_v61, %v3941_v28  ;;  %v10319_v61 = vadd.f32 %v10073_v31, %v3951_v53 }
 0xc3d   : > { %v3956_v46 = vpop.permute.xlu1 %3955 }
 0xc3e   : > { %v4563_v0 = vpop.f32.mrb[244].mxu0  ;;  %v10316_v11 = vadd.f32 %v10075_v35, %v3956_v46  ;;  %v10322_v21 = vadd.f32 %v10077_v40, %v3956_v46 }
 0xc3f   : > { %v4744_v25 = vmul.f32 %v4563_v0, %v10216_v43  ;;  %v4565_v37 = vpop.f32.mrb[245].mxu0 }
 0xc40   : > { %v4745_v14 = vmul.f32 %v4565_v37, %v10225_v41  ;;  %v4567_v3 = vpop.f32.mrb[246].mxu0  ;;  %v3961_v41 = vpop.permute.xlu0 %3960 }
 0xc41   : > { %v4746_v59 = vadd.f32 %v4744_v25, %v4742_v62  ;;  %v4748_v6 = vmul.f32 %v4567_v3, %v10219_v47  ;;  %v4569_v22 = vpop.f32.mrb[247].mxu0  ;;  %v10310_v47 = vadd.f32 %v10069_v55, %v3946_v5  ;;  %v10325_v28 = vadd.f32 %v10079_v9, %v3961_v41 }
 0xc42   : > { %v4747_v2 = vadd.f32 %v4745_v14, %v4743_v54  ;;  %v4749_v16 = vmul.f32 %v4569_v22, %v10228_v60  ;;  %v10313_v60 = vadd.f32 %v10071_v42, %v3951_v53  ;;  %v10328_v48 = vadd.f32 %v10081_v27, %v3961_v41 }
 0xc43   : > { %v10296_v18 = vadd.f32 %v4748_v6, %v4746_v59 }
 0xc44   : > { %v10304_v43 = vadd.f32 %v4749_v16, %v4747_v2 }
 0xc45   : > { %11629 = vst [vmem:[#allocation35_spill] sm:$0xff] %v10296_v18 }
 0xc46   : > { %11630 = vst [vmem:[#allocation32_spill] sm:$0xff] %v10304_v43  ;;  %v4573_v55 = vpop.f32.mrb[248].mxu0 }
 0xc47   : > { %v4752_v58 = vmul.f32 %v4573_v55, %v10299_v52  ;;  %v4756_v42 = vmul.f32 %v4573_v55, %v10307_v36  ;;  %v4760_v35 = vmul.f32 %v4573_v55, %v10313_v60  ;;  %v4764_v17 = vmul.f32 %v4573_v55, %v10316_v11  ;;  %v4575_v31 = vpop.f32.mrb[249].mxu0 }
 0xc48   : > { %v4768_v62 = vmul.f32 %v4573_v55, %v10325_v28  ;;  %v4753_v40 = vmul.f32 %v4575_v31, %v10302_v24  ;;  %v4757_v9 = vmul.f32 %v4575_v31, %v10310_v47  ;;  %v4761_v54 = vmul.f32 %v4575_v31, %v10319_v61  ;;  %v4577_v27 = vpop.f32.mrb[250].mxu0 }
 0xc49   : > { %v4754_v5 = vadd.f32 %v4752_v58, %v10188_v57  ;;  %v4758_v0 = vadd.f32 %v4756_v42, %v10192_v1  ;;  %v4762_v53 = vadd.f32 %v4760_v35, %v10196_v19  ;;  %v10342_v25 = vmul.f32 %v4575_v31, %v10322_v21  ;;  %v4579_v37 = vpop.f32.mrb[251].mxu0 }
 0xc4a   : > { %v4770_v14 = vadd.f32 %v4768_v62, %v10204_v20  ;;  %v4755_v3 = vadd.f32 %v4753_v40, %v10190_v10  ;;  %v10347_v59 = vadd.f32 %v4757_v9, %v10194_v34  ;;  %v10350_v6 = vadd.f32 %v4761_v54, %v10198_v12 }
 0xc4b   : > { %v4769_v57 = vmul.f32 %v4575_v31, %v10328_v48  ;;  %v4772_v1 = vmul.f32 %v4577_v27, %v10299_v52  ;;  %v4790_v19 = vmul.f32 %v4577_v27, %v10307_v36  ;;  %v4812_v22 = vmul.f32 %v4577_v27, %v10313_v60 }
 0xc4c   : > { %v4834_v2 = vmul.f32 %v4577_v27, %v10316_v11  ;;  %v4852_v20 = vmul.f32 %v4577_v27, %v10325_v28  ;;  %v4773_v10 = vmul.f32 %v4579_v37, %v10302_v24  ;;  %v4791_v34 = vmul.f32 %v4579_v37, %v10310_v47 }
 0xc4d   : > { %v10361_v16 = vadd.f32 %v4769_v57, %v10206_v49  ;;  %v4774_v12 = vmul.f32 0.18257418, %v4772_v1  ;;  %v10363_v46 = vmul.f32 0.18257418, %v4790_v19  ;;  %v4796_v41 = vmul.f32 0.31622776, %v4790_v19 }
 0xc4e   : > { %v4814_v55 = vmul.f32 -0.18257418, %v4812_v22  ;;  %v10365_v58 = vmul.f32 -0.18257418, %v4834_v2  ;;  %v10367_v42 = vmul.f32 -0.31622776, %v4852_v20  ;;  %v4813_v35 = vmul.f32 %v4579_v37, %v10319_v61 }
 0xc4f   : > { %v10370_v31 = vadd.f32 %v4796_v41, %v4770_v14  ;;  %v4775_v62 = vmul.f32 0.18257418, %v4773_v10  ;;  %v10372_v40 = vmul.f32 0.18257418, %v4791_v34  ;;  %v10374_v9 = vmul.f32 0.31622776, %v4791_v34 }
 0xc50   : > { %v10376_v49 = vmul.f32 -0.18257418, %v4813_v35  ;;  %v4835_v54 = vmul.f32 %v4579_v37, %v10322_v21  ;;  %v4853_v27 = vmul.f32 %v4579_v37, %v10328_v48  ;;  %v4583_v57 = vpop.f32.mrb[252].mxu0  ;;  %v4766_v1 = vadd.f32 %v4764_v17, %v10200_v33 }
 0xc51   : > { %v4778_v19 = vmul.f32 %v4583_v57, %v10299_v52  ;;  %v4800_v22 = vmul.f32 %v4583_v57, %v10307_v36  ;;  %v4818_v14 = vmul.f32 %v4583_v57, %v10313_v60  ;;  %v4840_v2 = vmul.f32 %v4583_v57, %v10316_v11  ;;  %v4585_v20 = vpop.f32.mrb[253].mxu0 }
 0xc52   : > { %v10385_v10 = vmul.f32 -0.18257418, %v4835_v54  ;;  %v10387_v34 = vmul.f32 -0.31622776, %v4853_v27  ;;  %v4858_v41 = vmul.f32 %v4583_v57, %v10325_v28  ;;  %v4779_v37 = vmul.f32 %v4585_v20, %v10302_v24  ;;  %v4587_v35 = vpop.f32.mrb[254].mxu0 }
 0xc53   : > { %v4780_v7 = vmul.f32 -0.18257418, %v4778_v19  ;;  %v4802_v33 = vmul.f32 0.18257418, %v4800_v22  ;;  %v10391_v17 = vmul.f32 0.18257418, %v4818_v14  ;;  %v4801_v51 = vmul.f32 %v4585_v20, %v10310_v47 }
 0xc54   : > { %v10394_v26 = vmul.f32 -0.31622776, %v4818_v14  ;;  %v4842_v38 = vmul.f32 -0.18257418, %v4840_v2  ;;  %v10396_v63 = vmul.f32 0.31622776, %v4858_v41  ;;  %v10399_v54 = vmul.f32 %v4585_v20, %v10319_v61 }
 0xc55   : > { %v4804_v27 = vadd.f32 %v4802_v33, %v4754_v5  ;;  %v4781_v43 = vmul.f32 -0.18257418, %v4779_v37  ;;  %v4803_v57 = vmul.f32 0.18257418, %v4801_v51  ;;  %v4841_v18 = vmul.f32 %v4585_v20, %v10322_v21  ;;  %v4589_v8 = vpop.f32.mrb[255].mxu0 }
 0xc56   : > { %v4859_v19 = vmul.f32 %v4585_v20, %v10328_v48  ;;  %v4776_v22 = vadd.f32 %v4774_v12, %v4762_v53  ;;  %v4782_v29 = vadd.f32 %v4780_v7, %v4758_v0  ;;  %v4784_v39 = vmul.f32 %v4587_v35, %v10299_v52  ;;  %v4593_v14 = vpop.f32.mrb[0].mxu0 }
 0xc57   : > { %v4805_v23 = vadd.f32 %v4803_v57, %v4755_v3  ;;  %v4843_v2 = vmul.f32 -0.18257418, %v4841_v18  ;;  %v4806_v41 = vmul.f32 %v4587_v35, %v10307_v36  ;;  %v4816_v13 = vadd.f32 %v4814_v55, %v4804_v27  ;;  %v4595_v50 = vpop.f32.mrb[1].mxu0 }
 0xc58   : > { %v4861_v15 = vmul.f32 0.31622776, %v4859_v19  ;;  %v4786_v5 = vmul.f32 -0.36514837, %v4784_v39  ;;  %v4828_v51 = vmul.f32 %v4587_v35, %v10313_v60  ;;  %v4846_v37 = vmul.f32 %v4587_v35, %v10316_v11  ;;  %v4597_v33 = vpop.f32.mrb[2].mxu0 }
 0xc59   : > { %v4808_v32 = vmul.f32 -0.18257418, %v4806_v41  ;;  %v4767_v7 = vadd.f32 %v10342_v25, %v10202_v45  ;;  %v4777_v0 = vadd.f32 %v4775_v62, %v10350_v6  ;;  %v4783_v53 = vadd.f32 %v4781_v43, %v10347_v59  ;;  %v4599_v18 = vpop.f32.mrb[3].mxu0 }
 0xc5a   : > { %v4788_v3 = vadd.f32 %v4786_v5, %v4766_v1  ;;  %v4830_v12 = vmul.f32 0.18257418, %v4828_v51  ;;  %v4848_v55 = vmul.f32 0.36514837, %v4846_v37  ;;  %v4785_v20 = vmul.f32 %v4589_v8, %v10302_v24 }
 0xc5b   : > { %v4810_v39 = vadd.f32 %v4808_v32, %v4776_v22  ;;  %v4807_v27 = vmul.f32 %v4589_v8, %v10310_v47  ;;  %v4829_v35 = vmul.f32 %v4589_v8, %v10319_v61  ;;  %v4847_v57 = vmul.f32 %v4589_v8, %v10322_v21 }
 0xc5c   : > { %v4794_v19 = vadd.f32 %v10363_v46, %v4788_v3  ;;  %v4832_v45 = vadd.f32 %v4830_v12, %v4782_v29  ;;  %v10416_v25 = vadd.f32 %v4848_v55, %v4816_v13  ;;  %v4787_v6 = vmul.f32 -0.36514837, %v4785_v20 }
 0xc5d   : > { %v4844_v43 = vadd.f32 %v4842_v38, %v4810_v39  ;;  %v4809_v59 = vmul.f32 -0.18257418, %v4807_v27  ;;  %v4831_v62 = vmul.f32 0.18257418, %v4829_v35  ;;  %v4849_v1 = vmul.f32 0.36514837, %v4847_v57 }
 0xc5e   : > { %v4838_v41 = vadd.f32 %v10365_v58, %v4832_v45  ;;  %v4789_v5 = vadd.f32 %v4787_v6, %v4767_v7  ;;  %v4864_v32 = vmul.f32 %v4593_v14, %v10299_v52  ;;  %v4865_v22 = vmul.f32 %v4595_v50, %v10302_v24  ;;  %v4603_v51 = vpop.f32.mrb[4].mxu0 }
 0xc5f   : > { %v4811_v37 = vadd.f32 %v4809_v59, %v4777_v0  ;;  %v4833_v8 = vadd.f32 %v4831_v62, %v4783_v53  ;;  %v4868_v46 = vmul.f32 %v4597_v33, %v10307_v36  ;;  %v4869_v13 = vmul.f32 %v4599_v18, %v10310_v47  ;;  %v4605_v29 = vpop.f32.mrb[5].mxu0 }
 0xc60   : > { %v4866_v38 = vadd.f32 %v4864_v32, %v10244_v56  ;;  %v4867_v3 = vadd.f32 %v4865_v22, %v10246_v4  ;;  %v4872_v12 = vmul.f32 %v4603_v51, %v10313_v60  ;;  %v4873_v58 = vmul.f32 %v4605_v29, %v10319_v61  ;;  %v4607_v7 = vpop.f32.mrb[6].mxu0 }
 0xc61   : > { %v4876_v14 = vmul.f32 %v4607_v7, %v10316_v11  ;;  %v4609_v50 = vpop.f32.mrb[7].mxu0  ;;  %v4817_v0 = vadd.f32 %v10376_v49, %v4805_v23  ;;  %v4839_v53 = vadd.f32 %v10385_v10, %v4833_v8  ;;  %v10431_v33 = vadd.f32 %v10367_v42, %v4838_v41 }
 0xc62   : > { %v4870_v18 = vadd.f32 %v4868_v46, %v4866_v38  ;;  %v4871_v55 = vadd.f32 %v4869_v13, %v4867_v3  ;;  %v4877_v56 = vmul.f32 %v4609_v50, %v10322_v21  ;;  %v4795_v4 = vadd.f32 %v10372_v40, %v4789_v5 }
 0xc63   : > { %v10435_v20 = vadd.f32 %v4849_v1, %v4817_v0  ;;  %v10438_v39 = vadd.f32 %v10387_v34, %v4839_v53  ;;  %v4821_v27 = vmul.f32 0.18257418, %v10399_v54  ;;  %v4845_v35 = vadd.f32 %v4843_v2, %v4811_v37 }
 0xc64   : > { %v4874_v23 = vadd.f32 %v4872_v12, %v4870_v18  ;;  %v4875_v49 = vadd.f32 %v4873_v58, %v4871_v55  ;;  %v10442_v10 = vadd.f32 %v10391_v17, %v4794_v19  ;;  %v10445_v42 = vadd.f32 %v10396_v63, %v4844_v43 }
 0xc65   : > { %11631 = vst [vmem:[#allocation31_spill] sm:$0xff] %v10438_v39  ;;  %v10447_v57 = vadd.f32 %v4821_v27, %v4795_v4  ;;  %v10449_v45 = vadd.f32 %v4861_v15, %v4845_v35  ;;  %v4799_v40 = vadd.f32 %v10374_v9, %v10361_v16  ;;  %v4825_v34 = vmul.f32 -0.31622776, %v10399_v54 }
 0xc66   : > { %11632 = vst [vmem:[#allocation33_spill] sm:$0xff] %v10442_v10  ;;  %11633 = vst [vmem:[#allocation20_spill] sm:$0xff] %v10445_v42  ;;  %v4878_v6 = vadd.f32 %v4876_v14, %v4874_v23  ;;  %v4879_v59 = vadd.f32 %v4877_v56, %v4875_v49  ;;  %v4613_v2 = vpop.f32.mrb[8].mxu0  ;;  %v10456_v62 = vadd.f32 %v10394_v26, %v10370_v31 }
 0xc67   : > { %11634 = vst [vmem:[#allocation42_spill] sm:$0xff] %v10447_v57  ;;  %11635 = vst [vmem:[#allocation44_spill] sm:$0xff] %v10449_v45  ;;  %v4880_v17 = vmul.f32 %v4613_v2, %v10325_v28  ;;  %v4615_v63 = vpop.f32.mrb[9].mxu0  ;;  %v10459_v19 = vadd.f32 %v4825_v34, %v4799_v40 }
 0xc68   : > { %11636 = vst [vmem:[#allocation36_spill] sm:$0xff] %v10456_v62  ;;  %v4881_v15 = vmul.f32 %v4615_v63, %v10328_v48  ;;  %v4617_v43 = vpop.f32.mrb[10].mxu0 }
 0xc69   : > { %11637 = vst [vmem:[#allocation48_spill] sm:$0xff] %v10459_v19  ;;  %v10462_v1 = vadd.f32 %v4880_v17, %v4878_v6  ;;  %v4902_v16 = vmul.f32 %v4617_v43, %v10307_v36  ;;  %v4926_v9 = vmul.f32 %v4617_v43, %v10313_v60  ;;  %v4950_v54 = vmul.f32 %v4617_v43, %v10316_v11  ;;  %v4619_v41 = vpop.f32.mrb[11].mxu0 }
 0xc6a   : > { %v10467_v5 = vadd.f32 %v4881_v15, %v4879_v59  ;;  %v4903_v26 = vmul.f32 %v4619_v41, %v10310_v47  ;;  %v4927_v31 = vmul.f32 %v4619_v41, %v10319_v61  ;;  %v4951_v32 = vmul.f32 %v4619_v41, %v10322_v21 }
 0xc6b   : > { %v4904_v22 = vmul.f32 0.18257418, %v4902_v16  ;;  %v10472_v51 = vmul.f32 -0.18257418, %v4926_v9  ;;  %v10474_v37 = vmul.f32 0.36514837, %v4950_v54 }
 0xc6c   : > { %v4905_v8 = vmul.f32 0.18257418, %v4903_v26  ;;  %v10476_v46 = vmul.f32 -0.18257418, %v4927_v31  ;;  %v10488_v18 = vmul.f32 0.36514837, %v4951_v32 }
 0xc6d   : > { %v11638_v32 = vld [vmem:[#allocation29_spill] sm:$0xff] }
 0xc6e   : > { %v4623_v13 = vpop.f32.mrb[12].mxu0 }
 0xc6f   : > { %v4884_v29 = vmul.f32 %v4623_v13, %v10299_v52  ;;  %v4932_v38 = vmul.f32 %v4623_v13, %v10313_v60  ;;  %v4956_v3 = vmul.f32 %v4623_v13, %v10316_v11  ;;  %v4968_v12 = vmul.f32 %v4623_v13, %v10325_v28  ;;  %v4625_v58 = vpop.f32.mrb[13].mxu0  ;;  %v11639_v13 = vld [vmem:[#allocation30_spill] sm:$0xff] }
 0xc70   : > { %v4885_v7 = vmul.f32 %v4625_v58, %v10302_v24  ;;  %v4933_v14 = vmul.f32 %v4625_v58, %v10319_v61  ;;  %v4957_v50 = vmul.f32 %v4625_v58, %v10322_v21  ;;  %v10486_v0 = vmul.f32 %v4625_v58, %v10328_v48  ;;  %v4627_v53 = vpop.f32.mrb[14].mxu0 }
 0xc71   : > { %v4886_v55 = vmul.f32 -0.18257418, %v4884_v29  ;;  %v4934_v56 = vmul.f32 0.18257418, %v4932_v38  ;;  %v4890_v4 = vmul.f32 %v4627_v53, %v10299_v52  ;;  %v10491_v27 = vmul.f32 -0.18257418, %v4956_v3 }
 0xc72   : > { %v10493_v35 = vmul.f32 -0.31622776, %v4968_v12  ;;  %v4887_v23 = vmul.f32 -0.18257418, %v4885_v7  ;;  %v4908_v49 = vmul.f32 %v4627_v53, %v10307_v36  ;;  %v10497_v34 = vmul.f32 0.18257418, %v4933_v14 }
 0xc73   : > { %v4888_v40 = vadd.f32 %v4886_v55, %v10282_v30  ;;  %v10499_v6 = vmul.f32 -0.18257418, %v4957_v50  ;;  %v4892_v59 = vmul.f32 0.18257418, %v4890_v4  ;;  %v4962_v63 = vmul.f32 %v4627_v53, %v10316_v11  ;;  %v4629_v43 = vpop.f32.mrb[15].mxu0 }
 0xc74   : > { %v4889_v2 = vadd.f32 %v4887_v23, %v10287_v44  ;;  %v4910_v17 = vmul.f32 -0.18257418, %v4908_v49  ;;  %v4974_v15 = vmul.f32 %v4627_v53, %v10325_v28  ;;  %v4891_v16 = vmul.f32 %v4629_v43, %v10302_v24  ;;  %v11641_v49 = vld [vmem:[#allocation34_spill] sm:$0xff] }
 0xc75   : > { %v4909_v9 = vmul.f32 %v4629_v43, %v10310_v47  ;;  %v4963_v54 = vmul.f32 %v4629_v43, %v10322_v21  ;;  %v4975_v30 = vmul.f32 %v4629_v43, %v10328_v48  ;;  %v4964_v41 = vmul.f32 -0.18257418, %v4962_v63  ;;  %v11642_v63 = vld [vmem:[#allocation9_spill] sm:$0xff] }
 0xc76   : > { %v4976_v26 = vmul.f32 0.31622776, %v4974_v15  ;;  %v4633_v31 = vpop.f32.mrb[16].mxu0  ;;  %v11640_v44 = vsub.f32 %v11638_v32, %v11639_v13  ;;  %v4906_v38 = vadd.f32 %v4904_v22, %v4888_v40  ;;  %v4893_v3 = vmul.f32 0.18257418, %v4891_v16  ;;  %v11645_v13 = vld [vmem:[#allocation19_spill] sm:$0xff] }
 0xc77   : > { %v4911_v12 = vmul.f32 -0.18257418, %v4909_v9  ;;  %v4965_v58 = vmul.f32 -0.18257418, %v4963_v54  ;;  %v4896_v7 = vmul.f32 %v4633_v31, %v10299_v52  ;;  %v10512_v14 = vmul.f32 0.31622776, %v4975_v30 }
 0xc78   : > { %v4894_v29 = vadd.f32 %v4892_v59, %v11640_v44  ;;  %v4914_v50 = vmul.f32 %v4633_v31, %v10307_v36  ;;  %v4938_v53 = vmul.f32 %v4633_v31, %v10313_v60  ;;  %v4635_v55 = vpop.f32.mrb[17].mxu0  ;;  %v4907_v4 = vadd.f32 %v4905_v8, %v4889_v2  ;;  %v11644_v31 = vld [vmem:[#allocation13_spill] sm:$0xff] }
 0xc79   : > { %v4898_v23 = vmul.f32 -0.36514837, %v4896_v7  ;;  %v11643_v15 = vsub.f32 %v11641_v49, %v11642_v63  ;;  %v4897_v22 = vmul.f32 %v4635_v55, %v10302_v24  ;;  %v4915_v40 = vmul.f32 %v4635_v55, %v10310_v47  ;;  %v4637_v59 = vpop.f32.mrb[18].mxu0 }
 0xc7a   : > { %v4916_v16 = vmul.f32 0.18257418, %v4914_v50  ;;  %v4940_v9 = vmul.f32 0.18257418, %v4938_v53  ;;  %v4939_v54 = vmul.f32 %v4635_v55, %v10319_v61  ;;  %v4920_v30 = vmul.f32 %v4637_v59, %v10307_v36  ;;  %v4639_v32 = vpop.f32.mrb[19].mxu0  ;;  %v11647_v50 = vld [vmem:[#allocation28_spill] sm:$0xff] }
 0xc7b   : > { %v4895_v43 = vadd.f32 %v4893_v3, %v11643_v15  ;;  %v11646_v8 = vsub.f32 %v11644_v31, %v11645_v13  ;;  %v4899_v44 = vmul.f32 -0.36514837, %v4897_v22  ;;  %v4917_v7 = vmul.f32 0.18257418, %v4915_v40  ;;  %v11648_v53 = vld [vmem:[#allocation12_spill] sm:$0xff] }
 0xc7c   : > { %v4944_v3 = vmul.f32 %v4637_v59, %v10313_v60  ;;  %v4918_v49 = vadd.f32 %v4916_v16, %v4894_v29  ;;  %v4942_v63 = vadd.f32 %v4940_v9, %v4906_v38  ;;  %v4941_v15 = vmul.f32 0.18257418, %v4939_v54 }
 0xc7d   : > { %v4900_v2 = vadd.f32 %v4898_v23, %v11646_v8  ;;  %v4922_v62 = vmul.f32 0.31622776, %v4920_v30  ;;  %v11649_v10 = vsub.f32 %v11647_v50, %v11648_v53  ;;  %v4919_v57 = vadd.f32 %v4917_v7, %v4895_v43  ;;  %v11651_v8 = vld [vmem:[#allocation32_spill] sm:$0xff] }
 0xc7e   : > { %v4946_v45 = vmul.f32 -0.31622776, %v4944_v3  ;;  %v4943_v39 = vadd.f32 %v4941_v15, %v4907_v4  ;;  %v4921_v31 = vmul.f32 %v4639_v32, %v10310_v47  ;;  %v4945_v23 = vmul.f32 %v4639_v32, %v10319_v61  ;;  %v4643_v22 = vpop.f32.mrb[20].mxu0 }
 0xc7f   : > { %v4912_v19 = vadd.f32 %v4910_v17, %v4900_v2  ;;  %v4901_v55 = vadd.f32 %v4899_v44, %v11649_v10  ;;  %v4924_v42 = vadd.f32 %v4922_v62, %v4918_v49  ;;  %v4980_v38 = vmul.f32 %v4643_v22, %v10299_v52  ;;  %v4645_v16 = vpop.f32.mrb[21].mxu0  ;;  %v11650_v62 = vld [vmem:[#allocation35_spill] sm:$0xff] }
 0xc80   : > { %v4948_v29 = vadd.f32 %v4946_v45, %v4942_v63  ;;  %v4923_v9 = vmul.f32 0.31622776, %v4921_v31  ;;  %v4947_v54 = vmul.f32 -0.31622776, %v4945_v23  ;;  %v4981_v10 = vmul.f32 %v4645_v16, %v10302_v24  ;;  %v4647_v43 = vpop.f32.mrb[22].mxu0 }
 0xc81   : > { %v4936_v40 = vadd.f32 %v4934_v56, %v4912_v19  ;;  %v4913_v59 = vadd.f32 %v4911_v12, %v4901_v55  ;;  %v4930_v17 = vadd.f32 %v10472_v51, %v4924_v42  ;;  %v4982_v30 = vadd.f32 %v4980_v38, %v11650_v62  ;;  %v4649_v32 = vpop.f32.mrb[23].mxu0 }
 0xc82   : > { %v4966_v4 = vadd.f32 %v4964_v41, %v4948_v29  ;;  %v4984_v13 = vmul.f32 %v4647_v43, %v10307_v36  ;;  %v4925_v56 = vadd.f32 %v4923_v9, %v4919_v57  ;;  %v4949_v12 = vadd.f32 %v4947_v54, %v4943_v39 }
 0xc83   : > { %v4937_v19 = vadd.f32 %v10497_v34, %v4913_v59  ;;  %v4960_v45 = vadd.f32 %v10491_v27, %v4930_v17  ;;  %v4983_v2 = vadd.f32 %v4981_v10, %v11651_v8  ;;  %v4985_v44 = vmul.f32 %v4649_v32, %v10310_v47  ;;  %v11654_v8 = vld [vmem:[#allocation44_spill] sm:$0xff] }
 0xc84   : > { %v4978_v42 = vadd.f32 %v4976_v26, %v4966_v4  ;;  %v4986_v51 = vadd.f32 %v4984_v13, %v4982_v30  ;;  %v4931_v41 = vadd.f32 %v10476_v46, %v4925_v56  ;;  %v4967_v3 = vadd.f32 %v4965_v58, %v4949_v12  ;;  %v11652_v56 = vld [vmem:[#allocation20_spill] sm:$0xff]  ;;  %v11653_v12 = vld [vmem:[#allocation31_spill] sm:$0xff] }
 0xc85   : > { %v4955_v7 = vadd.f32 %v10488_v18, %v4937_v19  ;;  %v4972_v49 = vadd.f32 %v10493_v35, %v4960_v45  ;;  %v4954_v63 = vadd.f32 %v10474_v37, %v4936_v40  ;;  %v4971_v34 = vmul.f32 -0.31622776, %v10486_v0 }
 0xc86   : > { %v4987_v27 = vadd.f32 %v4985_v44, %v4983_v2  ;;  %v4653_v57 = vpop.f32.mrb[24].mxu0  ;;  %v4961_v39 = vadd.f32 %v10499_v6, %v4931_v41  ;;  %v4979_v15 = vadd.f32 %v10512_v14, %v4967_v3  ;;  %v11655_v2 = vld [vmem:[#allocation42_spill] sm:$0xff] }
 0xc87   : > { %v5031_v26 = vpack.c.bf16 %v4972_v49, %v10462_v1  ;;  %v5033_v50 = vpack.c.bf16 %v4954_v63, %v4978_v42  ;;  %v4988_v18 = vmul.f32 %v4653_v57, %v10313_v60  ;;  %v4655_v53 = vpop.f32.mrb[25].mxu0  ;;  %v11656_v42 = vld [vmem:[#allocation33_spill] sm:$0xff]  ;;  %v7485_v49 = vld [vmem:[%s11445_s1 + $0xa0] sm:$0xff]   ;;  %v11659_v63 = vmov 0  }
 0xc88   : > { %v4989_v46 = vmul.f32 %v4655_v53, %v10319_v61  ;;  %v4657_v58 = vpop.f32.mrb[26].mxu0  ;;  %v4973_v35 = vadd.f32 %v4971_v34, %v4961_v39  ;;  %v5034_v55 = vpack.c.bf16 %v4955_v7, %v4979_v15  ;;  %v7486_v34 = vld [vmem:[%s11445_s1 + $0xa8] sm:$0xff]   ;;  %v7488_v57 = vld [vmem:[%s11445_s1 + $0xb8] sm:$0xff]   ;;  %v7489_v39 = vld [vmem:[%s11445_s1 + $0xc0] sm:$0xff]   ;;  %v5055_v15 = vpop.permute.xlu1 %5054 }
 0xc89   : > { %v4990_v37 = vadd.f32 %v4988_v18, %v4986_v51  ;;  %v4992_v0 = vmul.f32 %v4657_v58, %v10316_v11  ;;  %v4659_v31 = vpop.f32.mrb[27].mxu0  ;;  %v5060_v18 = vpop.permute.xlu0 %5059 }
 0xc8a   : > { %v4991_v23 = vadd.f32 %v4989_v46, %v4987_v27  ;;  %v5032_v6 = vpack.c.bf16 %v4973_v35, %v10467_v5  ;;  %v4993_v1 = vmul.f32 %v4659_v31, %v10322_v21  ;;  %v7487_v27 = vld [vmem:[%s11445_s1 + $0xb0] sm:$0xff]  }
 0xc8b   : > { %v4994_v22 = vadd.f32 %v4992_v0, %v4990_v37 }
 0xc8c   : > { %5142 = vmatprep.subr.bf16.mxu1 %v5032_v6  ;;  %v4995_v14 = vadd.f32 %v4993_v1, %v4991_v23  ;;  %v5065_v6 = vpop.permute.xlu1 %5064 }
 0xc8d   : > { %5143 = vmatpush1.bf16.msra.mxu1 %v5031_v26 }
 0xc8e   : > { %5144 = vmatprep.subr.bf16.mxu1 %v5034_v55  ;;  %v4663_v40 = vpop.f32.mrb[28].mxu0 }
 0xc8f   : > { %v4996_v59 = vmul.f32 %v4663_v40, %v10325_v28  ;;  %v4665_v29 = vpop.f32.mrb[29].mxu0 }
 0xc90   : > { %v4997_v38 = vmul.f32 %v4665_v29, %v10328_v48  ;;  %v4667_v16 = vpop.f32.mrb[30].mxu0 }
 0xc91   : > { %5145 = vmatpush1.bf16.msra.mxu1 %v5033_v50  ;;  %v4998_v17 = vadd.f32 %v4996_v59, %v4994_v22  ;;  %v5000_v9 = vmul.f32 %v4667_v16, %v10299_v52  ;;  %v5004_v5 = vmul.f32 %v4667_v16, %v10307_v36  ;;  %v5008_v54 = vmul.f32 %v4667_v16, %v10313_v60  ;;  %v4669_v10 = vpop.f32.mrb[31].mxu0  ;;  %v5070_v22 = vpop.permute.xlu0 %5069 }
 0xc92   : > { %v4999_v43 = vadd.f32 %v4997_v38, %v4995_v14  ;;  %v5012_v4 = vmul.f32 %v4667_v16, %v10316_v11  ;;  %v5016_v62 = vmul.f32 %v4667_v16, %v10325_v28  ;;  %v5001_v30 = vmul.f32 %v4669_v10, %v10302_v24 }
 0xc93   : > { %v5005_v13 = vmul.f32 %v4669_v10, %v10310_v47  ;;  %v5009_v32 = vmul.f32 %v4669_v10, %v10319_v61  ;;  %v5013_v19 = vmul.f32 %v4669_v10, %v10322_v21  ;;  %v5017_v52 = vmul.f32 %v4669_v10, %v10328_v48  ;;  %v11657_v21 = vld [vmem:[#allocation48_spill] sm:$0xff] }
 0xc94   : > { %v5003_v36 = vadd.f32 %v5001_v30, %v10435_v20  ;;  %v5002_v60 = vadd.f32 %v5000_v9, %v10416_v25  ;;  %v5006_v45 = vadd.f32 %v5004_v5, %v10431_v33  ;;  %v5010_v11 = vadd.f32 %v5008_v54, %v11652_v56  ;;  %v11658_v48 = vld [vmem:[#allocation36_spill] sm:$0xff]  ;;  %v5075_v54 = vpop.permute.xlu1 %5074 }
 0xc95   : > { %v5007_v28 = vadd.f32 %v5005_v13, %v11653_v12  ;;  %v5011_v24 = vadd.f32 %v5009_v32, %v11654_v8  ;;  %v5015_v47 = vadd.f32 %v5013_v19, %v11655_v2  ;;  %v5014_v61 = vadd.f32 %v5012_v4, %v11656_v42 }
 0xc96   : > { %v5035_v51 = vpack.c.bf16 %v5006_v45, %v5002_v60  ;;  %v5019_v44 = vadd.f32 %v5017_v52, %v11657_v21  ;;  %v5018_v7 = vadd.f32 %v5016_v62, %v11658_v48 }
 0xc97   : > { %v5036_v20 = vpack.c.bf16 %v5007_v28, %v5003_v36  ;;  %v5038_v41 = vpack.c.bf16 %v5015_v47, %v5011_v24  ;;  %v5037_v25 = vpack.c.bf16 %v5014_v61, %v5010_v11 }
 0xc98   : > { %v5040_v3 = vpack.c.bf16 %v4999_v43, %v5019_v44  ;;  %v5039_v33 = vpack.c.bf16 %v4998_v17, %v5018_v7  ;;  %v5080_v43 = vpop.permute.xlu0 %5079  ;;  %v5085_v45 = vpop.permute.xlu1 %5084 }
 0xc99   : > { %5146 = vmatprep.subr.bf16.mxu1 %v5036_v20 }
 0xc9a   : > { %5147 = vmatpush1.bf16.msra.mxu1 %v5035_v51 }
 0xc9b   : > { %5148 = vmatprep.subr.bf16.mxu1 %v5038_v41 }
 0xc9c   : > { %v5090_v11 = vpop.permute.xlu0 %5089  ;;  %v5095_v21 = vpop.permute.xlu1 %5094 }
 0xc9e   : > { %5149 = vmatpush1.bf16.msra.mxu1 %v5037_v25 }
 0xc9f   : > { %5150 = vmatprep.subr.bf16.mxu1 %v5040_v3 }
 0xca0   : > { %v5100_v48 = vpop.permute.xlu0 %5099 }
 0xca2   : > { %5151 = vmatpush1.bf16.msra.mxu1 %v5039_v33 }
 0xca5   : > { %7209 = vmatmul.mubr.msk.bf16.vlgmr.msra.gmra.mrb[152].mxu1 %vm463_vm0, %v7485_v49 }
 0xca6   : > { %5184 = vmatprep.mubr.bf16.mxu1 %v11659_v63 }
 0xcad   : > { %7210 = vmatmul.mubr.msk.bf16.gmra.mrb[156].mxu1 %vm463_vm0, %v7486_v34 }
 0xcae   : > { %5194 = vmatprep.mubr.bf16.mxu1 %v11659_v63 }
 0xcb5   : > { %7211 = vmatmul.mubr.msk.bf16.gmra.mrb[160].mxu1 %vm463_vm0, %v7487_v27  ;;  %v7490_v27 = vld [vmem:[%s11447_s3 + $0xf0] sm:$0xff]  }
 0xcb6   : > { %5204 = vmatprep.mubr.bf16.mxu1 %v11659_v63 }
 0xcbd   : > { %7212 = vmatmul.mubr.msk.bf16.gmra.mrb[164].mxu1 %vm463_vm0, %v7488_v57  ;;  %v7491_v57 = vld [vmem:[%s11447_s3 + $0xf8] sm:$0xff]  }
 0xcbe   : > { %5214 = vmatprep.mubr.bf16.mxu1 %v11659_v63 }
 0xcc5   : > { %7213 = vmatmul.mubr.msk.bf16.gmra.mrb[168].mxu1 %vm463_vm0, %v7489_v39  ;;  %v7492_v39 = vld [vmem:[%s11447_s3 + $0x100] sm:$0xff]  }
 0xcc6   : > { %5489 = vmatprep.mubr.bf16.mxu1 %v11659_v63 }
 0xd78   : > { %v5176_v26 = vpop.f32.mrb[152].mxu1 }
 0xd79   : > { %v5178_v50 = vpop.f32.mrb[153].mxu1  ;;  %v5177_v46 = vadd.f32 %v5176_v26, %v5055_v15  ;;  %v7493_v26 = vld [vmem:[%s11447_s3 + $0x108] sm:$0xff]  }
 0xd7a   : > { %v5180_v53 = vpop.f32.mrb[154].mxu1  ;;  %v5179_v55 = vadd.f32 %v5178_v50, %v5055_v15  ;;  %v7494_v15 = vld [vmem:[%s11447_s3 + $0x110] sm:$0xff]   ;;  %v7495_v50 = vld [vmem:[%s11447_s3 + $0x118] sm:$0xff]  }
 0xd7b   : > { %v5181_v58 = vadd.f32 %v5180_v53, %v5060_v18  ;;  %v5182_v35 = vpop.f32.mrb[155].mxu1  ;;  %v7497_v53 = vld [vmem:[%s11447_s3 + $0x128] sm:$0xff]  }
 0xd7c   : > { %v5183_v37 = vadd.f32 %v5182_v35, %v5060_v18  ;;  %v7496_v18 = vld [vmem:[%s11447_s3 + $0x120] sm:$0xff]  }
 0xd7d   : > { %v5246_v0 = vpack.c.bf16 %v5181_v58, %v5177_v46  ;;  %v7498_v46 = vld [vmem:[%s11447_s3 + $0x130] sm:$0xff]   ;;  %v7499_v58 = vld [vmem:[%s11447_s3 + $0x138] sm:$0xff]  }
 0xd7e   : > { %v5247_v31 = vpack.c.bf16 %v5183_v37, %v5179_v55 }
 0xd80   : > { %v5186_v23 = vpop.f32.mrb[156].mxu1  ;;  %5457 = vmatprep.subr.bf16.mxu1 %v5247_v31 }
 0xd81   : > { %v5188_v1 = vpop.f32.mrb[157].mxu1  ;;  %5458 = vmatpush1.bf16.msra.mxu1 %v5246_v0  ;;  %v5187_v40 = vadd.f32 %v5186_v23, %v5065_v6 }
 0xd82   : > { %v5190_v14 = vpop.f32.mrb[158].mxu1  ;;  %v5189_v38 = vadd.f32 %v5188_v1, %v5065_v6 }
 0xd83   : > { %v5191_v59 = vadd.f32 %v5190_v14, %v5070_v22  ;;  %v5192_v29 = vpop.f32.mrb[159].mxu1 }
 0xd84   : > { %v5193_v16 = vadd.f32 %v5192_v29, %v5070_v22 }
 0xd85   : > { %v5248_v17 = vpack.c.bf16 %v5191_v59, %v5187_v40 }
 0xd86   : > { %v5249_v9 = vpack.c.bf16 %v5193_v16, %v5189_v38 }
 0xd88   : > { %v5196_v5 = vpop.f32.mrb[160].mxu1  ;;  %5459 = vmatprep.subr.bf16.mxu1 %v5249_v9 }
 0xd89   : > { %v5198_v10 = vpop.f32.mrb[161].mxu1  ;;  %5460 = vmatpush1.bf16.msra.mxu1 %v5248_v17  ;;  %v5197_v62 = vadd.f32 %v5196_v5, %v5075_v54 }
 0xd8a   : > { %v5200_v4 = vpop.f32.mrb[162].mxu1  ;;  %v5199_v32 = vadd.f32 %v5198_v10, %v5075_v54 }
 0xd8b   : > { %v5201_v30 = vadd.f32 %v5200_v4, %v5080_v43  ;;  %v5202_v13 = vpop.f32.mrb[163].mxu1  ;;  %v5330_v4 = vpop.permute.xlu1 %5329 }
 0xd8c   : > { %v5203_v19 = vadd.f32 %v5202_v13, %v5080_v43 }
 0xd8d   : > { %v5250_v52 = vpack.c.bf16 %v5201_v30, %v5197_v62  ;;  %v5335_v30 = vpop.permute.xlu0 %5334 }
 0xd8e   : > { %v5251_v36 = vpack.c.bf16 %v5203_v19, %v5199_v32 }
 0xd90   : > { %v5206_v60 = vpop.f32.mrb[164].mxu1  ;;  %5461 = vmatprep.subr.bf16.mxu1 %v5251_v36 }
 0xd91   : > { %v5208_v56 = vpop.f32.mrb[165].mxu1  ;;  %5462 = vmatpush1.bf16.msra.mxu1 %v5250_v52  ;;  %v5207_v28 = vadd.f32 %v5206_v60, %v5085_v45 }
 0xd92   : > { %v5210_v12 = vpop.f32.mrb[166].mxu1  ;;  %v5209_v2 = vadd.f32 %v5208_v56, %v5085_v45 }
 0xd93   : > { %v5211_v8 = vadd.f32 %v5210_v12, %v5090_v11  ;;  %v5212_v24 = vpop.f32.mrb[167].mxu1  ;;  %v5340_v12 = vpop.permute.xlu1 %5339 }
 0xd94   : > { %v5213_v47 = vadd.f32 %v5212_v24, %v5090_v11 }
 0xd95   : > { %v5252_v42 = vpack.c.bf16 %v5211_v8, %v5207_v28  ;;  %v5345_v8 = vpop.permute.xlu0 %5344 }
 0xd96   : > { %v5253_v61 = vpack.c.bf16 %v5213_v47, %v5209_v2 }
 0xd98   : > { %v5216_v51 = vpop.f32.mrb[168].mxu1  ;;  %5463 = vmatprep.subr.bf16.mxu1 %v5253_v61 }
 0xd99   : > { %v5218_v44 = vpop.f32.mrb[169].mxu1  ;;  %5464 = vmatpush1.bf16.msra.mxu1 %v5252_v42  ;;  %v5217_v20 = vadd.f32 %v5216_v51, %v5095_v21 }
 0xd9a   : > { %v5220_v7 = vpop.f32.mrb[170].mxu1  ;;  %v5219_v3 = vadd.f32 %v5218_v44, %v5095_v21 }
 0xd9b   : > { %v5221_v41 = vadd.f32 %v5220_v7, %v5100_v48  ;;  %v5222_v25 = vpop.f32.mrb[171].mxu1  ;;  %v5350_v7 = vpop.permute.xlu1 %5349 }
 0xd9c   : > { %v5223_v33 = vadd.f32 %v5222_v25, %v5100_v48 }
 0xd9d   : > { %v5254_v49 = vpack.c.bf16 %v5221_v41, %v5217_v20  ;;  %v5355_v41 = vpop.permute.xlu0 %5354 }
 0xd9e   : > { %v5255_v34 = vpack.c.bf16 %v5223_v33, %v5219_v3 }
 0xda0   : > { %5465 = vmatprep.subr.bf16.mxu1 %v5255_v34 }
 0xda1   : > { %5466 = vmatpush1.bf16.msra.mxu1 %v5254_v49 }
 0xda4   : > { %7264 = vmatmul.mubr.msk.bf16.vlgmr.msra.gmra.mrb[172].mxu1 %vm463_vm0, %v7490_v27 }
 0xda5   : > { %5499 = vmatprep.mubr.bf16.mxu1 %v11659_v63 }
 0xdac   : > { %7265 = vmatmul.mubr.msk.bf16.gmra.mrb[176].mxu1 %vm463_vm0, %v7491_v57 }
 0xdad   : > { %5509 = vmatprep.mubr.bf16.mxu1 %v11659_v63 }
 0xdb4   : > { %7266 = vmatmul.mubr.msk.bf16.gmra.mrb[180].mxu1 %vm463_vm0, %v7492_v39 }
 0xdb5   : > { %5519 = vmatprep.mubr.bf16.mxu1 %v11659_v63 }
 0xdbc   : > { %7267 = vmatmul.mubr.msk.bf16.gmra.mrb[184].mxu1 %vm463_vm0, %v7493_v26 }
 0xdbd   : > { %5529 = vmatprep.mubr.bf16.mxu1 %v11659_v63 }
 0xdc4   : > { %7268 = vmatmul.mubr.msk.bf16.gmra.mrb[188].mxu1 %vm463_vm0, %v7494_v15  ;;  %v5360_v15 = vpop.permute.xlu1 %5359 }
 0xdc5   : > { %5539 = vmatprep.mubr.bf16.mxu1 %v11659_v63 }
 0xdcc   : > { %7269 = vmatmul.mubr.msk.bf16.gmra.mrb[192].mxu1 %vm463_vm0, %v7495_v50 }
 0xdcd   : > { %5549 = vmatprep.mubr.bf16.mxu1 %v11659_v63 }
 0xdd4   : > { %7270 = vmatmul.mubr.msk.bf16.gmra.mrb[196].mxu1 %vm463_vm0, %v7496_v18  ;;  %v5365_v18 = vpop.permute.xlu0 %5364 }
 0xdd5   : > { %5559 = vmatprep.mubr.bf16.mxu1 %v11659_v63 }
 0xddc   : > { %7271 = vmatmul.mubr.msk.bf16.gmra.mrb[200].mxu1 %vm463_vm0, %v7497_v53 }
 0xddd   : > { %5569 = vmatprep.mubr.bf16.mxu1 %v11659_v63 }
 0xde4   : > { %7272 = vmatmul.mubr.msk.bf16.gmra.mrb[204].mxu1 %vm463_vm0, %v7498_v46 }
 0xde5   : > { %5579 = vmatprep.mubr.bf16.mxu1 %v11659_v63 }
 0xdec   : > { %7273 = vmatmul.mubr.msk.bf16.gmra.mrb[208].mxu1 %vm463_vm0, %v7499_v58 }
 0xded   : > { %5832 = vmatprep.mubr.bf16.mxu1 %v11659_v63 }
 0xe77   : > { %v10651_v35 = vpop.f32.mrb[172].mxu1 }
 0xe78   : > { %v10653_v55 = vpop.f32.mrb[173].mxu1 }
 0xe79   : > { %v10655_v37 = vpop.f32.mrb[174].mxu1 }
 0xe7a   : > { %v10657_v0 = vpop.f32.mrb[175].mxu1 }
 0xe7f   : > { %v10659_v31 = vpop.f32.mrb[176].mxu1 }
 0xe80   : > { %v10661_v23 = vpop.f32.mrb[177].mxu1 }
 0xe81   : > { %v10663_v6 = vpop.f32.mrb[178].mxu1 }
 0xe82   : > { %v10665_v1 = vpop.f32.mrb[179].mxu1 }
 0xe87   : > { %v10667_v22 = vpop.f32.mrb[180].mxu1 }
 0xe88   : > { %v10669_v14 = vpop.f32.mrb[181].mxu1 }
 0xe89   : > { %v10671_v40 = vpop.f32.mrb[182].mxu1 }
 0xe8a   : > { %v10673_v59 = vpop.f32.mrb[183].mxu1 }
 0xe8f   : > { %v10675_v29 = vpop.f32.mrb[184].mxu1 }
 0xe90   : > { %v10677_v38 = vpop.f32.mrb[185].mxu1 }
 0xe91   : > { %v10679_v16 = vpop.f32.mrb[186].mxu1 }
 0xe92   : > { %v10681_v17 = vpop.f32.mrb[187].mxu1 }
 0xe97   : > { %v10683_v9 = vpop.f32.mrb[188].mxu1 }
 0xe98   : > { %v10685_v5 = vpop.f32.mrb[189].mxu1 }
 0xe99   : > { %v10687_v54 = vpop.f32.mrb[190].mxu1 }
 0xe9a   : > { %v10689_v10 = vpop.f32.mrb[191].mxu1 }
 0xe9f   : > { %v5541_v43 = vpop.f32.mrb[192].mxu1 }
 0xea0   : > { %v5543_v62 = vpop.f32.mrb[193].mxu1  ;;  %v5542_v32 = vadd.f32 %v5541_v43, %v5330_v4 }
 0xea1   : > { %v5545_v13 = vpop.f32.mrb[194].mxu1  ;;  %v5544_v36 = vadd.f32 %v5543_v62, %v5330_v4 }
 0xea2   : > { %v5546_v19 = vadd.f32 %v5545_v13, %v5335_v30  ;;  %v5547_v52 = vpop.f32.mrb[195].mxu1 }
 0xea3   : > { %v5548_v60 = vadd.f32 %v5547_v52, %v5335_v30 }
 0xea4   : > { %v5630_v45 = vpack.c.bf16 %v5546_v19, %v5542_v32  ;;  %v5370_v19 = vpop.permute.xlu1 %5369 }
 0xea5   : > { %v5631_v56 = vpack.c.bf16 %v5548_v60, %v5544_v36  ;;  %v5375_v36 = vpop.permute.xlu0 %5374 }
 0xea7   : > { %v5551_v11 = vpop.f32.mrb[196].mxu1  ;;  %5800 = vmatprep.subr.bf16.mxu1 %v5631_v56 }
 0xea8   : > { %v5553_v28 = vpop.f32.mrb[197].mxu1  ;;  %5801 = vmatpush1.bf16.msra.mxu1 %v5630_v45  ;;  %v5552_v2 = vadd.f32 %v5551_v11, %v5340_v12 }
 0xea9   : > { %v5555_v24 = vpop.f32.mrb[198].mxu1  ;;  %v5554_v61 = vadd.f32 %v5553_v28, %v5340_v12 }
 0xeaa   : > { %v5556_v47 = vadd.f32 %v5555_v24, %v5345_v8  ;;  %v5557_v42 = vpop.f32.mrb[199].mxu1 }
 0xeab   : > { %v5558_v51 = vadd.f32 %v5557_v42, %v5345_v8  ;;  %v7502_v42 = vld [vmem:[%s11450_s6 + $0x10] sm:$0xff]  }
 0xeac   : > { %v5632_v21 = vpack.c.bf16 %v5556_v47, %v5552_v2  ;;  %v7500_v2 = vld [vmem:[%s11450_s6] sm:$0xff]   ;;  %v7501_v47 = vld [vmem:[%s11450_s6 + $0x8] sm:$0xff]  }
 0xead   : > { %v5633_v44 = vpack.c.bf16 %v5558_v51, %v5554_v61  ;;  %v7503_v61 = vld [vmem:[%s11450_s6 + $0x18] sm:$0xff]   ;;  %v7504_v51 = vld [vmem:[%s11450_s6 + $0x20] sm:$0xff]  }
 0xeaf   : > { %v5561_v48 = vpop.f32.mrb[200].mxu1  ;;  %5802 = vmatprep.subr.bf16.mxu1 %v5633_v44  ;;  %v7506_v44 = vld [vmem:[%s11450_s6 + $0x30] sm:$0xff]  }
 0xeb0   : > { %v5563_v20 = vpop.f32.mrb[201].mxu1  ;;  %5803 = vmatpush1.bf16.msra.mxu1 %v5632_v21  ;;  %v5562_v3 = vadd.f32 %v5561_v48, %v5350_v7  ;;  %v7505_v21 = vld [vmem:[%s11450_s6 + $0x28] sm:$0xff]   ;;  %v7507_v48 = vld [vmem:[%s11450_s6 + $0x38] sm:$0xff]  }
 0xeb1   : > { %v5565_v25 = vpop.f32.mrb[202].mxu1  ;;  %v5564_v34 = vadd.f32 %v5563_v20, %v5350_v7  ;;  %v7508_v7 = vld [vmem:[%s11450_s6 + $0x40] sm:$0xff]   ;;  %v7509_v20 = vld [vmem:[%s11450_s6 + $0x48] sm:$0xff]  }
 0xeb2   : > { %v5566_v33 = vadd.f32 %v5565_v25, %v5355_v41  ;;  %v5567_v49 = vpop.f32.mrb[203].mxu1  ;;  %v7511_v25 = vld [vmem:[%s11450_s6 + $0x58] sm:$0xff]  }
 0xeb3   : > { %v5568_v27 = vadd.f32 %v5567_v49, %v5355_v41  ;;  %v7510_v41 = vld [vmem:[%s11450_s6 + $0x50] sm:$0xff]  }
 0xeb4   : > { %v5634_v57 = vpack.c.bf16 %v5566_v33, %v5562_v3  ;;  %v7512_v3 = vld [vmem:[%s11450_s6 + $0x60] sm:$0xff]   ;;  %v7513_v33 = vld [vmem:[%s11450_s6 + $0x68] sm:$0xff]   ;;  %v7514_v49 = vld [vmem:[%s11450_s6 + $0x70] sm:$0xff]  }
 0xeb5   : > { %v5635_v39 = vpack.c.bf16 %v5568_v27, %v5564_v34  ;;  %v7515_v34 = vld [vmem:[%s11450_s6 + $0x78] sm:$0xff]   ;;  %v7516_v27 = vld [vmem:[%s11450_s6 + $0x80] sm:$0xff]  }
 0xeb7   : > { %v5571_v26 = vpop.f32.mrb[204].mxu1  ;;  %5804 = vmatprep.subr.bf16.mxu1 %v5635_v39  ;;  %v7518_v39 = vld [vmem:[%s11450_s6 + $0x90] sm:$0xff]  }
 0xeb8   : > { %v5573_v50 = vpop.f32.mrb[205].mxu1  ;;  %5805 = vmatpush1.bf16.msra.mxu1 %v5634_v57  ;;  %v5572_v46 = vadd.f32 %v5571_v26, %v5360_v15  ;;  %v7517_v57 = vld [vmem:[%s11450_s6 + $0x88] sm:$0xff]   ;;  %v7519_v26 = vld [vmem:[%s11450_s6 + $0x98] sm:$0xff]  }
 0xeb9   : > { %v5575_v53 = vpop.f32.mrb[206].mxu1  ;;  %v5574_v4 = vadd.f32 %v5573_v50, %v5360_v15  ;;  %v5290_v15 = vpop.permute.xlu1 %5289 }
 0xeba   : > { %v5576_v58 = vadd.f32 %v5575_v53, %v5365_v18  ;;  %v5577_v43 = vpop.f32.mrb[207].mxu1 }
 0xebb   : > { %v5578_v62 = vadd.f32 %v5577_v43, %v5365_v18 }
 0xebc   : > { %v5636_v30 = vpack.c.bf16 %v5576_v58, %v5572_v46 }
 0xebd   : > { %v5637_v13 = vpack.c.bf16 %v5578_v62, %v5574_v4  ;;  %v5280_v50 = vpop.permute.xlu1 %5279 }
 0xebe   : > { %v10791_v18 = vadd.f32 %v10651_v35, %v5280_v50  ;;  %v10794_v53 = vadd.f32 %v10653_v55, %v5280_v50 }
 0xebf   : > { %v5581_v32 = vpop.f32.mrb[208].mxu1  ;;  %5806 = vmatprep.subr.bf16.mxu1 %v5637_v13 }
 0xec0   : > { %v5583_v52 = vpop.f32.mrb[209].mxu1  ;;  %5807 = vmatpush1.bf16.msra.mxu1 %v5636_v30  ;;  %v5582_v45 = vadd.f32 %v5581_v32, %v5370_v19 }
 0xec1   : > { %v5585_v60 = vpop.f32.mrb[210].mxu1  ;;  %v5584_v12 = vadd.f32 %v5583_v52, %v5370_v19  ;;  %v5285_v19 = vpop.permute.xlu0 %5284 }
 0xec2   : > { %v5586_v56 = vadd.f32 %v5585_v60, %v5375_v36  ;;  %v5587_v11 = vpop.f32.mrb[211].mxu1  ;;  %v10801_v35 = vadd.f32 %v10655_v37, %v5285_v19  ;;  %v10804_v55 = vadd.f32 %v10657_v0, %v5285_v19  ;;  %v10807_v60 = vadd.f32 %v10659_v31, %v5290_v15 }
 0xec3   : > { %v5588_v28 = vadd.f32 %v5587_v11, %v5375_v36  ;;  %v10811_v11 = vadd.f32 %v10661_v23, %v5290_v15 }
 0xec4   : > { %v5638_v8 = vpack.c.bf16 %v5586_v56, %v5582_v45 }
 0xec5   : > { %v5639_v24 = vpack.c.bf16 %v5588_v28, %v5584_v12 }
 0xec7   : > { %5808 = vmatprep.subr.bf16.mxu1 %v5639_v24 }
 0xec8   : > { %5809 = vmatpush1.bf16.msra.mxu1 %v5638_v8 }
 0xecb   : > { %7294 = vmatmul.mubr.msk.bf16.vlgmr.msra.gmra.mrb[212].mxu1 %vm463_vm0, %v7500_v2 }
 0xecc   : > { %5842 = vmatprep.mubr.bf16.mxu1 %v11659_v63 }
 0xed3   : > { %7295 = vmatmul.mubr.msk.bf16.gmra.mrb[216].mxu1 %vm463_vm0, %v7501_v47 }
 0xed4   : > { %5852 = vmatprep.mubr.bf16.mxu1 %v11659_v63 }
 0xedb   : > { %7296 = vmatmul.mubr.msk.bf16.gmra.mrb[220].mxu1 %vm463_vm0, %v7502_v42  ;;  %v5295_v42 = vpop.permute.xlu0 %5294 }
 0xedc   : > { %5862 = vmatprep.mubr.bf16.mxu1 %v11659_v63  ;;  %v10820_v23 = vadd.f32 %v10665_v1, %v5295_v42 }
 0xee3   : > { %7297 = vmatmul.mubr.msk.bf16.gmra.mrb[224].mxu1 %vm463_vm0, %v7503_v61  ;;  %v10817_v61 = vadd.f32 %v10663_v6, %v5295_v42 }
 0xee4   : > { %5872 = vmatprep.mubr.bf16.mxu1 %v11659_v63 }
 0xeeb   : > { %7298 = vmatmul.mubr.msk.bf16.gmra.mrb[228].mxu1 %vm463_vm0, %v7504_v51  ;;  %v5300_v51 = vpop.permute.xlu1 %5299 }
 0xeec   : > { %5882 = vmatprep.mubr.bf16.mxu1 %v11659_v63 }
 0xef3   : > { %7299 = vmatmul.mubr.msk.bf16.gmra.mrb[232].mxu1 %vm463_vm0, %v7505_v21 }
 0xef4   : > { %5892 = vmatprep.mubr.bf16.mxu1 %v11659_v63 }
 0xefb   : > { %7300 = vmatmul.mubr.msk.bf16.gmra.mrb[236].mxu1 %vm463_vm0, %v7506_v44  ;;  %v10823_v44 = vadd.f32 %v10667_v22, %v5300_v51 }
 0xefc   : > { %5902 = vmatprep.mubr.bf16.mxu1 %v11659_v63 }
 0xf03   : > { %7301 = vmatmul.mubr.msk.bf16.gmra.mrb[240].mxu1 %vm463_vm0, %v7507_v48 }
 0xf04   : > { %5912 = vmatprep.mubr.bf16.mxu1 %v11659_v63 }
 0xf0b   : > { %7302 = vmatmul.mubr.msk.bf16.gmra.mrb[244].mxu1 %vm463_vm0, %v7508_v7 }
 0xf0c   : > { %5922 = vmatprep.mubr.bf16.mxu1 %v11659_v63 }
 0xf13   : > { %7303 = vmatmul.mubr.msk.bf16.gmra.mrb[248].mxu1 %vm463_vm0, %v7509_v20  ;;  %v10827_v20 = vadd.f32 %v10669_v14, %v5300_v51 }
 0xf14   : > { %5932 = vmatprep.mubr.bf16.mxu1 %v11659_v63 }
 0xf1b   : > { %7304 = vmatmul.mubr.msk.bf16.gmra.mrb[252].mxu1 %vm463_vm0, %v7510_v41 }
 0xf1c   : > { %5942 = vmatprep.mubr.bf16.mxu1 %v11659_v63 }
 0xf23   : > { %7305 = vmatmul.mubr.msk.bf16.gmra.mrb[0].mxu1 %vm463_vm0, %v7511_v25 }
 0xf24   : > { %5952 = vmatprep.mubr.bf16.mxu1 %v11659_v63 }
 0xf2b   : > { %7306 = vmatmul.mubr.msk.bf16.gmra.mrb[4].mxu1 %vm463_vm0, %v7512_v3 }
 0xf2c   : > { %5962 = vmatprep.mubr.bf16.mxu1 %v11659_v63 }
 0xf33   : > { %7307 = vmatmul.mubr.msk.bf16.gmra.mrb[8].mxu1 %vm463_vm0, %v7513_v33 }
 0xf34   : > { %5972 = vmatprep.mubr.bf16.mxu1 %v11659_v63 }
 0xf3b   : > { %7308 = vmatmul.mubr.msk.bf16.gmra.mrb[12].mxu1 %vm463_vm0, %v7514_v49 }
 0xf3c   : > { %5982 = vmatprep.mubr.bf16.mxu1 %v11659_v63 }
 0xf43   : > { %7309 = vmatmul.mubr.msk.bf16.gmra.mrb[16].mxu1 %vm463_vm0, %v7515_v34 }
 0xf44   : > { %5992 = vmatprep.mubr.bf16.mxu1 %v11659_v63 }
 0xf4b   : > { %7310 = vmatmul.mubr.msk.bf16.gmra.mrb[20].mxu1 %vm463_vm0, %v7516_v27  ;;  %v5305_v27 = vpop.permute.xlu0 %5304 }
 0xf4c   : > { %6002 = vmatprep.mubr.bf16.mxu1 %v11659_v63  ;;  %v10836_v14 = vadd.f32 %v10673_v59, %v5305_v27 }
 0xf53   : > { %7311 = vmatmul.mubr.msk.bf16.gmra.mrb[24].mxu1 %vm463_vm0, %v7517_v57  ;;  %v10833_v57 = vadd.f32 %v10671_v40, %v5305_v27 }
 0xf54   : > { %6012 = vmatprep.mubr.bf16.mxu1 %v11659_v63 }
 0xf5b   : > { %7312 = vmatmul.mubr.msk.bf16.gmra.mrb[28].mxu1 %vm463_vm0, %v7518_v39  ;;  %v5310_v39 = vpop.permute.xlu1 %5309 }
 0xf5c   : > { %6022 = vmatprep.mubr.bf16.mxu1 %v11659_v63  ;;  %v10839_v15 = vadd.f32 %v10675_v29, %v5310_v39 }
 0xf63   : > { %7313 = vmatmul.mubr.msk.bf16.gmra.mrb[32].mxu1 %vm463_vm0, %v7519_v26  ;;  %vm6613_vm0 = vcmask 1040384  }
 0xf9e   : > { %v5834_v46 = vpop.f32.mrb[212].mxu1 }
 0xf9f   : > { %v6033_v58 = vmul.f32 %v5834_v46, %v10791_v18  ;;  %v5836_v43 = vpop.f32.mrb[213].mxu1 }
 0xfa0   : > { %v6034_v63 = vmul.f32 %v5836_v43, %v10794_v53  ;;  %v5838_v4 = vpop.f32.mrb[214].mxu1 }
 0xfa1   : > { %v6035_v62 = vmul.f32 %v5838_v4, %v10791_v18  ;;  %v5840_v30 = vpop.f32.mrb[215].mxu1 }
 0xfa2   : > { %v6036_v13 = vmul.f32 %v5840_v30, %v10794_v53 }
 0xfa3   : > { %v6037_v32 = vadd.f32 %v6035_v62, %v6033_v58  ;;  %v10843_v58 = vadd.f32 %v10677_v38, %v5310_v39 }
 0xfa4   : > { %v6038_v52 = vadd.f32 %v6036_v13, %v6034_v63 }
 0xfa6   : > { %v5844_v36 = vpop.f32.mrb[216].mxu1 }
 0xfa7   : > { %v6039_v45 = vmul.f32 %v5844_v36, %v10801_v35  ;;  %v5846_v56 = vpop.f32.mrb[217].mxu1 }
 0xfa8   : > { %v6040_v12 = vmul.f32 %v5846_v56, %v10804_v55  ;;  %v5848_v28 = vpop.f32.mrb[218].mxu1 }
 0xfa9   : > { %v6041_v8 = vadd.f32 %v6039_v45, %v6037_v32  ;;  %v6043_v37 = vmul.f32 %v5848_v28, %v10807_v60  ;;  %v5850_v24 = vpop.f32.mrb[219].mxu1  ;;  %v5315_v32 = vpop.permute.xlu0 %5314 }
 0xfaa   : > { %v6042_v2 = vadd.f32 %v6040_v12, %v6038_v52  ;;  %v6044_v0 = vmul.f32 %v5850_v24, %v10811_v11  ;;  %v10849_v19 = vadd.f32 %v10679_v16, %v5315_v32  ;;  %v5320_v52 = vpop.permute.xlu1 %5319  ;;  %v10852_v38 = vadd.f32 %v10681_v17, %v5315_v32 }
 0xfab   : > { %v6045_v47 = vadd.f32 %v6043_v37, %v6041_v8  ;;  %v10855_v45 = vadd.f32 %v10683_v9, %v5320_v52  ;;  %v10859_v28 = vadd.f32 %v10685_v5, %v5320_v52 }
 0xfac   : > { %v6046_v31 = vadd.f32 %v6044_v0, %v6042_v2 }
 0xfad   : > { %v5325_v42 = vpop.permute.xlu0 %5324 }
 0xfae   : > { %v5854_v21 = vpop.f32.mrb[220].mxu1  ;;  %v10868_v51 = vadd.f32 %v10689_v10, %v5325_v42 }
 0xfaf   : > { %v6047_v48 = vmul.f32 %v5854_v21, %v10817_v61  ;;  %v5856_v7 = vpop.f32.mrb[221].mxu1 }
 0xfb0   : > { %v6048_v41 = vmul.f32 %v5856_v7, %v10820_v23  ;;  %v5858_v25 = vpop.f32.mrb[222].mxu1  ;;  %11660 = vst [vmem:[#allocation41_spill] sm:$0xff] %v10868_v51 }
 0xfb1   : > { %v6049_v3 = vadd.f32 %v6047_v48, %v6045_v47  ;;  %v6051_v6 = vmul.f32 %v5858_v25, %v10823_v44  ;;  %v5860_v33 = vpop.f32.mrb[223].mxu1 }
 0xfb2   : > { %v6050_v49 = vadd.f32 %v6048_v41, %v6046_v31  ;;  %v6052_v1 = vmul.f32 %v5860_v33, %v10827_v20  ;;  %v10865_v31 = vadd.f32 %v10687_v54, %v5325_v42 }
 0xfb3   : > { %v6053_v34 = vadd.f32 %v6051_v6, %v6049_v3 }
 0xfb4   : > { %v6054_v22 = vadd.f32 %v6052_v1, %v6050_v49 }
 0xfb6   : > { %v5864_v26 = vpop.f32.mrb[224].mxu1 }
 0xfb7   : > { %v6055_v50 = vmul.f32 %v5864_v26, %v10833_v57  ;;  %v5866_v46 = vpop.f32.mrb[225].mxu1 }
 0xfb8   : > { %v6056_v43 = vmul.f32 %v5866_v46, %v10836_v14  ;;  %v5868_v63 = vpop.f32.mrb[226].mxu1 }
 0xfb9   : > { %v6057_v4 = vadd.f32 %v6055_v50, %v6053_v34  ;;  %v6059_v40 = vmul.f32 %v5868_v63, %v10839_v15  ;;  %v5870_v62 = vpop.f32.mrb[227].mxu1 }
 0xfba   : > { %v6058_v30 = vadd.f32 %v6056_v43, %v6054_v22  ;;  %v6060_v59 = vmul.f32 %v5870_v62, %v10843_v58 }
 0xfbb   : > { %v6061_v13 = vadd.f32 %v6059_v40, %v6057_v4 }
 0xfbc   : > { %v6062_v29 = vadd.f32 %v6060_v59, %v6058_v30 }
 0xfbe   : > { %v5874_v36 = vpop.f32.mrb[228].mxu1 }
 0xfbf   : > { %v6063_v56 = vmul.f32 %v5874_v36, %v10849_v19  ;;  %v5876_v12 = vpop.f32.mrb[229].mxu1 }
 0xfc0   : > { %v6064_v8 = vmul.f32 %v5876_v12, %v10852_v38  ;;  %v5878_v37 = vpop.f32.mrb[230].mxu1 }
 0xfc1   : > { %v6065_v24 = vadd.f32 %v6063_v56, %v6061_v13  ;;  %v6067_v16 = vmul.f32 %v5878_v37, %v10855_v45  ;;  %v5880_v2 = vpop.f32.mrb[231].mxu1 }
 0xfc2   : > { %v6066_v0 = vadd.f32 %v6064_v8, %v6062_v29  ;;  %v6068_v17 = vmul.f32 %v5880_v2, %v10859_v28 }
 0xfc3   : > { %v6069_v47 = vadd.f32 %v6067_v16, %v6065_v24 }
 0xfc4   : > { %v6070_v9 = vadd.f32 %v6068_v17, %v6066_v0 }
 0xfc6   : > { %v5884_v5 = vpop.f32.mrb[232].mxu1 }
 0xfc7   : > { %v6071_v21 = vmul.f32 %v5884_v5, %v10865_v31  ;;  %v5886_v48 = vpop.f32.mrb[233].mxu1 }
 0xfc8   : > { %v6072_v7 = vmul.f32 %v5886_v48, %v10868_v51  ;;  %v5888_v41 = vpop.f32.mrb[234].mxu1 }
 0xfc9   : > { %v6073_v25 = vadd.f32 %v6071_v21, %v6069_v47  ;;  %v6075_v3 = vmul.f32 %v5888_v41, %v10865_v31  ;;  %v5890_v6 = vpop.f32.mrb[235].mxu1 }
 0xfca   : > { %v6074_v33 = vadd.f32 %v6072_v7, %v6070_v9  ;;  %v6076_v49 = vmul.f32 %v5890_v6, %v10868_v51 }
 0xfcb   : > { %v6077_v1 = vadd.f32 %v6075_v3, %v6073_v25 }
 0xfcc   : > { %v6078_v54 = vadd.f32 %v6076_v49, %v6074_v33 }
 0xfcd   : > { %v6541_v22 = vrot.slane %v6077_v1, 4 }
 0xfce   : > { %v5894_v34 = vpop.f32.mrb[236].mxu1  ;;  %v6547_v50 = vrot.slane %v6078_v54, 4 }
 0xfcf   : > { %v10875_v10 = vmul.f32 %v5894_v34, %v10791_v18  ;;  %v5896_v27 = vpop.f32.mrb[237].mxu1  ;;  %v6542_v4 = vadd.f32 %v6541_v22, %v6077_v1 }
 0xfd0   : > { %v10878_v39 = vmul.f32 %v5896_v27, %v10794_v53  ;;  %v5898_v26 = vpop.f32.mrb[238].mxu1  ;;  %v6548_v40 = vadd.f32 %v6547_v50, %v6078_v54 }
 0xfd1   : > { %v10881_v46 = vmul.f32 %v5898_v26, %v10791_v18  ;;  %v5900_v43 = vpop.f32.mrb[239].mxu1  ;;  %v6543_v13 = vrot.slane %v6542_v4, 2 }
 0xfd2   : > { %v10884_v63 = vmul.f32 %v5900_v43, %v10794_v53  ;;  %v6549_v52 = vrot.slane %v6548_v40, 2 }
 0xfd3   : > { %v6544_v8 = vadd.f32 %v6543_v13, %v6542_v4 }
 0xfd4   : > { %v6550_v37 = vadd.f32 %v6549_v52, %v6548_v40 }
 0xfd5   : > { %v6545_v0 = vrot.slane %v6544_v8, 1 }
 0xfd6   : > { %v5904_v62 = vpop.f32.mrb[240].mxu1  ;;  %v6551_v42 = vrot.slane %v6550_v37, 1 }
 0xfd7   : > { %v10887_v30 = vmul.f32 %v5904_v62, %v10791_v18  ;;  %v5906_v59 = vpop.f32.mrb[241].mxu1 }
 0xfd8   : > { %v10890_v32 = vmul.f32 %v5906_v59, %v10794_v53  ;;  %v5908_v29 = vpop.f32.mrb[242].mxu1  ;;  %v10904_v49 = vadd.f32 %v6551_v42, %v6550_v37 }
 0xfd9   : > { %v6085_v36 = vmul.f32 %v5908_v29, %v10791_v18  ;;  %v5910_v56 = vpop.f32.mrb[243].mxu1 }
 0xfda   : > { %v6086_v12 = vmul.f32 %v5910_v56, %v10794_v53  ;;  %11662 = vst [vmem:[#allocation38_spill] sm:$0xff] %v10904_v49 }
 0xfde   : > { %v5914_v24 = vpop.f32.mrb[244].mxu1 }
 0xfdf   : > { %v6087_v16 = vmul.f32 %v5914_v24, %v10791_v18  ;;  %v5916_v2 = vpop.f32.mrb[245].mxu1 }
 0xfe0   : > { %v6088_v17 = vmul.f32 %v5916_v2, %v10794_v53  ;;  %v5918_v47 = vpop.f32.mrb[246].mxu1  ;;  %v10902_v53 = vadd.f32 %v6545_v0, %v6544_v8 }
 0xfe1   : > { %v6089_v9 = vmul.f32 %v5918_v47, %v10801_v35  ;;  %v6111_v5 = vmul.f32 %v5918_v47, %v10807_v60  ;;  %v6133_v21 = vmul.f32 %v5918_v47, %v10817_v61  ;;  %v5920_v48 = vpop.f32.mrb[247].mxu1 }
 0xfe2   : > { %v6090_v7 = vmul.f32 %v5920_v48, %v10804_v55  ;;  %v6112_v41 = vmul.f32 %v5920_v48, %v10811_v11  ;;  %v6134_v25 = vmul.f32 %v5920_v48, %v10820_v23  ;;  %11661 = vst [vmem:[#allocation45_spill] sm:$0xff] %v10902_v53 }
 0xfe3   : > { %v6091_v18 = vmul.f32 0.31622776, %v6089_v9  ;;  %v6095_v3 = vmul.f32 -0.18257418, %v6089_v9  ;;  %v6113_v34 = vmul.f32 0.31622776, %v6111_v5 }
 0xfe4   : > { %v6092_v6 = vmul.f32 0.31622776, %v6090_v7  ;;  %v6096_v33 = vmul.f32 -0.18257418, %v6090_v7  ;;  %v6135_v27 = vmul.f32 0.31622776, %v6133_v21 }
 0xfe5   : > { %v6093_v1 = vadd.f32 %v6091_v18, %v6085_v36  ;;  %v6097_v54 = vadd.f32 %v6095_v3, %v6087_v16  ;;  %v10906_v43 = vmul.f32 0.31622776, %v6112_v41  ;;  %v6136_v13 = vmul.f32 0.31622776, %v6134_v25 }
 0xfe6   : > { %v6094_v22 = vadd.f32 %v6092_v6, %v6086_v12  ;;  %v6098_v26 = vadd.f32 %v6096_v33, %v6088_v17  ;;  %v5924_v50 = vpop.f32.mrb[248].mxu1 }
 0xfe7   : > { %v6099_v4 = vmul.f32 %v5924_v50, %v10801_v35  ;;  %v6117_v40 = vmul.f32 %v5924_v50, %v10807_v60  ;;  %v6139_v62 = vmul.f32 %v5924_v50, %v10817_v61  ;;  %v5926_v59 = vpop.f32.mrb[249].mxu1 }
 0xfe8   : > { %v6100_v29 = vmul.f32 %v5926_v59, %v10804_v55  ;;  %v6118_v52 = vmul.f32 %v5926_v59, %v10811_v11  ;;  %v6140_v36 = vmul.f32 %v5926_v59, %v10820_v23  ;;  %v5928_v56 = vpop.f32.mrb[250].mxu1 }
 0xfe9   : > { %v6101_v12 = vmul.f32 0.31622776, %v6099_v4  ;;  %v6119_v8 = vmul.f32 -0.31622776, %v6117_v40  ;;  %v6123_v37 = vmul.f32 -0.18257418, %v6117_v40  ;;  %v6105_v24 = vmul.f32 %v5928_v56, %v10801_v35 }
 0xfea   : > { %v10915_v16 = vmul.f32 0.31622776, %v6139_v62  ;;  %v6102_v2 = vmul.f32 0.31622776, %v6100_v29  ;;  %v6120_v0 = vmul.f32 -0.31622776, %v6118_v52  ;;  %v6127_v17 = vmul.f32 %v5928_v56, %v10807_v60 }
 0xfeb   : > { %v6103_v47 = vadd.f32 %v6101_v12, %v10875_v10  ;;  %v6121_v42 = vadd.f32 %v6119_v8, %v6093_v1  ;;  %v6125_v9 = vadd.f32 %v6123_v37, %v6097_v54  ;;  %v6124_v5 = vmul.f32 -0.18257418, %v6118_v52  ;;  %v5930_v21 = vpop.f32.mrb[251].mxu1 }
 0xfec   : > { %v10920_v48 = vadd.f32 %v6102_v2, %v10878_v39  ;;  %v6122_v7 = vadd.f32 %v6120_v0, %v6094_v22  ;;  %v10922_v41 = vmul.f32 0.31622776, %v6140_v36  ;;  %v6107_v25 = vmul.f32 0.31622776, %v6105_v24 }
 0xfed   : > { %v6126_v18 = vadd.f32 %v6124_v5, %v6098_v26  ;;  %v6129_v3 = vmul.f32 0.31622776, %v6127_v17  ;;  %v6145_v6 = vmul.f32 %v5928_v56, %v10817_v61  ;;  %v6106_v33 = vmul.f32 %v5930_v21, %v10804_v55 }
 0xfee   : > { %v6109_v50 = vadd.f32 %v6107_v25, %v10887_v30  ;;  %v6128_v10 = vmul.f32 %v5930_v21, %v10811_v11  ;;  %v6146_v1 = vmul.f32 %v5930_v21, %v10820_v23  ;;  %v5934_v54 = vpop.f32.mrb[252].mxu1  ;;  %v10929_v4 = vadd.f32 %v6113_v34, %v6103_v47 }
 0xfef   : > { %v6131_v39 = vadd.f32 %v6129_v3, %v10881_v46  ;;  %v6147_v22 = vmul.f32 0.36514837, %v6145_v6  ;;  %v6108_v40 = vmul.f32 0.31622776, %v6106_v33  ;;  %v6151_v26 = vmul.f32 %v5934_v54, %v10801_v35  ;;  %v5936_v62 = vpop.f32.mrb[253].mxu1 }
 0xff0   : > { %v6130_v59 = vmul.f32 0.31622776, %v6128_v10  ;;  %v6148_v29 = vmul.f32 0.36514837, %v6146_v1  ;;  %v6137_v52 = vadd.f32 %v6135_v27, %v6109_v50  ;;  %v6185_v36 = vmul.f32 %v5934_v54, %v10807_v60  ;;  %v5938_v30 = vpop.f32.mrb[254].mxu1 }
 0xff1   : > { %v6149_v56 = vadd.f32 %v6147_v22, %v6125_v9  ;;  %v6110_v12 = vadd.f32 %v6108_v40, %v10890_v32  ;;  %v6153_v8 = vmul.f32 0.18257418, %v6151_v26  ;;  %v6219_v34 = vmul.f32 %v5934_v54, %v10817_v61  ;;  %v5940_v37 = vpop.f32.mrb[255].mxu1 }
 0xff2   : > { %v10937_v46 = vadd.f32 %v6130_v59, %v10884_v63  ;;  %v6150_v24 = vadd.f32 %v6148_v29, %v6126_v18  ;;  %v10939_v2 = vmul.f32 -0.18257418, %v6185_v36  ;;  %v6152_v0 = vmul.f32 %v5936_v62, %v10804_v55 }
 0xff3   : > { %v10942_v17 = vadd.f32 %v6153_v8, %v6137_v52  ;;  %v6221_v27 = vmul.f32 -0.36514837, %v6219_v34  ;;  %v6138_v47 = vadd.f32 %v6136_v13, %v6110_v12  ;;  %v6186_v9 = vmul.f32 %v5936_v62, %v10811_v11 }
 0xff4   : > { %v6154_v5 = vmul.f32 0.18257418, %v6152_v0  ;;  %v6220_v32 = vmul.f32 %v5936_v62, %v10820_v23  ;;  %v6157_v21 = vmul.f32 %v5938_v30, %v10801_v35  ;;  %v6191_v25 = vmul.f32 %v5938_v30, %v10807_v60 }
 0xff5   : > { %v10948_v63 = vmul.f32 -0.18257418, %v6186_v9  ;;  %v6225_v18 = vmul.f32 %v5938_v30, %v10817_v61  ;;  %v6158_v3 = vmul.f32 %v5940_v37, %v10804_v55  ;;  %v6192_v6 = vmul.f32 %v5940_v37, %v10811_v11 }
 0xff6   : > { %v10953_v33 = vadd.f32 %v6154_v5, %v6138_v47  ;;  %v6222_v13 = vmul.f32 -0.36514837, %v6220_v32  ;;  %v6159_v50 = vmul.f32 0.18257418, %v6157_v21  ;;  %v6163_v10 = vmul.f32 0.31622776, %v6157_v21 }
 0xff7   : > { %v6193_v1 = vmul.f32 0.18257418, %v6191_v25  ;;  %v10955_v54 = vmul.f32 -0.18257418, %v6225_v18  ;;  %v6160_v22 = vmul.f32 0.18257418, %v6158_v3  ;;  %v6226_v40 = vmul.f32 %v5940_v37, %v10820_v23 }
 0xff8   : > { %v6161_v26 = vadd.f32 %v6159_v50, %v6121_v42  ;;  %v6165_v62 = vadd.f32 %v6163_v10, %v6149_v56  ;;  %v6164_v59 = vmul.f32 0.31622776, %v6158_v3  ;;  %v6194_v29 = vmul.f32 0.18257418, %v6192_v6  ;;  %v5944_v52 = vpop.f32.mrb[0].mxu1 }
 0xff9   : > { %v6162_v36 = vadd.f32 %v6160_v22, %v6122_v7  ;;  %v10958_v30 = vmul.f32 -0.18257418, %v6226_v40  ;;  %v6167_v12 = vmul.f32 %v5944_v52, %v10801_v35  ;;  %v6197_v8 = vmul.f32 %v5944_v52, %v10807_v60  ;;  %v5946_v34 = vpop.f32.mrb[1].mxu1 }
 0xffa   : > { %v6166_v0 = vadd.f32 %v6164_v59, %v6150_v24  ;;  %v6231_v47 = vmul.f32 %v5944_v52, %v10817_v61  ;;  %v6116_v9 = vadd.f32 %v10906_v43, %v10920_v48  ;;  %v6168_v42 = vmul.f32 %v5946_v34, %v10804_v55  ;;  %v5948_v56 = vpop.f32.mrb[2].mxu1 }
 0xffb   : > { %v6169_v37 = vmul.f32 -0.18257418, %v6167_v12  ;;  %v6199_v5 = vmul.f32 0.18257418, %v6197_v8  ;;  %v6203_v32 = vmul.f32 -0.31622776, %v6197_v8  ;;  %v6198_v7 = vmul.f32 %v5946_v34, %v10811_v11 }
 0xffc   : > { %v10967_v21 = vmul.f32 0.18257418, %v6231_v47  ;;  %v6170_v25 = vmul.f32 -0.18257418, %v6168_v42  ;;  %v6232_v18 = vmul.f32 %v5946_v34, %v10820_v23  ;;  %v6143_v24 = vadd.f32 %v10915_v16, %v6131_v39  ;;  %v5950_v3 = vpop.f32.mrb[3].mxu1 }
 0xffd   : > { %v6171_v6 = vadd.f32 %v6169_v37, %v10929_v4  ;;  %v6201_v50 = vadd.f32 %v6199_v5, %v6161_v26  ;;  %v10972_v43 = vadd.f32 %v6203_v32, %v6165_v62  ;;  %v6200_v48 = vmul.f32 0.18257418, %v6198_v7 }
 0xffe   : > { %v6172_v10 = vadd.f32 %v6170_v25, %v6116_v9  ;;  %v6204_v22 = vmul.f32 -0.31622776, %v6198_v7  ;;  %v6234_v40 = vmul.f32 0.18257418, %v6232_v18  ;;  %v6173_v59 = vmul.f32 %v5948_v56, %v10801_v35  ;;  %v5954_v52 = vpop.f32.mrb[4].mxu1 }
 0xfff   : > { %v10975_v12 = vadd.f32 %v6221_v27, %v6201_v50  ;;  %v6202_v8 = vadd.f32 %v6200_v48, %v6162_v36  ;;  %v6195_v47 = vadd.f32 %v6193_v1, %v6171_v6  ;;  %v6207_v34 = vmul.f32 %v5948_v56, %v10807_v60  ;;  %v5956_v16 = vpop.f32.mrb[5].mxu1 }
0x1000   : > { %v10978_v39 = vadd.f32 %v6204_v22, %v6166_v0  ;;  %v6175_v4 = vmul.f32 -0.18257418, %v6173_v59  ;;  %v6237_v26 = vmul.f32 %v5948_v56, %v10817_v61  ;;  %v6144_v62 = vadd.f32 %v10922_v41, %v10937_v46  ;;  %v5958_v9 = vpop.f32.mrb[6].mxu1 }
0x1001   : > { %v10983_v42 = vadd.f32 %v6222_v13, %v6202_v8  ;;  %v6209_v37 = vmul.f32 -0.18257418, %v6207_v34  ;;  %v6174_v27 = vmul.f32 %v5950_v3, %v10804_v55  ;;  %v6196_v5 = vadd.f32 %v6194_v29, %v6172_v10  ;;  %v5960_v36 = vpop.f32.mrb[7].mxu1 }
0x1002   : > { %v6177_v1 = vadd.f32 %v6175_v4, %v6143_v24  ;;  %v6239_v32 = vmul.f32 0.36514837, %v6237_v26  ;;  %v6208_v7 = vmul.f32 %v5950_v3, %v10811_v11  ;;  %v6238_v0 = vmul.f32 %v5950_v3, %v10820_v23 }
0x1003   : > { %v6211_v25 = vadd.f32 %v6209_v37, %v10942_v17  ;;  %v6176_v61 = vmul.f32 -0.18257418, %v6174_v27  ;;  %v6179_v56 = vmul.f32 %v5954_v52, %v10801_v35  ;;  %v6213_v41 = vmul.f32 %v5954_v52, %v10807_v60 }
0x1004   : > { %v6241_v46 = vadd.f32 %v6239_v32, %v6195_v47  ;;  %v6210_v13 = vmul.f32 -0.18257418, %v6208_v7  ;;  %v6240_v18 = vmul.f32 0.36514837, %v6238_v0  ;;  %v6180_v6 = vmul.f32 %v5956_v16, %v10804_v55 }
0x1005   : > { %v6178_v29 = vadd.f32 %v6176_v61, %v6144_v62  ;;  %v6181_v50 = vmul.f32 -0.31622776, %v6179_v56  ;;  %v6215_v24 = vmul.f32 0.31622776, %v6213_v41  ;;  %v6214_v48 = vmul.f32 %v5956_v16, %v10811_v11 }
0x1006   : > { %v6212_v10 = vadd.f32 %v6210_v13, %v10953_v33  ;;  %v6242_v23 = vadd.f32 %v6240_v18, %v6196_v5  ;;  %v6182_v3 = vmul.f32 -0.31622776, %v6180_v6  ;;  %v6243_v17 = vmul.f32 %v5958_v9, %v10823_v44  ;;  %v5964_v22 = vpop.f32.mrb[8].mxu1 }
0x1007   : > { %v6183_v35 = vadd.f32 %v6181_v50, %v6177_v1  ;;  %v6217_v59 = vadd.f32 %v6215_v24, %v6211_v25  ;;  %v6216_v60 = vmul.f32 0.31622776, %v6214_v48  ;;  %v6247_v52 = vmul.f32 %v5958_v9, %v10833_v57  ;;  %v5966_v8 = vpop.f32.mrb[9].mxu1 }
0x1008   : > { %v6184_v47 = vadd.f32 %v6182_v3, %v6178_v29  ;;  %v10996_v55 = vadd.f32 %v6243_v17, %v6241_v46  ;;  %v6251_v34 = vmul.f32 %v5958_v9, %v10839_v15  ;;  %v11000_v11 = vmul.f32 %v5958_v9, %v10849_v19  ;;  %v5968_v33 = vpop.f32.mrb[10].mxu1 }
0x1009   : > { %v6189_v16 = vadd.f32 %v10939_v2, %v6183_v35  ;;  %v6229_v4 = vadd.f32 %v10955_v54, %v6217_v59  ;;  %v6218_v26 = vadd.f32 %v6216_v60, %v6212_v10  ;;  %v6259_v62 = vmul.f32 %v5958_v9, %v10855_v45  ;;  %v11005_v37 = vpop.f32.mrb[11].mxu1 }
0x100a   : > { %v6190_v27 = vadd.f32 %v10948_v63, %v6184_v47  ;;  %v6244_v5 = vmul.f32 %v5960_v36, %v10827_v20  ;;  %v6248_v1 = vmul.f32 %v5960_v36, %v10836_v14  ;;  %v6252_v32 = vmul.f32 %v5960_v36, %v10843_v58 }
0x100b   : > { %v6235_v7 = vadd.f32 %v10967_v21, %v6189_v16  ;;  %v6230_v0 = vadd.f32 %v10958_v30, %v6218_v26  ;;  %v6253_v2 = vadd.f32 %v6251_v34, %v6229_v4  ;;  %v11014_v54 = vadd.f32 %v6259_v62, %v10972_v43 }
0x100c   : > { %v6236_v25 = vadd.f32 %v6234_v40, %v6190_v27  ;;  %v6246_v9 = vadd.f32 %v6244_v5, %v6242_v23  ;;  %v11017_v61 = vmul.f32 %v5960_v36, %v10852_v38  ;;  %v6260_v63 = vmul.f32 %v5960_v36, %v10859_v28 }
0x100d   : > { %v6249_v56 = vadd.f32 %v6247_v52, %v6235_v7  ;;  %v11020_v41 = vadd.f32 %v6252_v32, %v6230_v0  ;;  %v6263_v46 = vmul.f32 %v5964_v22, %v10823_v44  ;;  %v6281_v21 = vmul.f32 %v5964_v22, %v10833_v57 }
0x100e   : > { %v11024_v13 = vadd.f32 %v6248_v1, %v6236_v25  ;;  %v11027_v30 = vadd.f32 %v6260_v63, %v10978_v39  ;;  %v6303_v43 = vmul.f32 %v5964_v22, %v10839_v15  ;;  %v6325_v40 = vmul.f32 %v5964_v22, %v10849_v19  ;;  %v5974_v18 = vpop.f32.mrb[12].mxu1 }
0x100f   : > { %v6265_v6 = vmul.f32 0.18257418, %v6263_v46  ;;  %v11031_v29 = vmul.f32 0.18257418, %v6281_v21  ;;  %v11033_v36 = vmul.f32 0.31622776, %v6281_v21  ;;  %v6343_v50 = vmul.f32 %v5964_v22, %v10855_v45 }
0x1010   : > { %v6305_v24 = vmul.f32 -0.18257418, %v6303_v43  ;;  %v11036_v48 = vmul.f32 -0.18257418, %v6325_v40  ;;  %v6264_v10 = vmul.f32 %v5966_v8, %v10827_v20  ;;  %v6282_v39 = vmul.f32 %v5966_v8, %v10836_v14  ;;  %v11040_v23 = vpop.f32.mrb[13].mxu1 }
0x1011   : > { %v11042_v3 = vmul.f32 -0.31622776, %v6343_v50  ;;  %v6304_v17 = vmul.f32 %v5966_v8, %v10843_v58  ;;  %v6326_v35 = vmul.f32 %v5966_v8, %v10852_v38  ;;  %v6344_v59 = vmul.f32 %v5966_v8, %v10859_v28  ;;  %v11047_v60 = vpop.f32.mrb[14].mxu1 }
0x1012   : > { %v6266_v22 = vmul.f32 0.18257418, %v6264_v10  ;;  %v11049_v52 = vmul.f32 0.18257418, %v6282_v39  ;;  %v11051_v47 = vmul.f32 0.31622776, %v6282_v39  ;;  %v6269_v34 = vmul.f32 %v5968_v33, %v10823_v44 }
0x1013   : > { %v6306_v16 = vmul.f32 -0.18257418, %v6304_v17  ;;  %v11054_v4 = vmul.f32 -0.18257418, %v6326_v35  ;;  %v11056_v26 = vmul.f32 -0.31622776, %v6344_v59  ;;  %v6291_v62 = vmul.f32 %v5968_v33, %v10833_v57 }
0x1014   : > { %v6271_v27 = vmul.f32 -0.18257418, %v6269_v34  ;;  %v6309_v5 = vmul.f32 %v5968_v33, %v10839_v15  ;;  %v6331_v8 = vmul.f32 %v5968_v33, %v10849_v19  ;;  %v6349_v1 = vmul.f32 %v5968_v33, %v10855_v45  ;;  %v11062_v32 = vpop.f32.mrb[15].mxu1 }
0x1015   : > { %v6293_v7 = vmul.f32 0.18257418, %v6291_v62  ;;  %v6270_v0 = vmul.f32 %v11005_v37, %v10827_v20  ;;  %v6292_v25 = vmul.f32 %v11005_v37, %v10836_v14  ;;  %v6310_v63 = vmul.f32 %v11005_v37, %v10843_v58 }
0x1016   : > { %v6311_v46 = vmul.f32 0.18257418, %v6309_v5  ;;  %v6315_v21 = vmul.f32 -0.31622776, %v6309_v5  ;;  %v6333_v43 = vmul.f32 -0.18257418, %v6331_v8  ;;  %v6332_v40 = vmul.f32 %v11005_v37, %v10852_v38 }
0x1017   : > { %v6295_v33 = vadd.f32 %v6293_v7, %v10996_v55  ;;  %v6351_v50 = vmul.f32 0.31622776, %v6349_v1  ;;  %v6272_v10 = vmul.f32 -0.18257418, %v6270_v0  ;;  %v6294_v39 = vmul.f32 0.18257418, %v6292_v25 }
0x1018   : > { %v6312_v17 = vmul.f32 0.18257418, %v6310_v63  ;;  %v11073_v35 = vmul.f32 -0.31622776, %v6310_v63  ;;  %v6334_v59 = vmul.f32 -0.18257418, %v6332_v40  ;;  %v6350_v34 = vmul.f32 %v11005_v37, %v10859_v28 }
0x1019   : > { %v6296_v62 = vadd.f32 %v6294_v39, %v6246_v9  ;;  %v6257_v5 = vadd.f32 %v11000_v11, %v10975_v12  ;;  %v6267_v8 = vadd.f32 %v6265_v6, %v6253_v2  ;;  %v6273_v49 = vadd.f32 %v6271_v27, %v6249_v56  ;;  %v11079_v53 = vpop.f32.mrb[16].mxu1 }
0x101a   : > { %v6352_v51 = vmul.f32 0.31622776, %v6350_v34  ;;  %v6275_v55 = vmul.f32 %v5974_v18, %v10823_v44  ;;  %v6297_v1 = vmul.f32 %v5974_v18, %v10833_v57  ;;  %v6307_v7 = vadd.f32 %v6305_v24, %v6295_v33  ;;  %v11083_v0 = vpop.f32.mrb[17].mxu1 }
0x101b   : > { %v6319_v25 = vmul.f32 %v5974_v18, %v10839_v15  ;;  %v6337_v37 = vmul.f32 %v5974_v18, %v10849_v19  ;;  %v6258_v9 = vadd.f32 %v11017_v61, %v10983_v42  ;;  %v6268_v12 = vadd.f32 %v6266_v22, %v11020_v41  ;;  %v11090_v11 = vpop.f32.mrb[18].mxu1 }
0x101c   : > { %v6277_v2 = vmul.f32 -0.36514837, %v6275_v55  ;;  %v6299_v56 = vmul.f32 -0.18257418, %v6297_v1  ;;  %v6274_v6 = vadd.f32 %v6272_v10, %v11024_v13  ;;  %v6276_v24 = vmul.f32 %v11040_v23, %v10827_v20  ;;  %v11095_v27 = vpop.f32.mrb[19].mxu1 }
0x101d   : > { %v6321_v63 = vmul.f32 0.18257418, %v6319_v25  ;;  %v6339_v40 = vmul.f32 0.36514837, %v6337_v37  ;;  %v6298_v18 = vmul.f32 %v11040_v23, %v10836_v14  ;;  %v6308_v33 = vadd.f32 %v6306_v16, %v6296_v62 }
0x101e   : > { %v6279_v42 = vadd.f32 %v6277_v2, %v6257_v5  ;;  %v6301_v61 = vadd.f32 %v6299_v56, %v6267_v8  ;;  %v6278_v41 = vmul.f32 -0.36514837, %v6276_v24  ;;  %v6320_v22 = vmul.f32 %v11040_v23, %v10843_v58  ;;  %v11101_v39 = vpop.f32.mrb[20].mxu1 }
0x101f   : > { %v6323_v13 = vadd.f32 %v6321_v63, %v6273_v49  ;;  %v11103_v10 = vadd.f32 %v6339_v40, %v6307_v7  ;;  %v6300_v34 = vmul.f32 -0.18257418, %v6298_v18  ;;  %v6338_v55 = vmul.f32 %v11040_v23, %v10852_v38  ;;  %v11107_v1 = vpop.f32.mrb[21].mxu1 }
0x1020   : > { %v6285_v25 = vadd.f32 %v11031_v29, %v6279_v42  ;;  %v6335_v16 = vadd.f32 %v6333_v43, %v6301_v61  ;;  %v6280_v62 = vadd.f32 %v6278_v41, %v6258_v9  ;;  %v6322_v5 = vmul.f32 0.18257418, %v6320_v22  ;;  %v11110_v8 = vpop.f32.mrb[22].mxu1 }
0x1021   : > { %v11113_v37 = vadd.f32 %v11036_v48, %v6323_v13  ;;  %v6302_v2 = vadd.f32 %v6300_v34, %v6268_v12  ;;  %v6340_v49 = vmul.f32 0.36514837, %v6338_v55  ;;  %v6289_v7 = vadd.f32 %v11033_v36, %v11014_v54  ;;  %v11117_v56 = vpop.f32.mrb[23].mxu1 }
0x1022   : > { %v11119_v23 = vadd.f32 %v6311_v46, %v6285_v25  ;;  %v6353_v24 = vadd.f32 %v6351_v50, %v6335_v16  ;;  %v6286_v29 = vadd.f32 %v11049_v52, %v6280_v62  ;;  %v6324_v43 = vadd.f32 %v6322_v5, %v6274_v6 }
0x1023   : > { %v6336_v9 = vadd.f32 %v6334_v59, %v6302_v2  ;;  %v11122_v63 = vadd.f32 %v6340_v49, %v6308_v33  ;;  %v6317_v40 = vadd.f32 %v6315_v21, %v6289_v7  ;;  %v6355_v48 = vmul.f32 %v11047_v60, %v10823_v44 }
0x1024   : > { %11663 = vst [vmem:[#allocation47_spill] sm:$0xff] %v11119_v23  ;;  %v11126_v12 = vadd.f32 %v6312_v17, %v6286_v29  ;;  %v11129_v18 = vadd.f32 %v11054_v4, %v6324_v43  ;;  %v6379_v54 = vmul.f32 %v11047_v60, %v10833_v57  ;;  %v6413_v36 = vmul.f32 %v11047_v60, %v10839_v15 }
0x1025   : > { %v6354_v52 = vadd.f32 %v6352_v51, %v6336_v9  ;;  %v6357_v46 = vmul.f32 -0.23904572, %v6355_v48  ;;  %v6471_v50 = vmul.f32 %v11047_v60, %v10855_v45  ;;  %v6290_v21 = vadd.f32 %v11051_v47, %v11027_v30 }
0x1026   : > { %11664 = vst [vmem:[#allocation43_spill] sm:$0xff] %v11126_v12  ;;  %v11139_v59 = vmul.f32 0.20701967, %v6379_v54  ;;  %v11141_v17 = vmul.f32 0.20701967, %v6413_v36  ;;  %v6356_v4 = vmul.f32 %v11062_v32, %v10827_v20  ;;  %v6380_v6 = vmul.f32 %v11062_v32, %v10836_v14  ;;  %v11147_v33 = vpop.f32.mrb[24].mxu1 }
0x1027   : > { %v6359_v51 = vadd.f32 %v6357_v46, %v6317_v40  ;;  %v11149_v42 = vmul.f32 -0.23904572, %v6471_v50  ;;  %v6318_v60 = vadd.f32 %v11073_v35, %v6290_v21  ;;  %v6414_v30 = vmul.f32 %v11062_v32, %v10843_v58  ;;  %v11154_v47 = vpop.f32.mrb[25].mxu1 }
0x1028   : > { %v6358_v61 = vmul.f32 -0.23904572, %v6356_v4  ;;  %v11156_v41 = vmul.f32 0.20701967, %v6380_v6  ;;  %v6472_v22 = vmul.f32 %v11062_v32, %v10859_v28  ;;  %v6361_v13 = vmul.f32 %v11079_v53, %v10823_v44  ;;  %v11162_v34 = vpop.f32.mrb[26].mxu1 }
0x1029   : > { %v11164_v55 = vmul.f32 0.20701967, %v6414_v30  ;;  %v6385_v35 = vmul.f32 %v11079_v53, %v10833_v57  ;;  %v6419_v25 = vmul.f32 %v11079_v53, %v10839_v15  ;;  %v6447_v16 = vmul.f32 %v11079_v53, %v10849_v19  ;;  %v11172_v62 = vpop.f32.mrb[27].mxu1 }
0x102a   : > { %v6360_v5 = vadd.f32 %v6358_v61, %v6318_v60  ;;  %v11174_v32 = vmul.f32 -0.23904572, %v6472_v22  ;;  %v6363_v2 = vmul.f32 0.20701967, %v6361_v13  ;;  %v11178_v49 = vmul.f32 %v11079_v53, %v10855_v45 }
0x102b   : > { %v11180_v7 = vmul.f32 -0.20701967, %v6385_v35  ;;  %v6391_v29 = vmul.f32 0.11952286, %v6385_v35  ;;  %v11182_v43 = vmul.f32 0.20701967, %v6419_v25  ;;  %v6362_v9 = vmul.f32 %v11083_v0, %v10827_v20 }
0x102c   : > { %11665 = vst [vmem:[#allocation46_spill] sm:$0xff] %v11174_v32  ;;  %v6365_v40 = vadd.f32 %v6363_v2, %v6353_v24  ;;  %v11186_v48 = vmul.f32 -0.20701967, %v6447_v16  ;;  %v6386_v54 = vmul.f32 %v11083_v0, %v10836_v14  ;;  %v6420_v36 = vmul.f32 %v11083_v0, %v10843_v58 }
0x102d   : > { %11666 = vst [vmem:[#allocation39_spill] sm:$0xff] %v11180_v7  ;;  %v6364_v46 = vmul.f32 0.20701967, %v6362_v9  ;;  %v6448_v53 = vmul.f32 %v11083_v0, %v10852_v38  ;;  %v11196_v50 = vmul.f32 %v11083_v0, %v10859_v28  ;;  %v6367_v21 = vmul.f32 %v11090_v11, %v10823_v44 }
0x102e   : > { %v11200_v24 = vmul.f32 -0.20701967, %v6386_v54  ;;  %v6392_v4 = vmul.f32 0.11952286, %v6386_v54  ;;  %v11202_v6 = vmul.f32 0.20701967, %v6420_v36  ;;  %v6395_v60 = vmul.f32 %v11090_v11, %v10833_v57 }
0x102f   : > { %v6366_v30 = vadd.f32 %v6364_v46, %v6354_v52  ;;  %v11206_v61 = vmul.f32 -0.20701967, %v6448_v53  ;;  %v6369_v22 = vmul.f32 0.20701967, %v6367_v21  ;;  %v6425_v13 = vmul.f32 %v11090_v11, %v10839_v15  ;;  %v11210_v0 = vpop.f32.mrb[28].mxu1 }
0x1030   : > { %11667 = vst [vmem:[#allocation37_spill] sm:$0xff] %v11200_v24  ;;  %v11212_v35 = vmul.f32 0.20701967, %v6395_v60  ;;  %v6453_v25 = vmul.f32 %v11090_v11, %v10849_v19  ;;  %v11218_v16 = vmul.f32 %v11090_v11, %v10855_v45  ;;  %v6368_v52 = vmul.f32 %v11095_v27, %v10827_v20  ;;  %v11222_v2 = vpop.f32.mrb[29].mxu1 }
0x1031   : > { %v11224_v9 = vmul.f32 0.20701967, %v6425_v13  ;;  %v6431_v54 = vmul.f32 0.11952286, %v6425_v13  ;;  %v6396_v36 = vmul.f32 %v11095_v27, %v10836_v14  ;;  %v6426_v46 = vmul.f32 %v11095_v27, %v10843_v58  ;;  %v11230_v53 = vpop.f32.mrb[30].mxu1 }
0x1032   : > { %11669 = vst [vmem:[#allocation7_spill] sm:$0xff] %v11230_v53  ;;  %v11232_v21 = vmul.f32 0.20701967, %v6453_v25  ;;  %v6370_v11 = vmul.f32 0.20701967, %v6368_v52  ;;  %v6454_v60 = vmul.f32 %v11095_v27, %v10852_v38  ;;  %v11238_v24 = vmul.f32 %v11095_v27, %v10859_v28  ;;  %v11240_v12 = vpop.f32.mrb[31].mxu1 }
0x1033   : > { %11668 = vst [vmem:[#allocation40_spill] sm:$0xff] %v11224_v9  ;;  %11671 = vst [vmem:[#allocation17_spill] sm:$0xff] %v11240_v12  ;;  %v11242_v13 = vmul.f32 0.20701967, %v6396_v36  ;;  %v11244_v9 = vmul.f32 0.20701967, %v6426_v46  ;;  %v6347_v23 = vadd.f32 %v11042_v3, %v11113_v37  ;;  %v6383_v52 = vadd.f32 %v11139_v59, %v6365_v40 }
0x1034   : > { %11670 = vst [vmem:[#allocation6_spill] sm:$0xff] %v11238_v24  ;;  %v6432_v7 = vmul.f32 0.11952286, %v6426_v46  ;;  %v11248_v25 = vmul.f32 0.20701967, %v6454_v60  ;;  %v6393_v32 = vadd.f32 %v6391_v29, %v6359_v51  ;;  %v6401_v53 = vmul.f32 %v11101_v39, %v10833_v57 }
0x1035   : > { %11672 = vst [vmem:[#allocation15_spill] sm:$0xff] %v11244_v9  ;;  %v6371_v27 = vadd.f32 %v6369_v22, %v6347_v23  ;;  %v6435_v12 = vmul.f32 %v11101_v39, %v10839_v15  ;;  %v6459_v36 = vmul.f32 %v11101_v39, %v10849_v19  ;;  %v6489_v46 = vmul.f32 %v11101_v39, %v10855_v45 }
0x1036   : > { %11673 = vst [vmem:[#allocation21_spill] sm:$0xff] %v11248_v25  ;;  %v6403_v9 = vmul.f32 -0.20701967, %v6401_v53  ;;  %v6433_v3 = vadd.f32 %v6431_v54, %v6393_v32  ;;  %v6348_v37 = vadd.f32 %v11056_v26, %v11129_v18  ;;  %v6384_v59 = vadd.f32 %v11156_v41, %v6366_v30  ;;  %v11262_v51 = vpop.f32.mrb[32].mxu1 }
0x1037   : > { %v6437_v29 = vmul.f32 0.20701967, %v6435_v12  ;;  %v6461_v23 = vmul.f32 -0.23904572, %v6459_v36  ;;  %v11264_v40 = vmul.f32 -0.23904572, %v6489_v46  ;;  %v6394_v22 = vadd.f32 %v6392_v4, %v6360_v5 }
0x1038   : > { %v6405_v60 = vadd.f32 %v6403_v9, %v6371_v27  ;;  %v6372_v25 = vadd.f32 %v6370_v11, %v6348_v37  ;;  %v6402_v24 = vmul.f32 %v11107_v1, %v10836_v14  ;;  %v6436_v39 = vmul.f32 %v11107_v1, %v10843_v58  ;;  %v11270_v32 = vpop.f32.mrb[33].mxu1 }
0x1039   : > { %v6439_v26 = vadd.f32 %v6437_v29, %v6383_v52  ;;  %v11272_v18 = vadd.f32 %v6461_v23, %v6433_v3  ;;  %v6434_v41 = vadd.f32 %v6432_v7, %v6394_v22  ;;  %v6460_v12 = vmul.f32 %v11107_v1, %v10852_v38  ;;  %v11276_v30 = vpop.f32.mrb[34].mxu1 }
0x103a   : > { %v6404_v5 = vmul.f32 -0.20701967, %v6402_v24  ;;  %v6438_v4 = vmul.f32 0.20701967, %v6436_v39  ;;  %v6490_v9 = vmul.f32 %v11107_v1, %v10859_v28  ;;  %v6373_v54 = vmul.f32 %v11110_v8, %v10823_v44  ;;  %v11282_v53 = vpop.f32.mrb[35].mxu1 }
0x103b   : > { %v6462_v11 = vmul.f32 -0.23904572, %v6460_v12  ;;  %v6407_v52 = vmul.f32 %v11110_v8, %v10833_v57  ;;  %v6441_v7 = vmul.f32 %v11110_v8, %v10839_v15  ;;  %v6465_v27 = vmul.f32 %v11110_v8, %v10849_v19 }
0x103c   : > { %v6406_v24 = vadd.f32 %v6404_v5, %v6372_v25  ;;  %v6440_v36 = vadd.f32 %v6438_v4, %v6384_v59  ;;  %v11290_v46 = vmul.f32 -0.23904572, %v6490_v9  ;;  %v6375_v1 = vmul.f32 -0.23904572, %v6373_v54 }
0x103d   : > { %v11292_v3 = vadd.f32 %v6462_v11, %v6434_v41  ;;  %v6409_v37 = vmul.f32 0.11952286, %v6407_v52  ;;  %v6443_v29 = vmul.f32 0.11952286, %v6441_v7  ;;  %v11294_v23 = vmul.f32 -0.23904572, %v6465_v27 }
0x103e   : > { %v6377_v22 = vadd.f32 %v6375_v1, %v11103_v10  ;;  %v11299_v39 = vmul.f32 %v11110_v8, %v10855_v45  ;;  %v6374_v12 = vmul.f32 %v11117_v56, %v10827_v20  ;;  %v6408_v25 = vmul.f32 %v11117_v56, %v10836_v14 }
0x103f   : > { %v6411_v59 = vadd.f32 %v6409_v37, %v6405_v60  ;;  %v6442_v41 = vmul.f32 %v11117_v56, %v10843_v58  ;;  %v6466_v5 = vmul.f32 %v11117_v56, %v10852_v38  ;;  %v11311_v10 = vmul.f32 %v11117_v56, %v10859_v28  ;;  %v11674_v37 = vld [vmem:[#allocation41_spill] sm:$0xff] }
0x1040   : > { %v6376_v4 = vmul.f32 -0.23904572, %v6374_v12  ;;  %v6410_v8 = vmul.f32 0.11952286, %v6408_v25  ;;  %v6399_v9 = vadd.f32 %v11212_v35, %v6377_v22  ;;  %v6501_v54 = vmul.f32 %v11147_v33, %v10823_v44 }
0x1041   : > { %v6444_v11 = vmul.f32 0.11952286, %v6442_v41  ;;  %v11316_v52 = vmul.f32 -0.23904572, %v6466_v5  ;;  %v6521_v60 = vmul.f32 %v11162_v34, %v10865_v31  ;;  %v6502_v7 = vmul.f32 %v11154_v47, %v10827_v20  ;;  %v11676_v5 = vld [vmem:[#allocation46_spill] sm:$0xff] }
0x1042   : > { %v6378_v27 = vadd.f32 %v6376_v4, %v11122_v63  ;;  %v6412_v56 = vadd.f32 %v6410_v8, %v6406_v24  ;;  %v6423_v1 = vadd.f32 %v11182_v43, %v6399_v9  ;;  %v6522_v35 = vmul.f32 %v11172_v62, %v11674_v37  ;;  %v11677_v8 = vld [vmem:[#allocation6_spill] sm:$0xff] }
0x1043   : > { %v6417_v22 = vadd.f32 %v11141_v17, %v6411_v59  ;;  %v6479_v44 = vmul.f32 0.11952286, %v11178_v49  ;;  %v6505_v12 = vmul.f32 %v11147_v33, %v10833_v57  ;;  %v6525_v34 = vmul.f32 %v11210_v0, %v10865_v31 }
0x1044   : > { %v6475_v20 = vadd.f32 %v11149_v42, %v6423_v1  ;;  %v6400_v63 = vadd.f32 %v11242_v13, %v6378_v27  ;;  %v6418_v24 = vadd.f32 %v11164_v55, %v6412_v56  ;;  %v6480_v43 = vmul.f32 0.11952286, %v11196_v50  ;;  %v11675_v50 = vld [vmem:[#allocation7_spill] sm:$0xff]  ;;  %v11678_v27 = vld [vmem:[#allocation21_spill] sm:$0xff] }
0x1045   : > { %v6451_v62 = vadd.f32 %v11186_v48, %v6417_v22  ;;  %v6506_v17 = vmul.f32 %v11154_v47, %v10836_v14  ;;  %v6526_v49 = vmul.f32 %v11222_v2, %v11674_v37  ;;  %v6445_v57 = vadd.f32 %v6443_v29, %v6439_v26 }
0x1046   : > { %v6503_v25 = vadd.f32 %v6501_v54, %v6475_v20  ;;  %v6424_v0 = vadd.f32 %v11202_v6, %v6400_v63  ;;  %v6452_v42 = vadd.f32 %v11206_v61, %v6418_v24  ;;  %v6485_v13 = vmul.f32 0.11952286, %v11218_v16 }
0x1047   : > { %v6481_v59 = vadd.f32 %v6479_v44, %v6451_v62  ;;  %v6457_v55 = vadd.f32 %v11232_v21, %v6445_v57  ;;  %v6509_v48 = vmul.f32 %v11147_v33, %v10839_v15  ;;  %v6529_v14 = vmul.f32 %v11675_v50, %v10865_v31  ;;  %v11680_v44 = vld [vmem:[#allocation47_spill] sm:$0xff]  ;;  %v11682_v62 = vld [vmem:[#allocation40_spill] sm:$0xff] }
0x1048   : > { %v6523_v41 = vadd.f32 %v6521_v60, %v6503_v25  ;;  %v6476_v2 = vadd.f32 %v11676_v5, %v6424_v0  ;;  %v6482_v26 = vadd.f32 %v6480_v43, %v6452_v42  ;;  %v6446_v29 = vadd.f32 %v6444_v11, %v6440_v36  ;;  %v11679_v60 = vld [vmem:[#allocation17_spill] sm:$0xff]  ;;  %v11681_v36 = vld [vmem:[#allocation39_spill] sm:$0xff] }
0x1049   : > { %v6507_v4 = vadd.f32 %v6505_v12, %v6481_v59  ;;  %v6487_v6 = vadd.f32 %v6485_v13, %v6457_v55  ;;  %v6486_v61 = vmul.f32 0.11952286, %v11677_v8  ;;  %v6510_v16 = vmul.f32 %v11154_v47, %v10843_v58  ;;  %v11683_v5 = vld [vmem:[#allocation43_spill] sm:$0xff] }
0x104a   : > { %v6553_v9 = vrot.slane %v6523_v41, 4  ;;  %v6504_v21 = vadd.f32 %v6502_v7, %v6476_v2  ;;  %v6508_v54 = vadd.f32 %v6506_v17, %v6482_v26  ;;  %v6458_v15 = vadd.f32 %v11678_v27, %v6446_v29  ;;  %v11684_v2 = vld [vmem:[#allocation37_spill] sm:$0xff] }
0x104b   : > { %v6527_v56 = vadd.f32 %v6525_v34, %v6507_v4  ;;  %v6511_v1 = vadd.f32 %v6509_v48, %v6487_v6  ;;  %v6530_v22 = vmul.f32 %v11679_v60, %v11674_v37  ;;  %v6389_v11 = vadd.f32 %v11681_v36, %v11680_v44 }
0x104c   : > { %v6554_v12 = vadd.f32 %v6553_v9, %v6523_v41  ;;  %v6524_v20 = vadd.f32 %v6522_v35, %v6504_v21  ;;  %v6528_v63 = vadd.f32 %v6526_v49, %v6508_v54  ;;  %v6488_v24 = vadd.f32 %v6486_v61, %v6458_v15  ;;  %v11685_v9 = vld [vmem:[#allocation15_spill] sm:$0xff] }
0x104d   : > { %v6565_v43 = vrot.slane %v6527_v56, 4  ;;  %v6531_v58 = vadd.f32 %v6529_v14, %v6511_v1  ;;  %v6429_v7 = vadd.f32 %v11682_v62, %v6389_v11  ;;  %v6513_v17 = vmul.f32 %v11147_v33, %v10849_v19 }
0x104e   : > { %v6555_v57 = vrot.slane %v6554_v12, 2  ;;  %v6559_v34 = vrot.slane %v6524_v20, 4  ;;  %v6571_v25 = vrot.slane %v6528_v63, 4  ;;  %v6512_v0 = vadd.f32 %v6510_v16, %v6488_v24 }
0x104f   : > { %v6566_v42 = vadd.f32 %v6565_v43, %v6527_v56  ;;  %v6577_v13 = vrot.slane %v6531_v58, 4  ;;  %v6469_v59 = vadd.f32 %v11294_v23, %v6429_v7  ;;  %v6533_v35 = vmul.f32 %v11262_v51, %v10865_v31 }
0x1050   : > { %v6556_v49 = vadd.f32 %v6555_v57, %v6554_v12  ;;  %v6560_v55 = vadd.f32 %v6559_v34, %v6524_v20  ;;  %v6572_v48 = vadd.f32 %v6571_v25, %v6528_v63  ;;  %v6532_v50 = vadd.f32 %v6530_v22, %v6512_v0  ;;  %v11686_v22 = vld [vmem:[#allocation45_spill] sm:$0xff]  ;;  %v11687_v0 = vld [vmem:[#allocation38_spill] sm:$0xff] }
0x1051   : > { %v6567_v14 = vrot.slane %v6566_v42, 2  ;;  %v6578_v41 = vadd.f32 %v6577_v13, %v6531_v58  ;;  %v6493_v19 = vadd.f32 %v11264_v40, %v6469_v59  ;;  %v6390_v26 = vadd.f32 %v11684_v2, %v11683_v5 }
0x1052   : > { %v6557_v29 = vrot.slane %v6556_v49, 1  ;;  %v6561_v4 = vrot.slane %v6560_v55, 2  ;;  %v6573_v6 = vrot.slane %v6572_v48, 2  ;;  %v6583_v8 = vrot.slane %v6532_v50, 4 }
0x1053   : > { %v6568_v61 = vadd.f32 %v6567_v14, %v6566_v42  ;;  %v6579_v23 = vrot.slane %v6578_v41, 2  ;;  %v6515_v16 = vadd.f32 %v6513_v17, %v6493_v19  ;;  %v6430_v51 = vadd.f32 %v11685_v9, %v6390_v26 }
0x1054   : > { %v6558_v21 = vadd.f32 %v6557_v29, %v6556_v49  ;;  %v6562_v54 = vadd.f32 %v6561_v4, %v6560_v55  ;;  %v6574_v27 = vadd.f32 %v6573_v6, %v6572_v48  ;;  %v6584_v15 = vadd.f32 %v6583_v8, %v6532_v50 }
0x1055   : > { %v6569_v56 = vrot.slane %v6568_v61, 1  ;;  %v6580_v1 = vadd.f32 %v6579_v23, %v6578_v41  ;;  %v6535_v60 = vadd.f32 %v6533_v35, %v6515_v16  ;;  %v6470_v40 = vadd.f32 %v11316_v52, %v6430_v51 }
0x1056   : > { %v6614_v44 = vsel %vm6613_vm0, %v11686_v22, %v6558_v21  ;;  %v6563_v36 = vrot.slane %v6562_v54, 1  ;;  %v6575_v11 = vrot.slane %v6574_v27, 1  ;;  %v6585_v12 = vrot.slane %v6584_v15, 2 }
0x1057   : > { %v6570_v20 = vadd.f32 %v6569_v56, %v6568_v61  ;;  %v6581_v63 = vrot.slane %v6580_v1, 1  ;;  %v6589_v24 = vrot.slane %v6535_v60, 4  ;;  %v6494_v43 = vadd.f32 %v11290_v46, %v6470_v40 }
0x1058   : > { %v6564_v58 = vadd.f32 %v6563_v36, %v6562_v54  ;;  %v6576_v62 = vadd.f32 %v6575_v11, %v6574_v27  ;;  %v6586_v7 = vadd.f32 %v6585_v12, %v6584_v15  ;;  %v6514_v17 = vmul.f32 %v11154_v47, %v10852_v38 }
0x1059   : > { %v6617_v57 = vsel %vm6616_vm10, %v6614_v44, %v6570_v20  ;;  %v6582_v52 = vadd.f32 %v6581_v63, %v6580_v1  ;;  %v6590_v34 = vadd.f32 %v6589_v24, %v6535_v60  ;;  %v6534_v25 = vmul.f32 %v11270_v32, %v11674_v37 }
0x105a   : > { %v6615_v42 = vsel %vm6613_vm0, %v11687_v0, %v6564_v58  ;;  %v6587_v13 = vrot.slane %v6586_v7, 1  ;;  %v6516_v59 = vadd.f32 %v6514_v17, %v6494_v43  ;;  %v6497_v46 = vmul.f32 0.23904572, %v11299_v39 }
0x105b   : > { %v6618_v35 = vsel %vm6616_vm10, %v6615_v42, %v6576_v62  ;;  %v6591_v49 = vrot.slane %v6590_v34, 2  ;;  %v6517_v38 = vmul.f32 %v11147_v33, %v10855_v45  ;;  %v6537_v55 = vmul.f32 %v11276_v30, %v10865_v31 }
0x105c   : > { %v6588_v48 = vadd.f32 %v6587_v13, %v6586_v7  ;;  %v6536_v50 = vadd.f32 %v6534_v25, %v6516_v59  ;;  %v6499_v32 = vadd.f32 %v6497_v46, %v11272_v18  ;;  %v6498_v14 = vmul.f32 0.23904572, %v11311_v10 }
0x105d   : > { %v6592_v41 = vadd.f32 %v6591_v49, %v6590_v34  ;;  %v6518_v19 = vmul.f32 %v11154_v47, %v10859_v28  ;;  %v6538_v39 = vmul.f32 %v11282_v53, %v11674_v37  ;;  %v6620_v33 = vsel %vm6619_vm11, %v6617_v57, %v6582_v52 }
0x105e   : > { %v6595_v5 = vrot.slane %v6536_v50, 4  ;;  %v6519_v2 = vadd.f32 %v6517_v38, %v6499_v32  ;;  %v6500_v45 = vadd.f32 %v6498_v14, %v11292_v3  ;;  %v6621_v30 = vsel %vm6619_vm11, %v6618_v35, %v6588_v48 }
0x105f   : > { %v6593_v31 = vrot.slane %v6592_v41, 1 }
0x1060   : > { %v6596_v26 = vadd.f32 %v6595_v5, %v6536_v50  ;;  %v6539_v18 = vadd.f32 %v6537_v55, %v6519_v2  ;;  %v6520_v29 = vadd.f32 %v6518_v19, %v6500_v45 }
0x1061   : > { %v6594_v10 = vadd.f32 %v6593_v31, %v6592_v41 }
0x1062   : > { %v6597_v4 = vrot.slane %v6596_v26, 2  ;;  %v6601_v6 = vrot.slane %v6539_v18, 4  ;;  %v6540_v28 = vadd.f32 %v6538_v39, %v6520_v29 }
0x1063   : > { %v6623_v47 = vsel %vm6622_vm12, %v6620_v33, %v6594_v10 }
0x1064   : > { %v6598_v53 = vadd.f32 %v6597_v4, %v6596_v26  ;;  %v6602_v37 = vadd.f32 %v6601_v6, %v6539_v18  ;;  %v6607_v8 = vrot.slane %v6540_v28, 4 }
0x1066   : > { %v6599_v61 = vrot.slane %v6598_v53, 1  ;;  %v6603_v3 = vrot.slane %v6602_v37, 2  ;;  %v6608_v23 = vadd.f32 %v6607_v8, %v6540_v28 }
0x1068   : > { %v6600_v16 = vadd.f32 %v6599_v61, %v6598_v53  ;;  %v6604_v9 = vadd.f32 %v6603_v3, %v6602_v37  ;;  %v6609_v51 = vrot.slane %v6608_v23, 2 }
0x106a   : > { %v6605_v21 = vrot.slane %v6604_v9, 1  ;;  %v6610_v54 = vadd.f32 %v6609_v51, %v6608_v23  ;;  %v6624_v27 = vsel %vm6622_vm12, %v6621_v30, %v6600_v16 }
0x106c   : > { %v6606_v15 = vadd.f32 %v6605_v21, %v6604_v9  ;;  %v6611_v56 = vrot.slane %v6610_v54, 1 }
0x106e   : > { %v6612_v1 = vadd.f32 %v6611_v56, %v6610_v54  ;;  %v6626_v60 = vsel %vm6625_vm13, %v6623_v47, %v6606_v15 }
0x106f   : > { %v6629_v40 = vsel %vm6628_vm14, %v6626_v60, 0.0 }
0x1070   : > { %v6627_v22 = vsel %vm6625_vm13, %v6624_v27, %v6612_v1  ;;  %6631 = vst [vmem:[%s334_s16] sm:$0xff] %v6629_v40 }
0x1071   : > { %v6630_v44 = vsel %vm6628_vm14, %v6627_v22, 0.0 }
0x1072   : > { %6632 = vst [vmem:[%s334_s16 + $0x8] sm:$0xff] %v6630_v44 }
0x1073   : > { %7653 = shalt.err (!%p7650_p5)
}
0x1074   : > { %s7654_s29 = scalar_lea.hbm %s11400_s13, 256  ;;  %s7658_s21 = scalar_lea.hbm %s11451_s7, 512 }
0x1075   : > { %p7655_p7 = scmp.ne.s32.totalorder %s11400_s13, %s7654_s29  ;;  %p7659_p12 = scmp.lt.u32.totalorder %s11400_s13, %s11451_s7 }
0x1076   : > { %p7660_p13 = scmp.lt.u32.totalorder %s7658_s21, %s7654_s29  ;;  %p7662_p1 = scmp.lt.u32.totalorder %s7654_s29, %s11400_s13 }
0x1077   : > { %p7656_p10 = pnand %p7655_p7, %p7784_p6 }
0x1078   : > { %p7661_p0 = por %p7660_p13, %p7659_p12 }
0x1079   : > { %p7657_p11 = pneg %p7656_p10 }
0x107a   : > { %p7663_p2 = por %p7662_p1, %p7661_p0 }
0x107c   : > { %p7664_p3 = pnand %p7663_p2, %p7657_p11 }
0x107e   : > { %7667 = shalt.err (!%p7664_p3)
}
0x107f   : > { %7333 = dma.vmem_to_hbm [thread:$0]  (%p7784_p6), %s11402_s23, 256, %s11400_s13, %s6634_s28  }
0x1080 PF: > { %s6660_s8 = sand.u32 1, %s7690_s24   ;;  %p7336_p4 = pnand %p6715_p9, %p7788_p8 }
0x1081   : > { %s6661_s9 = scalar_lea.sflag [#allocation4], %s6660_s8 }
0x1082   : > { %7685 = dma.done.wait (!%p7336_p4), %s6661_s9, 256  }
0x1083   : > { %7687 = vsyncadd (!%p7336_p4), %s6661_s9, 4294967040  ;;  %p17_p5 = scmp.ge.s32.totalorder %s7769_s30, 4   ;;  %s11688_s24 = smov %s7694_s25 }
0x1084   : > { %s11689_s25 = smov %s7698_s26  ;;  %s11690_s26 = smov %s7782_s10 }
0x1085   : > { %s11691_s27 = smov %s7769_s30  ;;  %19 = sbr.rel (!%p17_p5) target bundleno = 3 (0x3), region = 127 }
0x108c   :  { %6666 = vsyncpa [#allocation4], 1 }
0x108d   :  { %6668 = vsyncpa [#allocation4 + $0x1], 1 }

</bundles_post_ra>
